<compile_context>
chip_gen: v7x
topology: tpu7x:2x2x1
jax: 0.10.0
libtpu: 0.0.40
codegen_flags: <defaults>
</compile_context>

<pallas_src>
import functools

import jax
import jax.numpy as jnp
from jax.experimental import pallas as pl
from jax.experimental.pallas import tpu as pltpu

LEAKY = 0.1
KERNEL_SIZE = 5
STRIDE = 3
PERIOD = 2
CHANNELS = [1, 32, 128, 512, 1024, 1024]

_WEIGHT_TILE_BUDGET = 12 << 20  # bytes for the double-buffered bf16 weight tile


# --------------------------------------------------------------------------- kernel
def _mm_bias_act_kernel(p_ref, w_ref, b_ref, o_ref, *, alpha):
    """K-accumulating matmul into the resident f32 output block + fused bias/LeakyReLU.

    grid = (Cout tiles [parallel], K tiles [arbitrary, innermost]).  o_ref's
    index_map is constant along K, so the output block stays resident in VMEM and
    doubles as the accumulator (no scratch, no epilogue copy).
    """
    k = pl.program_id(1)

    @pl.when(k == 0)
    def _():
        o_ref[...] = jnp.zeros_like(o_ref)

    o_ref[...] += jnp.dot(p_ref[...], w_ref[...],
                          preferred_element_type=jnp.float32)

    @pl.when(k == pl.num_programs(1) - 1)
    def _():
        r = o_ref[...] + b_ref[...]
        if alpha is not None:
            r = jnp.where(r >= 0.0, r, alpha * r)
        o_ref[...] = r


def _pick_tn(cout: int) -> int:
    """Cout tile: split 1024-wide layers in two so v7x's 2 TCs stream concurrently."""
    if cout > 512 and cout % 512 == 0:
        return 512
    return cout


def _pick_tk(kdim: int, tn: int, itemsize: int) -> int:
    """Largest reduction tile whose double-buffered weight tile fits the budget."""
    def fits(tk):
        return 2 * tk * tn * itemsize <= _WEIGHT_TILE_BUDGET

    if fits(kdim):
        return kdim
    best = None
    for tk in range(128, kdim, 128):
        if kdim % tk == 0 and fits(tk):
            best = tk
    return best if best is not None else kdim


def matmul_bias_act(patches, w_mat, bias_row, alpha):
    """leaky_relu(patches @ w_mat + bias) on the MXU.

    patches: (M, Kdim) bf16, w_mat: (Kdim, Cout) bf16, bias_row: (1, Cout) f32.
    Returns (M, Cout) f32.
    """
    m, kdim = patches.shape
    cout = w_mat.shape[1]
    tn = _pick_tn(cout)
    tk = _pick_tk(kdim, tn, w_mat.dtype.itemsize)
    nk = kdim // tk
    nt = cout // tn

    # Actual footprint: double-buffered bf16 inputs + resident f32 output + slack.
    vmem_need = (2 * m * tk * patches.dtype.itemsize
                 + 2 * tk * tn * w_mat.dtype.itemsize
                 + 2 * m * tn * 4
                 + 2 * tn * 4
                 + (2 << 20))
    vmem_limit = int(min(max(vmem_need, 16 << 20), 32 << 20))

    kern = functools.partial(_mm_bias_act_kernel, alpha=alpha)
    return pl.pallas_call(
        kern,
        out_shape=jax.ShapeDtypeStruct((m, cout), jnp.float32),
        grid_spec=pltpu.PrefetchScalarGridSpec(
            num_scalar_prefetch=0,
            grid=(nt, nk),
            in_specs=[
                pl.BlockSpec((m, tk), lambda n, k: (0, k)),
                pl.BlockSpec((tk, tn), lambda n, k: (k, n)),
                pl.BlockSpec((1, tn), lambda n, k: (0, n)),
            ],
            out_specs=pl.BlockSpec((m, tn), lambda n, k: (0, n)),
        ),
        compiler_params=pltpu.CompilerParams(
            dimension_semantics=("parallel", "arbitrary"),
            vmem_limit_bytes=vmem_limit,
        ),
    )(patches, w_mat, bias_row)


def matmul_bias_act_ref(patches, w_mat, bias_row, alpha):
    """Pure-JAX reference using the exact same bf16 inputs (for correctness check)."""
    r = jnp.dot(patches.astype(jnp.float32), w_mat.astype(jnp.float32)) + bias_row
    if alpha is not None:
        r = jnp.where(r >= 0.0, r, alpha * r)
    return r


# ----------------------------------------------------------------------------- glue
def _round_up(x, mult):
    return (x + mult - 1) // mult * mult


def conv_kx1(x_nhc, w_mat, bias_row, stride, pad, alpha, matmul_fn=matmul_bias_act):
    """Conv2d kernel (K,1)/stride (S,1)/padding (pad,0), channels-last activations.

    x_nhc: (N, H, Cin) with N = B*period; w_mat: (K*Cin, Cout), rows k-major/cin-minor.
    Returns (N, H_out, Cout) f32 (post-bias, post-activation if alpha given).
    """
    n, h, cin = x_nhc.shape
    kcin, cout = w_mat.shape
    k = kcin // cin

    xp = jnp.pad(x_nhc, ((0, 0), (pad, pad), (0, 0)))
    hp = h + 2 * pad
    h_out = (hp - k) // stride + 1
    idx = jnp.arange(h_out)[:, None] * stride + jnp.arange(k)[None, :]  # (H_out, K)
    patches = xp[:, idx, :]                                # (N, H_out, K, Cin) — no transpose needed
    patches = patches.reshape(n * h_out, k * cin)

    m = n * h_out
    m_pad = max(_round_up(m, 8), 8)                        # keep sublane-friendly rows
    if m_pad != m:
        patches = jnp.pad(patches, ((0, m_pad - m), (0, 0)))

    out = matmul_fn(patches.astype(jnp.bfloat16), w_mat, bias_row, alpha)
    return out[:m].reshape(n, h_out, cout)


def _to_nchw(x_nhc, b, period):
    """(B*period, H, C) channels-last -> NCHW (B, C, H, period) for feature parity."""
    n, h, c = x_nhc.shape
    return jnp.transpose(x_nhc.reshape(b, period, h, c), (0, 3, 2, 1))


def mp_subdisc_forward(x, params, period=PERIOD, leaky=LEAKY,
                       matmul_fn=matmul_bias_act):
    """x: (B, C, T) -> (flattened logits (B, -1), list of NCHW features)."""
    features = []
    b, c, t = x.shape
    if t % period != 0:
        n_pad = period - t % period
        x = jnp.pad(x, ((0, 0), (0, 0), (0, n_pad)), mode="reflect")
        t = t + n_pad
    h = t // period
    # NCHW view (b, c, h, period) -> channels-last with the period axis folded into N.
    x_nhc = jnp.transpose(x.reshape(b, c, h, period), (0, 3, 2, 1)).reshape(
        b * period, h, c)

    pad = (KERNEL_SIZE - 1) // 2
    for w_mat, b_row in params["convs"]:
        x_nhc = conv_kx1(x_nhc, w_mat, b_row, STRIDE, pad, leaky, matmul_fn)
        features.append(_to_nchw(x_nhc, b, period))

    wo, bo = params["out_conv"]
    x_nhc = conv_kx1(x_nhc, wo, bo, stride=1, pad=1, alpha=None, matmul_fn=matmul_fn)
    out_nchw = _to_nchw(x_nhc, b, period)
    features.append(out_nchw)
    return out_nchw.reshape(b, -1), features


# ----------------------------------------------------------------------------- params
def prepare_conv_params(w_oihw, bias):
    """PyTorch-layout Conv2d weight (Cout, Cin, K, 1) -> matmul weight (K*Cin, Cout)
    in bf16 (rows k-major / cin-minor, matching the channels-last patches) plus
    (1, Cout) f32 bias.  Done ONCE at init so no transpose runs per forward.
    weight_norm's forward equals a plain conv with the composed weight g*v/||v||,
    so the composed weight is what gets stored here."""
    cout, cin, k, _ = w_oihw.shape
    w_mat = jnp.transpose(w_oihw[:, :, :, 0], (2, 1, 0)).reshape(k * cin, cout)
    return w_mat.astype(jnp.bfloat16), bias.reshape(1, cout).astype(jnp.float32)


def init_params(key):
    params = {"convs": [], "out_conv": None}
    keys = jax.random.split(key, 2 * (len(CHANNELS) - 1) + 2)
    ki = 0
    for i in range(len(CHANNELS) - 1):
        cin, cout = CHANNELS[i], CHANNELS[i + 1]
        w = 0.02 * jax.random.normal(keys[ki], (cout, cin, KERNEL_SIZE, 1), jnp.float32)
        ki += 1
        bi = 0.01 * jax.random.normal(keys[ki], (cout,), jnp.float32)
        ki += 1
        params["convs"].append(prepare_conv_params(w, bi))
    wo = 0.02 * jax.random.normal(keys[ki], (1, 1024, 3, 1), jnp.float32)
    ki += 1
    bo = 0.01 * jax.random.normal(keys[ki], (1,), jnp.float32)
    params["out_conv"] = prepare_conv_params(wo, bo)
    return params


# ----------------------------------------------------------------------------- main
if __name__ == "__main__":
    key = jax.random.PRNGKey(0)
    pkey, xkey = jax.random.split(key)
    params = init_params(pkey)

    # (B, C, T) with T not divisible by period -> exercises the reflect-pad branch.
    x = jax.random.normal(xkey, (2, 1, 63), jnp.float32)

    forward = jax.jit(mp_subdisc_forward)
    logits, feats = forward(x, params)
    logits = jax.block_until_ready(logits)
    for f in feats:
        jax.block_until_ready(f)

    # Shape parity with PyTorch (B=2, period=2): H goes 32 -> 11 -> 4 -> 2 -> 1 -> 1 -> 1.
    assert logits.shape == (2, 2), logits.shape
    assert [f.shape for f in feats] == [
        (2, 32, 11, 2),
        (2, 128, 4, 2),
        (2, 512, 2, 2),
        (2, 1024, 1, 2),
        (2, 1024, 1, 2),
        (2, 1, 1, 2),
    ], [f.shape for f in feats]

    # Numerical parity vs a pure-JAX reference that uses the exact same bf16
    # weights/patches (remaining difference is accumulation order only).
    ref_logits, _ = mp_subdisc_forward(x, params, matmul_fn=matmul_bias_act_ref)
    max_err = float(jnp.max(jnp.abs(logits - ref_logits)))
    assert max_err < 1e-3, max_err

    print("KERNEL_OK")
</pallas_src>

<mosaic_0001>
module attributes {stable_mosaic.version = 11 : i64} {
  func.func @_mm_bias_act_kernel(%arg0: i32, %arg1: i32, %arg2: memref<48x5xbf16, #tpu.memory_space<vmem>>, %arg3: memref<5x32xbf16, #tpu.memory_space<vmem>>, %arg4: memref<1x32xf32, #tpu.memory_space<vmem>>, %arg5: memref<48x32xf32, #tpu.memory_space<vmem>>) attributes {dimension_semantics = [#tpu.dimension_semantics<parallel>, #tpu.dimension_semantics<arbitrary>], iteration_bounds = array<i64: 1, 1>, scalar_prefetch = 0 : i64, scratch_operands = 0 : i64, tpu.core_type = #tpu.core_type<tc>, window_params = [{transform_indices = @transform_0, window_bounds = array<i64: 48, 5>}, {transform_indices = @transform_1, window_bounds = array<i64: 5, 32>}, {transform_indices = @transform_2, window_bounds = array<i64: 1, 32>}, {transform_indices = @transform_3, window_bounds = array<i64: 48, 32>}]} {
    %c0_i32 = arith.constant 0 : i32
    %0 = arith.cmpi eq, %arg1, %c0_i32 : i32
    %1 = arith.extui %0 : i1 to i32
    %c0_i32_0 = arith.constant 0 : i32
    %2 = arith.cmpi ne, %1, %c0_i32_0 : i32
    scf.if %2 {
      %cst_10 = arith.constant 0.000000e+00 : f32
      %12 = vector.broadcast %cst_10 : f32 to vector<48x32xf32>
      %c0_11 = arith.constant 0 : index
      %c0_12 = arith.constant 0 : index
      %13 = vector.load %arg5[%c0_11, %c0_12] : memref<48x32xf32, #tpu.memory_space<vmem>>, vector<48x32xf32>
      tpu.vector_store %arg5[%c0_11, %c0_12], %12 {strides = array<i32>} : memref<48x32xf32, #tpu.memory_space<vmem>>, vector<48x32xf32>,
    } else {
    }
    %c0 = arith.constant 0 : index
    %c0_1 = arith.constant 0 : index
    %3 = vector.load %arg5[%c0, %c0_1] : memref<48x32xf32, #tpu.memory_space<vmem>>, vector<48x32xf32>
    %c0_2 = arith.constant 0 : index
    %c0_3 = arith.constant 0 : index
    %4 = vector.load %arg2[%c0_2, %c0_3] : memref<48x5xbf16, #tpu.memory_space<vmem>>, vector<48x5xbf16>
    %c0_4 = arith.constant 0 : index
    %c0_5 = arith.constant 0 : index
    %5 = vector.load %arg3[%c0_4, %c0_5] : memref<5x32xbf16, #tpu.memory_space<vmem>>, vector<5x32xbf16>
    %cst = arith.constant dense<0.000000e+00> : vector<48x32xf32>
    %6 = tpu.matmul %4, %5, %cst {dimension_numbers = #tpu.dot_dimension_numbers<[1], [0], [0], [1], [0, 0, 1, 1], [], []>} : vector<48x5xbf16>, vector<5x32xbf16>, vector<48x32xf32> -> vector<48x32xf32>
    %7 = arith.addf %3, %6 : vector<48x32xf32>
    %c0_6 = arith.constant 0 : index
    %c0_7 = arith.constant 0 : index
    %8 = vector.load %arg5[%c0_6, %c0_7] : memref<48x32xf32, #tpu.memory_space<vmem>>, vector<48x32xf32>
    tpu.vector_store %arg5[%c0_6, %c0_7], %7 {strides = array<i32>} : memref<48x32xf32, #tpu.memory_space<vmem>>, vector<48x32xf32>,
    %c0_i32_8 = arith.constant 0 : i32
    %9 = arith.cmpi eq, %arg1, %c0_i32_8 : i32
    %10 = arith.extui %9 : i1 to i32
    %c0_i32_9 = arith.constant 0 : i32
    %11 = arith.cmpi ne, %10, %c0_i32_9 : i32
    scf.if %11 {
      %c0_10 = arith.constant 0 : index
      %c0_11 = arith.constant 0 : index
      %12 = vector.load %arg5[%c0_10, %c0_11] : memref<48x32xf32, #tpu.memory_space<vmem>>, vector<48x32xf32>
      %c0_12 = arith.constant 0 : index
      %c0_13 = arith.constant 0 : index
      %13 = vector.load %arg4[%c0_12, %c0_13] : memref<1x32xf32, #tpu.memory_space<vmem>>, vector<1x32xf32>
      %14 = vector.broadcast %13 : vector<1x32xf32> to vector<48x32xf32>
      %15 = arith.addf %12, %14 : vector<48x32xf32>
      %cst_14 = arith.constant 0.000000e+00 : f32
      %16 = vector.broadcast %cst_14 : f32 to vector<48x32xf32>
      %17 = arith.cmpf oge, %15, %16 : vector<48x32xf32>
      %cst_15 = arith.constant 1.000000e-01 : f32
      %18 = vector.broadcast %cst_15 : f32 to vector<48x32xf32>
      %19 = arith.mulf %18, %15 : vector<48x32xf32>
      %20 = arith.select %17, %15, %19 : vector<48x32xi1>, vector<48x32xf32>
      %c0_16 = arith.constant 0 : index
      %c0_17 = arith.constant 0 : index
      %21 = vector.load %arg5[%c0_16, %c0_17] : memref<48x32xf32, #tpu.memory_space<vmem>>, vector<48x32xf32>
      tpu.vector_store %arg5[%c0_16, %c0_17], %20 {strides = array<i32>} : memref<48x32xf32, #tpu.memory_space<vmem>>, vector<48x32xf32>,
    } else {
    }
    return
  }
  func.func @transform_0(%arg0: i32, %arg1: i32) -> (i32, i32) {
    %c0_i32 = arith.constant 0 : i32
    %c0_i32_0 = arith.constant 0 : i32
    return %c0_i32, %arg1 : i32, i32
  }
  func.func @transform_1(%arg0: i32, %arg1: i32) -> (i32, i32) {
    %c0_i32 = arith.constant 0 : i32
    return %arg1, %arg0 : i32, i32
  }
  func.func @transform_2(%arg0: i32, %arg1: i32) -> (i32, i32) {
    %c0_i32 = arith.constant 0 : i32
    %c0_i32_0 = arith.constant 0 : i32
    return %c0_i32, %arg0 : i32, i32
  }
  func.func @transform_3(%arg0: i32, %arg1: i32) -> (i32, i32) {
    %c0_i32 = arith.constant 0 : i32
    %c0_i32_0 = arith.constant 0 : i32
    return %c0_i32, %arg0 : i32, i32
  }
}

module attributes {stable_mosaic.version = 11 : i64} {
  func.func @_mm_bias_act_kernel(%arg0: i32, %arg1: i32, %arg2: memref<16x160xbf16, #tpu.memory_space<vmem>>, %arg3: memref<160x128xbf16, #tpu.memory_space<vmem>>, %arg4: memref<1x128xf32, #tpu.memory_space<vmem>>, %arg5: memref<16x128xf32, #tpu.memory_space<vmem>>) attributes {dimension_semantics = [#tpu.dimension_semantics<parallel>, #tpu.dimension_semantics<arbitrary>], iteration_bounds = array<i64: 1, 1>, scalar_prefetch = 0 : i64, scratch_operands = 0 : i64, tpu.core_type = #tpu.core_type<tc>, window_params = [{transform_indices = @transform_0, window_bounds = array<i64: 16, 160>}, {transform_indices = @transform_1, window_bounds = array<i64: 160, 128>}, {transform_indices = @transform_2, window_bounds = array<i64: 1, 128>}, {transform_indices = @transform_3, window_bounds = array<i64: 16, 128>}]} {
    %c0_i32 = arith.constant 0 : i32
    %0 = arith.cmpi eq, %arg1, %c0_i32 : i32
    %1 = arith.extui %0 : i1 to i32
    %c0_i32_0 = arith.constant 0 : i32
    %2 = arith.cmpi ne, %1, %c0_i32_0 : i32
    scf.if %2 {
      %cst_10 = arith.constant 0.000000e+00 : f32
      %12 = vector.broadcast %cst_10 : f32 to vector<16x128xf32>
      %c0_11 = arith.constant 0 : index
      %c0_12 = arith.constant 0 : index
      %13 = vector.load %arg5[%c0_11, %c0_12] : memref<16x128xf32, #tpu.memory_space<vmem>>, vector<16x128xf32>
      tpu.vector_store %arg5[%c0_11, %c0_12], %12 {strides = array<i32>} : memref<16x128xf32, #tpu.memory_space<vmem>>, vector<16x128xf32>,
    } else {
    }
    %c0 = arith.constant 0 : index
    %c0_1 = arith.constant 0 : index
    %3 = vector.load %arg5[%c0, %c0_1] : memref<16x128xf32, #tpu.memory_space<vmem>>, vector<16x128xf32>
    %c0_2 = arith.constant 0 : index
    %c0_3 = arith.constant 0 : index
    %4 = vector.load %arg2[%c0_2, %c0_3] : memref<16x160xbf16, #tpu.memory_space<vmem>>, vector<16x160xbf16>
    %c0_4 = arith.constant 0 : index
    %c0_5 = arith.constant 0 : index
    %5 = vector.load %arg3[%c0_4, %c0_5] : memref<160x128xbf16, #tpu.memory_space<vmem>>, vector<160x128xbf16>
    %cst = arith.constant dense<0.000000e+00> : vector<16x128xf32>
    %6 = tpu.matmul %4, %5, %cst {dimension_numbers = #tpu.dot_dimension_numbers<[1], [0], [0], [1], [0, 0, 1, 1], [], []>} : vector<16x160xbf16>, vector<160x128xbf16>, vector<16x128xf32> -> vector<16x128xf32>
    %7 = arith.addf %3, %6 : vector<16x128xf32>
    %c0_6 = arith.constant 0 : index
    %c0_7 = arith.constant 0 : index
    %8 = vector.load %arg5[%c0_6, %c0_7] : memref<16x128xf32, #tpu.memory_space<vmem>>, vector<16x128xf32>
    tpu.vector_store %arg5[%c0_6, %c0_7], %7 {strides = array<i32>} : memref<16x128xf32, #tpu.memory_space<vmem>>, vector<16x128xf32>,
    %c0_i32_8 = arith.constant 0 : i32
    %9 = arith.cmpi eq, %arg1, %c0_i32_8 : i32
    %10 = arith.extui %9 : i1 to i32
    %c0_i32_9 = arith.constant 0 : i32
    %11 = arith.cmpi ne, %10, %c0_i32_9 : i32
    scf.if %11 {
      %c0_10 = arith.constant 0 : index
      %c0_11 = arith.constant 0 : index
      %12 = vector.load %arg5[%c0_10, %c0_11] : memref<16x128xf32, #tpu.memory_space<vmem>>, vector<16x128xf32>
      %c0_12 = arith.constant 0 : index
      %c0_13 = arith.constant 0 : index
      %13 = vector.load %arg4[%c0_12, %c0_13] : memref<1x128xf32, #tpu.memory_space<vmem>>, vector<1x128xf32>
      %14 = vector.broadcast %13 : vector<1x128xf32> to vector<16x128xf32>
      %15 = arith.addf %12, %14 : vector<16x128xf32>
      %cst_14 = arith.constant 0.000000e+00 : f32
      %16 = vector.broadcast %cst_14 : f32 to vector<16x128xf32>
      %17 = arith.cmpf oge, %15, %16 : vector<16x128xf32>
      %cst_15 = arith.constant 1.000000e-01 : f32
      %18 = vector.broadcast %cst_15 : f32 to vector<16x128xf32>
      %19 = arith.mulf %18, %15 : vector<16x128xf32>
      %20 = arith.select %17, %15, %19 : vector<16x128xi1>, vector<16x128xf32>
      %c0_16 = arith.constant 0 : index
      %c0_17 = arith.constant 0 : index
      %21 = vector.load %arg5[%c0_16, %c0_17] : memref<16x128xf32, #tpu.memory_space<vmem>>, vector<16x128xf32>
      tpu.vector_store %arg5[%c0_16, %c0_17], %20 {strides = array<i32>} : memref<16x128xf32, #tpu.memory_space<vmem>>, vector<16x128xf32>,
    } else {
    }
    return
  }
  func.func @transform_0(%arg0: i32, %arg1: i32) -> (i32, i32) {
    %c0_i32 = arith.constant 0 : i32
    %c0_i32_0 = arith.constant 0 : i32
    return %c0_i32, %arg1 : i32, i32
  }
  func.func @transform_1(%arg0: i32, %arg1: i32) -> (i32, i32) {
    %c0_i32 = arith.constant 0 : i32
    return %arg1, %arg0 : i32, i32
  }
  func.func @transform_2(%arg0: i32, %arg1: i32) -> (i32, i32) {
    %c0_i32 = arith.constant 0 : i32
    %c0_i32_0 = arith.constant 0 : i32
    return %c0_i32, %arg0 : i32, i32
  }
  func.func @transform_3(%arg0: i32, %arg1: i32) -> (i32, i32) {
    %c0_i32 = arith.constant 0 : i32
    %c0_i32_0 = arith.constant 0 : i32
    return %c0_i32, %arg0 : i32, i32
  }
}

module attributes {stable_mosaic.version = 11 : i64} {
  func.func @_mm_bias_act_kernel(%arg0: i32, %arg1: i32, %arg2: memref<8x640xbf16, #tpu.memory_space<vmem>>, %arg3: memref<640x512xbf16, #tpu.memory_space<vmem>>, %arg4: memref<1x512xf32, #tpu.memory_space<vmem>>, %arg5: memref<8x512xf32, #tpu.memory_space<vmem>>) attributes {dimension_semantics = [#tpu.dimension_semantics<parallel>, #tpu.dimension_semantics<arbitrary>], iteration_bounds = array<i64: 1, 1>, scalar_prefetch = 0 : i64, scratch_operands = 0 : i64, tpu.core_type = #tpu.core_type<tc>, window_params = [{transform_indices = @transform_0, window_bounds = array<i64: 8, 640>}, {transform_indices = @transform_1, window_bounds = array<i64: 640, 512>}, {transform_indices = @transform_2, window_bounds = array<i64: 1, 512>}, {transform_indices = @transform_3, window_bounds = array<i64: 8, 512>}]} {
    %c0_i32 = arith.constant 0 : i32
    %0 = arith.cmpi eq, %arg1, %c0_i32 : i32
    %1 = arith.extui %0 : i1 to i32
    %c0_i32_0 = arith.constant 0 : i32
    %2 = arith.cmpi ne, %1, %c0_i32_0 : i32
    scf.if %2 {
      %cst_10 = arith.constant 0.000000e+00 : f32
      %12 = vector.broadcast %cst_10 : f32 to vector<8x512xf32>
      %c0_11 = arith.constant 0 : index
      %c0_12 = arith.constant 0 : index
      %13 = vector.load %arg5[%c0_11, %c0_12] : memref<8x512xf32, #tpu.memory_space<vmem>>, vector<8x512xf32>
      tpu.vector_store %arg5[%c0_11, %c0_12], %12 {strides = array<i32>} : memref<8x512xf32, #tpu.memory_space<vmem>>, vector<8x512xf32>,
    } else {
    }
    %c0 = arith.constant 0 : index
    %c0_1 = arith.constant 0 : index
    %3 = vector.load %arg5[%c0, %c0_1] : memref<8x512xf32, #tpu.memory_space<vmem>>, vector<8x512xf32>
    %c0_2 = arith.constant 0 : index
    %c0_3 = arith.constant 0 : index
    %4 = vector.load %arg2[%c0_2, %c0_3] : memref<8x640xbf16, #tpu.memory_space<vmem>>, vector<8x640xbf16>
    %c0_4 = arith.constant 0 : index
    %c0_5 = arith.constant 0 : index
    %5 = vector.load %arg3[%c0_4, %c0_5] : memref<640x512xbf16, #tpu.memory_space<vmem>>, vector<640x512xbf16>
    %cst = arith.constant dense<0.000000e+00> : vector<8x512xf32>
    %6 = tpu.matmul %4, %5, %cst {dimension_numbers = #tpu.dot_dimension_numbers<[1], [0], [0], [1], [0, 0, 1, 1], [], []>} : vector<8x640xbf16>, vector<640x512xbf16>, vector<8x512xf32> -> vector<8x512xf32>
    %7 = arith.addf %3, %6 : vector<8x512xf32>
    %c0_6 = arith.constant 0 : index
    %c0_7 = arith.constant 0 : index
    %8 = vector.load %arg5[%c0_6, %c0_7] : memref<8x512xf32, #tpu.memory_space<vmem>>, vector<8x512xf32>
    tpu.vector_store %arg5[%c0_6, %c0_7], %7 {strides = array<i32>} : memref<8x512xf32, #tpu.memory_space<vmem>>, vector<8x512xf32>,
    %c0_i32_8 = arith.constant 0 : i32
    %9 = arith.cmpi eq, %arg1, %c0_i32_8 : i32
    %10 = arith.extui %9 : i1 to i32
    %c0_i32_9 = arith.constant 0 : i32
    %11 = arith.cmpi ne, %10, %c0_i32_9 : i32
    scf.if %11 {
      %c0_10 = arith.constant 0 : index
      %c0_11 = arith.constant 0 : index
      %12 = vector.load %arg5[%c0_10, %c0_11] : memref<8x512xf32, #tpu.memory_space<vmem>>, vector<8x512xf32>
      %c0_12 = arith.constant 0 : index
      %c0_13 = arith.constant 0 : index
      %13 = vector.load %arg4[%c0_12, %c0_13] : memref<1x512xf32, #tpu.memory_space<vmem>>, vector<1x512xf32>
      %14 = vector.broadcast %13 : vector<1x512xf32> to vector<8x512xf32>
      %15 = arith.addf %12, %14 : vector<8x512xf32>
      %cst_14 = arith.constant 0.000000e+00 : f32
      %16 = vector.broadcast %cst_14 : f32 to vector<8x512xf32>
      %17 = arith.cmpf oge, %15, %16 : vector<8x512xf32>
      %cst_15 = arith.constant 1.000000e-01 : f32
      %18 = vector.broadcast %cst_15 : f32 to vector<8x512xf32>
      %19 = arith.mulf %18, %15 : vector<8x512xf32>
      %20 = arith.select %17, %15, %19 : vector<8x512xi1>, vector<8x512xf32>
      %c0_16 = arith.constant 0 : index
      %c0_17 = arith.constant 0 : index
      %21 = vector.load %arg5[%c0_16, %c0_17] : memref<8x512xf32, #tpu.memory_space<vmem>>, vector<8x512xf32>
      tpu.vector_store %arg5[%c0_16, %c0_17], %20 {strides = array<i32>} : memref<8x512xf32, #tpu.memory_space<vmem>>, vector<8x512xf32>,
    } else {
    }
    return
  }
  func.func @transform_0(%arg0: i32, %arg1: i32) -> (i32, i32) {
    %c0_i32 = arith.constant 0 : i32
    %c0_i32_0 = arith.constant 0 : i32
    return %c0_i32, %arg1 : i32, i32
  }
  func.func @transform_1(%arg0: i32, %arg1: i32) -> (i32, i32) {
    %c0_i32 = arith.constant 0 : i32
    return %arg1, %arg0 : i32, i32
  }
  func.func @transform_2(%arg0: i32, %arg1: i32) -> (i32, i32) {
    %c0_i32 = arith.constant 0 : i32
    %c0_i32_0 = arith.constant 0 : i32
    return %c0_i32, %arg0 : i32, i32
  }
  func.func @transform_3(%arg0: i32, %arg1: i32) -> (i32, i32) {
    %c0_i32 = arith.constant 0 : i32
    %c0_i32_0 = arith.constant 0 : i32
    return %c0_i32, %arg0 : i32, i32
  }
}

module attributes {stable_mosaic.version = 11 : i64} {
  func.func @_mm_bias_act_kernel(%arg0: i32, %arg1: i32, %arg2: memref<8x2560xbf16, #tpu.memory_space<vmem>>, %arg3: memref<2560x512xbf16, #tpu.memory_space<vmem>>, %arg4: memref<1x512xf32, #tpu.memory_space<vmem>>, %arg5: memref<8x512xf32, #tpu.memory_space<vmem>>) attributes {dimension_semantics = [#tpu.dimension_semantics<parallel>, #tpu.dimension_semantics<arbitrary>], iteration_bounds = array<i64: 2, 1>, scalar_prefetch = 0 : i64, scratch_operands = 0 : i64, tpu.core_type = #tpu.core_type<tc>, window_params = [{transform_indices = @transform_0, window_bounds = array<i64: 8, 2560>}, {transform_indices = @transform_1, window_bounds = array<i64: 2560, 512>}, {transform_indices = @transform_2, window_bounds = array<i64: 1, 512>}, {transform_indices = @transform_3, window_bounds = array<i64: 8, 512>}]} {
    %c0_i32 = arith.constant 0 : i32
    %0 = arith.cmpi eq, %arg1, %c0_i32 : i32
    %1 = arith.extui %0 : i1 to i32
    %c0_i32_0 = arith.constant 0 : i32
    %2 = arith.cmpi ne, %1, %c0_i32_0 : i32
    scf.if %2 {
      %cst_10 = arith.constant 0.000000e+00 : f32
      %12 = vector.broadcast %cst_10 : f32 to vector<8x512xf32>
      %c0_11 = arith.constant 0 : index
      %c0_12 = arith.constant 0 : index
      %13 = vector.load %arg5[%c0_11, %c0_12] : memref<8x512xf32, #tpu.memory_space<vmem>>, vector<8x512xf32>
      tpu.vector_store %arg5[%c0_11, %c0_12], %12 {strides = array<i32>} : memref<8x512xf32, #tpu.memory_space<vmem>>, vector<8x512xf32>,
    } else {
    }
    %c0 = arith.constant 0 : index
    %c0_1 = arith.constant 0 : index
    %3 = vector.load %arg5[%c0, %c0_1] : memref<8x512xf32, #tpu.memory_space<vmem>>, vector<8x512xf32>
    %c0_2 = arith.constant 0 : index
    %c0_3 = arith.constant 0 : index
    %4 = vector.load %arg2[%c0_2, %c0_3] : memref<8x2560xbf16, #tpu.memory_space<vmem>>, vector<8x2560xbf16>
    %c0_4 = arith.constant 0 : index
    %c0_5 = arith.constant 0 : index
    %5 = vector.load %arg3[%c0_4, %c0_5] : memref<2560x512xbf16, #tpu.memory_space<vmem>>, vector<2560x512xbf16>
    %cst = arith.constant dense<0.000000e+00> : vector<8x512xf32>
    %6 = tpu.matmul %4, %5, %cst {dimension_numbers = #tpu.dot_dimension_numbers<[1], [0], [0], [1], [0, 0, 1, 1], [], []>} : vector<8x2560xbf16>, vector<2560x512xbf16>, vector<8x512xf32> -> vector<8x512xf32>
    %7 = arith.addf %3, %6 : vector<8x512xf32>
    %c0_6 = arith.constant 0 : index
    %c0_7 = arith.constant 0 : index
    %8 = vector.load %arg5[%c0_6, %c0_7] : memref<8x512xf32, #tpu.memory_space<vmem>>, vector<8x512xf32>
    tpu.vector_store %arg5[%c0_6, %c0_7], %7 {strides = array<i32>} : memref<8x512xf32, #tpu.memory_space<vmem>>, vector<8x512xf32>,
    %c0_i32_8 = arith.constant 0 : i32
    %9 = arith.cmpi eq, %arg1, %c0_i32_8 : i32
    %10 = arith.extui %9 : i1 to i32
    %c0_i32_9 = arith.constant 0 : i32
    %11 = arith.cmpi ne, %10, %c0_i32_9 : i32
    scf.if %11 {
      %c0_10 = arith.constant 0 : index
      %c0_11 = arith.constant 0 : index
      %12 = vector.load %arg5[%c0_10, %c0_11] : memref<8x512xf32, #tpu.memory_space<vmem>>, vector<8x512xf32>
      %c0_12 = arith.constant 0 : index
      %c0_13 = arith.constant 0 : index
      %13 = vector.load %arg4[%c0_12, %c0_13] : memref<1x512xf32, #tpu.memory_space<vmem>>, vector<1x512xf32>
      %14 = vector.broadcast %13 : vector<1x512xf32> to vector<8x512xf32>
      %15 = arith.addf %12, %14 : vector<8x512xf32>
      %cst_14 = arith.constant 0.000000e+00 : f32
      %16 = vector.broadcast %cst_14 : f32 to vector<8x512xf32>
      %17 = arith.cmpf oge, %15, %16 : vector<8x512xf32>
      %cst_15 = arith.constant 1.000000e-01 : f32
      %18 = vector.broadcast %cst_15 : f32 to vector<8x512xf32>
      %19 = arith.mulf %18, %15 : vector<8x512xf32>
      %20 = arith.select %17, %15, %19 : vector<8x512xi1>, vector<8x512xf32>
      %c0_16 = arith.constant 0 : index
      %c0_17 = arith.constant 0 : index
      %21 = vector.load %arg5[%c0_16, %c0_17] : memref<8x512xf32, #tpu.memory_space<vmem>>, vector<8x512xf32>
      tpu.vector_store %arg5[%c0_16, %c0_17], %20 {strides = array<i32>} : memref<8x512xf32, #tpu.memory_space<vmem>>, vector<8x512xf32>,
    } else {
    }
    return
  }
  func.func @transform_0(%arg0: i32, %arg1: i32) -> (i32, i32) {
    %c0_i32 = arith.constant 0 : i32
    %c0_i32_0 = arith.constant 0 : i32
    return %c0_i32, %arg1 : i32, i32
  }
  func.func @transform_1(%arg0: i32, %arg1: i32) -> (i32, i32) {
    %c0_i32 = arith.constant 0 : i32
    return %arg1, %arg0 : i32, i32
  }
  func.func @transform_2(%arg0: i32, %arg1: i32) -> (i32, i32) {
    %c0_i32 = arith.constant 0 : i32
    %c0_i32_0 = arith.constant 0 : i32
    return %c0_i32, %arg0 : i32, i32
  }
  func.func @transform_3(%arg0: i32, %arg1: i32) -> (i32, i32) {
    %c0_i32 = arith.constant 0 : i32
    %c0_i32_0 = arith.constant 0 : i32
    return %c0_i32, %arg0 : i32, i32
  }
}

module attributes {stable_mosaic.version = 11 : i64} {
  func.func @_mm_bias_act_kernel(%arg0: i32, %arg1: i32, %arg2: memref<8x5120xbf16, #tpu.memory_space<vmem>>, %arg3: memref<5120x512xbf16, #tpu.memory_space<vmem>>, %arg4: memref<1x512xf32, #tpu.memory_space<vmem>>, %arg5: memref<8x512xf32, #tpu.memory_space<vmem>>) attributes {dimension_semantics = [#tpu.dimension_semantics<parallel>, #tpu.dimension_semantics<arbitrary>], iteration_bounds = array<i64: 2, 1>, scalar_prefetch = 0 : i64, scratch_operands = 0 : i64, tpu.core_type = #tpu.core_type<tc>, window_params = [{transform_indices = @transform_0, window_bounds = array<i64: 8, 5120>}, {transform_indices = @transform_1, window_bounds = array<i64: 5120, 512>}, {transform_indices = @transform_2, window_bounds = array<i64: 1, 512>}, {transform_indices = @transform_3, window_bounds = array<i64: 8, 512>}]} {
    %c0_i32 = arith.constant 0 : i32
    %0 = arith.cmpi eq, %arg1, %c0_i32 : i32
    %1 = arith.extui %0 : i1 to i32
    %c0_i32_0 = arith.constant 0 : i32
    %2 = arith.cmpi ne, %1, %c0_i32_0 : i32
    scf.if %2 {
      %cst_10 = arith.constant 0.000000e+00 : f32
      %12 = vector.broadcast %cst_10 : f32 to vector<8x512xf32>
      %c0_11 = arith.constant 0 : index
      %c0_12 = arith.constant 0 : index
      %13 = vector.load %arg5[%c0_11, %c0_12] : memref<8x512xf32, #tpu.memory_space<vmem>>, vector<8x512xf32>
      tpu.vector_store %arg5[%c0_11, %c0_12], %12 {strides = array<i32>} : memref<8x512xf32, #tpu.memory_space<vmem>>, vector<8x512xf32>,
    } else {
    }
    %c0 = arith.constant 0 : index
    %c0_1 = arith.constant 0 : index
    %3 = vector.load %arg5[%c0, %c0_1] : memref<8x512xf32, #tpu.memory_space<vmem>>, vector<8x512xf32>
    %c0_2 = arith.constant 0 : index
    %c0_3 = arith.constant 0 : index
    %4 = vector.load %arg2[%c0_2, %c0_3] : memref<8x5120xbf16, #tpu.memory_space<vmem>>, vector<8x5120xbf16>
    %c0_4 = arith.constant 0 : index
    %c0_5 = arith.constant 0 : index
    %5 = vector.load %arg3[%c0_4, %c0_5] : memref<5120x512xbf16, #tpu.memory_space<vmem>>, vector<5120x512xbf16>
    %cst = arith.constant dense<0.000000e+00> : vector<8x512xf32>
    %6 = tpu.matmul %4, %5, %cst {dimension_numbers = #tpu.dot_dimension_numbers<[1], [0], [0], [1], [0, 0, 1, 1], [], []>} : vector<8x5120xbf16>, vector<5120x512xbf16>, vector<8x512xf32> -> vector<8x512xf32>
    %7 = arith.addf %3, %6 : vector<8x512xf32>
    %c0_6 = arith.constant 0 : index
    %c0_7 = arith.constant 0 : index
    %8 = vector.load %arg5[%c0_6, %c0_7] : memref<8x512xf32, #tpu.memory_space<vmem>>, vector<8x512xf32>
    tpu.vector_store %arg5[%c0_6, %c0_7], %7 {strides = array<i32>} : memref<8x512xf32, #tpu.memory_space<vmem>>, vector<8x512xf32>,
    %c0_i32_8 = arith.constant 0 : i32
    %9 = arith.cmpi eq, %arg1, %c0_i32_8 : i32
    %10 = arith.extui %9 : i1 to i32
    %c0_i32_9 = arith.constant 0 : i32
    %11 = arith.cmpi ne, %10, %c0_i32_9 : i32
    scf.if %11 {
      %c0_10 = arith.constant 0 : index
      %c0_11 = arith.constant 0 : index
      %12 = vector.load %arg5[%c0_10, %c0_11] : memref<8x512xf32, #tpu.memory_space<vmem>>, vector<8x512xf32>
      %c0_12 = arith.constant 0 : index
      %c0_13 = arith.constant 0 : index
      %13 = vector.load %arg4[%c0_12, %c0_13] : memref<1x512xf32, #tpu.memory_space<vmem>>, vector<1x512xf32>
      %14 = vector.broadcast %13 : vector<1x512xf32> to vector<8x512xf32>
      %15 = arith.addf %12, %14 : vector<8x512xf32>
      %cst_14 = arith.constant 0.000000e+00 : f32
      %16 = vector.broadcast %cst_14 : f32 to vector<8x512xf32>
      %17 = arith.cmpf oge, %15, %16 : vector<8x512xf32>
      %cst_15 = arith.constant 1.000000e-01 : f32
      %18 = vector.broadcast %cst_15 : f32 to vector<8x512xf32>
      %19 = arith.mulf %18, %15 : vector<8x512xf32>
      %20 = arith.select %17, %15, %19 : vector<8x512xi1>, vector<8x512xf32>
      %c0_16 = arith.constant 0 : index
      %c0_17 = arith.constant 0 : index
      %21 = vector.load %arg5[%c0_16, %c0_17] : memref<8x512xf32, #tpu.memory_space<vmem>>, vector<8x512xf32>
      tpu.vector_store %arg5[%c0_16, %c0_17], %20 {strides = array<i32>} : memref<8x512xf32, #tpu.memory_space<vmem>>, vector<8x512xf32>,
    } else {
    }
    return
  }
  func.func @transform_0(%arg0: i32, %arg1: i32) -> (i32, i32) {
    %c0_i32 = arith.constant 0 : i32
    %c0_i32_0 = arith.constant 0 : i32
    return %c0_i32, %arg1 : i32, i32
  }
  func.func @transform_1(%arg0: i32, %arg1: i32) -> (i32, i32) {
    %c0_i32 = arith.constant 0 : i32
    return %arg1, %arg0 : i32, i32
  }
  func.func @transform_2(%arg0: i32, %arg1: i32) -> (i32, i32) {
    %c0_i32 = arith.constant 0 : i32
    %c0_i32_0 = arith.constant 0 : i32
    return %c0_i32, %arg0 : i32, i32
  }
  func.func @transform_3(%arg0: i32, %arg1: i32) -> (i32, i32) {
    %c0_i32 = arith.constant 0 : i32
    %c0_i32_0 = arith.constant 0 : i32
    return %c0_i32, %arg0 : i32, i32
  }
}

module attributes {stable_mosaic.version = 11 : i64} {
  func.func @_mm_bias_act_kernel(%arg0: i32, %arg1: i32, %arg2: memref<8x3072xbf16, #tpu.memory_space<vmem>>, %arg3: memref<3072x1xbf16, #tpu.memory_space<vmem>>, %arg4: memref<1x1xf32, #tpu.memory_space<vmem>>, %arg5: memref<8x1xf32, #tpu.memory_space<vmem>>) attributes {dimension_semantics = [#tpu.dimension_semantics<parallel>, #tpu.dimension_semantics<arbitrary>], iteration_bounds = array<i64: 1, 1>, scalar_prefetch = 0 : i64, scratch_operands = 0 : i64, tpu.core_type = #tpu.core_type<tc>, window_params = [{transform_indices = @transform_0, window_bounds = array<i64: 8, 3072>}, {transform_indices = @transform_1, window_bounds = array<i64: 3072, 1>}, {transform_indices = @transform_2, window_bounds = array<i64: 1, 1>}, {transform_indices = @transform_3, window_bounds = array<i64: 8, 1>}]} {
    %c0_i32 = arith.constant 0 : i32
    %0 = arith.cmpi eq, %arg1, %c0_i32 : i32
    %1 = arith.extui %0 : i1 to i32
    %c0_i32_0 = arith.constant 0 : i32
    %2 = arith.cmpi ne, %1, %c0_i32_0 : i32
    scf.if %2 {
      %cst_10 = arith.constant 0.000000e+00 : f32
      %12 = vector.broadcast %cst_10 : f32 to vector<8x1xf32>
      %c0_11 = arith.constant 0 : index
      %c0_12 = arith.constant 0 : index
      %13 = vector.load %arg5[%c0_11, %c0_12] : memref<8x1xf32, #tpu.memory_space<vmem>>, vector<8x1xf32>
      tpu.vector_store %arg5[%c0_11, %c0_12], %12 {strides = array<i32>} : memref<8x1xf32, #tpu.memory_space<vmem>>, vector<8x1xf32>,
    } else {
    }
    %c0 = arith.constant 0 : index
    %c0_1 = arith.constant 0 : index
    %3 = vector.load %arg5[%c0, %c0_1] : memref<8x1xf32, #tpu.memory_space<vmem>>, vector<8x1xf32>
    %c0_2 = arith.constant 0 : index
    %c0_3 = arith.constant 0 : index
    %4 = vector.load %arg2[%c0_2, %c0_3] : memref<8x3072xbf16, #tpu.memory_space<vmem>>, vector<8x3072xbf16>
    %c0_4 = arith.constant 0 : index
    %c0_5 = arith.constant 0 : index
    %5 = vector.load %arg3[%c0_4, %c0_5] : memref<3072x1xbf16, #tpu.memory_space<vmem>>, vector<3072x1xbf16>
    %cst = arith.constant dense<0.000000e+00> : vector<8x1xf32>
    %6 = tpu.matmul %4, %5, %cst {dimension_numbers = #tpu.dot_dimension_numbers<[1], [0], [0], [1], [0, 0, 1, 1], [], []>} : vector<8x3072xbf16>, vector<3072x1xbf16>, vector<8x1xf32> -> vector<8x1xf32>
    %7 = arith.addf %3, %6 : vector<8x1xf32>
    %c0_6 = arith.constant 0 : index
    %c0_7 = arith.constant 0 : index
    %8 = vector.load %arg5[%c0_6, %c0_7] : memref<8x1xf32, #tpu.memory_space<vmem>>, vector<8x1xf32>
    tpu.vector_store %arg5[%c0_6, %c0_7], %7 {strides = array<i32>} : memref<8x1xf32, #tpu.memory_space<vmem>>, vector<8x1xf32>,
    %c0_i32_8 = arith.constant 0 : i32
    %9 = arith.cmpi eq, %arg1, %c0_i32_8 : i32
    %10 = arith.extui %9 : i1 to i32
    %c0_i32_9 = arith.constant 0 : i32
    %11 = arith.cmpi ne, %10, %c0_i32_9 : i32
    scf.if %11 {
      %c0_10 = arith.constant 0 : index
      %c0_11 = arith.constant 0 : index
      %12 = vector.load %arg5[%c0_10, %c0_11] : memref<8x1xf32, #tpu.memory_space<vmem>>, vector<8x1xf32>
      %c0_12 = arith.constant 0 : index
      %c0_13 = arith.constant 0 : index
      %13 = vector.load %arg4[%c0_12, %c0_13] : memref<1x1xf32, #tpu.memory_space<vmem>>, vector<1x1xf32>
      %14 = vector.broadcast %13 : vector<1x1xf32> to vector<8x1xf32>
      %15 = arith.addf %12, %14 : vector<8x1xf32>
      %c0_14 = arith.constant 0 : index
      %c0_15 = arith.constant 0 : index
      %16 = vector.load %arg5[%c0_14, %c0_15] : memref<8x1xf32, #tpu.memory_space<vmem>>, vector<8x1xf32>
      tpu.vector_store %arg5[%c0_14, %c0_15], %15 {strides = array<i32>} : memref<8x1xf32, #tpu.memory_space<vmem>>, vector<8x1xf32>,
    } else {
    }
    return
  }
  func.func @transform_0(%arg0: i32, %arg1: i32) -> (i32, i32) {
    %c0_i32 = arith.constant 0 : i32
    %c0_i32_0 = arith.constant 0 : i32
    return %c0_i32, %arg1 : i32, i32
  }
  func.func @transform_1(%arg0: i32, %arg1: i32) -> (i32, i32) {
    %c0_i32 = arith.constant 0 : i32
    return %arg1, %arg0 : i32, i32
  }
  func.func @transform_2(%arg0: i32, %arg1: i32) -> (i32, i32) {
    %c0_i32 = arith.constant 0 : i32
    %c0_i32_0 = arith.constant 0 : i32
    return %c0_i32, %arg0 : i32, i32
  }
  func.func @transform_3(%arg0: i32, %arg1: i32) -> (i32, i32) {
    %c0_i32 = arith.constant 0 : i32
    %c0_i32_0 = arith.constant 0 : i32
    return %c0_i32, %arg0 : i32, i32
  }
}

</mosaic_0001>

<bundles_post_ra>
// kernel: mp_subdisc_forward.6
= control target key start
LH: loop header
LB: loop body
LE: loop exit
PB: predicated region body
PF: predicated region fallthrough
CT: control target
= control target key end

     0   :  { %8 = vsyncpa [#allocation3], 0  ;;  %s469_s0 = inlined_call_operand.vmem [shape: bf16[48,5], index: 0, kind: input, shape index: {}]   ;;  %s470_s1 = inlined_call_operand.hbm [shape: bf16[5,32], index: 1, kind: input, shape index: {}]   ;;  %s471_s2 = inlined_call_operand.hbm [shape: f32[1,32], index: 2, kind: input, shape index: {}]   ;;  %s472_s3 = inlined_call_operand.vmem [shape: f32[48,32], index: 3, kind: output, shape index: {}]  }
   0x1   :  { %9 = vsyncpa [#allocation5], 0  ;;  %s300_s12 = smov [#allocation2]   ;;  %s301_s14 = smov [#allocation4]  }
   0x2   :  { %s18_s13 = sshll.u32 %s300_s12, 4  ;;  %s28_s15 = sshll.u32 %s301_s14, 4  ;;  %s19_s13 = int_to_ptr.vmem [resolvable:$true] %s18_s13  ;;  %s29_s15 = int_to_ptr.vmem [resolvable:$true] %s28_s15 }
   0x3   :  { %s252_s18 = scalar_lea.hbm %s470_s1, 64 }
   0x4   :  { %p253_p0 = scmp.ne.s32.totalorder %s470_s1, %s252_s18  ;;  %p256_p1 = scmp.lt.u32.totalorder %s252_s18, %s470_s1 }
   0x6   :  { %p258_p2 = pnand %p256_p1, %p253_p0 }
   0x8   :  { %261 = shalt.err (!%p258_p2)
}
   0x9   :  { %s262_s23 = scalar_lea.vmem %s19_s13, 64  ;;  %p267_p4 = scmp.lt.s32.totalorder %s19_s13, %s19_s13 }
   0xa   :  { %p263_p3 = scmp.ne.s32.totalorder %s19_s13, %s262_s23  ;;  %p268_p5 = scmp.lt.s32.totalorder %s262_s23, %s262_s23 }
   0xc   :  { %p269_p6 = por %p268_p5, %p267_p4 }
   0xe   :  { %p270_p7 = pnand %p269_p6, %p263_p3 }
  0x10   :  { %273 = shalt.err (!%p270_p7)
}
  0x11   :  { %21 = dma.hbm_to_vmem [thread:$0]  %s470_s1, 64, %s19_s13, [#allocation3]  }
  0x12   :  { %s274_s28 = scalar_lea.hbm %s471_s2, 16 }
  0x13   :  { %p275_p8 = scmp.ne.s32.totalorder %s471_s2, %s274_s28  ;;  %p278_p9 = scmp.lt.u32.totalorder %s274_s28, %s471_s2 }
  0x15   :  { %p280_p10 = pnand %p278_p9, %p275_p8 }
  0x17   :  { %283 = shalt.err (!%p280_p10)
}
  0x18   :  { %s284_s6 = scalar_lea.vmem %s29_s15, 16  ;;  %s288_s7 = scalar_lea.vmem %s29_s15, 32 }
  0x19   :  { %p285_p11 = scmp.ne.s32.totalorder %s29_s15, %s284_s6  ;;  %p289_p12 = scmp.lt.s32.totalorder %s29_s15, %s29_s15 }
  0x1a   :  { %p290_p13 = scmp.lt.s32.totalorder %s288_s7, %s284_s6 }
  0x1c   :  { %p291_p0 = por %p290_p13, %p289_p12 }
  0x1e   :  { %p292_p1 = pnand %p291_p0, %p285_p11 }
  0x20   :  { %295 = shalt.err (!%p292_p1)
}
  0x21   :  { %31 = dma.hbm_to_vmem [thread:$0]  %s471_s2, 16, %s29_s15, [#allocation5]  }
  0x22   :  { %296 = dma.done.wait [#allocation3], 64  }
  0x23   :  { %297 = vsyncadd [#allocation3], 4294967232 }
  0x24   :  { %298 = dma.done.wait [#allocation5], 16  }
  0x25   :  { %299 = vsyncadd [#allocation5], 4294967280  ;;  %vm88_vm0 = vcmask 1041408   ;;  %v302_v0 = vmov 0.0   ;;  %vm43_vm1 = vcmask 261120   ;;  %vm89_vm2 = vcmask 1042432  }
  0x26   :  { %242 = vmatprep.subr.bf16.mxu1 %v302_v0  ;;  %228 = vmatprep.subr.bf16.mxu0 %v302_v0  ;;  %v303_v1 = vmov 65535   ;;  %vm304_vm3 = vmmov 0   ;;  %46 = vst.msk [vmem:[%s472_s3 + $0x10] sm:$0xff] %vm43_vm1, %v302_v0  ;;  %44 = vst.msk [vmem:[%s472_s3] sm:$0xff] %vm43_vm1, %v302_v0  ;;  %v62_v4 = vld [vmem:[#allocation2] sm:$0x7] }
  0x27   :  { %v90_v2 = vsel %vm88_vm0, 4294967295, %v303_v1  ;;  %234 = vmatprep.mubr.msk.bf16.mxu1 %vm304_vm3, %v302_v0  ;;  %230 = vmatprep.mubr.msk.bf16.mxu0 %vm304_vm3, %v302_v0  ;;  %45 = vst.msk [vmem:[%s472_s3 + $0x8] sm:$0xff] %vm43_vm1, %v302_v0  ;;  %47 = vst.msk [vmem:[%s472_s3 + $0x18] sm:$0xff] %vm43_vm1, %v302_v0  ;;  %v249_v6 = vld [vmem:[%s469_s0 + $0x8] sm:$0xff]   ;;  %v250_v7 = vld [vmem:[%s469_s0] sm:$0xff]   ;;  %vm78_vm4 = vcmask 39936  }
  0x28   :  { %48 = vst.msk [vmem:[%s472_s3 + $0x20] sm:$0xff] %vm43_vm1, %v302_v0  ;;  %49 = vst.msk [vmem:[%s472_s3 + $0x28] sm:$0xff] %vm43_vm1, %v302_v0  ;;  %v91_v3 = vsel %vm89_vm2, %v90_v2, 0  ;;  %v251_v8 = vld [vmem:[%s469_s0 + $0x10] sm:$0xff]   ;;  %v223_v26 = vld [vmem:[#allocation4] ss:$0 sm:$0xff] }
  0x29   :  { %v93_v5 = vand.u32 %v91_v3, %v62_v4 }
  0x2b   :  { %243 = vmatpush3.bf16.msra.mxu1 %v93_v5  ;;  %229 = vmatpush3.bf16.msra.mxu0 %v93_v5 }
  0x2d   :  { %v52_v9 = vld [vmem:[%s472_s3 + $0x10] sm:$0xff]  ;;  %v50_v10 = vld [vmem:[%s472_s3] sm:$0xff] }
  0x2e   :  { %235 = vmatmul.mubr.msk.bf16.vlgmr.msra.gmra.mrb[0].mxu1 %vm78_vm4, %v249_v6  ;;  %231 = vmatmul.mubr.msk.bf16.vlgmr.msra.gmra.mrb[0].mxu0 %vm78_vm4, %v250_v7  ;;  %v53_v12 = vld [vmem:[%s472_s3 + $0x18] sm:$0xff]  ;;  %v51_v14 = vld [vmem:[%s472_s3 + $0x8] sm:$0xff] }
  0x2f   :  { %238 = vmatprep.mubr.msk.bf16.mxu1 %vm304_vm3, %v302_v0  ;;  %v54_v25 = vld [vmem:[%s472_s3 + $0x20] sm:$0xff]  ;;  %v55_v28 = vld [vmem:[%s472_s3 + $0x28] sm:$0xff] }
  0x36   :  { %239 = vmatmul.mubr.msk.bf16.gmra.mrb[4].mxu1 %vm78_vm4, %v251_v8 }
 0x101   :  { %v137_v11 = vpop.f32.mrb[0].mxu1  ;;  %v129_v13 = vpop.f32.mrb[0].mxu0 }
 0x102   :  { %v154_v15 = vadd.f32 %v137_v11, %v52_v9  ;;  %v236_v16 = vpop.f32.mrb[1].mxu1  ;;  %v152_v17 = vadd.f32 %v129_v13, %v50_v10  ;;  %v232_v18 = vpop.f32.mrb[1].mxu0 }
 0x103   :  { %v140_v19 = vpop.f32.mrb[2].mxu1  ;;  %v132_v20 = vpop.f32.mrb[2].mxu0 }
 0x104   :  { %161 = vst.msk [vmem:[%s472_s3 + $0x10] sm:$0xff] %vm43_vm1, %v154_v15  ;;  %v155_v21 = vadd.f32 %v140_v19, %v53_v12  ;;  %v237_v22 = vpop.f32.mrb[3].mxu1  ;;  %159 = vst.msk [vmem:[%s472_s3] sm:$0xff] %vm43_vm1, %v152_v17  ;;  %v153_v23 = vadd.f32 %v132_v20, %v51_v14  ;;  %v233_v24 = vpop.f32.mrb[3].mxu0 }
 0x106   :  { %162 = vst.msk [vmem:[%s472_s3 + $0x18] sm:$0xff] %vm43_vm1, %v155_v21  ;;  %160 = vst.msk [vmem:[%s472_s3 + $0x8] sm:$0xff] %vm43_vm1, %v153_v23 }
 0x109   :  { %v145_v27 = vpop.f32.mrb[4].mxu1 }
 0x10a   :  { %v156_v29 = vadd.f32 %v145_v27, %v54_v25  ;;  %v240_v30 = vpop.f32.mrb[5].mxu1 }
 0x10b   :  { %v170_v31 = vld [vmem:[%s472_s3 + $0x10] sm:$0xff]  ;;  %v168_v32 = vld [vmem:[%s472_s3] sm:$0xff]  ;;  %v148_v33 = vpop.f32.mrb[6].mxu1 }
 0x10c   :  { %v183_v34 = vadd.f32 %v223_v26, %v170_v31  ;;  %v181_v35 = vadd.f32 %v223_v26, %v168_v32  ;;  %163 = vst.msk [vmem:[%s472_s3 + $0x20] sm:$0xff] %vm43_vm1, %v156_v29  ;;  %v157_v36 = vadd.f32 %v148_v33, %v55_v28  ;;  %v241_v37 = vpop.f32.mrb[7].mxu1 }
 0x10d   :  { %v171_v38 = vld [vmem:[%s472_s3 + $0x18] sm:$0xff]  ;;  %v169_v39 = vld [vmem:[%s472_s3 + $0x8] sm:$0xff] }
 0x10e   :  { %vm189_vm5 = vcmp.ge.f32.partialorder %v183_v34, 0.0  ;;  %v195_v40 = vmul.f32 0.1, %v183_v34  ;;  %v184_v41 = vadd.f32 %v223_v26, %v171_v38  ;;  %vm187_vm6 = vcmp.ge.f32.partialorder %v181_v35, 0.0  ;;  %164 = vst.msk [vmem:[%s472_s3 + $0x28] sm:$0xff] %vm43_vm1, %v157_v36 }
 0x10f   :  { %v193_v42 = vmul.f32 0.1, %v181_v35  ;;  %v182_v43 = vadd.f32 %v223_v26, %v169_v39 }
 0x110   :  { %v201_v44 = vsel %vm189_vm5, %v183_v34, %v195_v40  ;;  %vm190_vm7 = vcmp.ge.f32.partialorder %v184_v41, 0.0  ;;  %v196_v45 = vmul.f32 0.1, %v184_v41 }
 0x111   :  { %207 = vst.msk [vmem:[%s472_s3 + $0x10] sm:$0xff] %vm43_vm1, %v201_v44  ;;  %v199_v46 = vsel %vm187_vm6, %v181_v35, %v193_v42  ;;  %vm188_vm8 = vcmp.ge.f32.partialorder %v182_v43, 0.0  ;;  %v194_v47 = vmul.f32 0.1, %v182_v43 }
 0x112   :  { %v202_v48 = vsel %vm190_vm7, %v184_v41, %v196_v45  ;;  %205 = vst.msk [vmem:[%s472_s3] sm:$0xff] %vm43_vm1, %v199_v46 }
 0x113   :  { %208 = vst.msk [vmem:[%s472_s3 + $0x18] sm:$0xff] %vm43_vm1, %v202_v48  ;;  %v200_v49 = vsel %vm188_vm8, %v182_v43, %v194_v47  ;;  %v172_v50 = vld [vmem:[%s472_s3 + $0x20] sm:$0xff] }
 0x114   :  { %206 = vst.msk [vmem:[%s472_s3 + $0x8] sm:$0xff] %vm43_vm1, %v200_v49  ;;  %v185_v51 = vadd.f32 %v223_v26, %v172_v50 }
 0x115   :  { %v173_v52 = vld [vmem:[%s472_s3 + $0x28] sm:$0xff] }
 0x116   :  { %vm191_vm9 = vcmp.ge.f32.partialorder %v185_v51, 0.0  ;;  %v197_v53 = vmul.f32 0.1, %v185_v51  ;;  %v186_v54 = vadd.f32 %v223_v26, %v173_v52 }
 0x118   :  { %v203_v55 = vsel %vm191_vm9, %v185_v51, %v197_v53  ;;  %vm192_vm10 = vcmp.ge.f32.partialorder %v186_v54, 0.0  ;;  %v198_v56 = vmul.f32 0.1, %v186_v54 }
 0x119   :  { %209 = vst.msk [vmem:[%s472_s3 + $0x20] sm:$0xff] %vm43_vm1, %v203_v55 }
 0x11a   :  { %v204_v57 = vsel %vm192_vm10, %v186_v54, %v198_v56 }
 0x11b   :  { %210 = vst.msk [vmem:[%s472_s3 + $0x28] sm:$0xff] %vm43_vm1, %v204_v57 }
 0x11c   :  { %215 = vsyncpa [#allocation3], 1 }
 0x11d   :  { %216 = vsyncpa [#allocation5], 1 }

// kernel: mp_subdisc_forward.7
= control target key start
LH: loop header
LB: loop body
LE: loop exit
PB: predicated region body
PF: predicated region fallthrough
CT: control target
= control target key end

     0   :  { %8 = vsyncpa [#allocation3], 0  ;;  %s359_s0 = inlined_call_operand.vmem [shape: bf16[16,160], index: 0, kind: input, shape index: {}]   ;;  %s360_s1 = inlined_call_operand.hbm [shape: bf16[160,128], index: 1, kind: input, shape index: {}]   ;;  %s361_s2 = inlined_call_operand.hbm [shape: f32[1,128], index: 2, kind: input, shape index: {}]   ;;  %s362_s3 = inlined_call_operand.vmem [shape: f32[16,128], index: 3, kind: output, shape index: {}]  }
   0x1   :  { %9 = vsyncpa [#allocation5], 0  ;;  %s298_s12 = smov [#allocation2]   ;;  %s250_s16 = scalar_lea.hbm %s360_s1, 1280 }
   0x2   :  { %s17_s13 = sshll.u32 %s298_s12, 4  ;;  %p251_p0 = scmp.ne.s32.totalorder %s360_s1, %s250_s16  ;;  %s18_s13 = int_to_ptr.vmem [resolvable:$true] %s17_s13 }
   0x3   :  { %p254_p1 = scmp.lt.u32.totalorder %s250_s16, %s360_s1 }
   0x5   :  { %p256_p2 = pnand %p254_p1, %p251_p0 }
   0x7   :  { %259 = shalt.err (!%p256_p2)
}
   0x8   :  { %s260_s21 = scalar_lea.vmem %s18_s13, 1280  ;;  %p265_p4 = scmp.lt.s32.totalorder %s18_s13, %s18_s13 }
   0x9   :  { %p261_p3 = scmp.ne.s32.totalorder %s18_s13, %s260_s21  ;;  %p266_p5 = scmp.lt.s32.totalorder %s260_s21, %s260_s21 }
   0xb   :  { %p267_p6 = por %p266_p5, %p265_p4 }
   0xd   :  { %p268_p7 = pnand %p267_p6, %p261_p3 }
   0xf   :  { %271 = shalt.err (!%p268_p7)
}
  0x10   :  { %s299_s22 = smov 64   ;;  %s300_s23 = smov 4  }
  0x11   :  { %23 = dma.hbm_to_vmem [thread:$0]  %s360_s1, 1280, %s18_s13, [#allocation3], %s299_s22, %s299_s22, %s300_s23  }
  0x12   :  { %s301_s26 = smov [#allocation4]   ;;  %s272_s30 = scalar_lea.hbm %s361_s2, 16 }
  0x13   :  { %s30_s27 = sshll.u32 %s301_s26, 4  ;;  %p273_p8 = scmp.ne.s32.totalorder %s361_s2, %s272_s30  ;;  %s31_s27 = int_to_ptr.vmem [resolvable:$true] %s30_s27 }
  0x14   :  { %p276_p9 = scmp.lt.u32.totalorder %s272_s30, %s361_s2 }
  0x16   :  { %p278_p10 = pnand %p276_p9, %p273_p8 }
  0x18   :  { %281 = shalt.err (!%p278_p10)
}
  0x19   :  { %s282_s8 = scalar_lea.vmem %s31_s27, 16  ;;  %s286_s1 = scalar_lea.vmem %s31_s27, 32 }
  0x1a   :  { %p283_p11 = scmp.ne.s32.totalorder %s31_s27, %s282_s8  ;;  %p287_p12 = scmp.lt.s32.totalorder %s31_s27, %s31_s27 }
  0x1b   :  { %p288_p13 = scmp.lt.s32.totalorder %s286_s1, %s282_s8 }
  0x1d   :  { %p289_p0 = por %p288_p13, %p287_p12 }
  0x1f   :  { %p290_p1 = pnand %p289_p0, %p283_p11 }
  0x21   :  { %293 = shalt.err (!%p290_p1)
}
  0x22   :  { %33 = dma.hbm_to_vmem [thread:$0]  %s361_s2, 16, %s31_s27, [#allocation5]  }
  0x23   :  { %294 = dma.done.wait [#allocation3], 1280  }
  0x24   :  { %295 = vsyncadd [#allocation3], 4294966016 }
  0x25   :  { %296 = dma.done.wait [#allocation5], 16  }
  0x26   :  { %297 = vsyncadd [#allocation5], 4294967280  ;;  %v302_v0 = vmov 0   ;;  %v237_v1 = vld [vmem:[#allocation2] sm:$0xff]   ;;  %v238_v2 = vld [vmem:[#allocation2 + $0x8] sm:$0xff]   ;;  %vm140_vm0 = vcmask 261120  }
  0x27   :  { %144 = vmatprep.subr.bf16.mxu0 %v302_v0  ;;  %v239_v3 = vld [vmem:[#allocation2 + $0x10] sm:$0xff]   ;;  %v240_v4 = vld [vmem:[#allocation2 + $0x18] sm:$0xff]   ;;  %v249_v5 = vld [vmem:[%s359_s0 + $0x4] ss:$8 sps:$4 sm:$0xff]  }
  0x28   :  { %145 = vmatpush1.bf16.msra.mxu0 %v237_v1  ;;  %229 = vmatprep.mubr.msk.bf16.mxu0 %vm140_vm0, %v249_v5  ;;  %v241_v6 = vld [vmem:[#allocation2 + $0x20] sm:$0xff]   ;;  %v242_v7 = vld [vmem:[#allocation2 + $0x28] sm:$0xff]   ;;  %v243_v8 = vld [vmem:[#allocation2 + $0x30] sm:$0xff]  }
  0x29   :  { %146 = vmatprep.subr.bf16.mxu0 %v302_v0  ;;  %v244_v9 = vld [vmem:[#allocation2 + $0x38] sm:$0xff]   ;;  %v245_v10 = vld [vmem:[#allocation2 + $0x40] sm:$0xff]   ;;  %v246_v11 = vld [vmem:[#allocation2 + $0x48] sm:$0xff]  }
  0x2a   :  { %v247_v12 = vld [vmem:[%s359_s0] ss:$8 sps:$4 sm:$0xff]   ;;  %v230_v14 = vld [vmem:[#allocation4] ss:$0 sm:$0xff] }
  0x2c   :  { %147 = vmatpush1.bf16.msra.mxu0 %v238_v2 }
  0x2d   :  { %148 = vmatprep.subr.bf16.mxu0 %v302_v0 }
  0x30   :  { %149 = vmatpush1.bf16.msra.mxu0 %v239_v3 }
  0x31   :  { %150 = vmatprep.subr.bf16.mxu0 %v302_v0 }
  0x34   :  { %151 = vmatpush1.bf16.msra.mxu0 %v240_v4 }
  0x35   :  { %152 = vmatprep.subr.bf16.mxu0 %v302_v0 }
  0x38   :  { %153 = vmatpush1.bf16.msra.mxu0 %v241_v6 }
  0x39   :  { %154 = vmatprep.subr.bf16.mxu0 %v302_v0 }
  0x3c   :  { %155 = vmatpush1.bf16.msra.mxu0 %v242_v7 }
  0x3d   :  { %156 = vmatprep.subr.bf16.mxu0 %v302_v0 }
  0x40   :  { %157 = vmatpush1.bf16.msra.mxu0 %v243_v8 }
  0x41   :  { %158 = vmatprep.subr.bf16.mxu0 %v302_v0 }
  0x44   :  { %159 = vmatpush1.bf16.msra.mxu0 %v244_v9 }
  0x45   :  { %160 = vmatprep.subr.bf16.mxu0 %v302_v0 }
  0x48   :  { %161 = vmatpush1.bf16.msra.mxu0 %v245_v10 }
  0x49   :  { %162 = vmatprep.subr.bf16.mxu0 %v302_v0 }
  0x4c   :  { %163 = vmatpush1.bf16.msra.mxu0 %v246_v11 }
  0x4f   :  { %177 = vmatmul.mubr.bf16.vlgmr.msra.gmra.mrb[0].mxu0 %v247_v12 }
 0x122   :  { %v178_v13 = vpop.f32.mrb[0].mxu0 }
 0x123   :  { %v180_v15 = vpop.f32.mrb[1].mxu0  ;;  %v201_v17 = vadd.f32 %v230_v14, %v178_v13 }
 0x124   :  { %v181_v16 = vpop.f32.mrb[2].mxu0 }
 0x125   :  { %v183_v18 = vpop.f32.mrb[3].mxu0  ;;  %vm203_vm1 = vcmp.ge.f32.partialorder %v201_v17, 0.0  ;;  %v205_v19 = vmul.f32 0.1, %v201_v17  ;;  %v202_v20 = vadd.f32 %v230_v14, %v181_v16 }
 0x127   :  { %v207_v21 = vsel %vm203_vm1, %v201_v17, %v205_v19  ;;  %vm204_vm2 = vcmp.ge.f32.partialorder %v202_v20, 0.0  ;;  %v206_v22 = vmul.f32 0.1, %v202_v20 }
 0x128   :  { %209 = vst [vmem:[%s362_s3] sm:$0xff] %v207_v21 }
 0x129   :  { %v208_v23 = vsel %vm204_vm2, %v202_v20, %v206_v22 }
 0x12a   :  { %210 = vst [vmem:[%s362_s3 + $0x8] sm:$0xff] %v208_v23 }
 0x12b   :  { %215 = vsyncpa [#allocation3], 1 }
 0x12c   :  { %216 = vsyncpa [#allocation5], 1 }

// kernel: mp_subdisc_forward.8
= control target key start
LH: loop header
LB: loop body
LE: loop exit
PB: predicated region body
PF: predicated region fallthrough
CT: control target
= control target key end

     0   :  { %8 = vsyncpa [#allocation3], 0  ;;  %s1899_s0 = inlined_call_operand.vmem [shape: bf16[8,640], index: 0, kind: input, shape index: {}]   ;;  %s1900_s1 = inlined_call_operand.hbm [shape: bf16[640,512], index: 1, kind: input, shape index: {}]   ;;  %s1901_s2 = inlined_call_operand.hbm [shape: f32[1,512], index: 2, kind: input, shape index: {}]   ;;  %s1902_s3 = inlined_call_operand.vmem [shape: f32[8,512], index: 3, kind: output, shape index: {}]  }
   0x1   :  { %9 = vsyncpa [#allocation5], 0  ;;  %s1807_s12 = smov [#allocation2]   ;;  %s1759_s16 = scalar_lea.hbm %s1900_s1, 20480 }
   0x2   :  { %s17_s13 = sshll.u32 %s1807_s12, 4  ;;  %p1760_p0 = scmp.ne.s32.totalorder %s1900_s1, %s1759_s16  ;;  %s18_s13 = int_to_ptr.vmem [resolvable:$true] %s17_s13 }
   0x3   :  { %p1763_p1 = scmp.lt.u32.totalorder %s1759_s16, %s1900_s1 }
   0x5   :  { %p1765_p2 = pnand %p1763_p1, %p1760_p0 }
   0x7   :  { %1768 = shalt.err (!%p1765_p2)
}
   0x8   :  { %s1769_s21 = scalar_lea.vmem %s18_s13, 20480  ;;  %p1774_p4 = scmp.lt.s32.totalorder %s18_s13, %s18_s13 }
   0x9   :  { %p1770_p3 = scmp.ne.s32.totalorder %s18_s13, %s1769_s21  ;;  %p1775_p5 = scmp.lt.s32.totalorder %s1769_s21, %s1769_s21 }
   0xb   :  { %p1776_p6 = por %p1775_p5, %p1774_p4 }
   0xd   :  { %p1777_p7 = pnand %p1776_p6, %p1770_p3 }
   0xf   :  { %1780 = shalt.err (!%p1777_p7)
}
  0x10   :  { %s1808_s22 = smov 256   ;;  %s1809_s23 = smov 16  }
  0x11   :  { %23 = dma.hbm_to_vmem [thread:$0]  %s1900_s1, 20480, %s18_s13, [#allocation3], %s1808_s22, %s1808_s22, %s1809_s23  }
  0x12   :  { %s1810_s26 = smov [#allocation4]   ;;  %s1781_s30 = scalar_lea.hbm %s1901_s2, 64 }
  0x13   :  { %s30_s27 = sshll.u32 %s1810_s26, 4  ;;  %p1782_p8 = scmp.ne.s32.totalorder %s1901_s2, %s1781_s30  ;;  %s31_s27 = int_to_ptr.vmem [resolvable:$true] %s30_s27 }
  0x14   :  { %p1785_p9 = scmp.lt.u32.totalorder %s1781_s30, %s1901_s2 }
  0x16   :  { %p1787_p10 = pnand %p1785_p9, %p1782_p8 }
  0x18   :  { %1790 = shalt.err (!%p1787_p10)
}
  0x19   :  { %s1791_s8 = scalar_lea.vmem %s31_s27, 64  ;;  %p1796_p12 = scmp.lt.s32.totalorder %s31_s27, %s31_s27 }
  0x1a   :  { %p1792_p11 = scmp.ne.s32.totalorder %s31_s27, %s1791_s8  ;;  %p1797_p13 = scmp.lt.s32.totalorder %s1791_s8, %s1791_s8 }
  0x1c   :  { %p1798_p0 = por %p1797_p13, %p1796_p12 }
  0x1e   :  { %p1799_p1 = pnand %p1798_p0, %p1792_p11 }
  0x20   :  { %1802 = shalt.err (!%p1799_p1)
}
  0x21   :  { %33 = dma.hbm_to_vmem [thread:$0]  %s1901_s2, 64, %s31_s27, [#allocation5]  }
  0x22   :  { %1803 = dma.done.wait [#allocation3], 20480  }
  0x23   :  { %1804 = vsyncadd [#allocation3], 4294946816 }
  0x24   :  { %1805 = dma.done.wait [#allocation5], 64  }
  0x25   :  { %1806 = vsyncadd [#allocation5], 4294967232  ;;  %v1514_v0 = vld [vmem:[#allocation2 + $0x4] ss:$16 sps:$4 sm:$0xff]   ;;  %v1518_v2 = vld [vmem:[#allocation2] ss:$16 sps:$4 sm:$0xff]  }
  0x26   :  { %v1516_v1 = vld [vmem:[#allocation2 + $0x204] ss:$16 sps:$4 sm:$0xff]   ;;  %1034 = vmatprep.subr.bf16.mxu0 %v1514_v0  ;;  %v1519_v3 = vld [vmem:[#allocation2 + $0x200] ss:$16 sps:$4 sm:$0xff]   ;;  %v54_v48 = vld [vmem:[%s1899_s0 + $0x8] sm:$0xff] }
  0x27   :  { %1075 = vmatprep.subr.bf16.mxu1 %v1516_v1  ;;  %v1520_v4 = vld [vmem:[#allocation2 + $0x24] ss:$16 sps:$4 sm:$0xff]   ;;  %1035 = vmatpush1.bf16.msra.mxu0 %v1518_v2  ;;  %v1524_v6 = vld [vmem:[#allocation2 + $0x20] ss:$16 sps:$4 sm:$0xff]   ;;  %v1864_v51 = vcombine.high %v54_v48, %v54_v48 }
  0x28   :  { %1076 = vmatpush1.bf16.msra.mxu1 %v1519_v3  ;;  %v1522_v5 = vld [vmem:[#allocation2 + $0x224] ss:$16 sps:$4 sm:$0xff]   ;;  %1036 = vmatprep.subr.bf16.mxu0 %v1520_v4  ;;  %v1525_v7 = vld [vmem:[#allocation2 + $0x220] ss:$16 sps:$4 sm:$0xff]  }
  0x29   :  { %1077 = vmatprep.subr.bf16.mxu1 %v1522_v5  ;;  %v1526_v8 = vld [vmem:[#allocation2 + $0x44] ss:$16 sps:$4 sm:$0xff]   ;;  %v1530_v10 = vld [vmem:[#allocation2 + $0x40] ss:$16 sps:$4 sm:$0xff]   ;;  %1107 = vmatprep.mubr.bf16.mxu1 %v1864_v51  ;;  %v1619_v5 = vld [vmem:[#allocation2 + $0xc] ss:$16 sps:$4 sm:$0xff]  }
  0x2a   :  { %v1528_v9 = vld [vmem:[#allocation2 + $0x244] ss:$16 sps:$4 sm:$0xff]   ;;  %v1531_v11 = vld [vmem:[#allocation2 + $0x240] ss:$16 sps:$4 sm:$0xff]  }
  0x2b   :  { %1037 = vmatpush1.bf16.msra.mxu0 %v1524_v6  ;;  %v1532_v12 = vld [vmem:[#allocation2 + $0x64] ss:$16 sps:$4 sm:$0xff]   ;;  %v1536_v14 = vld [vmem:[#allocation2 + $0x60] ss:$16 sps:$4 sm:$0xff]  }
  0x2c   :  { %1078 = vmatpush1.bf16.msra.mxu1 %v1525_v7  ;;  %1038 = vmatprep.subr.bf16.mxu0 %v1526_v8  ;;  %v1534_v13 = vld [vmem:[#allocation2 + $0x264] ss:$16 sps:$4 sm:$0xff]   ;;  %v1537_v15 = vld [vmem:[#allocation2 + $0x260] ss:$16 sps:$4 sm:$0xff]   ;;  %v1870_v7 = vcombine.low %v54_v48, %v54_v48  ;;  %v1677_v48 = vld [vmem:[#allocation2 + $0x14c] ss:$16 sps:$4 sm:$0xff]  }
  0x2d   :  { %1079 = vmatprep.subr.bf16.mxu1 %v1528_v9  ;;  %v1538_v16 = vld [vmem:[#allocation2 + $0x84] ss:$16 sps:$4 sm:$0xff]   ;;  %v1542_v18 = vld [vmem:[#allocation2 + $0x80] ss:$16 sps:$4 sm:$0xff]   ;;  %v1617_v9 = vld [vmem:[#allocation2 + $0x8] ss:$16 sps:$4 sm:$0xff]  }
  0x2e   :  { %v1540_v17 = vld [vmem:[#allocation2 + $0x284] ss:$16 sps:$4 sm:$0xff]   ;;  %v1543_v19 = vld [vmem:[#allocation2 + $0x280] ss:$16 sps:$4 sm:$0xff]  }
  0x2f   :  { %1039 = vmatpush1.bf16.msra.mxu0 %v1530_v10  ;;  %v1544_v20 = vld [vmem:[#allocation2 + $0xa4] ss:$16 sps:$4 sm:$0xff]   ;;  %v1548_v22 = vld [vmem:[#allocation2 + $0xa0] ss:$16 sps:$4 sm:$0xff]  }
  0x30   :  { %1080 = vmatpush1.bf16.msra.mxu1 %v1531_v11  ;;  %1040 = vmatprep.subr.bf16.mxu0 %v1532_v12  ;;  %v1546_v21 = vld [vmem:[#allocation2 + $0x2a4] ss:$16 sps:$4 sm:$0xff]   ;;  %v1549_v23 = vld [vmem:[#allocation2 + $0x2a0] ss:$16 sps:$4 sm:$0xff]   ;;  %v1625_v11 = vld [vmem:[#allocation2 + $0x2c] ss:$16 sps:$4 sm:$0xff]  }
  0x31   :  { %1081 = vmatprep.subr.bf16.mxu1 %v1534_v13  ;;  %v1550_v24 = vld [vmem:[#allocation2 + $0xc4] ss:$16 sps:$4 sm:$0xff]   ;;  %v1554_v26 = vld [vmem:[#allocation2 + $0xc0] ss:$16 sps:$4 sm:$0xff]   ;;  %v1623_v13 = vld [vmem:[#allocation2 + $0x28] ss:$16 sps:$4 sm:$0xff]  }
  0x32   :  { %v1552_v25 = vld [vmem:[#allocation2 + $0x2c4] ss:$16 sps:$4 sm:$0xff]   ;;  %v1555_v27 = vld [vmem:[#allocation2 + $0x2c0] ss:$16 sps:$4 sm:$0xff]  }
  0x33   :  { %1041 = vmatpush1.bf16.msra.mxu0 %v1536_v14  ;;  %v1556_v28 = vld [vmem:[#allocation2 + $0xe4] ss:$16 sps:$4 sm:$0xff]   ;;  %v1560_v30 = vld [vmem:[#allocation2 + $0xe0] ss:$16 sps:$4 sm:$0xff]  }
  0x34   :  { %1082 = vmatpush1.bf16.msra.mxu1 %v1537_v15  ;;  %1042 = vmatprep.subr.bf16.mxu0 %v1538_v16  ;;  %v1558_v29 = vld [vmem:[#allocation2 + $0x2e4] ss:$16 sps:$4 sm:$0xff]   ;;  %v1561_v31 = vld [vmem:[#allocation2 + $0x2e0] ss:$16 sps:$4 sm:$0xff]   ;;  %v1631_v15 = vld [vmem:[#allocation2 + $0x4c] ss:$16 sps:$4 sm:$0xff]  }
  0x35   :  { %1083 = vmatprep.subr.bf16.mxu1 %v1540_v17  ;;  %v1562_v32 = vld [vmem:[#allocation2 + $0x104] ss:$16 sps:$4 sm:$0xff]   ;;  %v1566_v34 = vld [vmem:[#allocation2 + $0x100] ss:$16 sps:$4 sm:$0xff]   ;;  %v1811_v16 = vmov 0  }
  0x36   :  { %v1564_v33 = vld [vmem:[#allocation2 + $0x304] ss:$16 sps:$4 sm:$0xff]   ;;  %v1567_v35 = vld [vmem:[#allocation2 + $0x300] ss:$16 sps:$4 sm:$0xff]  }
  0x37   :  { %1043 = vmatpush1.bf16.msra.mxu0 %v1542_v18  ;;  %v1568_v36 = vld [vmem:[#allocation2 + $0x124] ss:$16 sps:$4 sm:$0xff]   ;;  %v1572_v38 = vld [vmem:[#allocation2 + $0x120] ss:$16 sps:$4 sm:$0xff]   ;;  %v1629_v18 = vld [vmem:[#allocation2 + $0x48] ss:$16 sps:$4 sm:$0xff]  }
  0x38   :  { %1084 = vmatpush1.bf16.msra.mxu1 %v1543_v19  ;;  %1044 = vmatprep.subr.bf16.mxu0 %v1544_v20  ;;  %v1570_v37 = vld [vmem:[#allocation2 + $0x324] ss:$16 sps:$4 sm:$0xff]   ;;  %v1573_v39 = vld [vmem:[#allocation2 + $0x320] ss:$16 sps:$4 sm:$0xff]   ;;  %v1637_v20 = vld [vmem:[#allocation2 + $0x6c] ss:$16 sps:$4 sm:$0xff]  }
  0x39   :  { %1085 = vmatprep.subr.bf16.mxu1 %v1546_v21  ;;  %v1574_v40 = vld [vmem:[#allocation2 + $0x144] ss:$16 sps:$4 sm:$0xff]   ;;  %v1578_v42 = vld [vmem:[#allocation2 + $0x140] ss:$16 sps:$4 sm:$0xff]  }
  0x3a   :  { %v1576_v41 = vld [vmem:[#allocation2 + $0x344] ss:$16 sps:$4 sm:$0xff]   ;;  %v1579_v43 = vld [vmem:[#allocation2 + $0x340] ss:$16 sps:$4 sm:$0xff]  }
  0x3b   :  { %1045 = vmatpush1.bf16.msra.mxu0 %v1548_v22  ;;  %v1580_v44 = vld [vmem:[#allocation2 + $0x164] ss:$16 sps:$4 sm:$0xff]   ;;  %v1584_v49 = vld [vmem:[#allocation2 + $0x160] ss:$16 sps:$4 sm:$0xff]   ;;  %v1635_v22 = vld [vmem:[#allocation2 + $0x68] ss:$16 sps:$4 sm:$0xff]  }
  0x3c   :  { %1086 = vmatpush1.bf16.msra.mxu1 %v1549_v23  ;;  %1046 = vmatprep.subr.bf16.mxu0 %v1550_v24  ;;  %v1582_v45 = vld [vmem:[#allocation2 + $0x364] ss:$16 sps:$4 sm:$0xff]   ;;  %v1585_v50 = vld [vmem:[#allocation2 + $0x360] ss:$16 sps:$4 sm:$0xff]   ;;  %v1643_v24 = vld [vmem:[#allocation2 + $0x8c] ss:$16 sps:$4 sm:$0xff]  }
  0x3d   :  { %1087 = vmatprep.subr.bf16.mxu1 %v1552_v25  ;;  %v53_v46 = vld [vmem:[%s1899_s0] sm:$0xff] }
  0x3e   :  { %v1859_v47 = vcombine.high %v53_v46, %v53_v46  ;;  %v1586_v52 = vld [vmem:[#allocation2 + $0x184] ss:$16 sps:$4 sm:$0xff]   ;;  %v1590_v54 = vld [vmem:[#allocation2 + $0x180] ss:$16 sps:$4 sm:$0xff]   ;;  %v1868_v6 = vcombine.low %v53_v46, %v53_v46  ;;  %v1669_v46 = vld [vmem:[#allocation2 + $0x128] ss:$16 sps:$4 sm:$0xff]  }
  0x3f   :  { %1047 = vmatpush1.bf16.msra.mxu0 %v1554_v26  ;;  %v1588_v53 = vld [vmem:[#allocation2 + $0x384] ss:$16 sps:$4 sm:$0xff]   ;;  %v1591_v55 = vld [vmem:[#allocation2 + $0x380] ss:$16 sps:$4 sm:$0xff]   ;;  %v1641_v26 = vld [vmem:[#allocation2 + $0x88] ss:$16 sps:$4 sm:$0xff]  }
  0x40   :  { %1088 = vmatpush1.bf16.msra.mxu1 %v1555_v27  ;;  %1048 = vmatprep.subr.bf16.mxu0 %v1556_v28  ;;  %v1592_v56 = vld [vmem:[#allocation2 + $0x1a4] ss:$16 sps:$4 sm:$0xff]   ;;  %v1596_v58 = vld [vmem:[#allocation2 + $0x1a0] ss:$16 sps:$4 sm:$0xff]   ;;  %v1649_v28 = vld [vmem:[#allocation2 + $0xac] ss:$16 sps:$4 sm:$0xff]  }
  0x41   :  { %1089 = vmatprep.subr.bf16.mxu1 %v1558_v29  ;;  %1066 = vmatprep.mubr.bf16.mxu0 %v1859_v47  ;;  %v1594_v57 = vld [vmem:[#allocation2 + $0x3a4] ss:$16 sps:$4 sm:$0xff]   ;;  %v1597_v59 = vld [vmem:[#allocation2 + $0x3a0] ss:$16 sps:$4 sm:$0xff]  }
  0x42   :  { %v1598_v60 = vld [vmem:[#allocation2 + $0x1c4] ss:$16 sps:$4 sm:$0xff]   ;;  %v1602_v62 = vld [vmem:[#allocation2 + $0x1c0] ss:$16 sps:$4 sm:$0xff]  }
  0x43   :  { %1049 = vmatpush1.bf16.msra.mxu0 %v1560_v30  ;;  %v1600_v61 = vld [vmem:[#allocation2 + $0x3c4] ss:$16 sps:$4 sm:$0xff]   ;;  %v1603_v63 = vld [vmem:[#allocation2 + $0x3c0] ss:$16 sps:$4 sm:$0xff]   ;;  %v1647_v30 = vld [vmem:[#allocation2 + $0xa8] ss:$16 sps:$4 sm:$0xff]  }
  0x44   :  { %1090 = vmatpush1.bf16.msra.mxu1 %v1561_v31  ;;  %1050 = vmatprep.subr.bf16.mxu0 %v1562_v32  ;;  %v1604_v0 = vld [vmem:[#allocation2 + $0x1e4] ss:$16 sps:$4 sm:$0xff]   ;;  %v1608_v2 = vld [vmem:[#allocation2 + $0x1e0] ss:$16 sps:$4 sm:$0xff]   ;;  %v1655_v32 = vld [vmem:[#allocation2 + $0xcc] ss:$16 sps:$4 sm:$0xff]  }
  0x45   :  { %1091 = vmatprep.subr.bf16.mxu1 %v1564_v33  ;;  %v1606_v1 = vld [vmem:[#allocation2 + $0x3e4] ss:$16 sps:$4 sm:$0xff]   ;;  %v1609_v3 = vld [vmem:[#allocation2 + $0x3e0] ss:$16 sps:$4 sm:$0xff]  }
  0x46   :  { %v1616_v4 = vld [vmem:[#allocation2 + $0x404] ss:$16 sps:$4 sm:$0xff]   ;;  %v1614_v8 = vld [vmem:[#allocation2 + $0x400] ss:$16 sps:$4 sm:$0xff]  }
  0x47   :  { %1051 = vmatpush1.bf16.msra.mxu0 %v1566_v34  ;;  %v1622_v10 = vld [vmem:[#allocation2 + $0x424] ss:$16 sps:$4 sm:$0xff]   ;;  %v1620_v12 = vld [vmem:[#allocation2 + $0x420] ss:$16 sps:$4 sm:$0xff]   ;;  %v1653_v34 = vld [vmem:[#allocation2 + $0xc8] ss:$16 sps:$4 sm:$0xff]  }
  0x48   :  { %1092 = vmatpush1.bf16.msra.mxu1 %v1567_v35  ;;  %1052 = vmatprep.subr.bf16.mxu0 %v1568_v36  ;;  %v1628_v14 = vld [vmem:[#allocation2 + $0x444] ss:$16 sps:$4 sm:$0xff]   ;;  %v1626_v17 = vld [vmem:[#allocation2 + $0x440] ss:$16 sps:$4 sm:$0xff]   ;;  %v1661_v36 = vld [vmem:[#allocation2 + $0xec] ss:$16 sps:$4 sm:$0xff]  }
  0x49   :  { %1093 = vmatprep.subr.bf16.mxu1 %v1570_v37  ;;  %v1634_v19 = vld [vmem:[#allocation2 + $0x464] ss:$16 sps:$4 sm:$0xff]   ;;  %v1632_v21 = vld [vmem:[#allocation2 + $0x460] ss:$16 sps:$4 sm:$0xff]  }
  0x4a   :  { %v1640_v23 = vld [vmem:[#allocation2 + $0x484] ss:$16 sps:$4 sm:$0xff]   ;;  %v1638_v25 = vld [vmem:[#allocation2 + $0x480] ss:$16 sps:$4 sm:$0xff]  }
  0x4b   :  { %1053 = vmatpush1.bf16.msra.mxu0 %v1572_v38  ;;  %v1646_v27 = vld [vmem:[#allocation2 + $0x4a4] ss:$16 sps:$4 sm:$0xff]   ;;  %v1644_v29 = vld [vmem:[#allocation2 + $0x4a0] ss:$16 sps:$4 sm:$0xff]   ;;  %v1659_v38 = vld [vmem:[#allocation2 + $0xe8] ss:$16 sps:$4 sm:$0xff]  }
  0x4c   :  { %1094 = vmatpush1.bf16.msra.mxu1 %v1573_v39  ;;  %1054 = vmatprep.subr.bf16.mxu0 %v1574_v40  ;;  %v1652_v31 = vld [vmem:[#allocation2 + $0x4c4] ss:$16 sps:$4 sm:$0xff]   ;;  %v1650_v33 = vld [vmem:[#allocation2 + $0x4c0] ss:$16 sps:$4 sm:$0xff]   ;;  %v1665_v39 = vld [vmem:[#allocation2 + $0x10c] ss:$16 sps:$4 sm:$0xff]  }
  0x4d   :  { %1095 = vmatprep.subr.bf16.mxu1 %v1576_v41  ;;  %v1658_v35 = vld [vmem:[#allocation2 + $0x4e4] ss:$16 sps:$4 sm:$0xff]   ;;  %v1656_v37 = vld [vmem:[#allocation2 + $0x4e0] ss:$16 sps:$4 sm:$0xff]   ;;  %v1668_v40 = vld [vmem:[#allocation2 + $0x20c] ss:$16 sps:$4 sm:$0xff]  }
  0x4e   :  { %v1879_v41 = vld [vmem:[%s1899_s0 + $0x10] ss:$0 sps:$4 sm:$0xff]  }
  0x4f   :  { %1055 = vmatpush1.bf16.msra.mxu0 %v1578_v42  ;;  %v1663_v42 = vld [vmem:[#allocation2 + $0x108] ss:$16 sps:$4 sm:$0xff]  }
  0x50   :  { %1096 = vmatpush1.bf16.msra.mxu1 %v1579_v43  ;;  %1056 = vmatprep.subr.bf16.mxu0 %v1580_v44  ;;  %v1666_v43 = vld [vmem:[#allocation2 + $0x208] ss:$16 sps:$4 sm:$0xff]   ;;  %v1671_v44 = vld [vmem:[#allocation2 + $0x12c] ss:$16 sps:$4 sm:$0xff]  }
  0x51   :  { %1097 = vmatprep.subr.bf16.mxu1 %v1582_v45  ;;  %v1674_v45 = vld [vmem:[#allocation2 + $0x22c] ss:$16 sps:$4 sm:$0xff]  }
  0x53   :  { %1057 = vmatpush1.bf16.msra.mxu0 %v1584_v49  ;;  %v1680_v49 = vld [vmem:[#allocation2 + $0x24c] ss:$16 sps:$4 sm:$0xff]  }
  0x54   :  { %1098 = vmatpush1.bf16.msra.mxu1 %v1585_v50  ;;  %1058 = vmatprep.subr.bf16.mxu0 %v1586_v52  ;;  %v1675_v50 = vld [vmem:[#allocation2 + $0x148] ss:$16 sps:$4 sm:$0xff]  }
  0x55   :  { %1099 = vmatprep.subr.bf16.mxu1 %v1588_v53  ;;  %v1678_v52 = vld [vmem:[#allocation2 + $0x248] ss:$16 sps:$4 sm:$0xff]   ;;  %v1683_v53 = vld [vmem:[#allocation2 + $0x16c] ss:$16 sps:$4 sm:$0xff]  }
  0x57   :  { %1059 = vmatpush1.bf16.msra.mxu0 %v1590_v54  ;;  %v1686_v54 = vld [vmem:[#allocation2 + $0x26c] ss:$16 sps:$4 sm:$0xff]  }
  0x58   :  { %1100 = vmatpush1.bf16.msra.mxu1 %v1591_v55  ;;  %1060 = vmatprep.subr.bf16.mxu0 %v1592_v56  ;;  %v1681_v55 = vld [vmem:[#allocation2 + $0x168] ss:$16 sps:$4 sm:$0xff]  }
  0x59   :  { %1101 = vmatprep.subr.bf16.mxu1 %v1594_v57  ;;  %v1684_v56 = vld [vmem:[#allocation2 + $0x268] ss:$16 sps:$4 sm:$0xff]   ;;  %v1689_v57 = vld [vmem:[#allocation2 + $0x18c] ss:$16 sps:$4 sm:$0xff]  }
  0x5b   :  { %1061 = vmatpush1.bf16.msra.mxu0 %v1596_v58  ;;  %v1692_v58 = vld [vmem:[#allocation2 + $0x28c] ss:$16 sps:$4 sm:$0xff]  }
  0x5c   :  { %1102 = vmatpush1.bf16.msra.mxu1 %v1597_v59  ;;  %1062 = vmatprep.subr.bf16.mxu0 %v1598_v60  ;;  %v1687_v59 = vld [vmem:[#allocation2 + $0x188] ss:$16 sps:$4 sm:$0xff]   ;;  %v1695_v60 = vld [vmem:[#allocation2 + $0x1ac] ss:$16 sps:$4 sm:$0xff]  }
  0x5d   :  { %1103 = vmatprep.subr.bf16.mxu1 %v1600_v61  ;;  %v1698_v61 = vld [vmem:[#allocation2 + $0x2ac] ss:$16 sps:$4 sm:$0xff]  }
  0x5f   :  { %1063 = vmatpush1.bf16.msra.mxu0 %v1602_v62  ;;  %v1693_v62 = vld [vmem:[#allocation2 + $0x1a8] ss:$16 sps:$4 sm:$0xff]  }
  0x60   :  { %1104 = vmatpush1.bf16.msra.mxu1 %v1603_v63  ;;  %1064 = vmatprep.subr.bf16.mxu0 %v1604_v0  ;;  %v1696_v63 = vld [vmem:[#allocation2 + $0x2a8] ss:$16 sps:$4 sm:$0xff]   ;;  %v1701_v0 = vld [vmem:[#allocation2 + $0x1cc] ss:$16 sps:$4 sm:$0xff]  }
  0x61   :  { %1105 = vmatprep.subr.bf16.mxu1 %v1606_v1  ;;  %v1704_v1 = vld [vmem:[#allocation2 + $0x2cc] ss:$16 sps:$4 sm:$0xff]  }
  0x63   :  { %1065 = vmatpush1.bf16.msra.mxu0 %v1608_v2  ;;  %v1699_v2 = vld [vmem:[#allocation2 + $0x1c8] ss:$16 sps:$4 sm:$0xff]  }
  0x64   :  { %1106 = vmatpush1.bf16.msra.mxu1 %v1609_v3  ;;  %1116 = vmatprep.subr.bf16.mxu0 %v1616_v4  ;;  %v1702_v3 = vld [vmem:[#allocation2 + $0x2c8] ss:$16 sps:$4 sm:$0xff]   ;;  %v1707_v4 = vld [vmem:[#allocation2 + $0x1ec] ss:$16 sps:$4 sm:$0xff]  }
  0x65   :  { %1157 = vmatprep.subr.bf16.mxu1 %v1619_v5  ;;  %v1710_v5 = vld [vmem:[#allocation2 + $0x2ec] ss:$16 sps:$4 sm:$0xff]  }
  0x66   :  { %1067 = vmatmul.mubr.bf16.vlgmr.msra.gmra.mrb[0].mxu0 %v1868_v6 }
  0x67   :  { %1108 = vmatmul.mubr.bf16.vlgmr.msra.gmra.mrb[0].mxu1 %v1870_v7  ;;  %1117 = vmatpush1.bf16.msra.mxu0 %v1614_v8  ;;  %v1705_v8 = vld [vmem:[#allocation2 + $0x1e8] ss:$16 sps:$4 sm:$0xff]  }
  0x68   :  { %1158 = vmatpush1.bf16.msra.mxu1 %v1617_v9  ;;  %1118 = vmatprep.subr.bf16.mxu0 %v1622_v10  ;;  %v1708_v9 = vld [vmem:[#allocation2 + $0x2e8] ss:$16 sps:$4 sm:$0xff]   ;;  %v1713_v10 = vld [vmem:[#allocation2 + $0x30c] ss:$16 sps:$4 sm:$0xff]  }
  0x69   :  { %1159 = vmatprep.subr.bf16.mxu1 %v1625_v11  ;;  %1148 = vmatprep.mubr.bf16.mxu0 %v1811_v16  ;;  %v1716_v11 = vld [vmem:[#allocation2 + $0x40c] ss:$16 sps:$4 sm:$0xff]  }
  0x6a   :  { %1189 = vmatprep.mubr.bf16.mxu1 %v1859_v47  ;;  %v1672_v47 = vld [vmem:[#allocation2 + $0x228] ss:$16 sps:$4 sm:$0xff]  }
  0x6b   :  { %1119 = vmatpush1.bf16.msra.mxu0 %v1620_v12  ;;  %v1711_v12 = vld [vmem:[#allocation2 + $0x308] ss:$16 sps:$4 sm:$0xff]  }
  0x6c   :  { %1160 = vmatpush1.bf16.msra.mxu1 %v1623_v13  ;;  %1120 = vmatprep.subr.bf16.mxu0 %v1628_v14  ;;  %v1714_v13 = vld [vmem:[#allocation2 + $0x408] ss:$16 sps:$4 sm:$0xff]   ;;  %v1719_v14 = vld [vmem:[#allocation2 + $0x32c] ss:$16 sps:$4 sm:$0xff]  }
  0x6d   :  { %1161 = vmatprep.subr.bf16.mxu1 %v1631_v15  ;;  %v1722_v15 = vld [vmem:[#allocation2 + $0x42c] ss:$16 sps:$4 sm:$0xff]  }
  0x6f   :  { %1121 = vmatpush1.bf16.msra.mxu0 %v1626_v17  ;;  %v1717_v17 = vld [vmem:[#allocation2 + $0x328] ss:$16 sps:$4 sm:$0xff]  }
  0x70   :  { %1162 = vmatpush1.bf16.msra.mxu1 %v1629_v18  ;;  %1122 = vmatprep.subr.bf16.mxu0 %v1634_v19  ;;  %v1720_v18 = vld [vmem:[#allocation2 + $0x428] ss:$16 sps:$4 sm:$0xff]   ;;  %v1725_v19 = vld [vmem:[#allocation2 + $0x34c] ss:$16 sps:$4 sm:$0xff]  }
  0x71   :  { %1163 = vmatprep.subr.bf16.mxu1 %v1637_v20  ;;  %v1728_v20 = vld [vmem:[#allocation2 + $0x44c] ss:$16 sps:$4 sm:$0xff]  }
  0x73   :  { %1123 = vmatpush1.bf16.msra.mxu0 %v1632_v21  ;;  %v1723_v21 = vld [vmem:[#allocation2 + $0x348] ss:$16 sps:$4 sm:$0xff]  }
  0x74   :  { %1164 = vmatpush1.bf16.msra.mxu1 %v1635_v22  ;;  %1124 = vmatprep.subr.bf16.mxu0 %v1640_v23  ;;  %v1726_v22 = vld [vmem:[#allocation2 + $0x448] ss:$16 sps:$4 sm:$0xff]   ;;  %v1731_v23 = vld [vmem:[#allocation2 + $0x36c] ss:$16 sps:$4 sm:$0xff]  }
  0x75   :  { %1165 = vmatprep.subr.bf16.mxu1 %v1643_v24  ;;  %v1734_v24 = vld [vmem:[#allocation2 + $0x46c] ss:$16 sps:$4 sm:$0xff]  }
  0x77   :  { %1125 = vmatpush1.bf16.msra.mxu0 %v1638_v25  ;;  %v1732_v25 = vld [vmem:[#allocation2 + $0x468] ss:$16 sps:$4 sm:$0xff]  }
  0x78   :  { %1166 = vmatpush1.bf16.msra.mxu1 %v1641_v26  ;;  %1126 = vmatprep.subr.bf16.mxu0 %v1646_v27  ;;  %v1737_v26 = vld [vmem:[#allocation2 + $0x38c] ss:$16 sps:$4 sm:$0xff]  }
  0x79   :  { %1167 = vmatprep.subr.bf16.mxu1 %v1649_v28  ;;  %v1740_v27 = vld [vmem:[#allocation2 + $0x48c] ss:$16 sps:$4 sm:$0xff]   ;;  %v1735_v28 = vld [vmem:[#allocation2 + $0x388] ss:$16 sps:$4 sm:$0xff]  }
  0x7b   :  { %1127 = vmatpush1.bf16.msra.mxu0 %v1644_v29  ;;  %v1743_v29 = vld [vmem:[#allocation2 + $0x3ac] ss:$16 sps:$4 sm:$0xff]  }
  0x7c   :  { %1168 = vmatpush1.bf16.msra.mxu1 %v1647_v30  ;;  %1128 = vmatprep.subr.bf16.mxu0 %v1652_v31  ;;  %v1746_v30 = vld [vmem:[#allocation2 + $0x4ac] ss:$16 sps:$4 sm:$0xff]   ;;  %v1741_v31 = vld [vmem:[#allocation2 + $0x3a8] ss:$16 sps:$4 sm:$0xff]  }
  0x7d   :  { %1169 = vmatprep.subr.bf16.mxu1 %v1655_v32  ;;  %v1744_v32 = vld [vmem:[#allocation2 + $0x4a8] ss:$16 sps:$4 sm:$0xff]  }
  0x7f   :  { %1129 = vmatpush1.bf16.msra.mxu0 %v1650_v33  ;;  %v1749_v33 = vld [vmem:[#allocation2 + $0x3cc] ss:$16 sps:$4 sm:$0xff]  }
  0x80   :  { %1170 = vmatpush1.bf16.msra.mxu1 %v1653_v34  ;;  %1130 = vmatprep.subr.bf16.mxu0 %v1658_v35  ;;  %v1752_v34 = vld [vmem:[#allocation2 + $0x4cc] ss:$16 sps:$4 sm:$0xff]   ;;  %v1747_v35 = vld [vmem:[#allocation2 + $0x3c8] ss:$16 sps:$4 sm:$0xff]  }
  0x81   :  { %1171 = vmatprep.subr.bf16.mxu1 %v1661_v36  ;;  %v1750_v36 = vld [vmem:[#allocation2 + $0x4c8] ss:$16 sps:$4 sm:$0xff]  }
  0x83   :  { %1131 = vmatpush1.bf16.msra.mxu0 %v1656_v37  ;;  %v1755_v37 = vld [vmem:[#allocation2 + $0x3ec] ss:$16 sps:$4 sm:$0xff]  }
  0x84   :  { %1172 = vmatpush1.bf16.msra.mxu1 %v1659_v38  ;;  %1198 = vmatprep.subr.bf16.mxu0 %v1668_v40  ;;  %v1758_v38 = vld [vmem:[#allocation2 + $0x4ec] ss:$16 sps:$4 sm:$0xff]   ;;  %v1756_v40 = vld [vmem:[#allocation2 + $0x4e8] ss:$16 sps:$4 sm:$0xff]  }
  0x85   :  { %1173 = vmatprep.subr.bf16.mxu1 %v1665_v39  ;;  %v1753_v39 = vld [vmem:[#allocation2 + $0x3e8] ss:$16 sps:$4 sm:$0xff]  }
  0x86   :  { %1149 = vmatmul.mubr.bf16.vlgmr.msra.gmra.mrb[4].mxu0 %v1879_v41 }
  0x87   :  { %1199 = vmatpush1.bf16.msra.mxu0 %v1666_v43  ;;  %1230 = vmatprep.mubr.bf16.mxu0 %v1864_v51  ;;  %v1690_v51 = vld [vmem:[#allocation2 + $0x288] ss:$16 sps:$4 sm:$0xff]  }
  0x88   :  { %1174 = vmatpush1.bf16.msra.mxu1 %v1663_v42  ;;  %1200 = vmatprep.subr.bf16.mxu0 %v1674_v45 }
  0x89   :  { %1175 = vmatprep.subr.bf16.mxu1 %v1671_v44 }
  0x8b   :  { %1201 = vmatpush1.bf16.msra.mxu0 %v1672_v47 }
  0x8c   :  { %1176 = vmatpush1.bf16.msra.mxu1 %v1669_v46  ;;  %1202 = vmatprep.subr.bf16.mxu0 %v1680_v49 }
  0x8d   :  { %1177 = vmatprep.subr.bf16.mxu1 %v1677_v48 }
  0x8f   :  { %1203 = vmatpush1.bf16.msra.mxu0 %v1678_v52 }
  0x90   :  { %1178 = vmatpush1.bf16.msra.mxu1 %v1675_v50  ;;  %1204 = vmatprep.subr.bf16.mxu0 %v1686_v54 }
  0x91   :  { %1179 = vmatprep.subr.bf16.mxu1 %v1683_v53  ;;  %v1297_v53 = vlaneseq }
  0x93   :  { %1205 = vmatpush1.bf16.msra.mxu0 %v1684_v56  ;;  %v1298_v54 = vshrl.u32 %v1297_v53, 7  ;;  %v1295_v56 = vld [vmem:[#allocation4] sm:$0xf] }
  0x94   :  { %1180 = vmatpush1.bf16.msra.mxu1 %v1681_v55  ;;  %1206 = vmatprep.subr.bf16.mxu0 %v1692_v58 }
  0x95   :  { %1181 = vmatprep.subr.bf16.mxu1 %v1689_v57  ;;  %v1299_v55 = vsub.s32 0, %v1298_v54  ;;  %v1303_v57 = vsub.s32 1, %v1298_v54 }
  0x97   :  { %1207 = vmatpush1.bf16.msra.mxu0 %v1690_v51 }
  0x98   :  { %1182 = vmatpush1.bf16.msra.mxu1 %v1687_v59  ;;  %1208 = vmatprep.subr.bf16.mxu0 %v1698_v61 }
  0x99   :  { %1183 = vmatprep.subr.bf16.mxu1 %v1695_v60  ;;  %v1304_v60 = vrot.slane %v1295_v56, %v1303_v57 }
  0x9b   :  { %1209 = vmatpush1.bf16.msra.mxu0 %v1696_v63 }
  0x9c   :  { %1184 = vmatpush1.bf16.msra.mxu1 %v1693_v62  ;;  %1210 = vmatprep.subr.bf16.mxu0 %v1704_v1 }
  0x9d   :  { %1185 = vmatprep.subr.bf16.mxu1 %v1701_v0 }
  0x9f   :  { %1211 = vmatpush1.bf16.msra.mxu0 %v1702_v3 }
  0xa0   :  { %1186 = vmatpush1.bf16.msra.mxu1 %v1699_v2  ;;  %1212 = vmatprep.subr.bf16.mxu0 %v1710_v5 }
  0xa1   :  { %1187 = vmatprep.subr.bf16.mxu1 %v1707_v4 }
  0xa3   :  { %1213 = vmatpush1.bf16.msra.mxu0 %v1708_v9 }
  0xa4   :  { %1188 = vmatpush1.bf16.msra.mxu1 %v1705_v8  ;;  %1214 = vmatprep.subr.bf16.mxu0 %v1713_v10 }
  0xa5   :  { %1239 = vmatprep.subr.bf16.mxu1 %v1716_v11  ;;  %v1307_v11 = vsub.s32 2, %v1298_v54 }
  0xa7   :  { %1190 = vmatmul.mubr.bf16.vlgmr.msra.gmra.mrb[4].mxu1 %v1868_v6  ;;  %1215 = vmatpush1.bf16.msra.mxu0 %v1711_v12  ;;  %v1729_v6 = vld [vmem:[#allocation2 + $0x368] ss:$16 sps:$4 sm:$0xff]  }
  0xa8   :  { %1240 = vmatpush1.bf16.msra.mxu1 %v1714_v13  ;;  %1216 = vmatprep.subr.bf16.mxu0 %v1719_v14  ;;  %v1311_v14 = vsub.s32 3, %v1298_v54 }
  0xa9   :  { %1241 = vmatprep.subr.bf16.mxu1 %v1722_v15  ;;  %1271 = vmatprep.mubr.bf16.mxu1 %v1811_v16  ;;  %v1738_v16 = vld [vmem:[#allocation2 + $0x488] ss:$16 sps:$4 sm:$0xff]  }
  0xab   :  { %1217 = vmatpush1.bf16.msra.mxu0 %v1717_v17 }
  0xac   :  { %1242 = vmatpush1.bf16.msra.mxu1 %v1720_v18  ;;  %1218 = vmatprep.subr.bf16.mxu0 %v1725_v19 }
  0xad   :  { %1243 = vmatprep.subr.bf16.mxu1 %v1728_v20 }
  0xaf   :  { %1219 = vmatpush1.bf16.msra.mxu0 %v1723_v21 }
  0xb0   :  { %1244 = vmatpush1.bf16.msra.mxu1 %v1726_v22  ;;  %1220 = vmatprep.subr.bf16.mxu0 %v1731_v23  ;;  %v1308_v23 = vrot.slane %v1295_v56, %v1307_v11 }
  0xb1   :  { %1245 = vmatprep.subr.bf16.mxu1 %v1734_v24 }
  0xb3   :  { %1221 = vmatpush1.bf16.msra.mxu0 %v1729_v6 }
  0xb4   :  { %1246 = vmatpush1.bf16.msra.mxu1 %v1732_v25  ;;  %1222 = vmatprep.subr.bf16.mxu0 %v1737_v26  ;;  %v1312_v26 = vrot.slane %v1295_v56, %v1311_v14 }
  0xb5   :  { %1247 = vmatprep.subr.bf16.mxu1 %v1740_v27 }
  0xb7   :  { %1223 = vmatpush1.bf16.msra.mxu0 %v1735_v28 }
  0xb8   :  { %1248 = vmatpush1.bf16.msra.mxu1 %v1738_v16  ;;  %1224 = vmatprep.subr.bf16.mxu0 %v1743_v29 }
  0xb9   :  { %1249 = vmatprep.subr.bf16.mxu1 %v1746_v30 }
  0xbb   :  { %1225 = vmatpush1.bf16.msra.mxu0 %v1741_v31 }
  0xbc   :  { %1250 = vmatpush1.bf16.msra.mxu1 %v1744_v32  ;;  %1226 = vmatprep.subr.bf16.mxu0 %v1749_v33 }
  0xbd   :  { %1251 = vmatprep.subr.bf16.mxu1 %v1752_v34 }
  0xbf   :  { %1227 = vmatpush1.bf16.msra.mxu0 %v1747_v35 }
  0xc0   :  { %1252 = vmatpush1.bf16.msra.mxu1 %v1750_v36  ;;  %1228 = vmatprep.subr.bf16.mxu0 %v1755_v37 }
  0xc1   :  { %1253 = vmatprep.subr.bf16.mxu1 %v1758_v38 }
  0xc3   :  { %1229 = vmatpush1.bf16.msra.mxu0 %v1753_v39 }
  0xc4   :  { %1254 = vmatpush1.bf16.msra.mxu1 %v1756_v40 }
  0xc6   :  { %1231 = vmatmul.mubr.bf16.vlgmr.msra.gmra.mrb[8].mxu0 %v1870_v7  ;;  %v1300_v7 = vrot.slane %v1295_v56, %v1299_v55 }
  0xc7   :  { %1272 = vmatmul.mubr.bf16.vlgmr.msra.gmra.mrb[8].mxu1 %v1879_v41 }
 0x139   :  { %v1068_v42 = vpop.f32.mrb[0].mxu0 }
 0x13a   :  { %v1109_v43 = vpop.f32.mrb[0].mxu1  ;;  %v1070_v45 = vpop.f32.mrb[1].mxu0 }
 0x13b   :  { %v1110_v44 = vadd.f32 %v1109_v43, %v1068_v42  ;;  %v1111_v46 = vpop.f32.mrb[1].mxu1  ;;  %v1072_v48 = vpop.f32.mrb[2].mxu0 }
 0x13c   :  { %v1112_v47 = vadd.f32 %v1111_v46, %v1070_v45  ;;  %v1113_v49 = vpop.f32.mrb[2].mxu1  ;;  %v1073_v50 = vpop.f32.mrb[3].mxu0 }
 0x13d   :  { %v1114_v52 = vpop.f32.mrb[3].mxu1 }
 0x159   :  { %v1150_v58 = vpop.f32.mrb[4].mxu0 }
 0x15a   :  { %v1151_v59 = vadd.f32 %v1150_v58, %v1110_v44  ;;  %v1152_v51 = vpop.f32.mrb[5].mxu0 }
 0x15b   :  { %v1153_v41 = vadd.f32 %v1152_v51, %v1112_v47  ;;  %v1154_v61 = vpop.f32.mrb[6].mxu0 }
 0x15c   :  { %v1155_v62 = vpop.f32.mrb[7].mxu0  ;;  %v1317_v63 = vadd.f32 %v1300_v7, %v1151_v59 }
 0x15d   :  { %v1318_v0 = vadd.f32 %v1304_v60, %v1153_v41 }
 0x15e   :  { %vm1321_vm0 = vcmp.ge.f32.partialorder %v1317_v63, 0.0  ;;  %v1325_v1 = vmul.f32 0.1, %v1317_v63 }
 0x15f   :  { %vm1322_vm1 = vcmp.ge.f32.partialorder %v1318_v0, 0.0  ;;  %v1326_v2 = vmul.f32 0.1, %v1318_v0 }
 0x160   :  { %v1329_v3 = vsel %vm1321_vm0, %v1317_v63, %v1325_v1 }
 0x161   :  { %1333 = vst [vmem:[%s1902_s3] sm:$0xff] %v1329_v3  ;;  %v1330_v4 = vsel %vm1322_vm1, %v1318_v0, %v1326_v2 }
 0x162   :  { %1334 = vst [vmem:[%s1902_s3 + $0x8] sm:$0xff] %v1330_v4 }
 0x17a   :  { %v1191_v5 = vpop.f32.mrb[4].mxu1 }
 0x17b   :  { %v1193_v8 = vpop.f32.mrb[5].mxu1 }
 0x17c   :  { %v1195_v9 = vpop.f32.mrb[6].mxu1 }
 0x17d   :  { %v1196_v10 = vpop.f32.mrb[7].mxu1 }
 0x199   :  { %v1232_v12 = vpop.f32.mrb[8].mxu0 }
 0x19a   :  { %v1273_v13 = vpop.f32.mrb[8].mxu1  ;;  %v1233_v15 = vadd.f32 %v1232_v12, %v1191_v5  ;;  %v1234_v17 = vpop.f32.mrb[9].mxu0 }
 0x19b   :  { %v1275_v18 = vpop.f32.mrb[9].mxu1  ;;  %v1235_v19 = vadd.f32 %v1234_v17, %v1193_v8  ;;  %v1236_v20 = vpop.f32.mrb[10].mxu0 }
 0x19c   :  { %v1277_v21 = vpop.f32.mrb[10].mxu1  ;;  %v1274_v22 = vadd.f32 %v1273_v13, %v1233_v15  ;;  %v1237_v24 = vpop.f32.mrb[11].mxu0 }
 0x19d   :  { %v1278_v6 = vpop.f32.mrb[11].mxu1  ;;  %v1276_v25 = vadd.f32 %v1275_v18, %v1235_v19 }
 0x19e   :  { %v1319_v27 = vadd.f32 %v1308_v23, %v1274_v22 }
 0x19f   :  { %v1320_v28 = vadd.f32 %v1312_v26, %v1276_v25 }
 0x1a0   :  { %vm1323_vm2 = vcmp.ge.f32.partialorder %v1319_v27, 0.0  ;;  %v1327_v16 = vmul.f32 0.1, %v1319_v27 }
 0x1a1   :  { %vm1324_vm3 = vcmp.ge.f32.partialorder %v1320_v28, 0.0  ;;  %v1328_v29 = vmul.f32 0.1, %v1320_v28 }
 0x1a2   :  { %v1331_v30 = vsel %vm1323_vm2, %v1319_v27, %v1327_v16 }
 0x1a3   :  { %1335 = vst [vmem:[%s1902_s3 + $0x10] sm:$0xff] %v1331_v30  ;;  %v1332_v31 = vsel %vm1324_vm3, %v1320_v28, %v1328_v29 }
 0x1a4   :  { %1336 = vst [vmem:[%s1902_s3 + $0x18] sm:$0xff] %v1332_v31 }
 0x1a5   :  { %1341 = vsyncpa [#allocation3], 1 }
 0x1a6   :  { %1342 = vsyncpa [#allocation5], 1 }

// kernel: mp_subdisc_forward.11
= control target key start
LH: loop header
LB: loop body
LE: loop exit
PB: predicated region body
PF: predicated region fallthrough
CT: control target
= control target key end

     0   :  { %vm21_vm0 = vcmask 7168   ;;  %s3508_s1 = inlined_call_operand.vmem [shape: bf16[3072,1], index: 1, kind: input, shape index: {}]   ;;  %s3509_s0 = inlined_call_operand.vmem [shape: bf16[8,3072], index: 0, kind: input, shape index: {}]   ;;  %s3510_s3 = inlined_call_operand.vmem [shape: f32[8,1], index: 3, kind: output, shape index: {}]   ;;  %s3511_s2 = inlined_call_operand.<no memory space> [shape: f32[1,1], index: 2, kind: input, shape index: {}]  }
   0x1   :  { %v2638_v0 = vld [vmem:[%s3508_s1 + $0x40] sm:$0xff]   ;;  %v2642_v4 = vld [vmem:[%s3508_s1 + $0x48] sm:$0xff]   ;;  %v2646_v8 = vld [vmem:[%s3508_s1 + $0x50] sm:$0xff]  }
   0x2   :  { %v2639_v1 = vld [vmem:[%s3508_s1 + $0xc0] sm:$0xff]   ;;  %2373 = vmatprep.subr.bf16.mxu0 %v2638_v0  ;;  %v2643_v5 = vld [vmem:[%s3508_s1 + $0xc8] sm:$0xff]   ;;  %v2647_v9 = vld [vmem:[%s3508_s1 + $0xd0] sm:$0xff]  }
   0x3   :  { %v2640_v2 = vld [vmem:[%s3508_s1] sm:$0xff]   ;;  %2395 = vmatprep.subr.bf16.mxu1 %v2639_v1  ;;  %v2644_v6 = vld [vmem:[%s3508_s1 + $0x8] sm:$0xff]   ;;  %v2648_v10 = vld [vmem:[%s3508_s1 + $0x10] sm:$0xff]  }
   0x4   :  { %v2641_v3 = vld [vmem:[%s3508_s1 + $0x80] sm:$0xff]   ;;  %2374 = vmatpush3.bf16.msra.mxu0 %v2640_v2  ;;  %v2645_v7 = vld [vmem:[%s3508_s1 + $0x88] sm:$0xff]   ;;  %v2649_v11 = vld [vmem:[%s3508_s1 + $0x90] sm:$0xff]  }
   0x5   :  { %2396 = vmatpush3.bf16.msra.mxu1 %v2641_v3  ;;  %2375 = vmatprep.subr.bf16.mxu0 %v2642_v4  ;;  %v2650_v12 = vld [vmem:[%s3508_s1 + $0x58] sm:$0xff]   ;;  %v2654_v16 = vld [vmem:[%s3508_s1 + $0x60] sm:$0xff]   ;;  %v2658_v20 = vld [vmem:[%s3508_s1 + $0x68] sm:$0xff]  }
   0x6   :  { %2397 = vmatprep.subr.bf16.mxu1 %v2643_v5  ;;  %v2651_v13 = vld [vmem:[%s3508_s1 + $0xd8] sm:$0xff]   ;;  %v2655_v17 = vld [vmem:[%s3508_s1 + $0xe0] sm:$0xff]   ;;  %v2659_v21 = vld [vmem:[%s3508_s1 + $0xe8] sm:$0xff]  }
   0x7   :  { %v2652_v14 = vld [vmem:[%s3508_s1 + $0x18] sm:$0xff]   ;;  %v2656_v18 = vld [vmem:[%s3508_s1 + $0x20] sm:$0xff]   ;;  %v2660_v22 = vld [vmem:[%s3508_s1 + $0x28] sm:$0xff]  }
   0x8   :  { %2376 = vmatpush3.bf16.msra.mxu0 %v2644_v6  ;;  %v2653_v15 = vld [vmem:[%s3508_s1 + $0x98] sm:$0xff]   ;;  %v2657_v19 = vld [vmem:[%s3508_s1 + $0xa0] sm:$0xff]   ;;  %v2661_v23 = vld [vmem:[%s3508_s1 + $0xa8] sm:$0xff]  }
   0x9   :  { %2398 = vmatpush3.bf16.msra.mxu1 %v2645_v7  ;;  %2377 = vmatprep.subr.bf16.mxu0 %v2646_v8  ;;  %v2662_v24 = vld [vmem:[%s3508_s1 + $0x70] sm:$0xff]   ;;  %v2666_v28 = vld [vmem:[%s3508_s1 + $0x78] sm:$0xff]   ;;  %v24_v32 = vld [vmem:[%s3509_s0] sm:$0xff] }
   0xa   :  { %2399 = vmatprep.subr.bf16.mxu1 %v2647_v9  ;;  %v2663_v25 = vld [vmem:[%s3508_s1 + $0xf0] sm:$0xff]   ;;  %v2667_v29 = vld [vmem:[%s3508_s1 + $0xf8] sm:$0xff]   ;;  %v25_v33 = vld [vmem:[%s3509_s0 + $0x8] sm:$0xff]  ;;  %v2156_v34 = vcombine.low %v24_v32, %v24_v32  ;;  %v2157_v35 = vcombine.high %v24_v32, %v24_v32 }
   0xb   :  { %v2664_v26 = vld [vmem:[%s3508_s1 + $0x30] sm:$0xff]   ;;  %v2668_v30 = vld [vmem:[%s3508_s1 + $0x38] sm:$0xff]   ;;  %v2158_v36 = vcombine.low %v25_v33, %v25_v33  ;;  %v2159_v37 = vcombine.high %v25_v33, %v25_v33  ;;  %v2674_v38 = vld [vmem:[%s3508_s1 + $0x140] sm:$0xff]  }
   0xc   :  { %2378 = vmatpush3.bf16.msra.mxu0 %v2648_v10  ;;  %v2665_v27 = vld [vmem:[%s3508_s1 + $0xb0] sm:$0xff]   ;;  %v2669_v31 = vld [vmem:[%s3508_s1 + $0xb8] sm:$0xff]   ;;  %v2675_v39 = vld [vmem:[%s3508_s1 + $0x1c0] sm:$0xff]   ;;  %1688 = vmatprep.mubr.bf16.mxu0 %v2157_v35 }
   0xd   :  { %2400 = vmatpush3.bf16.msra.mxu1 %v2649_v11  ;;  %2379 = vmatprep.subr.bf16.mxu0 %v2650_v12  ;;  %v2676_v40 = vld [vmem:[%s3508_s1 + $0x100] sm:$0xff]   ;;  %v2678_v42 = vld [vmem:[%s3508_s1 + $0x148] sm:$0xff]   ;;  %v2682_v46 = vld [vmem:[%s3508_s1 + $0x150] sm:$0xff]  }
   0xe   :  { %2401 = vmatprep.subr.bf16.mxu1 %v2651_v13  ;;  %1728 = vmatprep.mubr.bf16.mxu1 %v2159_v37  ;;  %v2677_v41 = vld [vmem:[%s3508_s1 + $0x180] sm:$0xff]   ;;  %v2679_v43 = vld [vmem:[%s3508_s1 + $0x1c8] sm:$0xff]   ;;  %v2683_v47 = vld [vmem:[%s3508_s1 + $0x1d0] sm:$0xff]  }
   0xf   :  { %v2680_v44 = vld [vmem:[%s3508_s1 + $0x108] sm:$0xff]   ;;  %v2684_v48 = vld [vmem:[%s3508_s1 + $0x110] sm:$0xff]   ;;  %v2686_v50 = vld [vmem:[%s3508_s1 + $0x158] sm:$0xff]  }
  0x10   :  { %2380 = vmatpush3.bf16.msra.mxu0 %v2652_v14  ;;  %v2681_v45 = vld [vmem:[%s3508_s1 + $0x188] sm:$0xff]   ;;  %v2685_v49 = vld [vmem:[%s3508_s1 + $0x190] sm:$0xff]   ;;  %v2687_v51 = vld [vmem:[%s3508_s1 + $0x1d8] sm:$0xff]  }
  0x11   :  { %2402 = vmatpush3.bf16.msra.mxu1 %v2653_v15  ;;  %2381 = vmatprep.subr.bf16.mxu0 %v2654_v16  ;;  %v2688_v52 = vld [vmem:[%s3508_s1 + $0x118] sm:$0xff]   ;;  %v2690_v54 = vld [vmem:[%s3508_s1 + $0x160] sm:$0xff]   ;;  %v2694_v58 = vld [vmem:[%s3508_s1 + $0x168] sm:$0xff]  }
  0x12   :  { %2403 = vmatprep.subr.bf16.mxu1 %v2655_v17  ;;  %v2689_v53 = vld [vmem:[%s3508_s1 + $0x198] sm:$0xff]   ;;  %v2691_v55 = vld [vmem:[%s3508_s1 + $0x1e0] sm:$0xff]   ;;  %v2695_v59 = vld [vmem:[%s3508_s1 + $0x1e8] sm:$0xff]  }
  0x13   :  { %v2692_v56 = vld [vmem:[%s3508_s1 + $0x120] sm:$0xff]   ;;  %v2696_v60 = vld [vmem:[%s3508_s1 + $0x128] sm:$0xff]   ;;  %v2698_v62 = vld [vmem:[%s3508_s1 + $0x170] sm:$0xff]  }
  0x14   :  { %2382 = vmatpush3.bf16.msra.mxu0 %v2656_v18  ;;  %v2693_v57 = vld [vmem:[%s3508_s1 + $0x1a0] sm:$0xff]   ;;  %v2697_v61 = vld [vmem:[%s3508_s1 + $0x1a8] sm:$0xff]   ;;  %v2699_v63 = vld [vmem:[%s3508_s1 + $0x1f0] sm:$0xff]  }
  0x15   :  { %2404 = vmatpush3.bf16.msra.mxu1 %v2657_v19  ;;  %2383 = vmatprep.subr.bf16.mxu0 %v2658_v20  ;;  %v2700_v0 = vld [vmem:[%s3508_s1 + $0x130] sm:$0xff]   ;;  %v2702_v2 = vld [vmem:[%s3508_s1 + $0x178] sm:$0xff]   ;;  %v2710_v12 = vld [vmem:[%s3508_s1 + $0x240] sm:$0xff]  }
  0x16   :  { %2405 = vmatprep.subr.bf16.mxu1 %v2659_v21  ;;  %v2701_v1 = vld [vmem:[%s3508_s1 + $0x1b0] sm:$0xff]   ;;  %v2703_v3 = vld [vmem:[%s3508_s1 + $0x1f8] sm:$0xff]   ;;  %v2711_v13 = vld [vmem:[%s3508_s1 + $0x2c0] sm:$0xff]  }
  0x17   :  { %v2704_v4 = vld [vmem:[%s3508_s1 + $0x138] sm:$0xff]   ;;  %v26_v6 = vld [vmem:[%s3509_s0 + $0x10] sm:$0xff]  ;;  %v2712_v14 = vld [vmem:[%s3508_s1 + $0x200] sm:$0xff]  }
  0x18   :  { %2384 = vmatpush3.bf16.msra.mxu0 %v2660_v22  ;;  %v2705_v5 = vld [vmem:[%s3508_s1 + $0x1b8] sm:$0xff]   ;;  %v2160_v7 = vcombine.low %v26_v6, %v26_v6  ;;  %v2161_v8 = vcombine.high %v26_v6, %v26_v6  ;;  %v2713_v15 = vld [vmem:[%s3508_s1 + $0x280] sm:$0xff]   ;;  %v2714_v16 = vld [vmem:[%s3508_s1 + $0x248] sm:$0xff]  }
  0x19   :  { %2406 = vmatpush3.bf16.msra.mxu1 %v2661_v23  ;;  %2385 = vmatprep.subr.bf16.mxu0 %v2662_v24  ;;  %v27_v9 = vld [vmem:[%s3509_s0 + $0x18] sm:$0xff]  ;;  %v2715_v17 = vld [vmem:[%s3508_s1 + $0x2c8] sm:$0xff]   ;;  %v2718_v20 = vld [vmem:[%s3508_s1 + $0x250] sm:$0xff]  }
  0x1a   :  { %2407 = vmatprep.subr.bf16.mxu1 %v2663_v25  ;;  %v2162_v10 = vcombine.low %v27_v9, %v27_v9  ;;  %v2163_v11 = vcombine.high %v27_v9, %v27_v9  ;;  %v2716_v18 = vld [vmem:[%s3508_s1 + $0x208] sm:$0xff]   ;;  %v2719_v21 = vld [vmem:[%s3508_s1 + $0x2d0] sm:$0xff]   ;;  %v2722_v24 = vld [vmem:[%s3508_s1 + $0x258] sm:$0xff]  }
  0x1b   :  { %v2717_v19 = vld [vmem:[%s3508_s1 + $0x288] sm:$0xff]   ;;  %v2720_v22 = vld [vmem:[%s3508_s1 + $0x210] sm:$0xff]   ;;  %v2723_v25 = vld [vmem:[%s3508_s1 + $0x2d8] sm:$0xff]  }
  0x1c   :  { %2386 = vmatpush3.bf16.msra.mxu0 %v2664_v26  ;;  %v2721_v23 = vld [vmem:[%s3508_s1 + $0x290] sm:$0xff]   ;;  %v2724_v26 = vld [vmem:[%s3508_s1 + $0x218] sm:$0xff]   ;;  %v2730_v32 = vld [vmem:[%s3508_s1 + $0x268] sm:$0xff]  }
  0x1d   :  { %2408 = vmatpush3.bf16.msra.mxu1 %v2665_v27  ;;  %2387 = vmatprep.subr.bf16.mxu0 %v2666_v28  ;;  %v2725_v27 = vld [vmem:[%s3508_s1 + $0x298] sm:$0xff]   ;;  %v2726_v28 = vld [vmem:[%s3508_s1 + $0x260] sm:$0xff]   ;;  %v2731_v33 = vld [vmem:[%s3508_s1 + $0x2e8] sm:$0xff]  }
  0x1e   :  { %2409 = vmatprep.subr.bf16.mxu1 %v2667_v29  ;;  %v2727_v29 = vld [vmem:[%s3508_s1 + $0x2e0] sm:$0xff]   ;;  %v2733_v35 = vld [vmem:[%s3508_s1 + $0x2a8] sm:$0xff]   ;;  %v2735_v37 = vld [vmem:[%s3508_s1 + $0x2f0] sm:$0xff]  }
  0x1f   :  { %v2766_v6 = vld [vmem:[%s3508_s1 + $0x368] sm:$0xff]  }
  0x20   :  { %2388 = vmatpush3.bf16.msra.mxu0 %v2668_v30  ;;  %v2728_v30 = vld [vmem:[%s3508_s1 + $0x220] sm:$0xff]   ;;  %v2769_v9 = vld [vmem:[%s3508_s1 + $0x3a8] sm:$0xff]  }
  0x21   :  { %2410 = vmatpush3.bf16.msra.mxu1 %v2669_v31  ;;  %2417 = vmatprep.subr.bf16.mxu0 %v2674_v38  ;;  %v2729_v31 = vld [vmem:[%s3508_s1 + $0x2a0] sm:$0xff]   ;;  %v2736_v38 = vld [vmem:[%s3508_s1 + $0x230] sm:$0xff]  }
  0x22   :  { %2439 = vmatprep.subr.bf16.mxu1 %v2675_v39  ;;  %v2737_v39 = vld [vmem:[%s3508_s1 + $0x2b0] sm:$0xff]  }
  0x23   :  { %1689 = vmatmul.mubr.bf16.vlgmr.msra.gmra.mrb[0].mxu0 %v2156_v34  ;;  %v2732_v34 = vld [vmem:[%s3508_s1 + $0x228] sm:$0xff]  }
  0x24   :  { %1729 = vmatmul.mubr.bf16.vlgmr.msra.gmra.mrb[0].mxu1 %v2158_v36  ;;  %2418 = vmatpush3.bf16.msra.mxu0 %v2676_v40  ;;  %v2734_v36 = vld [vmem:[%s3508_s1 + $0x270] sm:$0xff]   ;;  %v2738_v40 = vld [vmem:[%s3508_s1 + $0x278] sm:$0xff]  }
  0x25   :  { %2440 = vmatpush3.bf16.msra.mxu1 %v2677_v41  ;;  %2419 = vmatprep.subr.bf16.mxu0 %v2678_v42  ;;  %v2739_v41 = vld [vmem:[%s3508_s1 + $0x2f8] sm:$0xff]  }
  0x26   :  { %2441 = vmatprep.subr.bf16.mxu1 %v2679_v43  ;;  %1768 = vmatprep.mubr.bf16.mxu0 %v2161_v8  ;;  %v2740_v42 = vld [vmem:[%s3508_s1 + $0x238] sm:$0xff]   ;;  %v2768_v8 = vld [vmem:[%s3508_s1 + $0x328] sm:$0xff]  }
  0x27   :  { %1808 = vmatprep.mubr.bf16.mxu1 %v2163_v11  ;;  %v2741_v43 = vld [vmem:[%s3508_s1 + $0x2b8] sm:$0xff]   ;;  %v2771_v11 = vld [vmem:[%s3508_s1 + $0x3f0] sm:$0xff]  }
  0x28   :  { %2420 = vmatpush3.bf16.msra.mxu0 %v2680_v44  ;;  %v28_v44 = vld [vmem:[%s3509_s0 + $0x20] sm:$0xff] }
  0x29   :  { %2442 = vmatpush3.bf16.msra.mxu1 %v2681_v45  ;;  %2421 = vmatprep.subr.bf16.mxu0 %v2682_v46  ;;  %v29_v45 = vld [vmem:[%s3509_s0 + $0x28] sm:$0xff]  ;;  %v2164_v46 = vcombine.low %v28_v44, %v28_v44 }
  0x2a   :  { %2443 = vmatprep.subr.bf16.mxu1 %v2683_v47  ;;  %v2165_v47 = vcombine.high %v28_v44, %v28_v44  ;;  %v2802_v44 = vld [vmem:[%s3508_s1 + $0x468] sm:$0xff]  }
  0x2c   :  { %2422 = vmatpush3.bf16.msra.mxu0 %v2684_v48  ;;  %v2166_v48 = vcombine.low %v29_v45, %v29_v45 }
  0x2d   :  { %2444 = vmatpush3.bf16.msra.mxu1 %v2685_v49  ;;  %2423 = vmatprep.subr.bf16.mxu0 %v2686_v50  ;;  %v2167_v49 = vcombine.high %v29_v45, %v29_v45  ;;  %v2746_v50 = vld [vmem:[%s3508_s1 + $0x340] sm:$0xff]   ;;  %v2803_v45 = vld [vmem:[%s3508_s1 + $0x4e8] sm:$0xff]  }
  0x2e   :  { %2445 = vmatprep.subr.bf16.mxu1 %v2687_v51  ;;  %v2747_v51 = vld [vmem:[%s3508_s1 + $0x3c0] sm:$0xff]  }
  0x30   :  { %2424 = vmatpush3.bf16.msra.mxu0 %v2688_v52  ;;  %v2748_v52 = vld [vmem:[%s3508_s1 + $0x300] sm:$0xff]  }
  0x31   :  { %2446 = vmatpush3.bf16.msra.mxu1 %v2689_v53  ;;  %2425 = vmatprep.subr.bf16.mxu0 %v2690_v54  ;;  %v2749_v53 = vld [vmem:[%s3508_s1 + $0x380] sm:$0xff]   ;;  %v2750_v54 = vld [vmem:[%s3508_s1 + $0x348] sm:$0xff]  }
  0x32   :  { %2447 = vmatprep.subr.bf16.mxu1 %v2691_v55  ;;  %v2751_v55 = vld [vmem:[%s3508_s1 + $0x3c8] sm:$0xff]  }
  0x34   :  { %2426 = vmatpush3.bf16.msra.mxu0 %v2692_v56  ;;  %v2752_v56 = vld [vmem:[%s3508_s1 + $0x308] sm:$0xff]  }
  0x35   :  { %2448 = vmatpush3.bf16.msra.mxu1 %v2693_v57  ;;  %2427 = vmatprep.subr.bf16.mxu0 %v2694_v58  ;;  %v2753_v57 = vld [vmem:[%s3508_s1 + $0x388] sm:$0xff]   ;;  %v2754_v58 = vld [vmem:[%s3508_s1 + $0x350] sm:$0xff]  }
  0x36   :  { %2449 = vmatprep.subr.bf16.mxu1 %v2695_v59  ;;  %v2755_v59 = vld [vmem:[%s3508_s1 + $0x3d0] sm:$0xff]  }
  0x38   :  { %2428 = vmatpush3.bf16.msra.mxu0 %v2696_v60  ;;  %v2756_v60 = vld [vmem:[%s3508_s1 + $0x310] sm:$0xff]  }
  0x39   :  { %2450 = vmatpush3.bf16.msra.mxu1 %v2697_v61  ;;  %2429 = vmatprep.subr.bf16.mxu0 %v2698_v62  ;;  %v2757_v61 = vld [vmem:[%s3508_s1 + $0x390] sm:$0xff]   ;;  %v2758_v62 = vld [vmem:[%s3508_s1 + $0x358] sm:$0xff]  }
  0x3a   :  { %2451 = vmatprep.subr.bf16.mxu1 %v2699_v63  ;;  %v2759_v63 = vld [vmem:[%s3508_s1 + $0x3d8] sm:$0xff]  }
  0x3c   :  { %2430 = vmatpush3.bf16.msra.mxu0 %v2700_v0  ;;  %v2760_v0 = vld [vmem:[%s3508_s1 + $0x318] sm:$0xff]  }
  0x3d   :  { %2452 = vmatpush3.bf16.msra.mxu1 %v2701_v1  ;;  %2431 = vmatprep.subr.bf16.mxu0 %v2702_v2  ;;  %v2761_v1 = vld [vmem:[%s3508_s1 + $0x398] sm:$0xff]   ;;  %v2762_v2 = vld [vmem:[%s3508_s1 + $0x360] sm:$0xff]  }
  0x3e   :  { %2453 = vmatprep.subr.bf16.mxu1 %v2703_v3  ;;  %v2763_v3 = vld [vmem:[%s3508_s1 + $0x3e0] sm:$0xff]  }
  0x40   :  { %2432 = vmatpush3.bf16.msra.mxu0 %v2704_v4  ;;  %v2764_v4 = vld [vmem:[%s3508_s1 + $0x320] sm:$0xff]  }
  0x41   :  { %2454 = vmatpush3.bf16.msra.mxu1 %v2705_v5  ;;  %2461 = vmatprep.subr.bf16.mxu0 %v2710_v12  ;;  %v2765_v5 = vld [vmem:[%s3508_s1 + $0x3a0] sm:$0xff]   ;;  %v2772_v12 = vld [vmem:[%s3508_s1 + $0x330] sm:$0xff]  }
  0x42   :  { %2483 = vmatprep.subr.bf16.mxu1 %v2711_v13  ;;  %v2773_v13 = vld [vmem:[%s3508_s1 + $0x3b0] sm:$0xff]  }
  0x43   :  { %1769 = vmatmul.mubr.bf16.vlgmr.msra.gmra.mrb[4].mxu0 %v2160_v7  ;;  %v2767_v7 = vld [vmem:[%s3508_s1 + $0x3e8] sm:$0xff]  }
  0x44   :  { %1809 = vmatmul.mubr.bf16.vlgmr.msra.gmra.mrb[4].mxu1 %v2162_v10  ;;  %2462 = vmatpush3.bf16.msra.mxu0 %v2712_v14  ;;  %v2770_v10 = vld [vmem:[%s3508_s1 + $0x370] sm:$0xff]   ;;  %v2774_v14 = vld [vmem:[%s3508_s1 + $0x378] sm:$0xff]  }
  0x45   :  { %2484 = vmatpush3.bf16.msra.mxu1 %v2713_v15  ;;  %2463 = vmatprep.subr.bf16.mxu0 %v2714_v16  ;;  %v2775_v15 = vld [vmem:[%s3508_s1 + $0x3f8] sm:$0xff]  }
  0x46   :  { %2485 = vmatprep.subr.bf16.mxu1 %v2715_v17  ;;  %1848 = vmatprep.mubr.bf16.mxu0 %v2165_v47  ;;  %v2776_v16 = vld [vmem:[%s3508_s1 + $0x338] sm:$0xff]   ;;  %v2805_v47 = vld [vmem:[%s3508_s1 + $0x4a8] sm:$0xff]  }
  0x47   :  { %1888 = vmatprep.mubr.bf16.mxu1 %v2167_v49  ;;  %v2777_v17 = vld [vmem:[%s3508_s1 + $0x3b8] sm:$0xff]   ;;  %v2807_v49 = vld [vmem:[%s3508_s1 + $0x4f0] sm:$0xff]  }
  0x48   :  { %2464 = vmatpush3.bf16.msra.mxu0 %v2716_v18  ;;  %v30_v18 = vld [vmem:[%s3509_s0 + $0x30] sm:$0xff] }
  0x49   :  { %2486 = vmatpush3.bf16.msra.mxu1 %v2717_v19  ;;  %2465 = vmatprep.subr.bf16.mxu0 %v2718_v20  ;;  %v31_v19 = vld [vmem:[%s3509_s0 + $0x38] sm:$0xff]  ;;  %v2168_v20 = vcombine.low %v30_v18, %v30_v18 }
  0x4a   :  { %2487 = vmatprep.subr.bf16.mxu1 %v2719_v21  ;;  %v2169_v21 = vcombine.high %v30_v18, %v30_v18  ;;  %v2838_v18 = vld [vmem:[%s3508_s1 + $0x568] sm:$0xff]  }
  0x4c   :  { %2466 = vmatpush3.bf16.msra.mxu0 %v2720_v22  ;;  %v2170_v22 = vcombine.low %v31_v19, %v31_v19 }
  0x4d   :  { %2488 = vmatpush3.bf16.msra.mxu1 %v2721_v23  ;;  %2467 = vmatprep.subr.bf16.mxu0 %v2722_v24  ;;  %v2782_v23 = vld [vmem:[%s3508_s1 + $0x440] sm:$0xff]   ;;  %v2171_v24 = vcombine.high %v31_v19, %v31_v19  ;;  %v2839_v19 = vld [vmem:[%s3508_s1 + $0x5e8] sm:$0xff]  }
  0x4e   :  { %2489 = vmatprep.subr.bf16.mxu1 %v2723_v25  ;;  %v2783_v25 = vld [vmem:[%s3508_s1 + $0x4c0] sm:$0xff]  }
  0x50   :  { %2468 = vmatpush3.bf16.msra.mxu0 %v2724_v26  ;;  %v2784_v26 = vld [vmem:[%s3508_s1 + $0x400] sm:$0xff]  }
  0x51   :  { %2490 = vmatpush3.bf16.msra.mxu1 %v2725_v27  ;;  %2469 = vmatprep.subr.bf16.mxu0 %v2726_v28  ;;  %v2785_v27 = vld [vmem:[%s3508_s1 + $0x480] sm:$0xff]   ;;  %v2786_v28 = vld [vmem:[%s3508_s1 + $0x448] sm:$0xff]  }
  0x52   :  { %2491 = vmatprep.subr.bf16.mxu1 %v2727_v29  ;;  %v2787_v29 = vld [vmem:[%s3508_s1 + $0x4c8] sm:$0xff]  }
  0x54   :  { %2470 = vmatpush3.bf16.msra.mxu0 %v2728_v30  ;;  %v2788_v30 = vld [vmem:[%s3508_s1 + $0x408] sm:$0xff]  }
  0x55   :  { %2492 = vmatpush3.bf16.msra.mxu1 %v2729_v31  ;;  %2471 = vmatprep.subr.bf16.mxu0 %v2730_v32  ;;  %v2789_v31 = vld [vmem:[%s3508_s1 + $0x488] sm:$0xff]   ;;  %v2790_v32 = vld [vmem:[%s3508_s1 + $0x450] sm:$0xff]  }
  0x56   :  { %2493 = vmatprep.subr.bf16.mxu1 %v2731_v33  ;;  %v2791_v33 = vld [vmem:[%s3508_s1 + $0x4d0] sm:$0xff]  }
  0x58   :  { %2472 = vmatpush3.bf16.msra.mxu0 %v2732_v34  ;;  %v2792_v34 = vld [vmem:[%s3508_s1 + $0x410] sm:$0xff]  }
  0x59   :  { %2494 = vmatpush3.bf16.msra.mxu1 %v2733_v35  ;;  %2473 = vmatprep.subr.bf16.mxu0 %v2734_v36  ;;  %v2793_v35 = vld [vmem:[%s3508_s1 + $0x490] sm:$0xff]   ;;  %v2794_v36 = vld [vmem:[%s3508_s1 + $0x458] sm:$0xff]  }
  0x5a   :  { %2495 = vmatprep.subr.bf16.mxu1 %v2735_v37  ;;  %v2795_v37 = vld [vmem:[%s3508_s1 + $0x4d8] sm:$0xff]  }
  0x5c   :  { %2474 = vmatpush3.bf16.msra.mxu0 %v2736_v38  ;;  %v2796_v38 = vld [vmem:[%s3508_s1 + $0x418] sm:$0xff]  }
  0x5d   :  { %2496 = vmatpush3.bf16.msra.mxu1 %v2737_v39  ;;  %2475 = vmatprep.subr.bf16.mxu0 %v2738_v40  ;;  %v2797_v39 = vld [vmem:[%s3508_s1 + $0x498] sm:$0xff]   ;;  %v2798_v40 = vld [vmem:[%s3508_s1 + $0x460] sm:$0xff]  }
  0x5e   :  { %2497 = vmatprep.subr.bf16.mxu1 %v2739_v41  ;;  %v2799_v41 = vld [vmem:[%s3508_s1 + $0x4e0] sm:$0xff]  }
  0x60   :  { %2476 = vmatpush3.bf16.msra.mxu0 %v2740_v42  ;;  %v2800_v42 = vld [vmem:[%s3508_s1 + $0x420] sm:$0xff]  }
  0x61   :  { %2498 = vmatpush3.bf16.msra.mxu1 %v2741_v43  ;;  %2505 = vmatprep.subr.bf16.mxu0 %v2746_v50  ;;  %v2801_v43 = vld [vmem:[%s3508_s1 + $0x4a0] sm:$0xff]   ;;  %v2808_v50 = vld [vmem:[%s3508_s1 + $0x430] sm:$0xff]  }
  0x62   :  { %2527 = vmatprep.subr.bf16.mxu1 %v2747_v51  ;;  %v2809_v51 = vld [vmem:[%s3508_s1 + $0x4b0] sm:$0xff]  }
  0x63   :  { %1849 = vmatmul.mubr.bf16.vlgmr.msra.gmra.mrb[8].mxu0 %v2164_v46  ;;  %v2804_v46 = vld [vmem:[%s3508_s1 + $0x428] sm:$0xff]  }
  0x64   :  { %1889 = vmatmul.mubr.bf16.vlgmr.msra.gmra.mrb[8].mxu1 %v2166_v48  ;;  %2506 = vmatpush3.bf16.msra.mxu0 %v2748_v52  ;;  %v2806_v48 = vld [vmem:[%s3508_s1 + $0x470] sm:$0xff]   ;;  %v2810_v52 = vld [vmem:[%s3508_s1 + $0x478] sm:$0xff]  }
  0x65   :  { %2528 = vmatpush3.bf16.msra.mxu1 %v2749_v53  ;;  %2507 = vmatprep.subr.bf16.mxu0 %v2750_v54  ;;  %v2811_v53 = vld [vmem:[%s3508_s1 + $0x4f8] sm:$0xff]  }
  0x66   :  { %2529 = vmatprep.subr.bf16.mxu1 %v2751_v55  ;;  %1928 = vmatprep.mubr.bf16.mxu0 %v2169_v21  ;;  %v2812_v54 = vld [vmem:[%s3508_s1 + $0x438] sm:$0xff]   ;;  %v2841_v21 = vld [vmem:[%s3508_s1 + $0x5a8] sm:$0xff]  }
  0x67   :  { %1968 = vmatprep.mubr.bf16.mxu1 %v2171_v24  ;;  %v2813_v55 = vld [vmem:[%s3508_s1 + $0x4b8] sm:$0xff]   ;;  %v2844_v24 = vld [vmem:[%s3508_s1 + $0x530] sm:$0xff]  }
  0x68   :  { %2508 = vmatpush3.bf16.msra.mxu0 %v2752_v56  ;;  %v32_v56 = vld [vmem:[%s3509_s0 + $0x40] sm:$0xff] }
  0x69   :  { %2530 = vmatpush3.bf16.msra.mxu1 %v2753_v57  ;;  %2509 = vmatprep.subr.bf16.mxu0 %v2754_v58  ;;  %v2172_v57 = vcombine.low %v32_v56, %v32_v56  ;;  %v2173_v58 = vcombine.high %v32_v56, %v32_v56 }
  0x6a   :  { %2531 = vmatprep.subr.bf16.mxu1 %v2755_v59  ;;  %v33_v59 = vld [vmem:[%s3509_s0 + $0x48] sm:$0xff] }
  0x6c   :  { %2510 = vmatpush3.bf16.msra.mxu0 %v2756_v60  ;;  %v2174_v60 = vcombine.low %v33_v59, %v33_v59 }
  0x6d   :  { %2532 = vmatpush3.bf16.msra.mxu1 %v2757_v61  ;;  %2511 = vmatprep.subr.bf16.mxu0 %v2758_v62  ;;  %v2175_v61 = vcombine.high %v33_v59, %v33_v59  ;;  %v2818_v62 = vld [vmem:[%s3508_s1 + $0x540] sm:$0xff]  }
  0x6e   :  { %2533 = vmatprep.subr.bf16.mxu1 %v2759_v63  ;;  %v2819_v63 = vld [vmem:[%s3508_s1 + $0x5c0] sm:$0xff]  }
  0x70   :  { %2512 = vmatpush3.bf16.msra.mxu0 %v2760_v0  ;;  %v2820_v0 = vld [vmem:[%s3508_s1 + $0x500] sm:$0xff]  }
  0x71   :  { %2534 = vmatpush3.bf16.msra.mxu1 %v2761_v1  ;;  %2513 = vmatprep.subr.bf16.mxu0 %v2762_v2  ;;  %v2821_v1 = vld [vmem:[%s3508_s1 + $0x580] sm:$0xff]   ;;  %v2822_v2 = vld [vmem:[%s3508_s1 + $0x548] sm:$0xff]  }
  0x72   :  { %2535 = vmatprep.subr.bf16.mxu1 %v2763_v3  ;;  %v2823_v3 = vld [vmem:[%s3508_s1 + $0x5c8] sm:$0xff]  }
  0x74   :  { %2514 = vmatpush3.bf16.msra.mxu0 %v2764_v4  ;;  %v2824_v4 = vld [vmem:[%s3508_s1 + $0x508] sm:$0xff]  }
  0x75   :  { %2536 = vmatpush3.bf16.msra.mxu1 %v2765_v5  ;;  %2515 = vmatprep.subr.bf16.mxu0 %v2766_v6  ;;  %v2825_v5 = vld [vmem:[%s3508_s1 + $0x588] sm:$0xff]   ;;  %v2826_v6 = vld [vmem:[%s3508_s1 + $0x550] sm:$0xff]  }
  0x76   :  { %2537 = vmatprep.subr.bf16.mxu1 %v2767_v7  ;;  %v2827_v7 = vld [vmem:[%s3508_s1 + $0x5d0] sm:$0xff]  }
  0x78   :  { %2516 = vmatpush3.bf16.msra.mxu0 %v2768_v8  ;;  %v2828_v8 = vld [vmem:[%s3508_s1 + $0x510] sm:$0xff]  }
  0x79   :  { %2538 = vmatpush3.bf16.msra.mxu1 %v2769_v9  ;;  %2517 = vmatprep.subr.bf16.mxu0 %v2770_v10  ;;  %v2829_v9 = vld [vmem:[%s3508_s1 + $0x590] sm:$0xff]   ;;  %v2830_v10 = vld [vmem:[%s3508_s1 + $0x558] sm:$0xff]  }
  0x7a   :  { %2539 = vmatprep.subr.bf16.mxu1 %v2771_v11  ;;  %v2831_v11 = vld [vmem:[%s3508_s1 + $0x5d8] sm:$0xff]  }
  0x7c   :  { %2518 = vmatpush3.bf16.msra.mxu0 %v2772_v12  ;;  %v2832_v12 = vld [vmem:[%s3508_s1 + $0x518] sm:$0xff]  }
  0x7d   :  { %2540 = vmatpush3.bf16.msra.mxu1 %v2773_v13  ;;  %2519 = vmatprep.subr.bf16.mxu0 %v2774_v14  ;;  %v2833_v13 = vld [vmem:[%s3508_s1 + $0x598] sm:$0xff]   ;;  %v2834_v14 = vld [vmem:[%s3508_s1 + $0x560] sm:$0xff]  }
  0x7e   :  { %2541 = vmatprep.subr.bf16.mxu1 %v2775_v15  ;;  %v2835_v15 = vld [vmem:[%s3508_s1 + $0x5e0] sm:$0xff]  }
  0x80   :  { %2520 = vmatpush3.bf16.msra.mxu0 %v2776_v16  ;;  %v2836_v16 = vld [vmem:[%s3508_s1 + $0x520] sm:$0xff]  }
  0x81   :  { %2542 = vmatpush3.bf16.msra.mxu1 %v2777_v17  ;;  %2549 = vmatprep.subr.bf16.mxu0 %v2782_v23  ;;  %v2837_v17 = vld [vmem:[%s3508_s1 + $0x5a0] sm:$0xff]   ;;  %v2843_v23 = vld [vmem:[%s3508_s1 + $0x5f0] sm:$0xff]  }
  0x82   :  { %2571 = vmatprep.subr.bf16.mxu1 %v2783_v25  ;;  %v2845_v25 = vld [vmem:[%s3508_s1 + $0x5b0] sm:$0xff]  }
  0x83   :  { %1929 = vmatmul.mubr.bf16.vlgmr.msra.gmra.mrb[12].mxu0 %v2168_v20  ;;  %v2840_v20 = vld [vmem:[%s3508_s1 + $0x528] sm:$0xff]  }
  0x84   :  { %1969 = vmatmul.mubr.bf16.vlgmr.msra.gmra.mrb[12].mxu1 %v2170_v22  ;;  %2550 = vmatpush3.bf16.msra.mxu0 %v2784_v26  ;;  %v2842_v22 = vld [vmem:[%s3508_s1 + $0x570] sm:$0xff]   ;;  %v2846_v26 = vld [vmem:[%s3508_s1 + $0x578] sm:$0xff]  }
  0x85   :  { %2572 = vmatpush3.bf16.msra.mxu1 %v2785_v27  ;;  %2551 = vmatprep.subr.bf16.mxu0 %v2786_v28  ;;  %v2847_v27 = vld [vmem:[%s3508_s1 + $0x5f8] sm:$0xff]  }
  0x86   :  { %2573 = vmatprep.subr.bf16.mxu1 %v2787_v29  ;;  %2008 = vmatprep.mubr.bf16.mxu0 %v2173_v58  ;;  %v2848_v28 = vld [vmem:[%s3508_s1 + $0x538] sm:$0xff]  }
  0x87   :  { %2048 = vmatprep.mubr.bf16.mxu1 %v2175_v61  ;;  %v2849_v29 = vld [vmem:[%s3508_s1 + $0x5b8] sm:$0xff]  }
  0x88   :  { %2552 = vmatpush3.bf16.msra.mxu0 %v2788_v30  ;;  %v34_v30 = vld [vmem:[%s3509_s0 + $0x50] sm:$0xff] }
  0x89   :  { %2574 = vmatpush3.bf16.msra.mxu1 %v2789_v31  ;;  %2553 = vmatprep.subr.bf16.mxu0 %v2790_v32  ;;  %v35_v31 = vld [vmem:[%s3509_s0 + $0x58] sm:$0xff]  ;;  %v2176_v32 = vcombine.low %v34_v30, %v34_v30 }
  0x8a   :  { %2575 = vmatprep.subr.bf16.mxu1 %v2791_v33  ;;  %v2177_v33 = vcombine.high %v34_v30, %v34_v30 }
  0x8c   :  { %2554 = vmatpush3.bf16.msra.mxu0 %v2792_v34  ;;  %v2178_v34 = vcombine.low %v35_v31, %v35_v31 }
  0x8d   :  { %2576 = vmatpush3.bf16.msra.mxu1 %v2793_v35  ;;  %2555 = vmatprep.subr.bf16.mxu0 %v2794_v36  ;;  %v2179_v35 = vcombine.high %v35_v31, %v35_v31 }
  0x8e   :  { %2577 = vmatprep.subr.bf16.mxu1 %v2795_v37 }
  0x90   :  { %2556 = vmatpush3.bf16.msra.mxu0 %v2796_v38 }
  0x91   :  { %2578 = vmatpush3.bf16.msra.mxu1 %v2797_v39  ;;  %2557 = vmatprep.subr.bf16.mxu0 %v2798_v40 }
  0x92   :  { %2579 = vmatprep.subr.bf16.mxu1 %v2799_v41 }
  0x94   :  { %2558 = vmatpush3.bf16.msra.mxu0 %v2800_v42 }
  0x95   :  { %2580 = vmatpush3.bf16.msra.mxu1 %v2801_v43  ;;  %2559 = vmatprep.subr.bf16.mxu0 %v2802_v44 }
  0x96   :  { %2581 = vmatprep.subr.bf16.mxu1 %v2803_v45 }
  0x98   :  { %2560 = vmatpush3.bf16.msra.mxu0 %v2804_v46 }
  0x99   :  { %2582 = vmatpush3.bf16.msra.mxu1 %v2805_v47  ;;  %2561 = vmatprep.subr.bf16.mxu0 %v2806_v48 }
  0x9a   :  { %2583 = vmatprep.subr.bf16.mxu1 %v2807_v49 }
  0x9c   :  { %2562 = vmatpush3.bf16.msra.mxu0 %v2808_v50 }
  0x9d   :  { %2584 = vmatpush3.bf16.msra.mxu1 %v2809_v51  ;;  %2563 = vmatprep.subr.bf16.mxu0 %v2810_v52 }
  0x9e   :  { %2585 = vmatprep.subr.bf16.mxu1 %v2811_v53 }
  0xa0   :  { %2564 = vmatpush3.bf16.msra.mxu0 %v2812_v54 }
  0xa1   :  { %2586 = vmatpush3.bf16.msra.mxu1 %v2813_v55  ;;  %2593 = vmatprep.subr.bf16.mxu0 %v2818_v62 }
  0xa2   :  { %2615 = vmatprep.subr.bf16.mxu1 %v2819_v63 }
  0xa3   :  { %2009 = vmatmul.mubr.bf16.vlgmr.msra.gmra.mrb[16].mxu0 %v2172_v57  ;;  %v2854_v57 = vmov 0.0  }
  0xa4   :  { %2049 = vmatmul.mubr.bf16.vlgmr.msra.gmra.mrb[16].mxu1 %v2174_v60  ;;  %2594 = vmatpush3.bf16.msra.mxu0 %v2820_v0  ;;  %22 = vst.msk [vmem:[%s3510_s3] sm:$0xff] %vm21_vm0, %v2854_v57  ;;  %v8_v60 = vstv %s3511_s2 }
  0xa5   :  { %2616 = vmatpush3.bf16.msra.mxu1 %v2821_v1  ;;  %2595 = vmatprep.subr.bf16.mxu0 %v2822_v2  ;;  %9 = vst [vmem:[#allocation2] sm:$0x1] %v8_v60 }
  0xa6   :  { %2617 = vmatprep.subr.bf16.mxu1 %v2823_v3  ;;  %2088 = vmatprep.mubr.bf16.mxu0 %v2177_v33 }
  0xa7   :  { %2128 = vmatprep.mubr.bf16.mxu1 %v2179_v35 }
  0xa8   :  { %2596 = vmatpush3.bf16.msra.mxu0 %v2824_v4 }
  0xa9   :  { %2618 = vmatpush3.bf16.msra.mxu1 %v2825_v5  ;;  %2597 = vmatprep.subr.bf16.mxu0 %v2826_v6 }
  0xaa   :  { %2619 = vmatprep.subr.bf16.mxu1 %v2827_v7 }
  0xac   :  { %2598 = vmatpush3.bf16.msra.mxu0 %v2828_v8 }
  0xad   :  { %2620 = vmatpush3.bf16.msra.mxu1 %v2829_v9  ;;  %2599 = vmatprep.subr.bf16.mxu0 %v2830_v10 }
  0xae   :  { %2621 = vmatprep.subr.bf16.mxu1 %v2831_v11 }
  0xb0   :  { %2600 = vmatpush3.bf16.msra.mxu0 %v2832_v12 }
  0xb1   :  { %2622 = vmatpush3.bf16.msra.mxu1 %v2833_v13  ;;  %2601 = vmatprep.subr.bf16.mxu0 %v2834_v14 }
  0xb2   :  { %2623 = vmatprep.subr.bf16.mxu1 %v2835_v15 }
  0xb4   :  { %2602 = vmatpush3.bf16.msra.mxu0 %v2836_v16 }
  0xb5   :  { %2624 = vmatpush3.bf16.msra.mxu1 %v2837_v17  ;;  %2603 = vmatprep.subr.bf16.mxu0 %v2838_v18 }
  0xb6   :  { %2625 = vmatprep.subr.bf16.mxu1 %v2839_v19 }
  0xb8   :  { %2604 = vmatpush3.bf16.msra.mxu0 %v2840_v20 }
  0xb9   :  { %2626 = vmatpush3.bf16.msra.mxu1 %v2841_v21  ;;  %2605 = vmatprep.subr.bf16.mxu0 %v2842_v22 }
  0xba   :  { %2627 = vmatprep.subr.bf16.mxu1 %v2843_v23 }
  0xbc   :  { %2606 = vmatpush3.bf16.msra.mxu0 %v2844_v24 }
  0xbd   :  { %2628 = vmatpush3.bf16.msra.mxu1 %v2845_v25  ;;  %2607 = vmatprep.subr.bf16.mxu0 %v2846_v26 }
  0xbe   :  { %2629 = vmatprep.subr.bf16.mxu1 %v2847_v27 }
  0xc0   :  { %2608 = vmatpush3.bf16.msra.mxu0 %v2848_v28 }
  0xc1   :  { %2630 = vmatpush3.bf16.msra.mxu1 %v2849_v29 }
  0xc3   :  { %2089 = vmatmul.mubr.bf16.vlgmr.msra.gmra.mrb[20].mxu0 %v2176_v32 }
  0xc4   :  { %2129 = vmatmul.mubr.bf16.vlgmr.msra.gmra.mrb[20].mxu1 %v2178_v34 }
  0xf6   :  { %v2389_v36 = vpop.f32.mrb[0].mxu0 }
  0xf7   :  { %v2411_v37 = vpop.f32.mrb[0].mxu1  ;;  %v2390_v38 = vpop.f32.mrb[1].mxu0 }
  0xf8   :  { %v2412_v39 = vpop.f32.mrb[1].mxu1  ;;  %v2391_v40 = vadd.f32 %v2390_v38, %v2389_v36  ;;  %v2392_v42 = vpop.f32.mrb[2].mxu0 }
  0xf9   :  { %v2413_v41 = vadd.f32 %v2412_v39, %v2411_v37  ;;  %v2414_v43 = vpop.f32.mrb[2].mxu1  ;;  %v2393_v44 = vpop.f32.mrb[3].mxu0 }
  0xfa   :  { %v2415_v45 = vpop.f32.mrb[3].mxu1  ;;  %v23_v44 = vld [vmem:[%s3510_s3] sm:$0xff] }
  0xfb   :  { %v1731_v46 = vadd.f32 %v2413_v41, %v2391_v40 }
 0x116   :  { %v2433_v47 = vpop.f32.mrb[4].mxu0 }
 0x117   :  { %v2455_v48 = vpop.f32.mrb[4].mxu1  ;;  %v2434_v49 = vpop.f32.mrb[5].mxu0 }
 0x118   :  { %v2456_v50 = vpop.f32.mrb[5].mxu1  ;;  %v2435_v51 = vadd.f32 %v2434_v49, %v2433_v47  ;;  %v2436_v53 = vpop.f32.mrb[6].mxu0  ;;  %v2372_v47 = vld [vmem:[#allocation2] ss:$0 sm:$0xff] }
 0x119   :  { %v2457_v52 = vadd.f32 %v2456_v50, %v2455_v48  ;;  %v2458_v54 = vpop.f32.mrb[6].mxu1  ;;  %v2437_v55 = vpop.f32.mrb[7].mxu0 }
 0x11a   :  { %v2459_v56 = vpop.f32.mrb[7].mxu1  ;;  %v1771_v58 = vadd.f32 %v2435_v51, %v1731_v46 }
 0x11c   :  { %v1811_v59 = vadd.f32 %v2457_v52, %v1771_v58 }
 0x136   :  { %v2477_v61 = vpop.f32.mrb[8].mxu0 }
 0x137   :  { %v2499_v62 = vpop.f32.mrb[8].mxu1  ;;  %v2478_v63 = vpop.f32.mrb[9].mxu0 }
 0x138   :  { %v2479_v0 = vadd.f32 %v2478_v63, %v2477_v61  ;;  %v2500_v1 = vpop.f32.mrb[9].mxu1  ;;  %v2480_v2 = vpop.f32.mrb[10].mxu0 }
 0x139   :  { %v2501_v3 = vadd.f32 %v2500_v1, %v2499_v62  ;;  %v2502_v4 = vpop.f32.mrb[10].mxu1  ;;  %v2481_v5 = vpop.f32.mrb[11].mxu0 }
 0x13a   :  { %v1851_v6 = vadd.f32 %v2479_v0, %v1811_v59  ;;  %v2503_v7 = vpop.f32.mrb[11].mxu1 }
 0x13c   :  { %v1891_v8 = vadd.f32 %v2501_v3, %v1851_v6 }
 0x156   :  { %v2521_v9 = vpop.f32.mrb[12].mxu0 }
 0x157   :  { %v2543_v10 = vpop.f32.mrb[12].mxu1  ;;  %v2522_v11 = vpop.f32.mrb[13].mxu0 }
 0x158   :  { %v2523_v12 = vadd.f32 %v2522_v11, %v2521_v9  ;;  %v2544_v13 = vpop.f32.mrb[13].mxu1  ;;  %v2524_v14 = vpop.f32.mrb[14].mxu0 }
 0x159   :  { %v2545_v15 = vadd.f32 %v2544_v13, %v2543_v10  ;;  %v2546_v16 = vpop.f32.mrb[14].mxu1  ;;  %v2525_v17 = vpop.f32.mrb[15].mxu0 }
 0x15a   :  { %v1931_v18 = vadd.f32 %v2523_v12, %v1891_v8  ;;  %v2547_v19 = vpop.f32.mrb[15].mxu1 }
 0x15c   :  { %v1971_v20 = vadd.f32 %v2545_v15, %v1931_v18 }
 0x176   :  { %v2565_v21 = vpop.f32.mrb[16].mxu0 }
 0x177   :  { %v2587_v22 = vpop.f32.mrb[16].mxu1  ;;  %v2566_v23 = vpop.f32.mrb[17].mxu0 }
 0x178   :  { %v2588_v24 = vpop.f32.mrb[17].mxu1  ;;  %v2567_v25 = vadd.f32 %v2566_v23, %v2565_v21  ;;  %v2568_v27 = vpop.f32.mrb[18].mxu0 }
 0x179   :  { %v2589_v26 = vadd.f32 %v2588_v24, %v2587_v22  ;;  %v2590_v28 = vpop.f32.mrb[18].mxu1  ;;  %v2569_v29 = vpop.f32.mrb[19].mxu0 }
 0x17a   :  { %v2591_v30 = vpop.f32.mrb[19].mxu1  ;;  %v2011_v31 = vadd.f32 %v2567_v25, %v1971_v20 }
 0x17c   :  { %v2051_v32 = vadd.f32 %v2589_v26, %v2011_v31 }
 0x196   :  { %v2609_v33 = vpop.f32.mrb[20].mxu0 }
 0x197   :  { %v2631_v34 = vpop.f32.mrb[20].mxu1  ;;  %v2610_v35 = vpop.f32.mrb[21].mxu0 }
 0x198   :  { %v2611_v36 = vadd.f32 %v2610_v35, %v2609_v33  ;;  %v2632_v37 = vpop.f32.mrb[21].mxu1  ;;  %v2612_v38 = vpop.f32.mrb[22].mxu0 }
 0x199   :  { %v2633_v39 = vadd.f32 %v2632_v37, %v2631_v34  ;;  %v2634_v40 = vpop.f32.mrb[22].mxu1  ;;  %v2613_v41 = vpop.f32.mrb[23].mxu0 }
 0x19a   :  { %v2091_v42 = vadd.f32 %v2611_v36, %v2051_v32  ;;  %v2635_v43 = vpop.f32.mrb[23].mxu1 }
 0x19c   :  { %v2131_v45 = vadd.f32 %v2633_v39, %v2091_v42 }
 0x19e   :  { %v2136_v46 = vadd.f32 %v2131_v45, %v23_v44 }
 0x1a0   :  { %2138 = vst.msk [vmem:[%s3510_s3] sm:$0xff] %vm21_vm0, %v2136_v46 }
 0x1a7   :  { %v2142_v48 = vld [vmem:[%s3510_s3] sm:$0xff] }
 0x1a8   :  { %v2150_v49 = vadd.f32 %v2372_v47, %v2142_v48 }
 0x1aa   :  { %2151 = vst.msk [vmem:[%s3510_s3] sm:$0xff] %vm21_vm0, %v2150_v49 }

// kernel: mp_subdisc_forward.9
= control target key start
LH: loop header
LB: loop body
LE: loop exit
PB: predicated region body
PF: predicated region fallthrough
CT: control target
= control target key end

     0   :  { %8 = vsyncpa [#allocation3], 0  ;;  %s8079_s0 = inlined_call_operand.vmem [shape: bf16[8,2560], index: 0, kind: input, shape index: {}]   ;;  %s8080_s1 = inlined_call_operand.hbm [shape: bf16[2560,1024], index: 1, kind: input, shape index: {}]   ;;  %s8081_s2 = inlined_call_operand.hbm [shape: f32[1,1024], index: 2, kind: input, shape index: {}]   ;;  %s8082_s3 = inlined_call_operand.vmem [shape: f32[8,1024], index: 3, kind: output, shape index: {}]  }
   0x1   :  { %10 = vsyncpa [#allocation3 + $0x1], 0 }
   0x2   :  { %11 = vsyncpa [#allocation5], 0 }
   0x3   :  { %13 = vsyncpa [#allocation5 + $0x1], 0  ;;  %s7064_s12 = smov 0   ;;  %s7066_s13 = smov 0  }
   0x4   :  { %s7068_s14 = smov 0   ;;  %s7070_s15 = smov 0  }
   0x5   :  { %s7072_s16 = smov 0   ;;  %s7074_s17 = smov 0  }
   0x6 LB: > { %s5198_s18 = sadd.s32 4294967295, %s7036_s17   ;;  %s31_s19 = sadd.s32 1, %s7032_s16  ;;  %s7036_s17 = sphi %s7074_s17, %s19_s17   ;;  %s7032_s16 = sphi %s7072_s16, %s8094_s16   ;;  %s7028_s15 = sphi %s7070_s15, %s8093_s15   ;;  %s7024_s14 = sphi %s7068_s14, %s8092_s14   ;;  %s7020_s13 = sphi %s7066_s13, %s8091_s13   ;;  %s7016_s12 = sphi %s7064_s12, %s8090_s12  }
   0x7   : > { %p33_p0 = scmp.ge.s32.totalorder %s31_s19, 2  ;;  %s66_s20 = sadd.s32 1, %s7024_s14 }
   0x8   : > { %p73_p1 = scmp.ne.s32.totalorder %s7024_s14, %s7020_s13  ;;  %p74_p2 = scmp.eq.s32.totalorder %s7036_s17, 0 }
   0x9   : > { %s8096_s19 = smov (%p33_p0, %s31_s19), 0  ;;  %p79_p4 = scmp.ne.s32.totalorder %s7020_s13, %s7016_s12 }
   0xa   : > { %p75_p3 = por %p74_p2, %p73_p1  ;;  %s62_s21 = ssub.s32 %s7032_s16, %s8096_s19 }
   0xb   : > { %p80_p5 = scmp.eq.s32.totalorder %s5198_s18, 0  ;;  %p64_p6 = scmp.eq.s32.totalorder %s62_s21, 0 }
   0xc   : > { %p5889_p8 = scmp.lt.s32.totalorder %s7036_s17, 2  ;;  %s7112_s24 = sand.u32 1, %s7024_s14  }
   0xd   : > { %p7103_p7 = por %p80_p5, %p79_p4  ;;  %s5874_s25 = sshll.u32 %s7032_s16, 8 }
   0xe   : > { %s7109_s23 = scalar_select %p64_p6, %s7024_s14, %s66_s20  }
   0xf   : > { %s8084_s22 = scalar_select %p7103_p7, 1, 0 }
  0x10   : > { %s5876_s26 = smul.u32 5120, %s7112_s24  ;;  %s7119_s29 = scalar_lea.hbm %s8080_s1, %s5874_s25 }
  0x11   : > { %p7121_p9 = pnand %p5889_p8, %p75_p3  ;;  %s165_s6 = scalar_lea.sflag [#allocation3], %s7112_s24 }
  0x12   : > { %s168_s4 = scalar_lea.vmem [#allocation2], %s5876_s26  ;;  %s6922_s7 = scalar_lea.hbm %s7119_s29, 81920 }
  0x13   : > { %s178_s5 = sshll.u32 %s168_s4, 4  ;;  %p6923_p11 = scmp.ne.s32.totalorder %s7119_s29, %s6922_s7  ;;  %s7125_s5 = int_to_ptr.vmem [resolvable:$true] %s178_s5 }
  0x14   : > { %p6924_p12 = pneg %p7121_p9  ;;  %s6927_s10 = scalar_lea.hbm %s8080_s1, 163840 }
  0x15   : > { %p6928_p1 = scmp.lt.u32.totalorder %s7119_s29, %s8080_s1  ;;  %p6929_p2 = scmp.lt.u32.totalorder %s6927_s10, %s6922_s7 }
  0x16   : > { %p6925_p13 = pnand %p6924_p12, %p6923_p11  ;;  %p6931_p4 = scmp.lt.u32.totalorder %s6922_s7, %s7119_s29 }
  0x17   : > { %p6930_p3 = por %p6929_p2, %p6928_p1 }
  0x18   : > { %p6926_p0 = pneg %p6925_p13 }
  0x19   : > { %p6932_p5 = por %p6931_p4, %p6930_p3 }
  0x1b   : > { %p6933_p6 = pnand %p6932_p5, %p6926_p0 }
  0x1d   : > { %6936 = shalt.err (!%p6933_p6)
}
  0x1e   : > { %s6937_s18 = scalar_lea.vmem %s7125_s5, 81920  ;;  %s7038_s20 = smov [#allocation2]  }
  0x1f   : > { %p6938_p8 = scmp.ne.s32.totalorder %s7125_s5, %s6937_s18  ;;  %s6942_s21 = sshll.u32 %s7038_s20, 4  ;;  %s6943_s21 = int_to_ptr.vmem [resolvable:$false] %s6942_s21 }
  0x20   : > { %s6944_s25 = scalar_lea.vmem %s6943_s21, 163840  ;;  %p6945_p10 = scmp.lt.s32.totalorder %s7125_s5, %s6943_s21 }
  0x21   : > { %p6940_p11 = pnand %p6938_p8, %p6924_p12  ;;  %p6946_p1 = scmp.lt.s32.totalorder %s6944_s25, %s6937_s18 }
  0x23   : > { %p6941_p13 = pneg %p6940_p11  ;;  %p6947_p2 = por %p6946_p1, %p6945_p10 }
  0x25   : > { %p6948_p3 = pnand %p6947_p2, %p6941_p13 }
  0x27   : > { %6951 = shalt.err (!%p6948_p3)
}
  0x28   : > { %s7039_s26 = smov 512   ;;  %s7040_s27 = smov 256  }
  0x29   : > { %s7041_s28 = smov 16   ;;  %p205_p0 = scmp.lt.s32.totalorder %s7036_s17, 3 }
  0x2a   : > { %5885 = dma.hbm_to_vmem [thread:$0]  (!%p7121_p9), %s7119_s29, 81920, %s7125_s5, %s165_s6, %s7039_s26, %s7040_s27, %s7041_s28  }
  0x2b   : > { %s5205_s4 = sshll.u32 %s7112_s24, 2  ;;  %s5875_s7 = sshll.u32 %s7032_s16, 6 }
  0x2c   : > { %p8086_p10 = scmp.ge.s32.totalorder %s7036_s17, 1  ;;  %s7168_s11 = scalar_lea.hbm %s8081_s2, %s5875_s7 }
  0x2d   : > { %s192_s12 = scalar_lea.vmem [#allocation4], %s5205_s4  ;;  %s189_s29 = scalar_lea.sflag [#allocation5], %s7112_s24 }
  0x2e   : > { %p7161_p4 = pnand %p8086_p10, %p205_p0  ;;  %s200_s18 = sshll.u32 %s192_s12, 4  ;;  %s201_s18 = int_to_ptr.vmem [resolvable:$true] %s200_s18 }
  0x2f   : > { %s6952_s5 = scalar_lea.hbm %s7168_s11, 64  ;;  %s6957_s21 = scalar_lea.hbm %s8081_s2, 128 }
  0x30   : > { %s8087_s8 = scalar_select %p7161_p4, 1, 0 }
  0x31   : > { %p6953_p5 = scmp.ne.s32.totalorder %s7168_s11, %s6952_s5  ;;  %p6958_p11 = scmp.lt.u32.totalorder %s7168_s11, %s8081_s2 }
  0x32   : > { %p6959_p13 = scmp.lt.u32.totalorder %s6957_s21, %s6952_s5  ;;  %p6961_p2 = scmp.lt.u32.totalorder %s6952_s5, %s7168_s11 }
  0x33   : > { %p6955_p6 = pnand %p6953_p5, %p6924_p12 }
  0x34   : > { %p6960_p1 = por %p6959_p13, %p6958_p11 }
  0x35   : > { %p6956_p8 = pneg %p6955_p6 }
  0x36   : > { %p6962_p3 = por %p6961_p2, %p6960_p1 }
  0x38   : > { %p6963_p0 = pnand %p6962_p3, %p6956_p8 }
  0x3a   : > { %6966 = shalt.err (!%p6963_p0)
}
  0x3b   : > { %s6967_s24 = scalar_lea.vmem %s201_s18, 64  ;;  %s7042_s27 = smov [#allocation4]  }
  0x3c   : > { %p6968_p10 = scmp.ne.s32.totalorder %s201_s18, %s6967_s24  ;;  %s6972_s28 = sshll.u32 %s7042_s27, 4  ;;  %s6973_s28 = int_to_ptr.vmem [resolvable:$false] %s6972_s28 }
  0x3d   : > { %s6974_s4 = scalar_lea.vmem %s6973_s28, 128  ;;  %p6975_p7 = scmp.lt.s32.totalorder %s201_s18, %s6973_s28 }
  0x3e   : > { %p6970_p5 = pnand %p6968_p10, %p6924_p12  ;;  %p6976_p4 = scmp.lt.s32.totalorder %s6974_s4, %s6967_s24 }
  0x40   : > { %p6971_p6 = pneg %p6970_p5  ;;  %p6977_p11 = por %p6976_p4, %p6975_p7 }
  0x42   : > { %p6978_p13 = pnand %p6977_p11, %p6971_p6 }
  0x44   : > { %6981 = shalt.err (!%p6978_p13)
}
  0x45   : > { %5888 = dma.hbm_to_vmem [thread:$0]  (!%p7121_p9), %s7168_s11, 64, %s201_s18, %s189_s29  }
  0x46   : > { %p8088_p8 = scmp.ne.s32.totalorder %s8087_s8, 0 }
  0x47   : > { %s211_s7 = sand.u32 (!%p8088_p8), 1, %s7020_s13   ;;  %p8089_p12 = scmp.ne.s32.totalorder (!%p8088_p8), %s8084_s22, 0 }
  0x48   : > { %209 = sbr.rel (%p8088_p8) target bundleno = 956 (0x3bc), region = 32  ;;  %s212_s10 = scalar_lea.sflag (!%p8088_p8), [#allocation3], %s211_s7 }
  0x49   : > { %s5877_s9 = smul.u32 (!%p8088_p8), 5120, %s211_s7 }
  0x4b   : > { %s7193_s12 = scalar_lea.vmem (!%p8088_p8), [#allocation2], %s5877_s9 }
  0x4f   : > { %7007 = dma.done.wait (%p8089_p12), %s212_s10, 81920  }
  0x50   : > { %7009 = vsyncadd (%p8089_p12), %s212_s10, 4294885376  ;;  %s5209_s5 = sshll.u32 %s211_s7, 2  ;;  %s221_s30 = scalar_lea.sflag [#allocation5], %s211_s7 }
  0x51   : > { %s7199_s6 = scalar_lea.vmem [#allocation4], %s5209_s5 }
  0x52   : > { %7011 = dma.done.wait (%p8089_p12), %s221_s30, 64  }
  0x53   : > { %7013 = vsyncadd (%p8089_p12), %s221_s30, 4294967232  ;;  %v5942_v0 = vld [vmem:[%s7193_s12 + $0x4] ss:$16 sps:$4 sm:$0xff]   ;;  %v5946_v2 = vld [vmem:[%s7193_s12] ss:$16 sps:$4 sm:$0xff]   ;;  %s5210_s11 = sshll.u32 %s7028_s15, 2 }
  0x54   : > { %v5944_v1 = vld [vmem:[%s7193_s12 + $0x204] ss:$16 sps:$4 sm:$0xff]   ;;  %4204 = vmatprep.subr.bf16.mxu0 %v5942_v0  ;;  %v5947_v3 = vld [vmem:[%s7193_s12 + $0x200] ss:$16 sps:$4 sm:$0xff]   ;;  %v285_v48 = vld [vmem:[%s8079_s0 + $0x8] sm:$0xff]  ;;  %p267_p7 = scmp.lt.s32.totalorder %s5210_s11, 7 }
  0x55   : > { %4245 = vmatprep.subr.bf16.mxu1 %v5944_v1  ;;  %v5948_v4 = vld [vmem:[%s7193_s12 + $0x24] ss:$16 sps:$4 sm:$0xff]   ;;  %4205 = vmatpush1.bf16.msra.mxu0 %v5946_v2  ;;  %v5952_v6 = vld [vmem:[%s7193_s12 + $0x20] ss:$16 sps:$4 sm:$0xff]   ;;  %v7261_v51 = vcombine.high %v285_v48, %v285_v48 }
  0x56   : > { %4246 = vmatpush1.bf16.msra.mxu1 %v5947_v3  ;;  %v5950_v5 = vld [vmem:[%s7193_s12 + $0x224] ss:$16 sps:$4 sm:$0xff]   ;;  %4206 = vmatprep.subr.bf16.mxu0 %v5948_v4  ;;  %v5953_v7 = vld [vmem:[%s7193_s12 + $0x220] ss:$16 sps:$4 sm:$0xff]   ;;  %s8098_s11 = smov (!%p267_p7, %s5210_s11), 7 }
  0x57   : > { %4247 = vmatprep.subr.bf16.mxu1 %v5950_v5  ;;  %v5954_v8 = vld [vmem:[%s7193_s12 + $0x44] ss:$16 sps:$4 sm:$0xff]   ;;  %v5958_v10 = vld [vmem:[%s7193_s12 + $0x40] ss:$16 sps:$4 sm:$0xff]   ;;  %4277 = vmatprep.mubr.bf16.mxu1 %v7261_v51  ;;  %s5211_s18 = sshll.u32 %s8098_s11, 3 }
  0x58   : > { %v5956_v9 = vld [vmem:[%s7193_s12 + $0x244] ss:$16 sps:$4 sm:$0xff]   ;;  %v5959_v11 = vld [vmem:[%s7193_s12 + $0x240] ss:$16 sps:$4 sm:$0xff]   ;;  %s7765_s21 = scalar_lea.vmem %s8082_s3, %s5211_s18 }
  0x59   : > { %4207 = vmatpush1.bf16.msra.mxu0 %v5952_v6  ;;  %v5960_v12 = vld [vmem:[%s7193_s12 + $0x64] ss:$16 sps:$4 sm:$0xff]   ;;  %v5964_v14 = vld [vmem:[%s7193_s12 + $0x60] ss:$16 sps:$4 sm:$0xff]  }
  0x5a   : > { %4248 = vmatpush1.bf16.msra.mxu1 %v5953_v7  ;;  %4208 = vmatprep.subr.bf16.mxu0 %v5954_v8  ;;  %v5962_v13 = vld [vmem:[%s7193_s12 + $0x264] ss:$16 sps:$4 sm:$0xff]   ;;  %v5965_v15 = vld [vmem:[%s7193_s12 + $0x260] ss:$16 sps:$4 sm:$0xff]   ;;  %v7285_v7 = vcombine.low %v285_v48, %v285_v48 }
  0x5b   : > { %4249 = vmatprep.subr.bf16.mxu1 %v5956_v9  ;;  %v5966_v16 = vld [vmem:[%s7193_s12 + $0x84] ss:$16 sps:$4 sm:$0xff]   ;;  %v5970_v18 = vld [vmem:[%s7193_s12 + $0x80] ss:$16 sps:$4 sm:$0xff]  }
  0x5c   : > { %v5968_v17 = vld [vmem:[%s7193_s12 + $0x284] ss:$16 sps:$4 sm:$0xff]   ;;  %v5971_v19 = vld [vmem:[%s7193_s12 + $0x280] ss:$16 sps:$4 sm:$0xff]  }
  0x5d   : > { %4209 = vmatpush1.bf16.msra.mxu0 %v5958_v10  ;;  %v5972_v20 = vld [vmem:[%s7193_s12 + $0xa4] ss:$16 sps:$4 sm:$0xff]   ;;  %v5976_v22 = vld [vmem:[%s7193_s12 + $0xa0] ss:$16 sps:$4 sm:$0xff]  }
  0x5e   : > { %4250 = vmatpush1.bf16.msra.mxu1 %v5959_v11  ;;  %4210 = vmatprep.subr.bf16.mxu0 %v5960_v12  ;;  %v5974_v21 = vld [vmem:[%s7193_s12 + $0x2a4] ss:$16 sps:$4 sm:$0xff]   ;;  %v5977_v23 = vld [vmem:[%s7193_s12 + $0x2a0] ss:$16 sps:$4 sm:$0xff]  }
  0x5f   : > { %4251 = vmatprep.subr.bf16.mxu1 %v5962_v13  ;;  %v5978_v24 = vld [vmem:[%s7193_s12 + $0xc4] ss:$16 sps:$4 sm:$0xff]   ;;  %v5982_v26 = vld [vmem:[%s7193_s12 + $0xc0] ss:$16 sps:$4 sm:$0xff]  }
  0x60   : > { %v5980_v25 = vld [vmem:[%s7193_s12 + $0x2c4] ss:$16 sps:$4 sm:$0xff]   ;;  %v5983_v27 = vld [vmem:[%s7193_s12 + $0x2c0] ss:$16 sps:$4 sm:$0xff]  }
  0x61   : > { %4211 = vmatpush1.bf16.msra.mxu0 %v5964_v14  ;;  %v5984_v28 = vld [vmem:[%s7193_s12 + $0xe4] ss:$16 sps:$4 sm:$0xff]   ;;  %v5988_v30 = vld [vmem:[%s7193_s12 + $0xe0] ss:$16 sps:$4 sm:$0xff]  }
  0x62   : > { %4252 = vmatpush1.bf16.msra.mxu1 %v5965_v15  ;;  %4212 = vmatprep.subr.bf16.mxu0 %v5966_v16  ;;  %v5986_v29 = vld [vmem:[%s7193_s12 + $0x2e4] ss:$16 sps:$4 sm:$0xff]   ;;  %v5989_v31 = vld [vmem:[%s7193_s12 + $0x2e0] ss:$16 sps:$4 sm:$0xff]  }
  0x63   : > { %4253 = vmatprep.subr.bf16.mxu1 %v5968_v17  ;;  %v5990_v32 = vld [vmem:[%s7193_s12 + $0x104] ss:$16 sps:$4 sm:$0xff]   ;;  %v5994_v34 = vld [vmem:[%s7193_s12 + $0x100] ss:$16 sps:$4 sm:$0xff]  }
  0x64   : > { %v5992_v33 = vld [vmem:[%s7193_s12 + $0x304] ss:$16 sps:$4 sm:$0xff]   ;;  %v5995_v35 = vld [vmem:[%s7193_s12 + $0x300] ss:$16 sps:$4 sm:$0xff]  }
  0x65   : > { %4213 = vmatpush1.bf16.msra.mxu0 %v5970_v18  ;;  %v5996_v36 = vld [vmem:[%s7193_s12 + $0x124] ss:$16 sps:$4 sm:$0xff]   ;;  %v6000_v38 = vld [vmem:[%s7193_s12 + $0x120] ss:$16 sps:$4 sm:$0xff]  }
  0x66   : > { %4254 = vmatpush1.bf16.msra.mxu1 %v5971_v19  ;;  %4214 = vmatprep.subr.bf16.mxu0 %v5972_v20  ;;  %v5998_v37 = vld [vmem:[%s7193_s12 + $0x324] ss:$16 sps:$4 sm:$0xff]   ;;  %v6001_v39 = vld [vmem:[%s7193_s12 + $0x320] ss:$16 sps:$4 sm:$0xff]  }
  0x67   : > { %4255 = vmatprep.subr.bf16.mxu1 %v5974_v21  ;;  %v6002_v40 = vld [vmem:[%s7193_s12 + $0x144] ss:$16 sps:$4 sm:$0xff]   ;;  %v6006_v42 = vld [vmem:[%s7193_s12 + $0x140] ss:$16 sps:$4 sm:$0xff]  }
  0x68   : > { %v6004_v41 = vld [vmem:[%s7193_s12 + $0x344] ss:$16 sps:$4 sm:$0xff]   ;;  %v6007_v43 = vld [vmem:[%s7193_s12 + $0x340] ss:$16 sps:$4 sm:$0xff]  }
  0x69   : > { %4215 = vmatpush1.bf16.msra.mxu0 %v5976_v22  ;;  %v6008_v44 = vld [vmem:[%s7193_s12 + $0x164] ss:$16 sps:$4 sm:$0xff]   ;;  %v6012_v49 = vld [vmem:[%s7193_s12 + $0x160] ss:$16 sps:$4 sm:$0xff]  }
  0x6a   : > { %4256 = vmatpush1.bf16.msra.mxu1 %v5977_v23  ;;  %4216 = vmatprep.subr.bf16.mxu0 %v5978_v24  ;;  %v6010_v45 = vld [vmem:[%s7193_s12 + $0x364] ss:$16 sps:$4 sm:$0xff]   ;;  %v6013_v50 = vld [vmem:[%s7193_s12 + $0x360] ss:$16 sps:$4 sm:$0xff]  }
  0x6b   : > { %4257 = vmatprep.subr.bf16.mxu1 %v5980_v25  ;;  %v284_v46 = vld [vmem:[%s8079_s0] sm:$0xff] }
  0x6c   : > { %v7254_v47 = vcombine.high %v284_v46, %v284_v46  ;;  %v6014_v52 = vld [vmem:[%s7193_s12 + $0x184] ss:$16 sps:$4 sm:$0xff]   ;;  %v6018_v54 = vld [vmem:[%s7193_s12 + $0x180] ss:$16 sps:$4 sm:$0xff]   ;;  %v7283_v6 = vcombine.low %v284_v46, %v284_v46 }
  0x6d   : > { %4217 = vmatpush1.bf16.msra.mxu0 %v5982_v26  ;;  %v6016_v53 = vld [vmem:[%s7193_s12 + $0x384] ss:$16 sps:$4 sm:$0xff]   ;;  %v6019_v55 = vld [vmem:[%s7193_s12 + $0x380] ss:$16 sps:$4 sm:$0xff]  }
  0x6e   : > { %4258 = vmatpush1.bf16.msra.mxu1 %v5983_v27  ;;  %4218 = vmatprep.subr.bf16.mxu0 %v5984_v28  ;;  %v6020_v56 = vld [vmem:[%s7193_s12 + $0x1a4] ss:$16 sps:$4 sm:$0xff]   ;;  %v6024_v58 = vld [vmem:[%s7193_s12 + $0x1a0] ss:$16 sps:$4 sm:$0xff]  }
  0x6f   : > { %4259 = vmatprep.subr.bf16.mxu1 %v5986_v29  ;;  %4236 = vmatprep.mubr.bf16.mxu0 %v7254_v47  ;;  %v6022_v57 = vld [vmem:[%s7193_s12 + $0x3a4] ss:$16 sps:$4 sm:$0xff]   ;;  %v6025_v59 = vld [vmem:[%s7193_s12 + $0x3a0] ss:$16 sps:$4 sm:$0xff]  }
  0x70   : > { %v6026_v60 = vld [vmem:[%s7193_s12 + $0x1c4] ss:$16 sps:$4 sm:$0xff]   ;;  %v6030_v62 = vld [vmem:[%s7193_s12 + $0x1c0] ss:$16 sps:$4 sm:$0xff]  }
  0x71   : > { %4219 = vmatpush1.bf16.msra.mxu0 %v5988_v30  ;;  %v6028_v61 = vld [vmem:[%s7193_s12 + $0x3c4] ss:$16 sps:$4 sm:$0xff]   ;;  %v6031_v63 = vld [vmem:[%s7193_s12 + $0x3c0] ss:$16 sps:$4 sm:$0xff]  }
  0x72   : > { %4260 = vmatpush1.bf16.msra.mxu1 %v5989_v31  ;;  %4220 = vmatprep.subr.bf16.mxu0 %v5990_v32  ;;  %v6032_v0 = vld [vmem:[%s7193_s12 + $0x1e4] ss:$16 sps:$4 sm:$0xff]   ;;  %v6036_v2 = vld [vmem:[%s7193_s12 + $0x1e0] ss:$16 sps:$4 sm:$0xff]  }
  0x73   : > { %4261 = vmatprep.subr.bf16.mxu1 %v5992_v33  ;;  %v6034_v1 = vld [vmem:[%s7193_s12 + $0x3e4] ss:$16 sps:$4 sm:$0xff]   ;;  %v6037_v3 = vld [vmem:[%s7193_s12 + $0x3e0] ss:$16 sps:$4 sm:$0xff]   ;;  %v7321_v33 = vld [vmem:[%s8079_s0 + $0x18] sm:$0xff] }
  0x74   : > { %v6044_v4 = vld [vmem:[%s7193_s12 + $0x404] ss:$16 sps:$4 sm:$0xff]   ;;  %v6042_v8 = vld [vmem:[%s7193_s12 + $0x400] ss:$16 sps:$4 sm:$0xff]  }
  0x75   : > { %4221 = vmatpush1.bf16.msra.mxu0 %v5994_v34  ;;  %v6047_v5 = vld [vmem:[%s7193_s12 + $0x604] ss:$16 sps:$4 sm:$0xff]   ;;  %v6045_v9 = vld [vmem:[%s7193_s12 + $0x600] ss:$16 sps:$4 sm:$0xff]  }
  0x76   : > { %4262 = vmatpush1.bf16.msra.mxu1 %v5995_v35  ;;  %4222 = vmatprep.subr.bf16.mxu0 %v5996_v36  ;;  %v6050_v10 = vld [vmem:[%s7193_s12 + $0x424] ss:$16 sps:$4 sm:$0xff]   ;;  %v6048_v12 = vld [vmem:[%s7193_s12 + $0x420] ss:$16 sps:$4 sm:$0xff]  }
  0x77   : > { %4263 = vmatprep.subr.bf16.mxu1 %v5998_v37  ;;  %v6053_v11 = vld [vmem:[%s7193_s12 + $0x624] ss:$16 sps:$4 sm:$0xff]   ;;  %v6051_v13 = vld [vmem:[%s7193_s12 + $0x620] ss:$16 sps:$4 sm:$0xff]   ;;  %v7331_v37 = vcombine.high %v7321_v33, %v7321_v33 }
  0x78   : > { %v6056_v14 = vld [vmem:[%s7193_s12 + $0x444] ss:$16 sps:$4 sm:$0xff]   ;;  %v6054_v16 = vld [vmem:[%s7193_s12 + $0x440] ss:$16 sps:$4 sm:$0xff]  }
  0x79   : > { %4223 = vmatpush1.bf16.msra.mxu0 %v6000_v38  ;;  %v6059_v15 = vld [vmem:[%s7193_s12 + $0x644] ss:$16 sps:$4 sm:$0xff]   ;;  %v6057_v17 = vld [vmem:[%s7193_s12 + $0x640] ss:$16 sps:$4 sm:$0xff]  }
  0x7a   : > { %4264 = vmatpush1.bf16.msra.mxu1 %v6001_v39  ;;  %4224 = vmatprep.subr.bf16.mxu0 %v6002_v40  ;;  %v6062_v18 = vld [vmem:[%s7193_s12 + $0x464] ss:$16 sps:$4 sm:$0xff]   ;;  %v6060_v20 = vld [vmem:[%s7193_s12 + $0x460] ss:$16 sps:$4 sm:$0xff]  }
  0x7b   : > { %4265 = vmatprep.subr.bf16.mxu1 %v6004_v41  ;;  %v6065_v19 = vld [vmem:[%s7193_s12 + $0x664] ss:$16 sps:$4 sm:$0xff]   ;;  %v6063_v21 = vld [vmem:[%s7193_s12 + $0x660] ss:$16 sps:$4 sm:$0xff]  }
  0x7c   : > { %v6068_v22 = vld [vmem:[%s7193_s12 + $0x484] ss:$16 sps:$4 sm:$0xff]   ;;  %v6066_v24 = vld [vmem:[%s7193_s12 + $0x480] ss:$16 sps:$4 sm:$0xff]  }
  0x7d   : > { %4225 = vmatpush1.bf16.msra.mxu0 %v6006_v42  ;;  %v6071_v23 = vld [vmem:[%s7193_s12 + $0x684] ss:$16 sps:$4 sm:$0xff]   ;;  %v6069_v25 = vld [vmem:[%s7193_s12 + $0x680] ss:$16 sps:$4 sm:$0xff]  }
  0x7e   : > { %4266 = vmatpush1.bf16.msra.mxu1 %v6007_v43  ;;  %4226 = vmatprep.subr.bf16.mxu0 %v6008_v44  ;;  %v6074_v26 = vld [vmem:[%s7193_s12 + $0x4a4] ss:$16 sps:$4 sm:$0xff]   ;;  %v6072_v28 = vld [vmem:[%s7193_s12 + $0x4a0] ss:$16 sps:$4 sm:$0xff]  }
  0x7f   : > { %4267 = vmatprep.subr.bf16.mxu1 %v6010_v45  ;;  %v6077_v27 = vld [vmem:[%s7193_s12 + $0x6a4] ss:$16 sps:$4 sm:$0xff]   ;;  %v6075_v29 = vld [vmem:[%s7193_s12 + $0x6a0] ss:$16 sps:$4 sm:$0xff]  }
  0x80   : > { %v6080_v30 = vld [vmem:[%s7193_s12 + $0x4c4] ss:$16 sps:$4 sm:$0xff]   ;;  %v6078_v34 = vld [vmem:[%s7193_s12 + $0x4c0] ss:$16 sps:$4 sm:$0xff]  }
  0x81   : > { %4227 = vmatpush1.bf16.msra.mxu0 %v6012_v49  ;;  %v6083_v31 = vld [vmem:[%s7193_s12 + $0x6c4] ss:$16 sps:$4 sm:$0xff]   ;;  %v6081_v35 = vld [vmem:[%s7193_s12 + $0x6c0] ss:$16 sps:$4 sm:$0xff]  }
  0x82   : > { %4268 = vmatpush1.bf16.msra.mxu1 %v6013_v50  ;;  %4228 = vmatprep.subr.bf16.mxu0 %v6014_v52  ;;  %v7316_v32 = vld [vmem:[%s8079_s0 + $0x10] sm:$0xff] }
  0x83   : > { %4269 = vmatprep.subr.bf16.mxu1 %v6016_v53  ;;  %v7327_v36 = vcombine.high %v7316_v32, %v7316_v32  ;;  %v6086_v38 = vld [vmem:[%s7193_s12 + $0x4e4] ss:$16 sps:$4 sm:$0xff]   ;;  %v6084_v40 = vld [vmem:[%s7193_s12 + $0x4e0] ss:$16 sps:$4 sm:$0xff]  }
  0x84   : > { %v6089_v39 = vld [vmem:[%s7193_s12 + $0x6e4] ss:$16 sps:$4 sm:$0xff]   ;;  %v6087_v41 = vld [vmem:[%s7193_s12 + $0x6e0] ss:$16 sps:$4 sm:$0xff]  }
  0x85   : > { %4229 = vmatpush1.bf16.msra.mxu0 %v6018_v54  ;;  %v6092_v42 = vld [vmem:[%s7193_s12 + $0x504] ss:$16 sps:$4 sm:$0xff]   ;;  %v6090_v44 = vld [vmem:[%s7193_s12 + $0x500] ss:$16 sps:$4 sm:$0xff]  }
  0x86   : > { %4270 = vmatpush1.bf16.msra.mxu1 %v6019_v55  ;;  %4230 = vmatprep.subr.bf16.mxu0 %v6020_v56  ;;  %v6095_v43 = vld [vmem:[%s7193_s12 + $0x704] ss:$16 sps:$4 sm:$0xff]   ;;  %v6093_v45 = vld [vmem:[%s7193_s12 + $0x700] ss:$16 sps:$4 sm:$0xff]  }
  0x87   : > { %4271 = vmatprep.subr.bf16.mxu1 %v6022_v57  ;;  %v6098_v46 = vld [vmem:[%s7193_s12 + $0x524] ss:$16 sps:$4 sm:$0xff]   ;;  %v6096_v49 = vld [vmem:[%s7193_s12 + $0x520] ss:$16 sps:$4 sm:$0xff]  }
  0x88   : > { %v6101_v48 = vld [vmem:[%s7193_s12 + $0x724] ss:$16 sps:$4 sm:$0xff]   ;;  %v6099_v50 = vld [vmem:[%s7193_s12 + $0x720] ss:$16 sps:$4 sm:$0xff]  }
  0x89   : > { %4231 = vmatpush1.bf16.msra.mxu0 %v6024_v58  ;;  %v6104_v52 = vld [vmem:[%s7193_s12 + $0x544] ss:$16 sps:$4 sm:$0xff]   ;;  %v6102_v54 = vld [vmem:[%s7193_s12 + $0x540] ss:$16 sps:$4 sm:$0xff]  }
  0x8a   : > { %4272 = vmatpush1.bf16.msra.mxu1 %v6025_v59  ;;  %4232 = vmatprep.subr.bf16.mxu0 %v6026_v60  ;;  %v6107_v53 = vld [vmem:[%s7193_s12 + $0x744] ss:$16 sps:$4 sm:$0xff]   ;;  %v6105_v55 = vld [vmem:[%s7193_s12 + $0x740] ss:$16 sps:$4 sm:$0xff]  }
  0x8b   : > { %4273 = vmatprep.subr.bf16.mxu1 %v6028_v61  ;;  %v6110_v56 = vld [vmem:[%s7193_s12 + $0x564] ss:$16 sps:$4 sm:$0xff]   ;;  %v6108_v58 = vld [vmem:[%s7193_s12 + $0x560] ss:$16 sps:$4 sm:$0xff]  }
  0x8c   : > { %v6113_v57 = vld [vmem:[%s7193_s12 + $0x764] ss:$16 sps:$4 sm:$0xff]   ;;  %v6111_v59 = vld [vmem:[%s7193_s12 + $0x760] ss:$16 sps:$4 sm:$0xff]  }
  0x8d   : > { %4233 = vmatpush1.bf16.msra.mxu0 %v6030_v62  ;;  %v6116_v60 = vld [vmem:[%s7193_s12 + $0x584] ss:$16 sps:$4 sm:$0xff]   ;;  %v6114_v62 = vld [vmem:[%s7193_s12 + $0x580] ss:$16 sps:$4 sm:$0xff]  }
  0x8e   : > { %4274 = vmatpush1.bf16.msra.mxu1 %v6031_v63  ;;  %4234 = vmatprep.subr.bf16.mxu0 %v6032_v0  ;;  %v6119_v61 = vld [vmem:[%s7193_s12 + $0x784] ss:$16 sps:$4 sm:$0xff]   ;;  %v6117_v63 = vld [vmem:[%s7193_s12 + $0x780] ss:$16 sps:$4 sm:$0xff]  }
  0x8f   : > { %4275 = vmatprep.subr.bf16.mxu1 %v6034_v1  ;;  %v6122_v0 = vld [vmem:[%s7193_s12 + $0x5a4] ss:$16 sps:$4 sm:$0xff]  }
  0x90   : > { %v6125_v1 = vld [vmem:[%s7193_s12 + $0x7a4] ss:$16 sps:$4 sm:$0xff]  }
  0x91   : > { %4235 = vmatpush1.bf16.msra.mxu0 %v6036_v2  ;;  %v6120_v2 = vld [vmem:[%s7193_s12 + $0x5a0] ss:$16 sps:$4 sm:$0xff]  }
  0x92   : > { %4276 = vmatpush1.bf16.msra.mxu1 %v6037_v3  ;;  %4286 = vmatprep.subr.bf16.mxu0 %v6044_v4  ;;  %v6123_v3 = vld [vmem:[%s7193_s12 + $0x7a0] ss:$16 sps:$4 sm:$0xff]   ;;  %v6128_v4 = vld [vmem:[%s7193_s12 + $0x5c4] ss:$16 sps:$4 sm:$0xff]  }
  0x93   : > { %4327 = vmatprep.subr.bf16.mxu1 %v6047_v5  ;;  %v6131_v5 = vld [vmem:[%s7193_s12 + $0x7c4] ss:$16 sps:$4 sm:$0xff]  }
  0x94   : > { %4237 = vmatmul.mubr.bf16.vlgmr.msra.gmra.mrb[0].mxu0 %v7283_v6 }
  0x95   : > { %4278 = vmatmul.mubr.bf16.vlgmr.msra.gmra.mrb[0].mxu1 %v7285_v7  ;;  %4287 = vmatpush1.bf16.msra.mxu0 %v6042_v8  ;;  %v6126_v8 = vld [vmem:[%s7193_s12 + $0x5c0] ss:$16 sps:$4 sm:$0xff]  }
  0x96   : > { %4328 = vmatpush1.bf16.msra.mxu1 %v6045_v9  ;;  %4288 = vmatprep.subr.bf16.mxu0 %v6050_v10  ;;  %v6129_v9 = vld [vmem:[%s7193_s12 + $0x7c0] ss:$16 sps:$4 sm:$0xff]   ;;  %v6134_v10 = vld [vmem:[%s7193_s12 + $0x5e4] ss:$16 sps:$4 sm:$0xff]  }
  0x97   : > { %4329 = vmatprep.subr.bf16.mxu1 %v6053_v11  ;;  %4318 = vmatprep.mubr.bf16.mxu0 %v7327_v36  ;;  %v6137_v11 = vld [vmem:[%s7193_s12 + $0x7e4] ss:$16 sps:$4 sm:$0xff]  }
  0x98   : > { %4359 = vmatprep.mubr.bf16.mxu1 %v7331_v37 }
  0x99   : > { %4289 = vmatpush1.bf16.msra.mxu0 %v6048_v12  ;;  %v6132_v12 = vld [vmem:[%s7193_s12 + $0x5e0] ss:$16 sps:$4 sm:$0xff]  }
  0x9a   : > { %4330 = vmatpush1.bf16.msra.mxu1 %v6051_v13  ;;  %4290 = vmatprep.subr.bf16.mxu0 %v6056_v14  ;;  %v6135_v13 = vld [vmem:[%s7193_s12 + $0x7e0] ss:$16 sps:$4 sm:$0xff]   ;;  %v6144_v14 = vld [vmem:[%s7193_s12 + $0x804] ss:$16 sps:$4 sm:$0xff]  }
  0x9b   : > { %4331 = vmatprep.subr.bf16.mxu1 %v6059_v15  ;;  %v6147_v15 = vld [vmem:[%s7193_s12 + $0xa04] ss:$16 sps:$4 sm:$0xff]  }
  0x9d   : > { %4291 = vmatpush1.bf16.msra.mxu0 %v6054_v16  ;;  %v7375_v16 = vcombine.low %v7316_v32, %v7316_v32  ;;  %v6162_v32 = vld [vmem:[%s7193_s12 + $0x864] ss:$16 sps:$4 sm:$0xff]  }
  0x9e   : > { %4332 = vmatpush1.bf16.msra.mxu1 %v6057_v17  ;;  %4292 = vmatprep.subr.bf16.mxu0 %v6062_v18  ;;  %v7379_v17 = vcombine.low %v7321_v33, %v7321_v33  ;;  %v6142_v18 = vld [vmem:[%s7193_s12 + $0x800] ss:$16 sps:$4 sm:$0xff]   ;;  %v6165_v33 = vld [vmem:[%s7193_s12 + $0xa64] ss:$16 sps:$4 sm:$0xff]  }
  0x9f   : > { %4333 = vmatprep.subr.bf16.mxu1 %v6065_v19  ;;  %v6145_v19 = vld [vmem:[%s7193_s12 + $0xa00] ss:$16 sps:$4 sm:$0xff]  }
  0xa1   : > { %4293 = vmatpush1.bf16.msra.mxu0 %v6060_v20  ;;  %v6150_v20 = vld [vmem:[%s7193_s12 + $0x824] ss:$16 sps:$4 sm:$0xff]  }
  0xa2   : > { %4334 = vmatpush1.bf16.msra.mxu1 %v6063_v21  ;;  %4294 = vmatprep.subr.bf16.mxu0 %v6068_v22  ;;  %v6153_v21 = vld [vmem:[%s7193_s12 + $0xa24] ss:$16 sps:$4 sm:$0xff]  }
  0xa3   : > { %4335 = vmatprep.subr.bf16.mxu1 %v6071_v23  ;;  %v7388_v22 = vld [vmem:[%s8079_s0 + $0x20] sm:$0xff]  ;;  %v7393_v23 = vld [vmem:[%s8079_s0 + $0x28] sm:$0xff] }
  0xa5   : > { %4295 = vmatpush1.bf16.msra.mxu0 %v6066_v24  ;;  %v7397_v24 = vcombine.high %v7388_v22, %v7388_v22 }
  0xa6   : > { %4336 = vmatpush1.bf16.msra.mxu1 %v6069_v25  ;;  %4296 = vmatprep.subr.bf16.mxu0 %v6074_v26  ;;  %v7401_v25 = vcombine.high %v7393_v23, %v7393_v23  ;;  %v6148_v26 = vld [vmem:[%s7193_s12 + $0x820] ss:$16 sps:$4 sm:$0xff]  }
  0xa7   : > { %4337 = vmatprep.subr.bf16.mxu1 %v6077_v27  ;;  %v6151_v27 = vld [vmem:[%s7193_s12 + $0xa20] ss:$16 sps:$4 sm:$0xff]  }
  0xa9   : > { %4297 = vmatpush1.bf16.msra.mxu0 %v6072_v28  ;;  %v6156_v28 = vld [vmem:[%s7193_s12 + $0x844] ss:$16 sps:$4 sm:$0xff]  }
  0xaa   : > { %4338 = vmatpush1.bf16.msra.mxu1 %v6075_v29  ;;  %4298 = vmatprep.subr.bf16.mxu0 %v6080_v30  ;;  %v6159_v29 = vld [vmem:[%s7193_s12 + $0xa44] ss:$16 sps:$4 sm:$0xff]   ;;  %v6154_v30 = vld [vmem:[%s7193_s12 + $0x840] ss:$16 sps:$4 sm:$0xff]  }
  0xab   : > { %4339 = vmatprep.subr.bf16.mxu1 %v6083_v31  ;;  %v6157_v31 = vld [vmem:[%s7193_s12 + $0xa40] ss:$16 sps:$4 sm:$0xff]  }
  0xad   : > { %4299 = vmatpush1.bf16.msra.mxu0 %v6078_v34  ;;  %v6160_v34 = vld [vmem:[%s7193_s12 + $0x860] ss:$16 sps:$4 sm:$0xff]  }
  0xae   : > { %4340 = vmatpush1.bf16.msra.mxu1 %v6081_v35  ;;  %4300 = vmatprep.subr.bf16.mxu0 %v6086_v38  ;;  %v6163_v35 = vld [vmem:[%s7193_s12 + $0xa60] ss:$16 sps:$4 sm:$0xff]   ;;  %v6168_v38 = vld [vmem:[%s7193_s12 + $0x884] ss:$16 sps:$4 sm:$0xff]  }
  0xaf   : > { %4341 = vmatprep.subr.bf16.mxu1 %v6089_v39  ;;  %v6171_v39 = vld [vmem:[%s7193_s12 + $0xa84] ss:$16 sps:$4 sm:$0xff]  }
  0xb1   : > { %4301 = vmatpush1.bf16.msra.mxu0 %v6084_v40  ;;  %v6166_v40 = vld [vmem:[%s7193_s12 + $0x880] ss:$16 sps:$4 sm:$0xff]  }
  0xb2   : > { %4342 = vmatpush1.bf16.msra.mxu1 %v6087_v41  ;;  %4302 = vmatprep.subr.bf16.mxu0 %v6092_v42  ;;  %v6169_v41 = vld [vmem:[%s7193_s12 + $0xa80] ss:$16 sps:$4 sm:$0xff]   ;;  %v6174_v42 = vld [vmem:[%s7193_s12 + $0x8a4] ss:$16 sps:$4 sm:$0xff]  }
  0xb3   : > { %4343 = vmatprep.subr.bf16.mxu1 %v6095_v43  ;;  %v6177_v43 = vld [vmem:[%s7193_s12 + $0xaa4] ss:$16 sps:$4 sm:$0xff]  }
  0xb5   : > { %4303 = vmatpush1.bf16.msra.mxu0 %v6090_v44  ;;  %v6172_v44 = vld [vmem:[%s7193_s12 + $0x8a0] ss:$16 sps:$4 sm:$0xff]  }
  0xb6   : > { %4344 = vmatpush1.bf16.msra.mxu1 %v6093_v45  ;;  %4304 = vmatprep.subr.bf16.mxu0 %v6098_v46  ;;  %v6175_v45 = vld [vmem:[%s7193_s12 + $0xaa0] ss:$16 sps:$4 sm:$0xff]   ;;  %v6180_v46 = vld [vmem:[%s7193_s12 + $0x8c4] ss:$16 sps:$4 sm:$0xff]  }
  0xb7   : > { %4345 = vmatprep.subr.bf16.mxu1 %v6101_v48  ;;  %v6183_v48 = vld [vmem:[%s7193_s12 + $0xac4] ss:$16 sps:$4 sm:$0xff]  }
  0xb9   : > { %4305 = vmatpush1.bf16.msra.mxu0 %v6096_v49  ;;  %v6178_v49 = vld [vmem:[%s7193_s12 + $0x8c0] ss:$16 sps:$4 sm:$0xff]  }
  0xba   : > { %4346 = vmatpush1.bf16.msra.mxu1 %v6099_v50  ;;  %4306 = vmatprep.subr.bf16.mxu0 %v6104_v52  ;;  %v6181_v50 = vld [vmem:[%s7193_s12 + $0xac0] ss:$16 sps:$4 sm:$0xff]   ;;  %v6186_v52 = vld [vmem:[%s7193_s12 + $0x8e4] ss:$16 sps:$4 sm:$0xff]  }
  0xbb   : > { %4347 = vmatprep.subr.bf16.mxu1 %v6107_v53  ;;  %v6189_v53 = vld [vmem:[%s7193_s12 + $0xae4] ss:$16 sps:$4 sm:$0xff]  }
  0xbd   : > { %4307 = vmatpush1.bf16.msra.mxu0 %v6102_v54  ;;  %v6184_v54 = vld [vmem:[%s7193_s12 + $0x8e0] ss:$16 sps:$4 sm:$0xff]  }
  0xbe   : > { %4348 = vmatpush1.bf16.msra.mxu1 %v6105_v55  ;;  %4308 = vmatprep.subr.bf16.mxu0 %v6110_v56  ;;  %v6187_v55 = vld [vmem:[%s7193_s12 + $0xae0] ss:$16 sps:$4 sm:$0xff]   ;;  %v6192_v56 = vld [vmem:[%s7193_s12 + $0x904] ss:$16 sps:$4 sm:$0xff]  }
  0xbf   : > { %4349 = vmatprep.subr.bf16.mxu1 %v6113_v57  ;;  %v6195_v57 = vld [vmem:[%s7193_s12 + $0xb04] ss:$16 sps:$4 sm:$0xff]  }
  0xc1   : > { %4309 = vmatpush1.bf16.msra.mxu0 %v6108_v58  ;;  %v6190_v58 = vld [vmem:[%s7193_s12 + $0x900] ss:$16 sps:$4 sm:$0xff]  }
  0xc2   : > { %4350 = vmatpush1.bf16.msra.mxu1 %v6111_v59  ;;  %4310 = vmatprep.subr.bf16.mxu0 %v6116_v60  ;;  %v6193_v59 = vld [vmem:[%s7193_s12 + $0xb00] ss:$16 sps:$4 sm:$0xff]   ;;  %v6198_v60 = vld [vmem:[%s7193_s12 + $0x924] ss:$16 sps:$4 sm:$0xff]  }
  0xc3   : > { %4351 = vmatprep.subr.bf16.mxu1 %v6119_v61  ;;  %v6201_v61 = vld [vmem:[%s7193_s12 + $0xb24] ss:$16 sps:$4 sm:$0xff]  }
  0xc5   : > { %4311 = vmatpush1.bf16.msra.mxu0 %v6114_v62  ;;  %v6196_v62 = vld [vmem:[%s7193_s12 + $0x920] ss:$16 sps:$4 sm:$0xff]  }
  0xc6   : > { %4352 = vmatpush1.bf16.msra.mxu1 %v6117_v63  ;;  %4312 = vmatprep.subr.bf16.mxu0 %v6122_v0  ;;  %v6199_v63 = vld [vmem:[%s7193_s12 + $0xb20] ss:$16 sps:$4 sm:$0xff]   ;;  %v6204_v0 = vld [vmem:[%s7193_s12 + $0x944] ss:$16 sps:$4 sm:$0xff]  }
  0xc7   : > { %4353 = vmatprep.subr.bf16.mxu1 %v6125_v1  ;;  %v6207_v1 = vld [vmem:[%s7193_s12 + $0xb44] ss:$16 sps:$4 sm:$0xff]  }
  0xc9   : > { %4313 = vmatpush1.bf16.msra.mxu0 %v6120_v2  ;;  %v6202_v2 = vld [vmem:[%s7193_s12 + $0x940] ss:$16 sps:$4 sm:$0xff]  }
  0xca   : > { %4354 = vmatpush1.bf16.msra.mxu1 %v6123_v3  ;;  %4314 = vmatprep.subr.bf16.mxu0 %v6128_v4  ;;  %v6205_v3 = vld [vmem:[%s7193_s12 + $0xb40] ss:$16 sps:$4 sm:$0xff]   ;;  %v6210_v4 = vld [vmem:[%s7193_s12 + $0x964] ss:$16 sps:$4 sm:$0xff]  }
  0xcb   : > { %4355 = vmatprep.subr.bf16.mxu1 %v6131_v5  ;;  %v6213_v5 = vld [vmem:[%s7193_s12 + $0xb64] ss:$16 sps:$4 sm:$0xff]  }
  0xcd   : > { %4315 = vmatpush1.bf16.msra.mxu0 %v6126_v8  ;;  %v6208_v8 = vld [vmem:[%s7193_s12 + $0x960] ss:$16 sps:$4 sm:$0xff]  }
  0xce   : > { %4356 = vmatpush1.bf16.msra.mxu1 %v6129_v9  ;;  %4316 = vmatprep.subr.bf16.mxu0 %v6134_v10  ;;  %v6211_v9 = vld [vmem:[%s7193_s12 + $0xb60] ss:$16 sps:$4 sm:$0xff]   ;;  %v6216_v10 = vld [vmem:[%s7193_s12 + $0x984] ss:$16 sps:$4 sm:$0xff]  }
  0xcf   : > { %4357 = vmatprep.subr.bf16.mxu1 %v6137_v11  ;;  %v6219_v11 = vld [vmem:[%s7193_s12 + $0xb84] ss:$16 sps:$4 sm:$0xff]  }
  0xd1   : > { %4317 = vmatpush1.bf16.msra.mxu0 %v6132_v12  ;;  %v6214_v12 = vld [vmem:[%s7193_s12 + $0x980] ss:$16 sps:$4 sm:$0xff]  }
  0xd2   : > { %4358 = vmatpush1.bf16.msra.mxu1 %v6135_v13  ;;  %4368 = vmatprep.subr.bf16.mxu0 %v6144_v14  ;;  %v6217_v13 = vld [vmem:[%s7193_s12 + $0xb80] ss:$16 sps:$4 sm:$0xff]   ;;  %v6222_v14 = vld [vmem:[%s7193_s12 + $0x9a4] ss:$16 sps:$4 sm:$0xff]  }
  0xd3   : > { %4409 = vmatprep.subr.bf16.mxu1 %v6147_v15  ;;  %v6225_v15 = vld [vmem:[%s7193_s12 + $0xba4] ss:$16 sps:$4 sm:$0xff]  }
  0xd4   : > { %4319 = vmatmul.mubr.bf16.vlgmr.msra.gmra.mrb[4].mxu0 %v7375_v16 }
  0xd5   : > { %4360 = vmatmul.mubr.bf16.vlgmr.msra.gmra.mrb[4].mxu1 %v7379_v17  ;;  %4369 = vmatpush1.bf16.msra.mxu0 %v6142_v18  ;;  %v6220_v18 = vld [vmem:[%s7193_s12 + $0x9a0] ss:$16 sps:$4 sm:$0xff]  }
  0xd6   : > { %4410 = vmatpush1.bf16.msra.mxu1 %v6145_v19  ;;  %4370 = vmatprep.subr.bf16.mxu0 %v6150_v20  ;;  %v6223_v19 = vld [vmem:[%s7193_s12 + $0xba0] ss:$16 sps:$4 sm:$0xff]   ;;  %v6228_v20 = vld [vmem:[%s7193_s12 + $0x9c4] ss:$16 sps:$4 sm:$0xff]  }
  0xd7   : > { %4411 = vmatprep.subr.bf16.mxu1 %v6153_v21  ;;  %4400 = vmatprep.mubr.bf16.mxu0 %v7397_v24  ;;  %v6231_v21 = vld [vmem:[%s7193_s12 + $0xbc4] ss:$16 sps:$4 sm:$0xff]  }
  0xd8   : > { %4441 = vmatprep.mubr.bf16.mxu1 %v7401_v25 }
  0xd9   : > { %4371 = vmatpush1.bf16.msra.mxu0 %v6148_v26  ;;  %v6226_v26 = vld [vmem:[%s7193_s12 + $0x9c0] ss:$16 sps:$4 sm:$0xff]  }
  0xda   : > { %4412 = vmatpush1.bf16.msra.mxu1 %v6151_v27  ;;  %4372 = vmatprep.subr.bf16.mxu0 %v6156_v28  ;;  %v6229_v27 = vld [vmem:[%s7193_s12 + $0xbc0] ss:$16 sps:$4 sm:$0xff]   ;;  %v6234_v28 = vld [vmem:[%s7193_s12 + $0x9e4] ss:$16 sps:$4 sm:$0xff]  }
  0xdb   : > { %4413 = vmatprep.subr.bf16.mxu1 %v6159_v29  ;;  %v6237_v29 = vld [vmem:[%s7193_s12 + $0xbe4] ss:$16 sps:$4 sm:$0xff]  }
  0xdd   : > { %4373 = vmatpush1.bf16.msra.mxu0 %v6154_v30  ;;  %v6232_v30 = vld [vmem:[%s7193_s12 + $0x9e0] ss:$16 sps:$4 sm:$0xff]  }
  0xde   : > { %4414 = vmatpush1.bf16.msra.mxu1 %v6157_v31  ;;  %4374 = vmatprep.subr.bf16.mxu0 %v6162_v32  ;;  %v6235_v31 = vld [vmem:[%s7193_s12 + $0xbe0] ss:$16 sps:$4 sm:$0xff]   ;;  %v6244_v32 = vld [vmem:[%s7193_s12 + $0xc04] ss:$16 sps:$4 sm:$0xff]  }
  0xdf   : > { %4415 = vmatprep.subr.bf16.mxu1 %v6165_v33  ;;  %v6247_v33 = vld [vmem:[%s7193_s12 + $0xe04] ss:$16 sps:$4 sm:$0xff]  }
  0xe1   : > { %4375 = vmatpush1.bf16.msra.mxu0 %v6160_v34  ;;  %v6242_v34 = vld [vmem:[%s7193_s12 + $0xc00] ss:$16 sps:$4 sm:$0xff]  }
  0xe2   : > { %4416 = vmatpush1.bf16.msra.mxu1 %v6163_v35  ;;  %4376 = vmatprep.subr.bf16.mxu0 %v6168_v38  ;;  %v6245_v35 = vld [vmem:[%s7193_s12 + $0xe00] ss:$16 sps:$4 sm:$0xff]   ;;  %v7471_v38 = vcombine.low %v7388_v22, %v7388_v22  ;;  %v6250_v22 = vld [vmem:[%s7193_s12 + $0xc24] ss:$16 sps:$4 sm:$0xff]  }
  0xe3   : > { %4417 = vmatprep.subr.bf16.mxu1 %v6171_v39  ;;  %v7475_v39 = vcombine.low %v7393_v23, %v7393_v23  ;;  %v6253_v23 = vld [vmem:[%s7193_s12 + $0xe24] ss:$16 sps:$4 sm:$0xff]  }
  0xe5   : > { %4377 = vmatpush1.bf16.msra.mxu0 %v6166_v40  ;;  %v7480_v40 = vld [vmem:[%s8079_s0 + $0x30] sm:$0xff] }
  0xe6   : > { %4418 = vmatpush1.bf16.msra.mxu1 %v6169_v41  ;;  %4378 = vmatprep.subr.bf16.mxu0 %v6174_v42  ;;  %v7485_v41 = vld [vmem:[%s8079_s0 + $0x38] sm:$0xff]  ;;  %v7491_v42 = vcombine.high %v7480_v40, %v7480_v40 }
  0xe7   : > { %4419 = vmatprep.subr.bf16.mxu1 %v6177_v43  ;;  %v7495_v43 = vcombine.high %v7485_v41, %v7485_v41 }
  0xe9   : > { %4379 = vmatpush1.bf16.msra.mxu0 %v6172_v44  ;;  %v6248_v44 = vld [vmem:[%s7193_s12 + $0xc20] ss:$16 sps:$4 sm:$0xff]  }
  0xea   : > { %4420 = vmatpush1.bf16.msra.mxu1 %v6175_v45  ;;  %4380 = vmatprep.subr.bf16.mxu0 %v6180_v46  ;;  %v6251_v45 = vld [vmem:[%s7193_s12 + $0xe20] ss:$16 sps:$4 sm:$0xff]   ;;  %v6256_v46 = vld [vmem:[%s7193_s12 + $0xc44] ss:$16 sps:$4 sm:$0xff]  }
  0xeb   : > { %4421 = vmatprep.subr.bf16.mxu1 %v6183_v48  ;;  %v6259_v48 = vld [vmem:[%s7193_s12 + $0xe44] ss:$16 sps:$4 sm:$0xff]  }
  0xed   : > { %4381 = vmatpush1.bf16.msra.mxu0 %v6178_v49  ;;  %v6254_v49 = vld [vmem:[%s7193_s12 + $0xc40] ss:$16 sps:$4 sm:$0xff]  }
  0xee   : > { %4422 = vmatpush1.bf16.msra.mxu1 %v6181_v50  ;;  %4382 = vmatprep.subr.bf16.mxu0 %v6186_v52  ;;  %v6257_v50 = vld [vmem:[%s7193_s12 + $0xe40] ss:$16 sps:$4 sm:$0xff]   ;;  %v6262_v52 = vld [vmem:[%s7193_s12 + $0xc64] ss:$16 sps:$4 sm:$0xff]  }
  0xef   : > { %4423 = vmatprep.subr.bf16.mxu1 %v6189_v53  ;;  %v6265_v53 = vld [vmem:[%s7193_s12 + $0xe64] ss:$16 sps:$4 sm:$0xff]  }
  0xf1   : > { %4383 = vmatpush1.bf16.msra.mxu0 %v6184_v54  ;;  %v6260_v54 = vld [vmem:[%s7193_s12 + $0xc60] ss:$16 sps:$4 sm:$0xff]  }
  0xf2   : > { %4424 = vmatpush1.bf16.msra.mxu1 %v6187_v55  ;;  %4384 = vmatprep.subr.bf16.mxu0 %v6192_v56  ;;  %v6263_v55 = vld [vmem:[%s7193_s12 + $0xe60] ss:$16 sps:$4 sm:$0xff]   ;;  %v6268_v56 = vld [vmem:[%s7193_s12 + $0xc84] ss:$16 sps:$4 sm:$0xff]  }
  0xf3   : > { %4425 = vmatprep.subr.bf16.mxu1 %v6195_v57  ;;  %v6271_v57 = vld [vmem:[%s7193_s12 + $0xe84] ss:$16 sps:$4 sm:$0xff]  }
  0xf5   : > { %4385 = vmatpush1.bf16.msra.mxu0 %v6190_v58  ;;  %v6266_v58 = vld [vmem:[%s7193_s12 + $0xc80] ss:$16 sps:$4 sm:$0xff]  }
  0xf6   : > { %4426 = vmatpush1.bf16.msra.mxu1 %v6193_v59  ;;  %4386 = vmatprep.subr.bf16.mxu0 %v6198_v60  ;;  %v6269_v59 = vld [vmem:[%s7193_s12 + $0xe80] ss:$16 sps:$4 sm:$0xff]   ;;  %v6274_v60 = vld [vmem:[%s7193_s12 + $0xca4] ss:$16 sps:$4 sm:$0xff]  }
  0xf7   : > { %4427 = vmatprep.subr.bf16.mxu1 %v6201_v61  ;;  %v6277_v61 = vld [vmem:[%s7193_s12 + $0xea4] ss:$16 sps:$4 sm:$0xff]  }
  0xf9   : > { %4387 = vmatpush1.bf16.msra.mxu0 %v6196_v62  ;;  %v6272_v62 = vld [vmem:[%s7193_s12 + $0xca0] ss:$16 sps:$4 sm:$0xff]  }
  0xfa   : > { %4428 = vmatpush1.bf16.msra.mxu1 %v6199_v63  ;;  %4388 = vmatprep.subr.bf16.mxu0 %v6204_v0  ;;  %v6275_v63 = vld [vmem:[%s7193_s12 + $0xea0] ss:$16 sps:$4 sm:$0xff]   ;;  %v6280_v0 = vld [vmem:[%s7193_s12 + $0xcc4] ss:$16 sps:$4 sm:$0xff]  }
  0xfb   : > { %4429 = vmatprep.subr.bf16.mxu1 %v6207_v1  ;;  %v6283_v1 = vld [vmem:[%s7193_s12 + $0xec4] ss:$16 sps:$4 sm:$0xff]  }
  0xfd   : > { %4389 = vmatpush1.bf16.msra.mxu0 %v6202_v2  ;;  %v6278_v2 = vld [vmem:[%s7193_s12 + $0xcc0] ss:$16 sps:$4 sm:$0xff]  }
  0xfe   : > { %4430 = vmatpush1.bf16.msra.mxu1 %v6205_v3  ;;  %4390 = vmatprep.subr.bf16.mxu0 %v6210_v4  ;;  %v6281_v3 = vld [vmem:[%s7193_s12 + $0xec0] ss:$16 sps:$4 sm:$0xff]   ;;  %v6286_v4 = vld [vmem:[%s7193_s12 + $0xce4] ss:$16 sps:$4 sm:$0xff]  }
  0xff   : > { %4431 = vmatprep.subr.bf16.mxu1 %v6213_v5  ;;  %v6289_v5 = vld [vmem:[%s7193_s12 + $0xee4] ss:$16 sps:$4 sm:$0xff]  }
 0x101   : > { %4391 = vmatpush1.bf16.msra.mxu0 %v6208_v8  ;;  %v6284_v8 = vld [vmem:[%s7193_s12 + $0xce0] ss:$16 sps:$4 sm:$0xff]  }
 0x102   : > { %4432 = vmatpush1.bf16.msra.mxu1 %v6211_v9  ;;  %4392 = vmatprep.subr.bf16.mxu0 %v6216_v10  ;;  %v6287_v9 = vld [vmem:[%s7193_s12 + $0xee0] ss:$16 sps:$4 sm:$0xff]   ;;  %v6292_v10 = vld [vmem:[%s7193_s12 + $0xd04] ss:$16 sps:$4 sm:$0xff]  }
 0x103   : > { %4433 = vmatprep.subr.bf16.mxu1 %v6219_v11  ;;  %v6295_v11 = vld [vmem:[%s7193_s12 + $0xf04] ss:$16 sps:$4 sm:$0xff]  }
 0x105   : > { %4393 = vmatpush1.bf16.msra.mxu0 %v6214_v12  ;;  %v6290_v12 = vld [vmem:[%s7193_s12 + $0xd00] ss:$16 sps:$4 sm:$0xff]  }
 0x106   : > { %4434 = vmatpush1.bf16.msra.mxu1 %v6217_v13  ;;  %4394 = vmatprep.subr.bf16.mxu0 %v6222_v14  ;;  %v6293_v13 = vld [vmem:[%s7193_s12 + $0xf00] ss:$16 sps:$4 sm:$0xff]   ;;  %v6298_v14 = vld [vmem:[%s7193_s12 + $0xd24] ss:$16 sps:$4 sm:$0xff]  }
 0x107   : > { %4435 = vmatprep.subr.bf16.mxu1 %v6225_v15  ;;  %v6301_v15 = vld [vmem:[%s7193_s12 + $0xf24] ss:$16 sps:$4 sm:$0xff]  }
 0x109   : > { %4395 = vmatpush1.bf16.msra.mxu0 %v6220_v18  ;;  %v6296_v18 = vld [vmem:[%s7193_s12 + $0xd20] ss:$16 sps:$4 sm:$0xff]  }
 0x10a   : > { %4436 = vmatpush1.bf16.msra.mxu1 %v6223_v19  ;;  %4396 = vmatprep.subr.bf16.mxu0 %v6228_v20  ;;  %v6299_v19 = vld [vmem:[%s7193_s12 + $0xf20] ss:$16 sps:$4 sm:$0xff]   ;;  %v6304_v20 = vld [vmem:[%s7193_s12 + $0xd44] ss:$16 sps:$4 sm:$0xff]  }
 0x10b   : > { %4437 = vmatprep.subr.bf16.mxu1 %v6231_v21  ;;  %v6307_v21 = vld [vmem:[%s7193_s12 + $0xf44] ss:$16 sps:$4 sm:$0xff]  }
 0x10d   : > { %4397 = vmatpush1.bf16.msra.mxu0 %v6226_v26  ;;  %v6302_v26 = vld [vmem:[%s7193_s12 + $0xd40] ss:$16 sps:$4 sm:$0xff]  }
 0x10e   : > { %4438 = vmatpush1.bf16.msra.mxu1 %v6229_v27  ;;  %4398 = vmatprep.subr.bf16.mxu0 %v6234_v28  ;;  %v6305_v27 = vld [vmem:[%s7193_s12 + $0xf40] ss:$16 sps:$4 sm:$0xff]   ;;  %v6310_v28 = vld [vmem:[%s7193_s12 + $0xd64] ss:$16 sps:$4 sm:$0xff]  }
 0x10f   : > { %4439 = vmatprep.subr.bf16.mxu1 %v6237_v29  ;;  %v6313_v29 = vld [vmem:[%s7193_s12 + $0xf64] ss:$16 sps:$4 sm:$0xff]  }
 0x111   : > { %4399 = vmatpush1.bf16.msra.mxu0 %v6232_v30  ;;  %v6308_v30 = vld [vmem:[%s7193_s12 + $0xd60] ss:$16 sps:$4 sm:$0xff]  }
 0x112   : > { %4440 = vmatpush1.bf16.msra.mxu1 %v6235_v31  ;;  %4450 = vmatprep.subr.bf16.mxu0 %v6244_v32  ;;  %v6311_v31 = vld [vmem:[%s7193_s12 + $0xf60] ss:$16 sps:$4 sm:$0xff]   ;;  %v6316_v32 = vld [vmem:[%s7193_s12 + $0xd84] ss:$16 sps:$4 sm:$0xff]  }
 0x113   : > { %4491 = vmatprep.subr.bf16.mxu1 %v6247_v33  ;;  %v6319_v33 = vld [vmem:[%s7193_s12 + $0xf84] ss:$16 sps:$4 sm:$0xff]  }
 0x114   : > { %4401 = vmatmul.mubr.bf16.vlgmr.msra.gmra.mrb[8].mxu0 %v7471_v38 }
 0x115   : > { %4442 = vmatmul.mubr.bf16.vlgmr.msra.gmra.mrb[8].mxu1 %v7475_v39  ;;  %4451 = vmatpush1.bf16.msra.mxu0 %v6242_v34  ;;  %v6314_v34 = vld [vmem:[%s7193_s12 + $0xd80] ss:$16 sps:$4 sm:$0xff]  }
 0x116   : > { %4492 = vmatpush1.bf16.msra.mxu1 %v6245_v35  ;;  %4452 = vmatprep.subr.bf16.mxu0 %v6250_v22  ;;  %v6317_v35 = vld [vmem:[%s7193_s12 + $0xf80] ss:$16 sps:$4 sm:$0xff]   ;;  %v6322_v22 = vld [vmem:[%s7193_s12 + $0xda4] ss:$16 sps:$4 sm:$0xff]  }
 0x117   : > { %4493 = vmatprep.subr.bf16.mxu1 %v6253_v23  ;;  %4482 = vmatprep.mubr.bf16.mxu0 %v7491_v42  ;;  %v6325_v23 = vld [vmem:[%s7193_s12 + $0xfa4] ss:$16 sps:$4 sm:$0xff]  }
 0x118   : > { %4523 = vmatprep.mubr.bf16.mxu1 %v7495_v43 }
 0x119   : > { %4453 = vmatpush1.bf16.msra.mxu0 %v6248_v44  ;;  %v6320_v44 = vld [vmem:[%s7193_s12 + $0xda0] ss:$16 sps:$4 sm:$0xff]  }
 0x11a   : > { %4494 = vmatpush1.bf16.msra.mxu1 %v6251_v45  ;;  %4454 = vmatprep.subr.bf16.mxu0 %v6256_v46  ;;  %v6323_v45 = vld [vmem:[%s7193_s12 + $0xfa0] ss:$16 sps:$4 sm:$0xff]   ;;  %v6328_v46 = vld [vmem:[%s7193_s12 + $0xdc4] ss:$16 sps:$4 sm:$0xff]  }
 0x11b   : > { %4495 = vmatprep.subr.bf16.mxu1 %v6259_v48  ;;  %v6331_v48 = vld [vmem:[%s7193_s12 + $0xfc4] ss:$16 sps:$4 sm:$0xff]  }
 0x11d   : > { %4455 = vmatpush1.bf16.msra.mxu0 %v6254_v49  ;;  %v6326_v49 = vld [vmem:[%s7193_s12 + $0xdc0] ss:$16 sps:$4 sm:$0xff]  }
 0x11e   : > { %4496 = vmatpush1.bf16.msra.mxu1 %v6257_v50  ;;  %4456 = vmatprep.subr.bf16.mxu0 %v6262_v52  ;;  %v6329_v50 = vld [vmem:[%s7193_s12 + $0xfc0] ss:$16 sps:$4 sm:$0xff]   ;;  %v6334_v52 = vld [vmem:[%s7193_s12 + $0xde4] ss:$16 sps:$4 sm:$0xff]  }
 0x11f   : > { %4497 = vmatprep.subr.bf16.mxu1 %v6265_v53  ;;  %v6337_v53 = vld [vmem:[%s7193_s12 + $0xfe4] ss:$16 sps:$4 sm:$0xff]  }
 0x121   : > { %4457 = vmatpush1.bf16.msra.mxu0 %v6260_v54  ;;  %v6332_v54 = vld [vmem:[%s7193_s12 + $0xde0] ss:$16 sps:$4 sm:$0xff]  }
 0x122   : > { %4498 = vmatpush1.bf16.msra.mxu1 %v6263_v55  ;;  %4458 = vmatprep.subr.bf16.mxu0 %v6268_v56  ;;  %v6335_v55 = vld [vmem:[%s7193_s12 + $0xfe0] ss:$16 sps:$4 sm:$0xff]   ;;  %v6344_v56 = vld [vmem:[%s7193_s12 + $0x1004] ss:$16 sps:$4 sm:$0xff]  }
 0x123   : > { %4499 = vmatprep.subr.bf16.mxu1 %v6271_v57  ;;  %v6347_v57 = vld [vmem:[%s7193_s12 + $0x1204] ss:$16 sps:$4 sm:$0xff]  }
 0x125   : > { %4459 = vmatpush1.bf16.msra.mxu0 %v6266_v58  ;;  %v7564_v58 = vld [vmem:[%s8079_s0 + $0x40] sm:$0xff] }
 0x126   : > { %4500 = vmatpush1.bf16.msra.mxu1 %v6269_v59  ;;  %4460 = vmatprep.subr.bf16.mxu0 %v6274_v60  ;;  %v7568_v59 = vcombine.low %v7480_v40, %v7480_v40  ;;  %v7572_v60 = vcombine.low %v7485_v41, %v7485_v41  ;;  %v6350_v40 = vld [vmem:[%s7193_s12 + $0x1024] ss:$16 sps:$4 sm:$0xff]   ;;  %v7585_v41 = vcombine.high %v7564_v58, %v7564_v58 }
 0x127   : > { %4501 = vmatprep.subr.bf16.mxu1 %v6277_v61  ;;  %v7577_v61 = vld [vmem:[%s8079_s0 + $0x48] sm:$0xff] }
 0x129   : > { %4461 = vmatpush1.bf16.msra.mxu0 %v6272_v62  ;;  %v6342_v62 = vld [vmem:[%s7193_s12 + $0x1000] ss:$16 sps:$4 sm:$0xff]  }
 0x12a   : > { %4502 = vmatpush1.bf16.msra.mxu1 %v6275_v63  ;;  %4462 = vmatprep.subr.bf16.mxu0 %v6280_v0  ;;  %v6345_v63 = vld [vmem:[%s7193_s12 + $0x1200] ss:$16 sps:$4 sm:$0xff]   ;;  %v6353_v0 = vld [vmem:[%s7193_s12 + $0x1224] ss:$16 sps:$4 sm:$0xff]  }
 0x12b   : > { %4503 = vmatprep.subr.bf16.mxu1 %v6283_v1  ;;  %v7589_v1 = vcombine.high %v7577_v61, %v7577_v61 }
 0x12d   : > { %4463 = vmatpush1.bf16.msra.mxu0 %v6278_v2  ;;  %v6348_v2 = vld [vmem:[%s7193_s12 + $0x1020] ss:$16 sps:$4 sm:$0xff]  }
 0x12e   : > { %4504 = vmatpush1.bf16.msra.mxu1 %v6281_v3  ;;  %4464 = vmatprep.subr.bf16.mxu0 %v6286_v4  ;;  %v6351_v3 = vld [vmem:[%s7193_s12 + $0x1220] ss:$16 sps:$4 sm:$0xff]   ;;  %v6356_v4 = vld [vmem:[%s7193_s12 + $0x1044] ss:$16 sps:$4 sm:$0xff]  }
 0x12f   : > { %4505 = vmatprep.subr.bf16.mxu1 %v6289_v5  ;;  %v6359_v5 = vld [vmem:[%s7193_s12 + $0x1244] ss:$16 sps:$4 sm:$0xff]  }
 0x131   : > { %4465 = vmatpush1.bf16.msra.mxu0 %v6284_v8  ;;  %v6354_v8 = vld [vmem:[%s7193_s12 + $0x1040] ss:$16 sps:$4 sm:$0xff]  }
 0x132   : > { %4506 = vmatpush1.bf16.msra.mxu1 %v6287_v9  ;;  %4466 = vmatprep.subr.bf16.mxu0 %v6292_v10  ;;  %v6357_v9 = vld [vmem:[%s7193_s12 + $0x1240] ss:$16 sps:$4 sm:$0xff]   ;;  %v6362_v10 = vld [vmem:[%s7193_s12 + $0x1064] ss:$16 sps:$4 sm:$0xff]  }
 0x133   : > { %4507 = vmatprep.subr.bf16.mxu1 %v6295_v11  ;;  %v6365_v11 = vld [vmem:[%s7193_s12 + $0x1264] ss:$16 sps:$4 sm:$0xff]  }
 0x135   : > { %4467 = vmatpush1.bf16.msra.mxu0 %v6290_v12  ;;  %v6360_v12 = vld [vmem:[%s7193_s12 + $0x1060] ss:$16 sps:$4 sm:$0xff]  }
 0x136   : > { %4508 = vmatpush1.bf16.msra.mxu1 %v6293_v13  ;;  %4468 = vmatprep.subr.bf16.mxu0 %v6298_v14  ;;  %v6363_v13 = vld [vmem:[%s7193_s12 + $0x1260] ss:$16 sps:$4 sm:$0xff]   ;;  %v6368_v14 = vld [vmem:[%s7193_s12 + $0x1084] ss:$16 sps:$4 sm:$0xff]  }
 0x137   : > { %4509 = vmatprep.subr.bf16.mxu1 %v6301_v15  ;;  %v6371_v15 = vld [vmem:[%s7193_s12 + $0x1284] ss:$16 sps:$4 sm:$0xff]  }
 0x139   : > { %4469 = vmatpush1.bf16.msra.mxu0 %v6296_v18  ;;  %v6366_v18 = vld [vmem:[%s7193_s12 + $0x1080] ss:$16 sps:$4 sm:$0xff]  }
 0x13a   : > { %4510 = vmatpush1.bf16.msra.mxu1 %v6299_v19  ;;  %4470 = vmatprep.subr.bf16.mxu0 %v6304_v20  ;;  %v6369_v19 = vld [vmem:[%s7193_s12 + $0x1280] ss:$16 sps:$4 sm:$0xff]   ;;  %v6374_v20 = vld [vmem:[%s7193_s12 + $0x10a4] ss:$16 sps:$4 sm:$0xff]  }
 0x13b   : > { %4511 = vmatprep.subr.bf16.mxu1 %v6307_v21  ;;  %v6377_v21 = vld [vmem:[%s7193_s12 + $0x12a4] ss:$16 sps:$4 sm:$0xff]  }
 0x13d   : > { %4471 = vmatpush1.bf16.msra.mxu0 %v6302_v26  ;;  %v6372_v26 = vld [vmem:[%s7193_s12 + $0x10a0] ss:$16 sps:$4 sm:$0xff]  }
 0x13e   : > { %4512 = vmatpush1.bf16.msra.mxu1 %v6305_v27  ;;  %4472 = vmatprep.subr.bf16.mxu0 %v6310_v28  ;;  %v6375_v27 = vld [vmem:[%s7193_s12 + $0x12a0] ss:$16 sps:$4 sm:$0xff]   ;;  %v6380_v28 = vld [vmem:[%s7193_s12 + $0x10c4] ss:$16 sps:$4 sm:$0xff]  }
 0x13f   : > { %4513 = vmatprep.subr.bf16.mxu1 %v6313_v29  ;;  %v6383_v29 = vld [vmem:[%s7193_s12 + $0x12c4] ss:$16 sps:$4 sm:$0xff]  }
 0x141   : > { %4473 = vmatpush1.bf16.msra.mxu0 %v6308_v30 }
 0x142   : > { %4514 = vmatpush1.bf16.msra.mxu1 %v6311_v31  ;;  %4474 = vmatprep.subr.bf16.mxu0 %v6316_v32  ;;  %v6378_v32 = vld [vmem:[%s7193_s12 + $0x10c0] ss:$16 sps:$4 sm:$0xff]  }
 0x143   : > { %4515 = vmatprep.subr.bf16.mxu1 %v6319_v33  ;;  %v6381_v33 = vld [vmem:[%s7193_s12 + $0x12c0] ss:$16 sps:$4 sm:$0xff]  }
 0x145   : > { %4475 = vmatpush1.bf16.msra.mxu0 %v6314_v34 }
 0x146   : > { %4516 = vmatpush1.bf16.msra.mxu1 %v6317_v35  ;;  %4476 = vmatprep.subr.bf16.mxu0 %v6322_v22 }
 0x147   : > { %4517 = vmatprep.subr.bf16.mxu1 %v6325_v23 }
 0x149   : > { %4477 = vmatpush1.bf16.msra.mxu0 %v6320_v44 }
 0x14a   : > { %4518 = vmatpush1.bf16.msra.mxu1 %v6323_v45  ;;  %4478 = vmatprep.subr.bf16.mxu0 %v6328_v46 }
 0x14b   : > { %4519 = vmatprep.subr.bf16.mxu1 %v6331_v48 }
 0x14d   : > { %4479 = vmatpush1.bf16.msra.mxu0 %v6326_v49  ;;  %v6386_v49 = vld [vmem:[%s7193_s12 + $0x10e4] ss:$16 sps:$4 sm:$0xff]  }
 0x14e   : > { %4520 = vmatpush1.bf16.msra.mxu1 %v6329_v50  ;;  %4480 = vmatprep.subr.bf16.mxu0 %v6334_v52  ;;  %v6389_v50 = vld [vmem:[%s7193_s12 + $0x12e4] ss:$16 sps:$4 sm:$0xff]   ;;  %v6384_v52 = vld [vmem:[%s7193_s12 + $0x10e0] ss:$16 sps:$4 sm:$0xff]  }
 0x14f   : > { %4521 = vmatprep.subr.bf16.mxu1 %v6337_v53  ;;  %v6387_v53 = vld [vmem:[%s7193_s12 + $0x12e0] ss:$16 sps:$4 sm:$0xff]  }
 0x151   : > { %4481 = vmatpush1.bf16.msra.mxu0 %v6332_v54  ;;  %v6392_v54 = vld [vmem:[%s7193_s12 + $0x1104] ss:$16 sps:$4 sm:$0xff]  }
 0x152   : > { %4522 = vmatpush1.bf16.msra.mxu1 %v6335_v55  ;;  %4532 = vmatprep.subr.bf16.mxu0 %v6344_v56  ;;  %v6395_v55 = vld [vmem:[%s7193_s12 + $0x1304] ss:$16 sps:$4 sm:$0xff]   ;;  %v6390_v56 = vld [vmem:[%s7193_s12 + $0x1100] ss:$16 sps:$4 sm:$0xff]  }
 0x153   : > { %4573 = vmatprep.subr.bf16.mxu1 %v6347_v57  ;;  %v6393_v57 = vld [vmem:[%s7193_s12 + $0x1300] ss:$16 sps:$4 sm:$0xff]  }
 0x154   : > { %4483 = vmatmul.mubr.bf16.vlgmr.msra.gmra.mrb[12].mxu0 %v7568_v59 }
 0x155   : > { %4524 = vmatmul.mubr.bf16.vlgmr.msra.gmra.mrb[12].mxu1 %v7572_v60  ;;  %4533 = vmatpush1.bf16.msra.mxu0 %v6342_v62  ;;  %v6398_v62 = vld [vmem:[%s7193_s12 + $0x1124] ss:$16 sps:$4 sm:$0xff]  }
 0x156   : > { %4574 = vmatpush1.bf16.msra.mxu1 %v6345_v63  ;;  %4534 = vmatprep.subr.bf16.mxu0 %v6350_v40  ;;  %v6401_v63 = vld [vmem:[%s7193_s12 + $0x1324] ss:$16 sps:$4 sm:$0xff]   ;;  %v6396_v40 = vld [vmem:[%s7193_s12 + $0x1120] ss:$16 sps:$4 sm:$0xff]  }
 0x157   : > { %4575 = vmatprep.subr.bf16.mxu1 %v6353_v0  ;;  %4564 = vmatprep.mubr.bf16.mxu0 %v7585_v41  ;;  %v6399_v0 = vld [vmem:[%s7193_s12 + $0x1320] ss:$16 sps:$4 sm:$0xff]  }
 0x158   : > { %4605 = vmatprep.mubr.bf16.mxu1 %v7589_v1 }
 0x159   : > { %4535 = vmatpush1.bf16.msra.mxu0 %v6348_v2  ;;  %v6404_v2 = vld [vmem:[%s7193_s12 + $0x1144] ss:$16 sps:$4 sm:$0xff]  }
 0x15a   : > { %4576 = vmatpush1.bf16.msra.mxu1 %v6351_v3  ;;  %4536 = vmatprep.subr.bf16.mxu0 %v6356_v4  ;;  %v6407_v3 = vld [vmem:[%s7193_s12 + $0x1344] ss:$16 sps:$4 sm:$0xff]   ;;  %v6402_v4 = vld [vmem:[%s7193_s12 + $0x1140] ss:$16 sps:$4 sm:$0xff]  }
 0x15b   : > { %4577 = vmatprep.subr.bf16.mxu1 %v6359_v5  ;;  %v6405_v5 = vld [vmem:[%s7193_s12 + $0x1340] ss:$16 sps:$4 sm:$0xff]  }
 0x15d   : > { %4537 = vmatpush1.bf16.msra.mxu0 %v6354_v8  ;;  %v6410_v8 = vld [vmem:[%s7193_s12 + $0x1164] ss:$16 sps:$4 sm:$0xff]  }
 0x15e   : > { %4578 = vmatpush1.bf16.msra.mxu1 %v6357_v9  ;;  %4538 = vmatprep.subr.bf16.mxu0 %v6362_v10  ;;  %v6413_v9 = vld [vmem:[%s7193_s12 + $0x1364] ss:$16 sps:$4 sm:$0xff]   ;;  %v6408_v10 = vld [vmem:[%s7193_s12 + $0x1160] ss:$16 sps:$4 sm:$0xff]  }
 0x15f   : > { %4579 = vmatprep.subr.bf16.mxu1 %v6365_v11  ;;  %v6411_v11 = vld [vmem:[%s7193_s12 + $0x1360] ss:$16 sps:$4 sm:$0xff]  }
 0x161   : > { %4539 = vmatpush1.bf16.msra.mxu0 %v6360_v12  ;;  %v6416_v12 = vld [vmem:[%s7193_s12 + $0x1184] ss:$16 sps:$4 sm:$0xff]  }
 0x162   : > { %4580 = vmatpush1.bf16.msra.mxu1 %v6363_v13  ;;  %4540 = vmatprep.subr.bf16.mxu0 %v6368_v14  ;;  %v6419_v13 = vld [vmem:[%s7193_s12 + $0x1384] ss:$16 sps:$4 sm:$0xff]   ;;  %v6414_v14 = vld [vmem:[%s7193_s12 + $0x1180] ss:$16 sps:$4 sm:$0xff]  }
 0x163   : > { %4581 = vmatprep.subr.bf16.mxu1 %v6371_v15  ;;  %v6417_v15 = vld [vmem:[%s7193_s12 + $0x1380] ss:$16 sps:$4 sm:$0xff]  }
 0x165   : > { %4541 = vmatpush1.bf16.msra.mxu0 %v6366_v18  ;;  %v6422_v18 = vld [vmem:[%s7193_s12 + $0x11a4] ss:$16 sps:$4 sm:$0xff]  }
 0x166   : > { %4582 = vmatpush1.bf16.msra.mxu1 %v6369_v19  ;;  %4542 = vmatprep.subr.bf16.mxu0 %v6374_v20  ;;  %v6425_v19 = vld [vmem:[%s7193_s12 + $0x13a4] ss:$16 sps:$4 sm:$0xff]   ;;  %v6420_v20 = vld [vmem:[%s7193_s12 + $0x11a0] ss:$16 sps:$4 sm:$0xff]  }
 0x167   : > { %4583 = vmatprep.subr.bf16.mxu1 %v6377_v21  ;;  %v4238_v30 = vpop.f32.mrb[0].mxu0  ;;  %v6423_v21 = vld [vmem:[%s7193_s12 + $0x13a0] ss:$16 sps:$4 sm:$0xff]  }
 0x168   : > { %v4279_v31 = vpop.f32.mrb[0].mxu1  ;;  %v4240_v35 = vpop.f32.mrb[1].mxu0 }
 0x169   : > { %v7617_v34 = vadd.f32 %v4279_v31, %v4238_v30  ;;  %v4281_v22 = vpop.f32.mrb[1].mxu1  ;;  %v4242_v44 = vpop.f32.mrb[2].mxu0  ;;  %4543 = vmatpush1.bf16.msra.mxu0 %v6372_v26  ;;  %v6428_v26 = vld [vmem:[%s7193_s12 + $0x11c4] ss:$16 sps:$4 sm:$0xff]  }
 0x16a   : > { %v7619_v23 = vadd.f32 %v4281_v22, %v4240_v35  ;;  %v4283_v45 = vpop.f32.mrb[2].mxu1  ;;  %4584 = vmatpush1.bf16.msra.mxu1 %v6375_v27  ;;  %v4243_v46 = vpop.f32.mrb[3].mxu0  ;;  %4544 = vmatprep.subr.bf16.mxu0 %v6380_v28  ;;  %v6431_v27 = vld [vmem:[%s7193_s12 + $0x13c4] ss:$16 sps:$4 sm:$0xff]   ;;  %v6426_v28 = vld [vmem:[%s7193_s12 + $0x11c0] ss:$16 sps:$4 sm:$0xff]  }
 0x16b   : > { %v4284_v48 = vpop.f32.mrb[3].mxu1  ;;  %4585 = vmatprep.subr.bf16.mxu1 %v6383_v29  ;;  %v6429_v29 = vld [vmem:[%s7193_s12 + $0x13c0] ss:$16 sps:$4 sm:$0xff]   ;;  %v6434_v30 = vld [vmem:[%s7193_s12 + $0x11e4] ss:$16 sps:$4 sm:$0xff]   ;;  %v7663_v46 = vcombine.low %v7564_v58, %v7564_v58 }
 0x16c   : > { %v6437_v31 = vld [vmem:[%s7193_s12 + $0x13e4] ss:$16 sps:$4 sm:$0xff]   ;;  %v6444_v35 = vld [vmem:[%s7193_s12 + $0xc] ss:$16 sps:$4 sm:$0xff]   ;;  %v6442_v44 = vld [vmem:[%s7193_s12 + $0x8] ss:$16 sps:$4 sm:$0xff]   ;;  %v7667_v48 = vcombine.low %v7577_v61, %v7577_v61 }
 0x16d   : > { %4545 = vmatpush1.bf16.msra.mxu0 %v6378_v32  ;;  %v6432_v32 = vld [vmem:[%s7193_s12 + $0x11e0] ss:$16 sps:$4 sm:$0xff]   ;;  %v6447_v22 = vld [vmem:[%s7193_s12 + $0x20c] ss:$16 sps:$4 sm:$0xff]   ;;  %v6445_v45 = vld [vmem:[%s7193_s12 + $0x208] ss:$16 sps:$4 sm:$0xff]  }
 0x16e   : > { %4586 = vmatpush1.bf16.msra.mxu1 %v6381_v33  ;;  %4546 = vmatprep.subr.bf16.mxu0 %v6386_v49  ;;  %v6435_v33 = vld [vmem:[%s7193_s12 + $0x13e0] ss:$16 sps:$4 sm:$0xff]   ;;  %v6450_v49 = vld [vmem:[%s7193_s12 + $0x2c] ss:$16 sps:$4 sm:$0xff]   ;;  %v6448_v58 = vld [vmem:[%s7193_s12 + $0x28] ss:$16 sps:$4 sm:$0xff]  }
 0x16f   : > { %4587 = vmatprep.subr.bf16.mxu1 %v6389_v50  ;;  %v6453_v50 = vld [vmem:[%s7193_s12 + $0x22c] ss:$16 sps:$4 sm:$0xff]   ;;  %v6451_v61 = vld [vmem:[%s7193_s12 + $0x228] ss:$16 sps:$4 sm:$0xff]  }
 0x171   : > { %4547 = vmatpush1.bf16.msra.mxu0 %v6384_v52  ;;  %v6456_v52 = vld [vmem:[%s7193_s12 + $0x4c] ss:$16 sps:$4 sm:$0xff]  }
 0x172   : > { %4588 = vmatpush1.bf16.msra.mxu1 %v6387_v53  ;;  %4548 = vmatprep.subr.bf16.mxu0 %v6392_v54  ;;  %v6459_v53 = vld [vmem:[%s7193_s12 + $0x24c] ss:$16 sps:$4 sm:$0xff]   ;;  %v6454_v54 = vld [vmem:[%s7193_s12 + $0x48] ss:$16 sps:$4 sm:$0xff]  }
 0x173   : > { %4589 = vmatprep.subr.bf16.mxu1 %v6395_v55  ;;  %v6457_v55 = vld [vmem:[%s7193_s12 + $0x248] ss:$16 sps:$4 sm:$0xff]  }
 0x175   : > { %4549 = vmatpush1.bf16.msra.mxu0 %v6390_v56  ;;  %v6462_v56 = vld [vmem:[%s7193_s12 + $0x6c] ss:$16 sps:$4 sm:$0xff]  }
 0x176   : > { %4590 = vmatpush1.bf16.msra.mxu1 %v6393_v57  ;;  %4550 = vmatprep.subr.bf16.mxu0 %v6398_v62  ;;  %v6465_v57 = vld [vmem:[%s7193_s12 + $0x26c] ss:$16 sps:$4 sm:$0xff]   ;;  %v6463_v62 = vld [vmem:[%s7193_s12 + $0x268] ss:$16 sps:$4 sm:$0xff]  }
 0x177   : > { %4591 = vmatprep.subr.bf16.mxu1 %v6401_v63  ;;  %v6471_v63 = vld [vmem:[%s7193_s12 + $0x28c] ss:$16 sps:$4 sm:$0xff]  }
 0x179   : > { %4551 = vmatpush1.bf16.msra.mxu0 %v6396_v40  ;;  %v6466_v40 = vld [vmem:[%s7193_s12 + $0x88] ss:$16 sps:$4 sm:$0xff]  }
 0x17a   : > { %4592 = vmatpush1.bf16.msra.mxu1 %v6399_v0  ;;  %4552 = vmatprep.subr.bf16.mxu0 %v6404_v2  ;;  %v6469_v0 = vld [vmem:[%s7193_s12 + $0x288] ss:$16 sps:$4 sm:$0xff]   ;;  %v6474_v2 = vld [vmem:[%s7193_s12 + $0xac] ss:$16 sps:$4 sm:$0xff]  }
 0x17b   : > { %4593 = vmatprep.subr.bf16.mxu1 %v6407_v3  ;;  %v6477_v3 = vld [vmem:[%s7193_s12 + $0x2ac] ss:$16 sps:$4 sm:$0xff]  }
 0x17d   : > { %4553 = vmatpush1.bf16.msra.mxu0 %v6402_v4  ;;  %v6472_v4 = vld [vmem:[%s7193_s12 + $0xa8] ss:$16 sps:$4 sm:$0xff]  }
 0x17e   : > { %4594 = vmatpush1.bf16.msra.mxu1 %v6405_v5  ;;  %4554 = vmatprep.subr.bf16.mxu0 %v6410_v8  ;;  %v6475_v5 = vld [vmem:[%s7193_s12 + $0x2a8] ss:$16 sps:$4 sm:$0xff]   ;;  %v6480_v8 = vld [vmem:[%s7193_s12 + $0xcc] ss:$16 sps:$4 sm:$0xff]  }
 0x17f   : > { %4595 = vmatprep.subr.bf16.mxu1 %v6413_v9  ;;  %v6483_v9 = vld [vmem:[%s7193_s12 + $0x2cc] ss:$16 sps:$4 sm:$0xff]  }
 0x181   : > { %4555 = vmatpush1.bf16.msra.mxu0 %v6408_v10 }
 0x182   : > { %4596 = vmatpush1.bf16.msra.mxu1 %v6411_v11  ;;  %4556 = vmatprep.subr.bf16.mxu0 %v6416_v12  ;;  %v6478_v12 = vld [vmem:[%s7193_s12 + $0xc8] ss:$16 sps:$4 sm:$0xff]  }
 0x183   : > { %4597 = vmatprep.subr.bf16.mxu1 %v6419_v13  ;;  %v6481_v13 = vld [vmem:[%s7193_s12 + $0x2c8] ss:$16 sps:$4 sm:$0xff]  }
 0x185   : > { %4557 = vmatpush1.bf16.msra.mxu0 %v6414_v14 }
 0x186   : > { %4598 = vmatpush1.bf16.msra.mxu1 %v6417_v15  ;;  %4558 = vmatprep.subr.bf16.mxu0 %v6422_v18 }
 0x187   : > { %4599 = vmatprep.subr.bf16.mxu1 %v6425_v19 }
 0x189   : > { %4559 = vmatpush1.bf16.msra.mxu0 %v6420_v20 }
 0x18a   : > { %4600 = vmatpush1.bf16.msra.mxu1 %v6423_v21  ;;  %4560 = vmatprep.subr.bf16.mxu0 %v6428_v26 }
 0x18b   : > { %4601 = vmatprep.subr.bf16.mxu1 %v6431_v27 }
 0x18d   : > { %4561 = vmatpush1.bf16.msra.mxu0 %v6426_v28 }
 0x18e   : > { %4602 = vmatpush1.bf16.msra.mxu1 %v6429_v29  ;;  %4562 = vmatprep.subr.bf16.mxu0 %v6434_v30  ;;  %v6489_v29 = vld [vmem:[%s7193_s12 + $0x2ec] ss:$16 sps:$4 sm:$0xff]  }
 0x18f   : > { %4603 = vmatprep.subr.bf16.mxu1 %v6437_v31  ;;  %v6487_v31 = vld [vmem:[%s7193_s12 + $0x2e8] ss:$16 sps:$4 sm:$0xff]  }
 0x191   : > { %4563 = vmatpush1.bf16.msra.mxu0 %v6432_v32  ;;  %v6492_v32 = vld [vmem:[%s7193_s12 + $0x10c] ss:$16 sps:$4 sm:$0xff]  }
 0x192   : > { %4604 = vmatpush1.bf16.msra.mxu1 %v6435_v33  ;;  %4614 = vmatprep.subr.bf16.mxu0 %v6444_v35  ;;  %v6495_v33 = vld [vmem:[%s7193_s12 + $0x30c] ss:$16 sps:$4 sm:$0xff]   ;;  %v6490_v35 = vld [vmem:[%s7193_s12 + $0x108] ss:$16 sps:$4 sm:$0xff]  }
 0x193   : > { %4655 = vmatprep.subr.bf16.mxu1 %v6447_v22  ;;  %v6493_v22 = vld [vmem:[%s7193_s12 + $0x308] ss:$16 sps:$4 sm:$0xff]  }
 0x194   : > { %4565 = vmatmul.mubr.bf16.vlgmr.msra.gmra.mrb[16].mxu0 %v7663_v46 }
 0x195   : > { %4606 = vmatmul.mubr.bf16.vlgmr.msra.gmra.mrb[16].mxu1 %v7667_v48  ;;  %4615 = vmatpush1.bf16.msra.mxu0 %v6442_v44  ;;  %v6498_v44 = vld [vmem:[%s7193_s12 + $0x12c] ss:$16 sps:$4 sm:$0xff]  }
 0x196   : > { %4656 = vmatpush1.bf16.msra.mxu1 %v6445_v45  ;;  %4616 = vmatprep.subr.bf16.mxu0 %v6450_v49  ;;  %v6501_v45 = vld [vmem:[%s7193_s12 + $0x32c] ss:$16 sps:$4 sm:$0xff]   ;;  %v6496_v49 = vld [vmem:[%s7193_s12 + $0x128] ss:$16 sps:$4 sm:$0xff]  }
 0x197   : > { %4657 = vmatprep.subr.bf16.mxu1 %v6453_v50  ;;  %4646 = vmatprep.mubr.bf16.mxu0 %v7254_v47  ;;  %v6460_v47 = vld [vmem:[%s7193_s12 + $0x68] ss:$16 sps:$4 sm:$0xff]  }
 0x198   : > { %4687 = vmatprep.mubr.bf16.mxu1 %v7261_v51  ;;  %v6468_v51 = vld [vmem:[%s7193_s12 + $0x8c] ss:$16 sps:$4 sm:$0xff]   ;;  %v6499_v50 = vld [vmem:[%s7193_s12 + $0x328] ss:$16 sps:$4 sm:$0xff]  }
 0x199   : > { %4617 = vmatpush1.bf16.msra.mxu0 %v6448_v58  ;;  %v6504_v58 = vld [vmem:[%s7193_s12 + $0x14c] ss:$16 sps:$4 sm:$0xff]  }
 0x19a   : > { %4658 = vmatpush1.bf16.msra.mxu1 %v6451_v61  ;;  %4618 = vmatprep.subr.bf16.mxu0 %v6456_v52  ;;  %v6507_v61 = vld [vmem:[%s7193_s12 + $0x34c] ss:$16 sps:$4 sm:$0xff]   ;;  %v6502_v52 = vld [vmem:[%s7193_s12 + $0x148] ss:$16 sps:$4 sm:$0xff]  }
 0x19b   : > { %4659 = vmatprep.subr.bf16.mxu1 %v6459_v53  ;;  %v6505_v53 = vld [vmem:[%s7193_s12 + $0x348] ss:$16 sps:$4 sm:$0xff]  }
 0x19d   : > { %4619 = vmatpush1.bf16.msra.mxu0 %v6454_v54  ;;  %v6510_v54 = vld [vmem:[%s7193_s12 + $0x16c] ss:$16 sps:$4 sm:$0xff]  }
 0x19e   : > { %4660 = vmatpush1.bf16.msra.mxu1 %v6457_v55  ;;  %4620 = vmatprep.subr.bf16.mxu0 %v6462_v56  ;;  %v6513_v55 = vld [vmem:[%s7193_s12 + $0x36c] ss:$16 sps:$4 sm:$0xff]   ;;  %v6508_v56 = vld [vmem:[%s7193_s12 + $0x168] ss:$16 sps:$4 sm:$0xff]  }
 0x19f   : > { %4661 = vmatprep.subr.bf16.mxu1 %v6465_v57  ;;  %v6511_v57 = vld [vmem:[%s7193_s12 + $0x368] ss:$16 sps:$4 sm:$0xff]  }
 0x1a1   : > { %4621 = vmatpush1.bf16.msra.mxu0 %v6460_v47  ;;  %v6516_v47 = vld [vmem:[%s7193_s12 + $0x18c] ss:$16 sps:$4 sm:$0xff]  }
 0x1a2   : > { %4662 = vmatpush1.bf16.msra.mxu1 %v6463_v62  ;;  %4622 = vmatprep.subr.bf16.mxu0 %v6468_v51  ;;  %v6519_v62 = vld [vmem:[%s7193_s12 + $0x38c] ss:$16 sps:$4 sm:$0xff]   ;;  %v6514_v51 = vld [vmem:[%s7193_s12 + $0x188] ss:$16 sps:$4 sm:$0xff]  }
 0x1a3   : > { %4663 = vmatprep.subr.bf16.mxu1 %v6471_v63  ;;  %v6517_v63 = vld [vmem:[%s7193_s12 + $0x388] ss:$16 sps:$4 sm:$0xff]  }
 0x1a5   : > { %4623 = vmatpush1.bf16.msra.mxu0 %v6466_v40  ;;  %v6522_v40 = vld [vmem:[%s7193_s12 + $0x1ac] ss:$16 sps:$4 sm:$0xff]  }
 0x1a6   : > { %4664 = vmatpush1.bf16.msra.mxu1 %v6469_v0  ;;  %4624 = vmatprep.subr.bf16.mxu0 %v6474_v2  ;;  %v6525_v0 = vld [vmem:[%s7193_s12 + $0x3ac] ss:$16 sps:$4 sm:$0xff]   ;;  %v6520_v2 = vld [vmem:[%s7193_s12 + $0x1a8] ss:$16 sps:$4 sm:$0xff]  }
 0x1a7   : > { %4665 = vmatprep.subr.bf16.mxu1 %v6477_v3  ;;  %v4320_v10 = vpop.f32.mrb[4].mxu0  ;;  %v6523_v3 = vld [vmem:[%s7193_s12 + $0x3a8] ss:$16 sps:$4 sm:$0xff]  }
 0x1a8   : > { %v4361_v11 = vpop.f32.mrb[4].mxu1  ;;  %v4321_v14 = vadd.f32 %v4320_v10, %v7617_v34  ;;  %v4322_v15 = vpop.f32.mrb[5].mxu0  ;;  %v6486_v34 = vld [vmem:[%s7193_s12 + $0xec] ss:$16 sps:$4 sm:$0xff]  }
 0x1a9   : > { %v4363_v18 = vpop.f32.mrb[5].mxu1  ;;  %v4323_v19 = vadd.f32 %v4322_v15, %v7619_v23  ;;  %v4324_v20 = vpop.f32.mrb[6].mxu0  ;;  %4625 = vmatpush1.bf16.msra.mxu0 %v6472_v4  ;;  %v6484_v23 = vld [vmem:[%s7193_s12 + $0xe8] ss:$16 sps:$4 sm:$0xff]   ;;  %v6528_v4 = vld [vmem:[%s7193_s12 + $0x1cc] ss:$16 sps:$4 sm:$0xff]  }
 0x1aa   : > { %v4365_v21 = vpop.f32.mrb[6].mxu1  ;;  %4666 = vmatpush1.bf16.msra.mxu1 %v6475_v5  ;;  %v7699_v26 = vadd.f32 %v4361_v11, %v4321_v14  ;;  %v4325_v27 = vpop.f32.mrb[7].mxu0  ;;  %4626 = vmatprep.subr.bf16.mxu0 %v6480_v8  ;;  %v6531_v5 = vld [vmem:[%s7193_s12 + $0x3cc] ss:$16 sps:$4 sm:$0xff]   ;;  %v6526_v8 = vld [vmem:[%s7193_s12 + $0x1c8] ss:$16 sps:$4 sm:$0xff]  }
 0x1ab   : > { %v4366_v28 = vpop.f32.mrb[7].mxu1  ;;  %4667 = vmatprep.subr.bf16.mxu1 %v6483_v9  ;;  %v7703_v30 = vadd.f32 %v4363_v18, %v4323_v19  ;;  %v6529_v9 = vld [vmem:[%s7193_s12 + $0x3c8] ss:$16 sps:$4 sm:$0xff]   ;;  %v6534_v10 = vld [vmem:[%s7193_s12 + $0x1ec] ss:$16 sps:$4 sm:$0xff]  }
 0x1ac   : > { %v6537_v11 = vld [vmem:[%s7193_s12 + $0x3ec] ss:$16 sps:$4 sm:$0xff]   ;;  %v6538_v18 = vld [vmem:[%s7193_s12 + $0x408] ss:$16 sps:$4 sm:$0xff]  }
 0x1ad   : > { %4627 = vmatpush1.bf16.msra.mxu0 %v6478_v12  ;;  %v6532_v12 = vld [vmem:[%s7193_s12 + $0x1e8] ss:$16 sps:$4 sm:$0xff]   ;;  %v6540_v14 = vld [vmem:[%s7193_s12 + $0x40c] ss:$16 sps:$4 sm:$0xff]  }
 0x1ae   : > { %4668 = vmatpush1.bf16.msra.mxu1 %v6481_v13  ;;  %4628 = vmatprep.subr.bf16.mxu0 %v6486_v34  ;;  %v6535_v13 = vld [vmem:[%s7193_s12 + $0x3e8] ss:$16 sps:$4 sm:$0xff]   ;;  %v6543_v15 = vld [vmem:[%s7193_s12 + $0x60c] ss:$16 sps:$4 sm:$0xff]  }
 0x1af   : > { %4669 = vmatprep.subr.bf16.mxu1 %v6489_v29  ;;  %v6541_v19 = vld [vmem:[%s7193_s12 + $0x608] ss:$16 sps:$4 sm:$0xff]   ;;  %v6546_v20 = vld [vmem:[%s7193_s12 + $0x42c] ss:$16 sps:$4 sm:$0xff]  }
 0x1b0   : > { %v6549_v21 = vld [vmem:[%s7193_s12 + $0x62c] ss:$16 sps:$4 sm:$0xff]   ;;  %v6544_v27 = vld [vmem:[%s7193_s12 + $0x428] ss:$16 sps:$4 sm:$0xff]  }
 0x1b1   : > { %4629 = vmatpush1.bf16.msra.mxu0 %v6484_v23  ;;  %v6547_v28 = vld [vmem:[%s7193_s12 + $0x628] ss:$16 sps:$4 sm:$0xff]   ;;  %v6552_v34 = vld [vmem:[%s7193_s12 + $0x44c] ss:$16 sps:$4 sm:$0xff]  }
 0x1b2   : > { %4670 = vmatpush1.bf16.msra.mxu1 %v6487_v31  ;;  %4630 = vmatprep.subr.bf16.mxu0 %v6492_v32  ;;  %v6555_v29 = vld [vmem:[%s7193_s12 + $0x64c] ss:$16 sps:$4 sm:$0xff]   ;;  %v6556_v32 = vld [vmem:[%s7193_s12 + $0x468] ss:$16 sps:$4 sm:$0xff]  }
 0x1b3   : > { %4671 = vmatprep.subr.bf16.mxu1 %v6495_v33  ;;  %v6558_v23 = vld [vmem:[%s7193_s12 + $0x46c] ss:$16 sps:$4 sm:$0xff]  }
 0x1b4   : > { %v6561_v31 = vld [vmem:[%s7193_s12 + $0x66c] ss:$16 sps:$4 sm:$0xff]  }
 0x1b5   : > { %4631 = vmatpush1.bf16.msra.mxu0 %v6490_v35  ;;  %v6567_v33 = vld [vmem:[%s7193_s12 + $0x68c] ss:$16 sps:$4 sm:$0xff]   ;;  %v6562_v35 = vld [vmem:[%s7193_s12 + $0x488] ss:$16 sps:$4 sm:$0xff]  }
 0x1b6   : > { %4672 = vmatpush1.bf16.msra.mxu1 %v6493_v22  ;;  %4632 = vmatprep.subr.bf16.mxu0 %v6498_v44  ;;  %v6565_v22 = vld [vmem:[%s7193_s12 + $0x688] ss:$16 sps:$4 sm:$0xff]   ;;  %v7043_v44 = vmov 0.0  }
 0x1b7   : > { %4673 = vmatprep.subr.bf16.mxu1 %v6501_v45  ;;  %276 = vst [vmem:[%s7765_s21] sm:$0xff] %v7043_v44  ;;  %v6570_v45 = vld [vmem:[%s7193_s12 + $0x4ac] ss:$16 sps:$4 sm:$0xff]   ;;  %277 = vst [vmem:[%s7765_s21 + $0x8] sm:$0xff] %v7043_v44 }
 0x1b8   : > { %278 = vst [vmem:[%s7765_s21 + $0x10] sm:$0xff] %v7043_v44  ;;  %279 = vst [vmem:[%s7765_s21 + $0x18] sm:$0xff] %v7043_v44  ;;  %v6627_v44 = vld [vmem:[%s7193_s12 + $0x7cc] ss:$16 sps:$4 sm:$0xff]  }
 0x1b9   : > { %4633 = vmatpush1.bf16.msra.mxu0 %v6496_v49  ;;  %v6573_v49 = vld [vmem:[%s7193_s12 + $0x6ac] ss:$16 sps:$4 sm:$0xff]  }
 0x1ba   : > { %4674 = vmatpush1.bf16.msra.mxu1 %v6499_v50  ;;  %4634 = vmatprep.subr.bf16.mxu0 %v6504_v58  ;;  %v6568_v50 = vld [vmem:[%s7193_s12 + $0x4a8] ss:$16 sps:$4 sm:$0xff]  }
 0x1bb   : > { %4675 = vmatprep.subr.bf16.mxu1 %v6507_v61  ;;  %v6571_v58 = vld [vmem:[%s7193_s12 + $0x6a8] ss:$16 sps:$4 sm:$0xff]   ;;  %v6576_v61 = vld [vmem:[%s7193_s12 + $0x4cc] ss:$16 sps:$4 sm:$0xff]  }
 0x1bd   : > { %4635 = vmatpush1.bf16.msra.mxu0 %v6502_v52  ;;  %v6579_v52 = vld [vmem:[%s7193_s12 + $0x6cc] ss:$16 sps:$4 sm:$0xff]  }
 0x1be   : > { %4676 = vmatpush1.bf16.msra.mxu1 %v6505_v53  ;;  %4636 = vmatprep.subr.bf16.mxu0 %v6510_v54 }
 0x1bf   : > { %4677 = vmatprep.subr.bf16.mxu1 %v6513_v55 }
 0x1c1   : > { %4637 = vmatpush1.bf16.msra.mxu0 %v6508_v56 }
 0x1c2   : > { %4678 = vmatpush1.bf16.msra.mxu1 %v6511_v57  ;;  %4638 = vmatprep.subr.bf16.mxu0 %v6516_v47 }
 0x1c3   : > { %4679 = vmatprep.subr.bf16.mxu1 %v6519_v62 }
 0x1c5   : > { %4639 = vmatpush1.bf16.msra.mxu0 %v6514_v51 }
 0x1c6   : > { %4680 = vmatpush1.bf16.msra.mxu1 %v6517_v63  ;;  %4640 = vmatprep.subr.bf16.mxu0 %v6522_v40  ;;  %v6574_v63 = vld [vmem:[%s7193_s12 + $0x4c8] ss:$16 sps:$4 sm:$0xff]  }
 0x1c7   : > { %4681 = vmatprep.subr.bf16.mxu1 %v6525_v0  ;;  %v6577_v40 = vld [vmem:[%s7193_s12 + $0x6c8] ss:$16 sps:$4 sm:$0xff]  }
 0x1c9   : > { %4641 = vmatpush1.bf16.msra.mxu0 %v6520_v2 }
 0x1ca   : > { %4682 = vmatpush1.bf16.msra.mxu1 %v6523_v3  ;;  %4642 = vmatprep.subr.bf16.mxu0 %v6528_v4 }
 0x1cb   : > { %4683 = vmatprep.subr.bf16.mxu1 %v6531_v5  ;;  %v6580_v5 = vld [vmem:[%s7193_s12 + $0x4e8] ss:$16 sps:$4 sm:$0xff]  }
 0x1cd   : > { %4643 = vmatpush1.bf16.msra.mxu0 %v6526_v8  ;;  %v6583_v8 = vld [vmem:[%s7193_s12 + $0x6e8] ss:$16 sps:$4 sm:$0xff]  }
 0x1ce   : > { %4684 = vmatpush1.bf16.msra.mxu1 %v6529_v9  ;;  %4644 = vmatprep.subr.bf16.mxu0 %v6534_v10  ;;  %v6588_v9 = vld [vmem:[%s7193_s12 + $0x50c] ss:$16 sps:$4 sm:$0xff]  }
 0x1cf   : > { %4685 = vmatprep.subr.bf16.mxu1 %v6537_v11  ;;  %v6591_v10 = vld [vmem:[%s7193_s12 + $0x70c] ss:$16 sps:$4 sm:$0xff]   ;;  %v6586_v11 = vld [vmem:[%s7193_s12 + $0x508] ss:$16 sps:$4 sm:$0xff]  }
 0x1d1   : > { %4645 = vmatpush1.bf16.msra.mxu0 %v6532_v12  ;;  %v6589_v12 = vld [vmem:[%s7193_s12 + $0x708] ss:$16 sps:$4 sm:$0xff]  }
 0x1d2   : > { %4686 = vmatpush1.bf16.msra.mxu1 %v6535_v13  ;;  %4696 = vmatprep.subr.bf16.mxu0 %v6540_v14  ;;  %v6594_v13 = vld [vmem:[%s7193_s12 + $0x52c] ss:$16 sps:$4 sm:$0xff]  }
 0x1d3   : > { %4737 = vmatprep.subr.bf16.mxu1 %v6543_v15  ;;  %v6597_v14 = vld [vmem:[%s7193_s12 + $0x72c] ss:$16 sps:$4 sm:$0xff]   ;;  %v6592_v15 = vld [vmem:[%s7193_s12 + $0x528] ss:$16 sps:$4 sm:$0xff]  }
 0x1d4   : > { %4647 = vmatmul.mubr.bf16.vlgmr.msra.gmra.mrb[20].mxu0 %v7283_v6  ;;  %v6550_v6 = vld [vmem:[%s7193_s12 + $0x448] ss:$16 sps:$4 sm:$0xff]  }
 0x1d5   : > { %4688 = vmatmul.mubr.bf16.vlgmr.msra.gmra.mrb[20].mxu1 %v7285_v7  ;;  %4697 = vmatpush1.bf16.msra.mxu0 %v6538_v18  ;;  %v6553_v7 = vld [vmem:[%s7193_s12 + $0x648] ss:$16 sps:$4 sm:$0xff]  }
 0x1d6   : > { %4738 = vmatpush1.bf16.msra.mxu1 %v6541_v19  ;;  %4698 = vmatprep.subr.bf16.mxu0 %v6546_v20  ;;  %v6595_v18 = vld [vmem:[%s7193_s12 + $0x728] ss:$16 sps:$4 sm:$0xff]   ;;  %v6600_v19 = vld [vmem:[%s7193_s12 + $0x54c] ss:$16 sps:$4 sm:$0xff]  }
 0x1d7   : > { %4739 = vmatprep.subr.bf16.mxu1 %v6549_v21  ;;  %4728 = vmatprep.mubr.bf16.mxu0 %v7327_v36  ;;  %v6559_v36 = vld [vmem:[%s7193_s12 + $0x668] ss:$16 sps:$4 sm:$0xff]   ;;  %v6603_v20 = vld [vmem:[%s7193_s12 + $0x74c] ss:$16 sps:$4 sm:$0xff]  }
 0x1d8   : > { %4769 = vmatprep.mubr.bf16.mxu1 %v7331_v37  ;;  %v6564_v37 = vld [vmem:[%s7193_s12 + $0x48c] ss:$16 sps:$4 sm:$0xff]   ;;  %v6598_v21 = vld [vmem:[%s7193_s12 + $0x548] ss:$16 sps:$4 sm:$0xff]  }
 0x1d9   : > { %4699 = vmatpush1.bf16.msra.mxu0 %v6544_v27  ;;  %v6601_v27 = vld [vmem:[%s7193_s12 + $0x748] ss:$16 sps:$4 sm:$0xff]  }
 0x1da   : > { %4740 = vmatpush1.bf16.msra.mxu1 %v6547_v28  ;;  %4700 = vmatprep.subr.bf16.mxu0 %v6552_v34  ;;  %v6606_v28 = vld [vmem:[%s7193_s12 + $0x56c] ss:$16 sps:$4 sm:$0xff]  }
 0x1db   : > { %4741 = vmatprep.subr.bf16.mxu1 %v6555_v29  ;;  %v6609_v34 = vld [vmem:[%s7193_s12 + $0x76c] ss:$16 sps:$4 sm:$0xff]   ;;  %v6604_v29 = vld [vmem:[%s7193_s12 + $0x568] ss:$16 sps:$4 sm:$0xff]  }
 0x1dd   : > { %4701 = vmatpush1.bf16.msra.mxu0 %v6550_v6  ;;  %v6607_v6 = vld [vmem:[%s7193_s12 + $0x768] ss:$16 sps:$4 sm:$0xff]  }
 0x1de   : > { %4742 = vmatpush1.bf16.msra.mxu1 %v6553_v7  ;;  %4702 = vmatprep.subr.bf16.mxu0 %v6558_v23  ;;  %v6612_v7 = vld [vmem:[%s7193_s12 + $0x58c] ss:$16 sps:$4 sm:$0xff]  }
 0x1df   : > { %4743 = vmatprep.subr.bf16.mxu1 %v6561_v31  ;;  %v6615_v23 = vld [vmem:[%s7193_s12 + $0x78c] ss:$16 sps:$4 sm:$0xff]   ;;  %v6610_v31 = vld [vmem:[%s7193_s12 + $0x588] ss:$16 sps:$4 sm:$0xff]  }
 0x1e1   : > { %4703 = vmatpush1.bf16.msra.mxu0 %v6556_v32  ;;  %v6613_v32 = vld [vmem:[%s7193_s12 + $0x788] ss:$16 sps:$4 sm:$0xff]  }
 0x1e2   : > { %4744 = vmatpush1.bf16.msra.mxu1 %v6559_v36  ;;  %4704 = vmatprep.subr.bf16.mxu0 %v6564_v37  ;;  %v6618_v36 = vld [vmem:[%s7193_s12 + $0x5ac] ss:$16 sps:$4 sm:$0xff]  }
 0x1e3   : > { %4745 = vmatprep.subr.bf16.mxu1 %v6567_v33  ;;  %v6621_v37 = vld [vmem:[%s7193_s12 + $0x7ac] ss:$16 sps:$4 sm:$0xff]   ;;  %v6616_v33 = vld [vmem:[%s7193_s12 + $0x5a8] ss:$16 sps:$4 sm:$0xff]  }
 0x1e5   : > { %4705 = vmatpush1.bf16.msra.mxu0 %v6562_v35  ;;  %v6619_v35 = vld [vmem:[%s7193_s12 + $0x7a8] ss:$16 sps:$4 sm:$0xff]  }
 0x1e6   : > { %4746 = vmatpush1.bf16.msra.mxu1 %v6565_v22  ;;  %4706 = vmatprep.subr.bf16.mxu0 %v6570_v45  ;;  %v6624_v22 = vld [vmem:[%s7193_s12 + $0x5cc] ss:$16 sps:$4 sm:$0xff]   ;;  %v6622_v45 = vld [vmem:[%s7193_s12 + $0x5c8] ss:$16 sps:$4 sm:$0xff]  }
 0x1e7   : > { %4747 = vmatprep.subr.bf16.mxu1 %v6573_v49  ;;  %v4402_v53 = vpop.f32.mrb[8].mxu0  ;;  %v6625_v49 = vld [vmem:[%s7193_s12 + $0x7c8] ss:$16 sps:$4 sm:$0xff]  }
 0x1e8   : > { %v4443_v54 = vpop.f32.mrb[8].mxu1  ;;  %v4403_v55 = vadd.f32 %v4402_v53, %v7699_v26  ;;  %v4404_v56 = vpop.f32.mrb[9].mxu0  ;;  %v6582_v26 = vld [vmem:[%s7193_s12 + $0x4ec] ss:$16 sps:$4 sm:$0xff]  }
 0x1e9   : > { %v4445_v57 = vpop.f32.mrb[9].mxu1  ;;  %v4405_v47 = vadd.f32 %v4404_v56, %v7703_v30  ;;  %v4406_v62 = vpop.f32.mrb[10].mxu0  ;;  %4707 = vmatpush1.bf16.msra.mxu0 %v6568_v50  ;;  %v6585_v30 = vld [vmem:[%s7193_s12 + $0x6ec] ss:$16 sps:$4 sm:$0xff]   ;;  %v6637_v56 = vld [vmem:[%s7193_s12 + $0xa08] ss:$16 sps:$4 sm:$0xff]  }
 0x1ea   : > { %v4447_v51 = vpop.f32.mrb[10].mxu1  ;;  %4748 = vmatpush1.bf16.msra.mxu1 %v6571_v58  ;;  %v7783_v0 = vadd.f32 %v4443_v54, %v4403_v55  ;;  %v4407_v2 = vpop.f32.mrb[11].mxu0  ;;  %4708 = vmatprep.subr.bf16.mxu0 %v6576_v61  ;;  %v6630_v50 = vld [vmem:[%s7193_s12 + $0x5ec] ss:$16 sps:$4 sm:$0xff]   ;;  %v6628_v61 = vld [vmem:[%s7193_s12 + $0x5e8] ss:$16 sps:$4 sm:$0xff]  }
 0x1eb   : > { %v4448_v3 = vpop.f32.mrb[11].mxu1  ;;  %4749 = vmatprep.subr.bf16.mxu1 %v6579_v52  ;;  %v7787_v4 = vadd.f32 %v4445_v57, %v4405_v47  ;;  %v6633_v58 = vld [vmem:[%s7193_s12 + $0x7ec] ss:$16 sps:$4 sm:$0xff]   ;;  %v6631_v52 = vld [vmem:[%s7193_s12 + $0x7e8] ss:$16 sps:$4 sm:$0xff]  }
 0x1ec   : > { %v6636_v53 = vld [vmem:[%s7193_s12 + $0x80c] ss:$16 sps:$4 sm:$0xff]   ;;  %v6634_v55 = vld [vmem:[%s7193_s12 + $0x808] ss:$16 sps:$4 sm:$0xff]  }
 0x1ed   : > { %4709 = vmatpush1.bf16.msra.mxu0 %v6574_v63  ;;  %v6639_v54 = vld [vmem:[%s7193_s12 + $0xa0c] ss:$16 sps:$4 sm:$0xff]   ;;  %v6640_v62 = vld [vmem:[%s7193_s12 + $0x828] ss:$16 sps:$4 sm:$0xff]  }
 0x1ee   : > { %4750 = vmatpush1.bf16.msra.mxu1 %v6577_v40  ;;  %4710 = vmatprep.subr.bf16.mxu0 %v6582_v26  ;;  %v6642_v57 = vld [vmem:[%s7193_s12 + $0x82c] ss:$16 sps:$4 sm:$0xff]   ;;  %v6643_v51 = vld [vmem:[%s7193_s12 + $0xa28] ss:$16 sps:$4 sm:$0xff]  }
 0x1ef   : > { %4751 = vmatprep.subr.bf16.mxu1 %v6585_v30  ;;  %v6645_v47 = vld [vmem:[%s7193_s12 + $0xa2c] ss:$16 sps:$4 sm:$0xff]   ;;  %v6652_v26 = vld [vmem:[%s7193_s12 + $0x868] ss:$16 sps:$4 sm:$0xff]  }
 0x1f0   : > { %v6648_v63 = vld [vmem:[%s7193_s12 + $0x84c] ss:$16 sps:$4 sm:$0xff]  }
 0x1f1   : > { %4711 = vmatpush1.bf16.msra.mxu0 %v6580_v5  ;;  %v6651_v40 = vld [vmem:[%s7193_s12 + $0xa4c] ss:$16 sps:$4 sm:$0xff]   ;;  %v6658_v5 = vld [vmem:[%s7193_s12 + $0x888] ss:$16 sps:$4 sm:$0xff]  }
 0x1f2   : > { %4752 = vmatpush1.bf16.msra.mxu1 %v6583_v8  ;;  %4712 = vmatprep.subr.bf16.mxu0 %v6588_v9  ;;  %v6654_v2 = vld [vmem:[%s7193_s12 + $0x86c] ss:$16 sps:$4 sm:$0xff]   ;;  %v6661_v8 = vld [vmem:[%s7193_s12 + $0xa88] ss:$16 sps:$4 sm:$0xff]  }
 0x1f3   : > { %4753 = vmatprep.subr.bf16.mxu1 %v6591_v10  ;;  %v6657_v3 = vld [vmem:[%s7193_s12 + $0xa6c] ss:$16 sps:$4 sm:$0xff]  }
 0x1f4   : > { %v6663_v30 = vld [vmem:[%s7193_s12 + $0xa8c] ss:$16 sps:$4 sm:$0xff]  }
 0x1f5   : > { %4713 = vmatpush1.bf16.msra.mxu0 %v6586_v11  ;;  %v6666_v9 = vld [vmem:[%s7193_s12 + $0x8ac] ss:$16 sps:$4 sm:$0xff]   ;;  %v6664_v11 = vld [vmem:[%s7193_s12 + $0x8a8] ss:$16 sps:$4 sm:$0xff]  }
 0x1f6   : > { %4754 = vmatpush1.bf16.msra.mxu1 %v6589_v12  ;;  %4714 = vmatprep.subr.bf16.mxu0 %v6594_v13  ;;  %v6669_v10 = vld [vmem:[%s7193_s12 + $0xaac] ss:$16 sps:$4 sm:$0xff]   ;;  %v6667_v12 = vld [vmem:[%s7193_s12 + $0xaa8] ss:$16 sps:$4 sm:$0xff]  }
 0x1f7   : > { %4755 = vmatprep.subr.bf16.mxu1 %v6597_v14  ;;  %v6672_v13 = vld [vmem:[%s7193_s12 + $0x8cc] ss:$16 sps:$4 sm:$0xff]  }
 0x1f8   : > { %v6675_v14 = vld [vmem:[%s7193_s12 + $0xacc] ss:$16 sps:$4 sm:$0xff]  }
 0x1f9   : > { %4715 = vmatpush1.bf16.msra.mxu0 %v6592_v15 }
 0x1fa   : > { %4756 = vmatpush1.bf16.msra.mxu1 %v6595_v18  ;;  %4716 = vmatprep.subr.bf16.mxu0 %v6600_v19 }
 0x1fb   : > { %4757 = vmatprep.subr.bf16.mxu1 %v6603_v20 }
 0x1fd   : > { %4717 = vmatpush1.bf16.msra.mxu0 %v6598_v21 }
 0x1fe   : > { %4758 = vmatpush1.bf16.msra.mxu1 %v6601_v27  ;;  %4718 = vmatprep.subr.bf16.mxu0 %v6606_v28 }
 0x1ff   : > { %4759 = vmatprep.subr.bf16.mxu1 %v6609_v34 }
 0x201   : > { %4719 = vmatpush1.bf16.msra.mxu0 %v6604_v29  ;;  %v6670_v29 = vld [vmem:[%s7193_s12 + $0x8c8] ss:$16 sps:$4 sm:$0xff]  }
 0x202   : > { %4760 = vmatpush1.bf16.msra.mxu1 %v6607_v6  ;;  %4720 = vmatprep.subr.bf16.mxu0 %v6612_v7  ;;  %v6673_v6 = vld [vmem:[%s7193_s12 + $0xac8] ss:$16 sps:$4 sm:$0xff]  }
 0x203   : > { %4761 = vmatprep.subr.bf16.mxu1 %v6615_v23 }
 0x205   : > { %4721 = vmatpush1.bf16.msra.mxu0 %v6610_v31 }
 0x206   : > { %4762 = vmatpush1.bf16.msra.mxu1 %v6613_v32  ;;  %4722 = vmatprep.subr.bf16.mxu0 %v6618_v36  ;;  %v6676_v36 = vld [vmem:[%s7193_s12 + $0x8e8] ss:$16 sps:$4 sm:$0xff]  }
 0x207   : > { %4763 = vmatprep.subr.bf16.mxu1 %v6621_v37  ;;  %v6679_v37 = vld [vmem:[%s7193_s12 + $0xae8] ss:$16 sps:$4 sm:$0xff]  }
 0x209   : > { %4723 = vmatpush1.bf16.msra.mxu0 %v6616_v33  ;;  %v6684_v33 = vld [vmem:[%s7193_s12 + $0x90c] ss:$16 sps:$4 sm:$0xff]  }
 0x20a   : > { %4764 = vmatpush1.bf16.msra.mxu1 %v6619_v35  ;;  %4724 = vmatprep.subr.bf16.mxu0 %v6624_v22  ;;  %v6687_v35 = vld [vmem:[%s7193_s12 + $0xb0c] ss:$16 sps:$4 sm:$0xff]   ;;  %v6682_v22 = vld [vmem:[%s7193_s12 + $0x908] ss:$16 sps:$4 sm:$0xff]  }
 0x20b   : > { %4765 = vmatprep.subr.bf16.mxu1 %v6627_v44  ;;  %v6685_v44 = vld [vmem:[%s7193_s12 + $0xb08] ss:$16 sps:$4 sm:$0xff]  }
 0x20d   : > { %4725 = vmatpush1.bf16.msra.mxu0 %v6622_v45  ;;  %v6690_v45 = vld [vmem:[%s7193_s12 + $0x92c] ss:$16 sps:$4 sm:$0xff]  }
 0x20e   : > { %4766 = vmatpush1.bf16.msra.mxu1 %v6625_v49  ;;  %4726 = vmatprep.subr.bf16.mxu0 %v6630_v50  ;;  %v6693_v49 = vld [vmem:[%s7193_s12 + $0xb2c] ss:$16 sps:$4 sm:$0xff]   ;;  %v6688_v50 = vld [vmem:[%s7193_s12 + $0x928] ss:$16 sps:$4 sm:$0xff]  }
 0x20f   : > { %4767 = vmatprep.subr.bf16.mxu1 %v6633_v58  ;;  %v6691_v58 = vld [vmem:[%s7193_s12 + $0xb28] ss:$16 sps:$4 sm:$0xff]  }
 0x211   : > { %4727 = vmatpush1.bf16.msra.mxu0 %v6628_v61  ;;  %v6696_v61 = vld [vmem:[%s7193_s12 + $0x94c] ss:$16 sps:$4 sm:$0xff]  }
 0x212   : > { %4768 = vmatpush1.bf16.msra.mxu1 %v6631_v52  ;;  %4778 = vmatprep.subr.bf16.mxu0 %v6636_v53  ;;  %v6699_v52 = vld [vmem:[%s7193_s12 + $0xb4c] ss:$16 sps:$4 sm:$0xff]   ;;  %v6694_v53 = vld [vmem:[%s7193_s12 + $0x948] ss:$16 sps:$4 sm:$0xff]  }
 0x213   : > { %4819 = vmatprep.subr.bf16.mxu1 %v6639_v54  ;;  %v6697_v54 = vld [vmem:[%s7193_s12 + $0xb48] ss:$16 sps:$4 sm:$0xff]  }
 0x214   : > { %4729 = vmatmul.mubr.bf16.vlgmr.msra.gmra.mrb[24].mxu0 %v7375_v16  ;;  %v6646_v16 = vld [vmem:[%s7193_s12 + $0x848] ss:$16 sps:$4 sm:$0xff]  }
 0x215   : > { %4770 = vmatmul.mubr.bf16.vlgmr.msra.gmra.mrb[24].mxu1 %v7379_v17  ;;  %4779 = vmatpush1.bf16.msra.mxu0 %v6634_v55  ;;  %v6649_v17 = vld [vmem:[%s7193_s12 + $0xa48] ss:$16 sps:$4 sm:$0xff]   ;;  %v6702_v55 = vld [vmem:[%s7193_s12 + $0x96c] ss:$16 sps:$4 sm:$0xff]  }
 0x216   : > { %4820 = vmatpush1.bf16.msra.mxu1 %v6637_v56  ;;  %4780 = vmatprep.subr.bf16.mxu0 %v6642_v57  ;;  %v6705_v56 = vld [vmem:[%s7193_s12 + $0xb6c] ss:$16 sps:$4 sm:$0xff]   ;;  %v6700_v57 = vld [vmem:[%s7193_s12 + $0x968] ss:$16 sps:$4 sm:$0xff]  }
 0x217   : > { %4821 = vmatprep.subr.bf16.mxu1 %v6645_v47  ;;  %4810 = vmatprep.mubr.bf16.mxu0 %v7397_v24  ;;  %v6655_v24 = vld [vmem:[%s7193_s12 + $0xa68] ss:$16 sps:$4 sm:$0xff]  }
 0x218   : > { %4851 = vmatprep.mubr.bf16.mxu1 %v7401_v25  ;;  %v6660_v25 = vld [vmem:[%s7193_s12 + $0x88c] ss:$16 sps:$4 sm:$0xff]   ;;  %v6703_v47 = vld [vmem:[%s7193_s12 + $0xb68] ss:$16 sps:$4 sm:$0xff]  }
 0x219   : > { %4781 = vmatpush1.bf16.msra.mxu0 %v6640_v62  ;;  %v6708_v62 = vld [vmem:[%s7193_s12 + $0x98c] ss:$16 sps:$4 sm:$0xff]  }
 0x21a   : > { %4822 = vmatpush1.bf16.msra.mxu1 %v6643_v51  ;;  %4782 = vmatprep.subr.bf16.mxu0 %v6648_v63  ;;  %v6711_v51 = vld [vmem:[%s7193_s12 + $0xb8c] ss:$16 sps:$4 sm:$0xff]   ;;  %v6706_v63 = vld [vmem:[%s7193_s12 + $0x988] ss:$16 sps:$4 sm:$0xff]  }
 0x21b   : > { %4823 = vmatprep.subr.bf16.mxu1 %v6651_v40  ;;  %v6709_v40 = vld [vmem:[%s7193_s12 + $0xb88] ss:$16 sps:$4 sm:$0xff]  }
 0x21d   : > { %4783 = vmatpush1.bf16.msra.mxu0 %v6646_v16  ;;  %v6714_v16 = vld [vmem:[%s7193_s12 + $0x9ac] ss:$16 sps:$4 sm:$0xff]  }
 0x21e   : > { %4824 = vmatpush1.bf16.msra.mxu1 %v6649_v17  ;;  %4784 = vmatprep.subr.bf16.mxu0 %v6654_v2  ;;  %v6717_v17 = vld [vmem:[%s7193_s12 + $0xbac] ss:$16 sps:$4 sm:$0xff]   ;;  %v6712_v2 = vld [vmem:[%s7193_s12 + $0x9a8] ss:$16 sps:$4 sm:$0xff]  }
 0x21f   : > { %4825 = vmatprep.subr.bf16.mxu1 %v6657_v3  ;;  %v6715_v3 = vld [vmem:[%s7193_s12 + $0xba8] ss:$16 sps:$4 sm:$0xff]  }
 0x221   : > { %4785 = vmatpush1.bf16.msra.mxu0 %v6652_v26  ;;  %v6720_v26 = vld [vmem:[%s7193_s12 + $0x9cc] ss:$16 sps:$4 sm:$0xff]  }
 0x222   : > { %4826 = vmatpush1.bf16.msra.mxu1 %v6655_v24  ;;  %4786 = vmatprep.subr.bf16.mxu0 %v6660_v25  ;;  %v6723_v24 = vld [vmem:[%s7193_s12 + $0xbcc] ss:$16 sps:$4 sm:$0xff]   ;;  %v6718_v25 = vld [vmem:[%s7193_s12 + $0x9c8] ss:$16 sps:$4 sm:$0xff]  }
 0x223   : > { %4827 = vmatprep.subr.bf16.mxu1 %v6663_v30  ;;  %v6721_v30 = vld [vmem:[%s7193_s12 + $0xbc8] ss:$16 sps:$4 sm:$0xff]  }
 0x225   : > { %4787 = vmatpush1.bf16.msra.mxu0 %v6658_v5  ;;  %v6726_v5 = vld [vmem:[%s7193_s12 + $0x9ec] ss:$16 sps:$4 sm:$0xff]  }
 0x226   : > { %4828 = vmatpush1.bf16.msra.mxu1 %v6661_v8  ;;  %4788 = vmatprep.subr.bf16.mxu0 %v6666_v9  ;;  %v6729_v8 = vld [vmem:[%s7193_s12 + $0xbec] ss:$16 sps:$4 sm:$0xff]   ;;  %v6724_v9 = vld [vmem:[%s7193_s12 + $0x9e8] ss:$16 sps:$4 sm:$0xff]  }
 0x227   : > { %4829 = vmatprep.subr.bf16.mxu1 %v6669_v10  ;;  %v4484_v15 = vpop.f32.mrb[12].mxu0  ;;  %v6727_v10 = vld [vmem:[%s7193_s12 + $0xbe8] ss:$16 sps:$4 sm:$0xff]  }
 0x228   : > { %v4525_v18 = vpop.f32.mrb[12].mxu1  ;;  %v4485_v19 = vadd.f32 %v4484_v15, %v7783_v0  ;;  %v4486_v20 = vpop.f32.mrb[13].mxu0  ;;  %v6678_v0 = vld [vmem:[%s7193_s12 + $0x8ec] ss:$16 sps:$4 sm:$0xff]  }
 0x229   : > { %v4527_v21 = vpop.f32.mrb[13].mxu1  ;;  %v4487_v27 = vadd.f32 %v4486_v20, %v7787_v4  ;;  %v4488_v28 = vpop.f32.mrb[14].mxu0  ;;  %4789 = vmatpush1.bf16.msra.mxu0 %v6664_v11  ;;  %v6681_v4 = vld [vmem:[%s7193_s12 + $0xaec] ss:$16 sps:$4 sm:$0xff]   ;;  %v6739_v20 = vld [vmem:[%s7193_s12 + $0xe28] ss:$16 sps:$4 sm:$0xff]  }
 0x22a   : > { %v4529_v34 = vpop.f32.mrb[14].mxu1  ;;  %4830 = vmatpush1.bf16.msra.mxu1 %v6667_v12  ;;  %v7857_v7 = vadd.f32 %v4525_v18, %v4485_v19  ;;  %v4489_v23 = vpop.f32.mrb[15].mxu0  ;;  %4790 = vmatprep.subr.bf16.mxu0 %v6672_v13  ;;  %v6732_v11 = vld [vmem:[%s7193_s12 + $0xc0c] ss:$16 sps:$4 sm:$0xff]   ;;  %v6730_v13 = vld [vmem:[%s7193_s12 + $0xc08] ss:$16 sps:$4 sm:$0xff]  }
 0x22b   : > { %v4530_v31 = vpop.f32.mrb[15].mxu1  ;;  %4831 = vmatprep.subr.bf16.mxu1 %v6675_v14  ;;  %v7861_v32 = vadd.f32 %v4527_v21, %v4487_v27  ;;  %v6735_v12 = vld [vmem:[%s7193_s12 + $0xe0c] ss:$16 sps:$4 sm:$0xff]   ;;  %v6733_v14 = vld [vmem:[%s7193_s12 + $0xe08] ss:$16 sps:$4 sm:$0xff]  }
 0x22c   : > { %v6738_v15 = vld [vmem:[%s7193_s12 + $0xc2c] ss:$16 sps:$4 sm:$0xff]   ;;  %v6736_v19 = vld [vmem:[%s7193_s12 + $0xc28] ss:$16 sps:$4 sm:$0xff]  }
 0x22d   : > { %4791 = vmatpush1.bf16.msra.mxu0 %v6670_v29  ;;  %v6741_v18 = vld [vmem:[%s7193_s12 + $0xe2c] ss:$16 sps:$4 sm:$0xff]   ;;  %v6748_v29 = vld [vmem:[%s7193_s12 + $0xc68] ss:$16 sps:$4 sm:$0xff]  }
 0x22e   : > { %4832 = vmatpush1.bf16.msra.mxu1 %v6673_v6  ;;  %4792 = vmatprep.subr.bf16.mxu0 %v6678_v0  ;;  %v6744_v21 = vld [vmem:[%s7193_s12 + $0xc4c] ss:$16 sps:$4 sm:$0xff]   ;;  %v6754_v23 = vld [vmem:[%s7193_s12 + $0xc88] ss:$16 sps:$4 sm:$0xff]  }
 0x22f   : > { %4833 = vmatprep.subr.bf16.mxu1 %v6681_v4  ;;  %v6747_v27 = vld [vmem:[%s7193_s12 + $0xe4c] ss:$16 sps:$4 sm:$0xff]   ;;  %v6757_v31 = vld [vmem:[%s7193_s12 + $0xe88] ss:$16 sps:$4 sm:$0xff]  }
 0x230   : > { %v6750_v28 = vld [vmem:[%s7193_s12 + $0xc6c] ss:$16 sps:$4 sm:$0xff]  }
 0x231   : > { %4793 = vmatpush1.bf16.msra.mxu0 %v6676_v36  ;;  %v6753_v34 = vld [vmem:[%s7193_s12 + $0xe6c] ss:$16 sps:$4 sm:$0xff]   ;;  %v6760_v36 = vld [vmem:[%s7193_s12 + $0xca8] ss:$16 sps:$4 sm:$0xff]  }
 0x232   : > { %4834 = vmatpush1.bf16.msra.mxu1 %v6679_v37  ;;  %4794 = vmatprep.subr.bf16.mxu0 %v6684_v33  ;;  %v6759_v6 = vld [vmem:[%s7193_s12 + $0xe8c] ss:$16 sps:$4 sm:$0xff]   ;;  %v6763_v37 = vld [vmem:[%s7193_s12 + $0xea8] ss:$16 sps:$4 sm:$0xff]  }
 0x233   : > { %4835 = vmatprep.subr.bf16.mxu1 %v6687_v35  ;;  %v6762_v0 = vld [vmem:[%s7193_s12 + $0xcac] ss:$16 sps:$4 sm:$0xff]  }
 0x234   : > { %v6765_v4 = vld [vmem:[%s7193_s12 + $0xeac] ss:$16 sps:$4 sm:$0xff]  }
 0x235   : > { %4795 = vmatpush1.bf16.msra.mxu0 %v6682_v22  ;;  %v6768_v33 = vld [vmem:[%s7193_s12 + $0xccc] ss:$16 sps:$4 sm:$0xff]  }
 0x236   : > { %4836 = vmatpush1.bf16.msra.mxu1 %v6685_v44  ;;  %4796 = vmatprep.subr.bf16.mxu0 %v6690_v45  ;;  %v6771_v35 = vld [vmem:[%s7193_s12 + $0xecc] ss:$16 sps:$4 sm:$0xff]  }
 0x237   : > { %4837 = vmatprep.subr.bf16.mxu1 %v6693_v49 }
 0x239   : > { %4797 = vmatpush1.bf16.msra.mxu0 %v6688_v50 }
 0x23a   : > { %4838 = vmatpush1.bf16.msra.mxu1 %v6691_v58  ;;  %4798 = vmatprep.subr.bf16.mxu0 %v6696_v61  ;;  %v6766_v58 = vld [vmem:[%s7193_s12 + $0xcc8] ss:$16 sps:$4 sm:$0xff]   ;;  %v280_v61 = vld [vmem:[%s7765_s21] sm:$0xff] }
 0x23b   : > { %4839 = vmatprep.subr.bf16.mxu1 %v6699_v52 }
 0x23d   : > { %4799 = vmatpush1.bf16.msra.mxu0 %v6694_v53  ;;  %v281_v53 = vld [vmem:[%s7765_s21 + $0x8] sm:$0xff] }
 0x23e   : > { %4840 = vmatpush1.bf16.msra.mxu1 %v6697_v54  ;;  %4800 = vmatprep.subr.bf16.mxu0 %v6702_v55 }
 0x23f   : > { %4841 = vmatprep.subr.bf16.mxu1 %v6705_v56  ;;  %v6769_v56 = vld [vmem:[%s7193_s12 + $0xec8] ss:$16 sps:$4 sm:$0xff]  }
 0x241   : > { %4801 = vmatpush1.bf16.msra.mxu0 %v6700_v57 }
 0x242   : > { %4842 = vmatpush1.bf16.msra.mxu1 %v6703_v47  ;;  %4802 = vmatprep.subr.bf16.mxu0 %v6708_v62  ;;  %v6774_v62 = vld [vmem:[%s7193_s12 + $0xcec] ss:$16 sps:$4 sm:$0xff]  }
 0x243   : > { %4843 = vmatprep.subr.bf16.mxu1 %v6711_v51  ;;  %v6777_v51 = vld [vmem:[%s7193_s12 + $0xeec] ss:$16 sps:$4 sm:$0xff]  }
 0x245   : > { %4803 = vmatpush1.bf16.msra.mxu0 %v6706_v63  ;;  %v7936_v63 = vld [vmem:[%s7765_s21 + $0x10] sm:$0xff] }
 0x246   : > { %4844 = vmatpush1.bf16.msra.mxu1 %v6709_v40  ;;  %4804 = vmatprep.subr.bf16.mxu0 %v6714_v16 }
 0x247   : > { %4845 = vmatprep.subr.bf16.mxu1 %v6717_v17  ;;  %v6772_v17 = vld [vmem:[%s7193_s12 + $0xce8] ss:$16 sps:$4 sm:$0xff]  }
 0x249   : > { %4805 = vmatpush1.bf16.msra.mxu0 %v6712_v2  ;;  %v6775_v2 = vld [vmem:[%s7193_s12 + $0xee8] ss:$16 sps:$4 sm:$0xff]  }
 0x24a   : > { %4846 = vmatpush1.bf16.msra.mxu1 %v6715_v3  ;;  %4806 = vmatprep.subr.bf16.mxu0 %v6720_v26  ;;  %v6780_v3 = vld [vmem:[%s7193_s12 + $0xd0c] ss:$16 sps:$4 sm:$0xff]  }
 0x24b   : > { %4847 = vmatprep.subr.bf16.mxu1 %v6723_v24  ;;  %v6783_v26 = vld [vmem:[%s7193_s12 + $0xf0c] ss:$16 sps:$4 sm:$0xff]   ;;  %v6778_v24 = vld [vmem:[%s7193_s12 + $0xd08] ss:$16 sps:$4 sm:$0xff]  }
 0x24d   : > { %4807 = vmatpush1.bf16.msra.mxu0 %v6718_v25  ;;  %v6781_v25 = vld [vmem:[%s7193_s12 + $0xf08] ss:$16 sps:$4 sm:$0xff]  }
 0x24e   : > { %4848 = vmatpush1.bf16.msra.mxu1 %v6721_v30  ;;  %4808 = vmatprep.subr.bf16.mxu0 %v6726_v5  ;;  %v6786_v30 = vld [vmem:[%s7193_s12 + $0xd2c] ss:$16 sps:$4 sm:$0xff]  }
 0x24f   : > { %4849 = vmatprep.subr.bf16.mxu1 %v6729_v8  ;;  %v6789_v5 = vld [vmem:[%s7193_s12 + $0xf2c] ss:$16 sps:$4 sm:$0xff]   ;;  %v6784_v8 = vld [vmem:[%s7193_s12 + $0xd28] ss:$16 sps:$4 sm:$0xff]  }
 0x251   : > { %4809 = vmatpush1.bf16.msra.mxu0 %v6724_v9  ;;  %v6787_v9 = vld [vmem:[%s7193_s12 + $0xf28] ss:$16 sps:$4 sm:$0xff]  }
 0x252   : > { %4850 = vmatpush1.bf16.msra.mxu1 %v6727_v10  ;;  %4860 = vmatprep.subr.bf16.mxu0 %v6732_v11  ;;  %v6792_v10 = vld [vmem:[%s7193_s12 + $0xd4c] ss:$16 sps:$4 sm:$0xff]  }
 0x253   : > { %4901 = vmatprep.subr.bf16.mxu1 %v6735_v12  ;;  %v6795_v11 = vld [vmem:[%s7193_s12 + $0xf4c] ss:$16 sps:$4 sm:$0xff]   ;;  %v6790_v12 = vld [vmem:[%s7193_s12 + $0xd48] ss:$16 sps:$4 sm:$0xff]  }
 0x254   : > { %4811 = vmatmul.mubr.bf16.vlgmr.msra.gmra.mrb[28].mxu0 %v7471_v38  ;;  %v6742_v38 = vld [vmem:[%s7193_s12 + $0xc48] ss:$16 sps:$4 sm:$0xff]  }
 0x255   : > { %4852 = vmatmul.mubr.bf16.vlgmr.msra.gmra.mrb[28].mxu1 %v7475_v39  ;;  %4861 = vmatpush1.bf16.msra.mxu0 %v6730_v13  ;;  %v6745_v39 = vld [vmem:[%s7193_s12 + $0xe48] ss:$16 sps:$4 sm:$0xff]  }
 0x256   : > { %4902 = vmatpush1.bf16.msra.mxu1 %v6733_v14  ;;  %4862 = vmatprep.subr.bf16.mxu0 %v6738_v15  ;;  %v6793_v13 = vld [vmem:[%s7193_s12 + $0xf48] ss:$16 sps:$4 sm:$0xff]   ;;  %v6798_v14 = vld [vmem:[%s7193_s12 + $0xd6c] ss:$16 sps:$4 sm:$0xff]  }
 0x257   : > { %4903 = vmatprep.subr.bf16.mxu1 %v6741_v18  ;;  %4892 = vmatprep.mubr.bf16.mxu0 %v7491_v42  ;;  %v6751_v42 = vld [vmem:[%s7193_s12 + $0xe68] ss:$16 sps:$4 sm:$0xff]   ;;  %v6801_v15 = vld [vmem:[%s7193_s12 + $0xf6c] ss:$16 sps:$4 sm:$0xff]  }
 0x258   : > { %4933 = vmatprep.mubr.bf16.mxu1 %v7495_v43  ;;  %v6756_v43 = vld [vmem:[%s7193_s12 + $0xc8c] ss:$16 sps:$4 sm:$0xff]   ;;  %v6796_v18 = vld [vmem:[%s7193_s12 + $0xd68] ss:$16 sps:$4 sm:$0xff]  }
 0x259   : > { %4863 = vmatpush1.bf16.msra.mxu0 %v6736_v19  ;;  %v6799_v19 = vld [vmem:[%s7193_s12 + $0xf68] ss:$16 sps:$4 sm:$0xff]  }
 0x25a   : > { %4904 = vmatpush1.bf16.msra.mxu1 %v6739_v20  ;;  %4864 = vmatprep.subr.bf16.mxu0 %v6744_v21  ;;  %v6804_v20 = vld [vmem:[%s7193_s12 + $0xd8c] ss:$16 sps:$4 sm:$0xff]  }
 0x25b   : > { %4905 = vmatprep.subr.bf16.mxu1 %v6747_v27  ;;  %v6807_v21 = vld [vmem:[%s7193_s12 + $0xf8c] ss:$16 sps:$4 sm:$0xff]   ;;  %v6802_v27 = vld [vmem:[%s7193_s12 + $0xd88] ss:$16 sps:$4 sm:$0xff]  }
 0x25d   : > { %4865 = vmatpush1.bf16.msra.mxu0 %v6742_v38  ;;  %v6805_v38 = vld [vmem:[%s7193_s12 + $0xf88] ss:$16 sps:$4 sm:$0xff]  }
 0x25e   : > { %4906 = vmatpush1.bf16.msra.mxu1 %v6745_v39  ;;  %4866 = vmatprep.subr.bf16.mxu0 %v6750_v28  ;;  %v6810_v39 = vld [vmem:[%s7193_s12 + $0xdac] ss:$16 sps:$4 sm:$0xff]  }
 0x25f   : > { %4907 = vmatprep.subr.bf16.mxu1 %v6753_v34  ;;  %v6813_v28 = vld [vmem:[%s7193_s12 + $0xfac] ss:$16 sps:$4 sm:$0xff]   ;;  %v6808_v34 = vld [vmem:[%s7193_s12 + $0xda8] ss:$16 sps:$4 sm:$0xff]  }
 0x261   : > { %4867 = vmatpush1.bf16.msra.mxu0 %v6748_v29  ;;  %v6811_v29 = vld [vmem:[%s7193_s12 + $0xfa8] ss:$16 sps:$4 sm:$0xff]  }
 0x262   : > { %4908 = vmatpush1.bf16.msra.mxu1 %v6751_v42  ;;  %4868 = vmatprep.subr.bf16.mxu0 %v6756_v43  ;;  %v6816_v42 = vld [vmem:[%s7193_s12 + $0xdcc] ss:$16 sps:$4 sm:$0xff]  }
 0x263   : > { %4909 = vmatprep.subr.bf16.mxu1 %v6759_v6  ;;  %v6819_v43 = vld [vmem:[%s7193_s12 + $0xfcc] ss:$16 sps:$4 sm:$0xff]   ;;  %v6814_v6 = vld [vmem:[%s7193_s12 + $0xdc8] ss:$16 sps:$4 sm:$0xff]  }
 0x265   : > { %4869 = vmatpush1.bf16.msra.mxu0 %v6754_v23  ;;  %v6817_v23 = vld [vmem:[%s7193_s12 + $0xfc8] ss:$16 sps:$4 sm:$0xff]  }
 0x266   : > { %4910 = vmatpush1.bf16.msra.mxu1 %v6757_v31  ;;  %4870 = vmatprep.subr.bf16.mxu0 %v6762_v0  ;;  %v6822_v31 = vld [vmem:[%s7193_s12 + $0xdec] ss:$16 sps:$4 sm:$0xff]  }
 0x267   : > { %4911 = vmatprep.subr.bf16.mxu1 %v6765_v4  ;;  %v4566_v22 = vpop.f32.mrb[16].mxu0  ;;  %v6825_v0 = vld [vmem:[%s7193_s12 + $0xfec] ss:$16 sps:$4 sm:$0xff]   ;;  %v6820_v4 = vld [vmem:[%s7193_s12 + $0xde8] ss:$16 sps:$4 sm:$0xff]  }
 0x268   : > { %v4607_v44 = vpop.f32.mrb[16].mxu1  ;;  %v4567_v45 = vadd.f32 %v4566_v22, %v7857_v7  ;;  %v4568_v49 = vpop.f32.mrb[17].mxu0  ;;  %v6829_v22 = vld [vmem:[%s7193_s12 + $0x1208] ss:$16 sps:$4 sm:$0xff]  }
 0x269   : > { %v4609_v50 = vpop.f32.mrb[17].mxu1  ;;  %v4569_v52 = vadd.f32 %v4568_v49, %v7861_v32  ;;  %v4570_v54 = vpop.f32.mrb[18].mxu0  ;;  %4871 = vmatpush1.bf16.msra.mxu0 %v6760_v36  ;;  %v6823_v36 = vld [vmem:[%s7193_s12 + $0xfe8] ss:$16 sps:$4 sm:$0xff]  }
 0x26a   : > { %v4611_v55 = vpop.f32.mrb[18].mxu1  ;;  %4912 = vmatpush1.bf16.msra.mxu1 %v6763_v37  ;;  %v4608_v57 = vadd.f32 %v4607_v44, %v4567_v45  ;;  %v4571_v47 = vpop.f32.mrb[19].mxu0  ;;  %4872 = vmatprep.subr.bf16.mxu0 %v6768_v33  ;;  %v6828_v37 = vld [vmem:[%s7193_s12 + $0x100c] ss:$16 sps:$4 sm:$0xff]   ;;  %v6832_v49 = vld [vmem:[%s7193_s12 + $0x1028] ss:$16 sps:$4 sm:$0xff]  }
 0x26b   : > { %v4612_v7 = vpop.f32.mrb[19].mxu1  ;;  %4913 = vmatprep.subr.bf16.mxu1 %v6771_v35  ;;  %v4610_v32 = vadd.f32 %v4609_v50, %v4569_v52  ;;  %v6831_v33 = vld [vmem:[%s7193_s12 + $0x120c] ss:$16 sps:$4 sm:$0xff]   ;;  %v6826_v35 = vld [vmem:[%s7193_s12 + $0x1008] ss:$16 sps:$4 sm:$0xff]  }
 0x26c   : > { %v5024_v40 = vadd.f32 %v4608_v57, %v280_v61  ;;  %v6834_v44 = vld [vmem:[%s7193_s12 + $0x102c] ss:$16 sps:$4 sm:$0xff]   ;;  %v6835_v50 = vld [vmem:[%s7193_s12 + $0x1228] ss:$16 sps:$4 sm:$0xff]  }
 0x26d   : > { %v5025_v16 = vadd.f32 %v4610_v32, %v281_v53  ;;  %4873 = vmatpush1.bf16.msra.mxu0 %v6766_v58  ;;  %v6837_v45 = vld [vmem:[%s7193_s12 + $0x122c] ss:$16 sps:$4 sm:$0xff]   ;;  %v6844_v54 = vld [vmem:[%s7193_s12 + $0x1068] ss:$16 sps:$4 sm:$0xff]  }
 0x26e   : > { %4914 = vmatpush1.bf16.msra.mxu1 %v6769_v56  ;;  %4874 = vmatprep.subr.bf16.mxu0 %v6774_v62  ;;  %5028 = vst [vmem:[%s7765_s21] sm:$0xff] %v5024_v40  ;;  %v6840_v58 = vld [vmem:[%s7193_s12 + $0x104c] ss:$16 sps:$4 sm:$0xff]   ;;  %v6850_v56 = vld [vmem:[%s7193_s12 + $0x1088] ss:$16 sps:$4 sm:$0xff]  }
 0x26f   : > { %4915 = vmatprep.subr.bf16.mxu1 %v6777_v51  ;;  %5029 = vst [vmem:[%s7765_s21 + $0x8] sm:$0xff] %v5025_v16  ;;  %v6843_v61 = vld [vmem:[%s7193_s12 + $0x124c] ss:$16 sps:$4 sm:$0xff]   ;;  %v6853_v57 = vld [vmem:[%s7193_s12 + $0x1288] ss:$16 sps:$4 sm:$0xff]  }
 0x270   : > { %v6846_v52 = vld [vmem:[%s7193_s12 + $0x106c] ss:$16 sps:$4 sm:$0xff]   ;;  %v6856_v62 = vld [vmem:[%s7193_s12 + $0x10a8] ss:$16 sps:$4 sm:$0xff]  }
 0x271   : > { %4875 = vmatpush1.bf16.msra.mxu0 %v6772_v17  ;;  %v6849_v53 = vld [vmem:[%s7193_s12 + $0x126c] ss:$16 sps:$4 sm:$0xff]   ;;  %v6859_v51 = vld [vmem:[%s7193_s12 + $0x12a8] ss:$16 sps:$4 sm:$0xff]  }
 0x272   : > { %4916 = vmatpush1.bf16.msra.mxu1 %v6775_v2  ;;  %4876 = vmatprep.subr.bf16.mxu0 %v6780_v3  ;;  %v6855_v55 = vld [vmem:[%s7193_s12 + $0x128c] ss:$16 sps:$4 sm:$0xff]  }
 0x273   : > { %4917 = vmatprep.subr.bf16.mxu1 %v6783_v26  ;;  %v6858_v47 = vld [vmem:[%s7193_s12 + $0x10ac] ss:$16 sps:$4 sm:$0xff]  }
 0x274   : > { %v6861_v7 = vld [vmem:[%s7193_s12 + $0x12ac] ss:$16 sps:$4 sm:$0xff]  }
 0x275   : > { %4877 = vmatpush1.bf16.msra.mxu0 %v6778_v24  ;;  %v6864_v32 = vld [vmem:[%s7193_s12 + $0x10cc] ss:$16 sps:$4 sm:$0xff]  }
 0x276   : > { %4918 = vmatpush1.bf16.msra.mxu1 %v6781_v25  ;;  %4878 = vmatprep.subr.bf16.mxu0 %v6786_v30  ;;  %v6867_v40 = vld [vmem:[%s7193_s12 + $0x12cc] ss:$16 sps:$4 sm:$0xff]  }
 0x277   : > { %4919 = vmatprep.subr.bf16.mxu1 %v6789_v5  ;;  %v6862_v5 = vld [vmem:[%s7193_s12 + $0x10c8] ss:$16 sps:$4 sm:$0xff]  }
 0x279   : > { %4879 = vmatpush1.bf16.msra.mxu0 %v6784_v8  ;;  %v6865_v8 = vld [vmem:[%s7193_s12 + $0x12c8] ss:$16 sps:$4 sm:$0xff]  }
 0x27a   : > { %4920 = vmatpush1.bf16.msra.mxu1 %v6787_v9  ;;  %4880 = vmatprep.subr.bf16.mxu0 %v6792_v10 }
 0x27b   : > { %4921 = vmatprep.subr.bf16.mxu1 %v6795_v11  ;;  %v6870_v11 = vld [vmem:[%s7193_s12 + $0x10ec] ss:$16 sps:$4 sm:$0xff]  }
 0x27d   : > { %4881 = vmatpush1.bf16.msra.mxu0 %v6790_v12  ;;  %v6873_v12 = vld [vmem:[%s7193_s12 + $0x12ec] ss:$16 sps:$4 sm:$0xff]  }
 0x27e   : > { %4922 = vmatpush1.bf16.msra.mxu1 %v6793_v13  ;;  %4882 = vmatprep.subr.bf16.mxu0 %v6798_v14  ;;  %v6868_v13 = vld [vmem:[%s7193_s12 + $0x10e8] ss:$16 sps:$4 sm:$0xff]  }
 0x27f   : > { %4923 = vmatprep.subr.bf16.mxu1 %v6801_v15  ;;  %v6871_v14 = vld [vmem:[%s7193_s12 + $0x12e8] ss:$16 sps:$4 sm:$0xff]   ;;  %v6876_v15 = vld [vmem:[%s7193_s12 + $0x110c] ss:$16 sps:$4 sm:$0xff]  }
 0x281   : > { %4883 = vmatpush1.bf16.msra.mxu0 %v6796_v18  ;;  %v6879_v18 = vld [vmem:[%s7193_s12 + $0x130c] ss:$16 sps:$4 sm:$0xff]  }
 0x282   : > { %4924 = vmatpush1.bf16.msra.mxu1 %v6799_v19  ;;  %4884 = vmatprep.subr.bf16.mxu0 %v6804_v20  ;;  %v6874_v19 = vld [vmem:[%s7193_s12 + $0x1108] ss:$16 sps:$4 sm:$0xff]  }
 0x283   : > { %4925 = vmatprep.subr.bf16.mxu1 %v6807_v21  ;;  %v6877_v20 = vld [vmem:[%s7193_s12 + $0x1308] ss:$16 sps:$4 sm:$0xff]   ;;  %v6882_v21 = vld [vmem:[%s7193_s12 + $0x112c] ss:$16 sps:$4 sm:$0xff]  }
 0x285   : > { %4885 = vmatpush1.bf16.msra.mxu0 %v6802_v27  ;;  %v6885_v27 = vld [vmem:[%s7193_s12 + $0x132c] ss:$16 sps:$4 sm:$0xff]  }
 0x286   : > { %4926 = vmatpush1.bf16.msra.mxu1 %v6805_v38  ;;  %4886 = vmatprep.subr.bf16.mxu0 %v6810_v39  ;;  %v6880_v38 = vld [vmem:[%s7193_s12 + $0x1128] ss:$16 sps:$4 sm:$0xff]  }
 0x287   : > { %4927 = vmatprep.subr.bf16.mxu1 %v6813_v28  ;;  %v6883_v39 = vld [vmem:[%s7193_s12 + $0x1328] ss:$16 sps:$4 sm:$0xff]   ;;  %v6888_v28 = vld [vmem:[%s7193_s12 + $0x114c] ss:$16 sps:$4 sm:$0xff]  }
 0x289   : > { %4887 = vmatpush1.bf16.msra.mxu0 %v6808_v34  ;;  %v6891_v34 = vld [vmem:[%s7193_s12 + $0x134c] ss:$16 sps:$4 sm:$0xff]  }
 0x28a   : > { %4928 = vmatpush1.bf16.msra.mxu1 %v6811_v29  ;;  %4888 = vmatprep.subr.bf16.mxu0 %v6816_v42  ;;  %v6886_v29 = vld [vmem:[%s7193_s12 + $0x1148] ss:$16 sps:$4 sm:$0xff]  }
 0x28b   : > { %4929 = vmatprep.subr.bf16.mxu1 %v6819_v43  ;;  %v6889_v42 = vld [vmem:[%s7193_s12 + $0x1348] ss:$16 sps:$4 sm:$0xff]   ;;  %v6894_v43 = vld [vmem:[%s7193_s12 + $0x116c] ss:$16 sps:$4 sm:$0xff]  }
 0x28d   : > { %4889 = vmatpush1.bf16.msra.mxu0 %v6814_v6  ;;  %v6897_v6 = vld [vmem:[%s7193_s12 + $0x136c] ss:$16 sps:$4 sm:$0xff]  }
 0x28e   : > { %4930 = vmatpush1.bf16.msra.mxu1 %v6817_v23  ;;  %4890 = vmatprep.subr.bf16.mxu0 %v6822_v31  ;;  %v6892_v23 = vld [vmem:[%s7193_s12 + $0x1168] ss:$16 sps:$4 sm:$0xff]  }
 0x28f   : > { %4931 = vmatprep.subr.bf16.mxu1 %v6825_v0  ;;  %v6895_v31 = vld [vmem:[%s7193_s12 + $0x1368] ss:$16 sps:$4 sm:$0xff]   ;;  %v6900_v0 = vld [vmem:[%s7193_s12 + $0x118c] ss:$16 sps:$4 sm:$0xff]  }
 0x291   : > { %4891 = vmatpush1.bf16.msra.mxu0 %v6820_v4  ;;  %v6903_v4 = vld [vmem:[%s7193_s12 + $0x138c] ss:$16 sps:$4 sm:$0xff]  }
 0x292   : > { %4932 = vmatpush1.bf16.msra.mxu1 %v6823_v36  ;;  %4942 = vmatprep.subr.bf16.mxu0 %v6828_v37  ;;  %v6898_v36 = vld [vmem:[%s7193_s12 + $0x1188] ss:$16 sps:$4 sm:$0xff]  }
 0x293   : > { %4983 = vmatprep.subr.bf16.mxu1 %v6831_v33  ;;  %v6901_v37 = vld [vmem:[%s7193_s12 + $0x1388] ss:$16 sps:$4 sm:$0xff]   ;;  %v6906_v33 = vld [vmem:[%s7193_s12 + $0x11ac] ss:$16 sps:$4 sm:$0xff]  }
 0x294   : > { %4893 = vmatmul.mubr.bf16.vlgmr.msra.gmra.mrb[32].mxu0 %v7568_v59  ;;  %v6838_v59 = vld [vmem:[%s7193_s12 + $0x1048] ss:$16 sps:$4 sm:$0xff]  }
 0x295   : > { %4934 = vmatmul.mubr.bf16.vlgmr.msra.gmra.mrb[32].mxu1 %v7572_v60  ;;  %4943 = vmatpush1.bf16.msra.mxu0 %v6826_v35  ;;  %v6841_v60 = vld [vmem:[%s7193_s12 + $0x1248] ss:$16 sps:$4 sm:$0xff]   ;;  %v6909_v35 = vld [vmem:[%s7193_s12 + $0x13ac] ss:$16 sps:$4 sm:$0xff]  }
 0x296   : > { %4984 = vmatpush1.bf16.msra.mxu1 %v6829_v22  ;;  %4944 = vmatprep.subr.bf16.mxu0 %v6834_v44  ;;  %v6904_v22 = vld [vmem:[%s7193_s12 + $0x11a8] ss:$16 sps:$4 sm:$0xff]  }
 0x297   : > { %4985 = vmatprep.subr.bf16.mxu1 %v6837_v45  ;;  %4974 = vmatprep.mubr.bf16.mxu0 %v7585_v41  ;;  %v6847_v41 = vld [vmem:[%s7193_s12 + $0x1268] ss:$16 sps:$4 sm:$0xff]   ;;  %v6912_v45 = vld [vmem:[%s7193_s12 + $0x11cc] ss:$16 sps:$4 sm:$0xff]  }
 0x298   : > { %5015 = vmatprep.mubr.bf16.mxu1 %v7589_v1  ;;  %v6852_v1 = vld [vmem:[%s7193_s12 + $0x108c] ss:$16 sps:$4 sm:$0xff]   ;;  %v6907_v44 = vld [vmem:[%s7193_s12 + $0x13a8] ss:$16 sps:$4 sm:$0xff]  }
 0x299   : > { %4945 = vmatpush1.bf16.msra.mxu0 %v6832_v49  ;;  %v6915_v49 = vld [vmem:[%s7193_s12 + $0x13cc] ss:$16 sps:$4 sm:$0xff]  }
 0x29a   : > { %4986 = vmatpush1.bf16.msra.mxu1 %v6835_v50  ;;  %4946 = vmatprep.subr.bf16.mxu0 %v6840_v58  ;;  %v6910_v50 = vld [vmem:[%s7193_s12 + $0x11c8] ss:$16 sps:$4 sm:$0xff]  }
 0x29b   : > { %4987 = vmatprep.subr.bf16.mxu1 %v6843_v61  ;;  %v6913_v58 = vld [vmem:[%s7193_s12 + $0x13c8] ss:$16 sps:$4 sm:$0xff]   ;;  %v6918_v61 = vld [vmem:[%s7193_s12 + $0x11ec] ss:$16 sps:$4 sm:$0xff]  }
 0x29d   : > { %4947 = vmatpush1.bf16.msra.mxu0 %v6838_v59  ;;  %v6921_v59 = vld [vmem:[%s7193_s12 + $0x13ec] ss:$16 sps:$4 sm:$0xff]  }
 0x29e   : > { %4988 = vmatpush1.bf16.msra.mxu1 %v6841_v60  ;;  %4948 = vmatprep.subr.bf16.mxu0 %v6846_v52  ;;  %v6916_v60 = vld [vmem:[%s7193_s12 + $0x11e8] ss:$16 sps:$4 sm:$0xff]  }
 0x29f   : > { %4989 = vmatprep.subr.bf16.mxu1 %v6849_v53  ;;  %v6919_v52 = vld [vmem:[%s7193_s12 + $0x13e8] ss:$16 sps:$4 sm:$0xff]  }
 0x2a1   : > { %4949 = vmatpush1.bf16.msra.mxu0 %v6844_v54 }
 0x2a2   : > { %4990 = vmatpush1.bf16.msra.mxu1 %v6847_v41  ;;  %4950 = vmatprep.subr.bf16.mxu0 %v6852_v1 }
 0x2a3   : > { %4991 = vmatprep.subr.bf16.mxu1 %v6855_v55 }
 0x2a5   : > { %4951 = vmatpush1.bf16.msra.mxu0 %v6850_v56 }
 0x2a6   : > { %4992 = vmatpush1.bf16.msra.mxu1 %v6853_v57  ;;  %4952 = vmatprep.subr.bf16.mxu0 %v6858_v47 }
 0x2a7   : > { %4993 = vmatprep.subr.bf16.mxu1 %v6861_v7  ;;  %v4648_v16 = vpop.f32.mrb[20].mxu0 }
 0x2a8   : > { %v4689_v17 = vpop.f32.mrb[20].mxu1  ;;  %v4650_v3 = vpop.f32.mrb[21].mxu0 }
 0x2a9   : > { %v8004_v2 = vadd.f32 %v4689_v17, %v4648_v16  ;;  %v4691_v26 = vpop.f32.mrb[21].mxu1  ;;  %v4652_v25 = vpop.f32.mrb[22].mxu0  ;;  %4953 = vmatpush1.bf16.msra.mxu0 %v6856_v62 }
 0x2aa   : > { %v8006_v24 = vadd.f32 %v4691_v26, %v4650_v3  ;;  %v4693_v30 = vpop.f32.mrb[22].mxu1  ;;  %4994 = vmatpush1.bf16.msra.mxu1 %v6859_v51  ;;  %v4653_v9 = vpop.f32.mrb[23].mxu0  ;;  %4954 = vmatprep.subr.bf16.mxu0 %v6864_v32 }
 0x2ab   : > { %v4694_v10 = vpop.f32.mrb[23].mxu1  ;;  %4995 = vmatprep.subr.bf16.mxu1 %v6867_v40 }
 0x2ad   : > { %4955 = vmatpush1.bf16.msra.mxu0 %v6862_v5 }
 0x2ae   : > { %4996 = vmatpush1.bf16.msra.mxu1 %v6865_v8  ;;  %4956 = vmatprep.subr.bf16.mxu0 %v6870_v11 }
 0x2af   : > { %4997 = vmatprep.subr.bf16.mxu1 %v6873_v12 }
 0x2b1   : > { %4957 = vmatpush1.bf16.msra.mxu0 %v6868_v13 }
 0x2b2   : > { %4998 = vmatpush1.bf16.msra.mxu1 %v6871_v14  ;;  %4958 = vmatprep.subr.bf16.mxu0 %v6876_v15 }
 0x2b3   : > { %4999 = vmatprep.subr.bf16.mxu1 %v6879_v18 }
 0x2b5   : > { %4959 = vmatpush1.bf16.msra.mxu0 %v6874_v19 }
 0x2b6   : > { %5000 = vmatpush1.bf16.msra.mxu1 %v6877_v20  ;;  %4960 = vmatprep.subr.bf16.mxu0 %v6882_v21 }
 0x2b7   : > { %5001 = vmatprep.subr.bf16.mxu1 %v6885_v27  ;;  %v5041_v27 = vlaneseq }
 0x2b9   : > { %4961 = vmatpush1.bf16.msra.mxu0 %v6880_v38 }
 0x2ba   : > { %5002 = vmatpush1.bf16.msra.mxu1 %v6883_v39  ;;  %4962 = vmatprep.subr.bf16.mxu0 %v6888_v28 }
 0x2bb   : > { %5003 = vmatprep.subr.bf16.mxu1 %v6891_v34 }
 0x2bd   : > { %4963 = vmatpush1.bf16.msra.mxu0 %v6886_v29 }
 0x2be   : > { %5004 = vmatpush1.bf16.msra.mxu1 %v6889_v42  ;;  %4964 = vmatprep.subr.bf16.mxu0 %v6894_v43  ;;  %v5042_v43 = vshrl.u32 %v5041_v27, 7 }
 0x2bf   : > { %5005 = vmatprep.subr.bf16.mxu1 %v6897_v6 }
 0x2c1   : > { %4965 = vmatpush1.bf16.msra.mxu0 %v6892_v23 }
 0x2c2   : > { %5006 = vmatpush1.bf16.msra.mxu1 %v6895_v31  ;;  %4966 = vmatprep.subr.bf16.mxu0 %v6900_v0 }
 0x2c3   : > { %5007 = vmatprep.subr.bf16.mxu1 %v6903_v4 }
 0x2c5   : > { %4967 = vmatpush1.bf16.msra.mxu0 %v6898_v36 }
 0x2c6   : > { %5008 = vmatpush1.bf16.msra.mxu1 %v6901_v37  ;;  %4968 = vmatprep.subr.bf16.mxu0 %v6906_v33  ;;  %v5055_v33 = vsub.s32 3, %v5042_v43 }
 0x2c7   : > { %5009 = vmatprep.subr.bf16.mxu1 %v6909_v35  ;;  %v5039_v35 = vld [vmem:[%s7199_s6] sm:$0xf] }
 0x2c9   : > { %4969 = vmatpush1.bf16.msra.mxu0 %v6904_v22  ;;  %v5043_v22 = vsub.s32 0, %v5042_v43 }
 0x2ca   : > { %5010 = vmatpush1.bf16.msra.mxu1 %v6907_v44  ;;  %4970 = vmatprep.subr.bf16.mxu0 %v6912_v45  ;;  %v5047_v44 = vsub.s32 1, %v5042_v43  ;;  %v5051_v45 = vsub.s32 2, %v5042_v43 }
 0x2cb   : > { %5011 = vmatprep.subr.bf16.mxu1 %v6915_v49  ;;  %v5056_v49 = vrot.slane %v5039_v35, %v5055_v33 }
 0x2cd   : > { %4971 = vmatpush1.bf16.msra.mxu0 %v6910_v50  ;;  %v5044_v50 = vrot.slane %v5039_v35, %v5043_v22 }
 0x2ce   : > { %5012 = vmatpush1.bf16.msra.mxu1 %v6913_v58  ;;  %4972 = vmatprep.subr.bf16.mxu0 %v6918_v61  ;;  %v5048_v58 = vrot.slane %v5039_v35, %v5047_v44  ;;  %v5052_v61 = vrot.slane %v5039_v35, %v5051_v45 }
 0x2cf   : > { %5013 = vmatprep.subr.bf16.mxu1 %v6921_v59 }
 0x2d1   : > { %4973 = vmatpush1.bf16.msra.mxu0 %v6916_v60  ;;  %v5035_v60 = vld [vmem:[%s7765_s21] sm:$0xff] }
 0x2d2   : > { %5014 = vmatpush1.bf16.msra.mxu1 %v6919_v52  ;;  %v5036_v52 = vld [vmem:[%s7765_s21 + $0x8] sm:$0xff] }
 0x2d4   : > { %4975 = vmatmul.mubr.bf16.vlgmr.msra.gmra.mrb[36].mxu0 %v7663_v46 }
 0x2d5   : > { %5016 = vmatmul.mubr.bf16.vlgmr.msra.gmra.mrb[36].mxu1 %v7667_v48 }
 0x2e7   : > { %v4730_v53 = vpop.f32.mrb[24].mxu0 }
 0x2e8   : > { %v4771_v54 = vpop.f32.mrb[24].mxu1  ;;  %v4731_v41 = vadd.f32 %v4730_v53, %v8004_v2  ;;  %v4732_v1 = vpop.f32.mrb[25].mxu0 }
 0x2e9   : > { %v4773_v55 = vpop.f32.mrb[25].mxu1  ;;  %v4733_v56 = vadd.f32 %v4732_v1, %v8006_v24  ;;  %v4734_v57 = vpop.f32.mrb[26].mxu0 }
 0x2ea   : > { %v4775_v47 = vpop.f32.mrb[26].mxu1  ;;  %v4772_v7 = vadd.f32 %v4771_v54, %v4731_v41  ;;  %v4735_v62 = vpop.f32.mrb[27].mxu0  ;;  %v5061_v54 = vadd.f32 %v5044_v50, %v5035_v60  ;;  %v5062_v41 = vadd.f32 %v5048_v58, %v5036_v52 }
 0x2eb   : > { %v4776_v51 = vpop.f32.mrb[27].mxu1  ;;  %v4774_v32 = vadd.f32 %v4773_v55, %v4733_v56 }
 0x2ec   : > { %vm5065_vm0 = vcmp.ge.f32.partialorder %v5061_v54, 0.0  ;;  %vm5066_vm1 = vcmp.ge.f32.partialorder %v5062_v41, 0.0  ;;  %v5069_v1 = vmul.f32 0.1, %v5061_v54  ;;  %v5070_v56 = vmul.f32 0.1, %v5062_v41 }
 0x2ee   : > { %v5073_v47 = vsel %vm5065_vm0, %v5061_v54, %v5069_v1 }
 0x2ef   : > { %5077 = vst [vmem:[%s7765_s21] sm:$0xff] %v5073_v47 }
 0x327   : > { %v4812_v40 = vpop.f32.mrb[28].mxu0 }
 0x328   : > { %v4853_v16 = vpop.f32.mrb[28].mxu1  ;;  %v4813_v17 = vadd.f32 %v4812_v40, %v4772_v7  ;;  %v4814_v46 = vpop.f32.mrb[29].mxu0  ;;  %v5074_v7 = vsel %vm5066_vm1, %v5062_v41, %v5070_v56 }
 0x329   : > { %v4855_v3 = vpop.f32.mrb[29].mxu1  ;;  %v4815_v48 = vadd.f32 %v4814_v46, %v4774_v32  ;;  %v4816_v26 = vpop.f32.mrb[30].mxu0  ;;  %5078 = vst [vmem:[%s7765_s21 + $0x8] sm:$0xff] %v5074_v7 }
 0x32a   : > { %v4857_v25 = vpop.f32.mrb[30].mxu1  ;;  %v4854_v30 = vadd.f32 %v4853_v16, %v4813_v17  ;;  %v4817_v2 = vpop.f32.mrb[31].mxu0 }
 0x32b   : > { %v4858_v5 = vpop.f32.mrb[31].mxu1  ;;  %v4856_v8 = vadd.f32 %v4855_v3, %v4815_v48 }
 0x367   : > { %v4894_v9 = vpop.f32.mrb[32].mxu0 }
 0x368   : > { %v4935_v24 = vpop.f32.mrb[32].mxu1  ;;  %v4895_v10 = vadd.f32 %v4894_v9, %v4854_v30  ;;  %v4896_v11 = vpop.f32.mrb[33].mxu0 }
 0x369   : > { %v4937_v12 = vpop.f32.mrb[33].mxu1  ;;  %v4897_v13 = vadd.f32 %v4896_v11, %v4856_v8  ;;  %v4898_v14 = vpop.f32.mrb[34].mxu0 }
 0x36a   : > { %v4939_v15 = vpop.f32.mrb[34].mxu1  ;;  %v4936_v18 = vadd.f32 %v4935_v24, %v4895_v10  ;;  %v4899_v19 = vpop.f32.mrb[35].mxu0 }
 0x36b   : > { %v4940_v20 = vpop.f32.mrb[35].mxu1  ;;  %v4938_v21 = vadd.f32 %v4937_v12, %v4897_v13 }
 0x3a7   : > { %v4976_v38 = vpop.f32.mrb[36].mxu0 }
 0x3a8   : > { %v5017_v39 = vpop.f32.mrb[36].mxu1  ;;  %v4977_v28 = vadd.f32 %v4976_v38, %v4936_v18  ;;  %v4978_v34 = vpop.f32.mrb[37].mxu0 }
 0x3a9   : > { %v5019_v29 = vpop.f32.mrb[37].mxu1  ;;  %v4979_v42 = vadd.f32 %v4978_v34, %v4938_v21  ;;  %v4980_v6 = vpop.f32.mrb[38].mxu0 }
 0x3aa   : > { %v5021_v23 = vpop.f32.mrb[38].mxu1  ;;  %v5018_v31 = vadd.f32 %v5017_v39, %v4977_v28  ;;  %v4981_v0 = vpop.f32.mrb[39].mxu0 }
 0x3ab   : > { %v5022_v4 = vpop.f32.mrb[39].mxu1  ;;  %v5020_v36 = vadd.f32 %v5019_v29, %v4979_v42 }
 0x3ac   : > { %v5026_v37 = vadd.f32 %v5018_v31, %v7936_v63 }
 0x3ad   : > { %5031 = vst [vmem:[%s7765_s21 + $0x18] sm:$0xff] %v5020_v36  ;;  %v5064_v59 = vadd.f32 %v5056_v49, %v5020_v36 }
 0x3ae   : > { %5030 = vst [vmem:[%s7765_s21 + $0x10] sm:$0xff] %v5026_v37 }
 0x3af   : > { %v5072_v55 = vmul.f32 0.1, %v5064_v59  ;;  %vm5068_vm3 = vcmp.ge.f32.partialorder %v5064_v59, 0.0 }
 0x3b1   : > { %v5076_v51 = vsel %vm5068_vm3, %v5064_v59, %v5072_v55 }
 0x3b2   : > { %5080 = vst [vmem:[%s7765_s21 + $0x18] sm:$0xff] %v5076_v51 }
 0x3b5   : > { %v5037_v53 = vld [vmem:[%s7765_s21 + $0x10] sm:$0xff] }
 0x3b6   : > { %v5063_v63 = vadd.f32 %v5052_v61, %v5037_v53 }
 0x3b8   : > { %vm5067_vm2 = vcmp.ge.f32.partialorder %v5063_v63, 0.0  ;;  %v5071_v57 = vmul.f32 0.1, %v5063_v63 }
 0x3ba   : > { %v5075_v62 = vsel %vm5067_vm2, %v5063_v63, %v5071_v57 }
 0x3bb   : > { %5079 = vst [vmem:[%s7765_s21 + $0x10] sm:$0xff] %v5075_v62 }
 0x3bc PF: > { %s19_s17 = sadd.s32 1, %s7036_s17   ;;  %s8090_s12 = smov %s7020_s13 }
 0x3bd   : > { %p16_p9 = scmp.ge.s32.totalorder %s19_s17, 4   ;;  %s8091_s13 = smov %s7024_s14 }
 0x3be   : > { %s8092_s14 = smov %s7109_s23  ;;  %s8093_s15 = smov %s7032_s16 }
 0x3bf   : > { %s8094_s16 = smov %s8096_s19  ;;  %18 = sbr.rel (!%p16_p9) target bundleno = 6 (0x6), region = 96 }
 0x3c6   :  { %5103 = vsyncpa [#allocation3], 1 }
 0x3c7   :  { %5105 = vsyncpa [#allocation3 + $0x1], 1 }
 0x3c8   :  { %5106 = vsyncpa [#allocation5], 1 }
 0x3c9   :  { %5108 = vsyncpa [#allocation5 + $0x1], 1 }

// kernel: mp_subdisc_forward.10
= control target key start
LH: loop header
LB: loop body
LE: loop exit
PB: predicated region body
PF: predicated region fallthrough
CT: control target
= control target key end

     0   :  { %8 = vsyncpa [#allocation3], 0  ;;  %s15329_s0 = inlined_call_operand.vmem [shape: bf16[8,5120], index: 0, kind: input, shape index: {}]   ;;  %s15330_s1 = inlined_call_operand.hbm [shape: bf16[5120,1024], index: 1, kind: input, shape index: {}]   ;;  %s15331_s2 = inlined_call_operand.hbm [shape: f32[1,1024], index: 2, kind: input, shape index: {}]   ;;  %s15332_s3 = inlined_call_operand.vmem [shape: f32[8,1024], index: 3, kind: output, shape index: {}]  }
   0x1   :  { %10 = vsyncpa [#allocation3 + $0x1], 0 }
   0x2   :  { %11 = vsyncpa [#allocation5], 0 }
   0x3   :  { %13 = vsyncpa [#allocation5 + $0x1], 0  ;;  %s13444_s12 = smov 0   ;;  %s13446_s13 = smov 0  }
   0x4   :  { %s13448_s14 = smov 0   ;;  %s13450_s15 = smov 0  }
   0x5   :  { %s13452_s16 = smov 0   ;;  %s13454_s17 = smov 0  }
   0x6 LB: > { %s9938_s18 = sadd.s32 4294967295, %s13416_s17   ;;  %s31_s19 = sadd.s32 1, %s13412_s16  ;;  %s13416_s17 = sphi %s13454_s17, %s19_s17   ;;  %s13412_s16 = sphi %s13452_s16, %s15344_s16   ;;  %s13408_s15 = sphi %s13450_s15, %s15343_s15   ;;  %s13404_s14 = sphi %s13448_s14, %s15342_s14   ;;  %s13400_s13 = sphi %s13446_s13, %s15341_s13   ;;  %s13396_s12 = sphi %s13444_s12, %s15340_s12  }
   0x7   : > { %p33_p0 = scmp.ge.s32.totalorder %s31_s19, 2  ;;  %s66_s20 = sadd.s32 1, %s13404_s14 }
   0x8   : > { %p73_p1 = scmp.ne.s32.totalorder %s13404_s14, %s13400_s13  ;;  %p74_p2 = scmp.eq.s32.totalorder %s13416_s17, 0 }
   0x9   : > { %s15346_s19 = smov (%p33_p0, %s31_s19), 0  ;;  %p79_p4 = scmp.ne.s32.totalorder %s13400_s13, %s13396_s12 }
   0xa   : > { %p75_p3 = por %p74_p2, %p73_p1  ;;  %s62_s21 = ssub.s32 %s13412_s16, %s15346_s19 }
   0xb   : > { %p80_p5 = scmp.eq.s32.totalorder %s9938_s18, 0  ;;  %p64_p6 = scmp.eq.s32.totalorder %s62_s21, 0 }
   0xc   : > { %p11289_p8 = scmp.lt.s32.totalorder %s13416_s17, 2  ;;  %s13492_s24 = sand.u32 1, %s13404_s14  }
   0xd   : > { %p13483_p7 = por %p80_p5, %p79_p4  ;;  %s11274_s25 = sshll.u32 %s13412_s16, 8 }
   0xe   : > { %s13489_s23 = scalar_select %p64_p6, %s13404_s14, %s66_s20  }
   0xf   : > { %s15334_s22 = scalar_select %p13483_p7, 1, 0 }
  0x10   : > { %s11276_s26 = smul.u32 10240, %s13492_s24  ;;  %s13499_s29 = scalar_lea.hbm %s15330_s1, %s11274_s25 }
  0x11   : > { %p13501_p9 = pnand %p11289_p8, %p75_p3  ;;  %s165_s6 = scalar_lea.sflag [#allocation3], %s13492_s24 }
  0x12   : > { %s168_s4 = scalar_lea.vmem [#allocation2], %s11276_s26  ;;  %s13302_s7 = scalar_lea.hbm %s13499_s29, 163840 }
  0x13   : > { %s178_s5 = sshll.u32 %s168_s4, 4  ;;  %p13303_p11 = scmp.ne.s32.totalorder %s13499_s29, %s13302_s7  ;;  %s13505_s5 = int_to_ptr.vmem [resolvable:$true] %s178_s5 }
  0x14   : > { %p13304_p12 = pneg %p13501_p9  ;;  %s13307_s10 = scalar_lea.hbm %s15330_s1, 327680 }
  0x15   : > { %p13308_p1 = scmp.lt.u32.totalorder %s13499_s29, %s15330_s1  ;;  %p13309_p2 = scmp.lt.u32.totalorder %s13307_s10, %s13302_s7 }
  0x16   : > { %p13305_p13 = pnand %p13304_p12, %p13303_p11  ;;  %p13311_p4 = scmp.lt.u32.totalorder %s13302_s7, %s13499_s29 }
  0x17   : > { %p13310_p3 = por %p13309_p2, %p13308_p1 }
  0x18   : > { %p13306_p0 = pneg %p13305_p13 }
  0x19   : > { %p13312_p5 = por %p13311_p4, %p13310_p3 }
  0x1b   : > { %p13313_p6 = pnand %p13312_p5, %p13306_p0 }
  0x1d   : > { %13316 = shalt.err (!%p13313_p6)
}
  0x1e   : > { %s13317_s18 = scalar_lea.vmem %s13505_s5, 163840  ;;  %s13418_s20 = smov [#allocation2]  }
  0x1f   : > { %p13318_p8 = scmp.ne.s32.totalorder %s13505_s5, %s13317_s18  ;;  %s13322_s21 = sshll.u32 %s13418_s20, 4  ;;  %s13323_s21 = int_to_ptr.vmem [resolvable:$false] %s13322_s21 }
  0x20   : > { %s13324_s25 = scalar_lea.vmem %s13323_s21, 327680  ;;  %p13325_p10 = scmp.lt.s32.totalorder %s13505_s5, %s13323_s21 }
  0x21   : > { %p13320_p11 = pnand %p13318_p8, %p13304_p12  ;;  %p13326_p1 = scmp.lt.s32.totalorder %s13324_s25, %s13317_s18 }
  0x23   : > { %p13321_p13 = pneg %p13320_p11  ;;  %p13327_p2 = por %p13326_p1, %p13325_p10 }
  0x25   : > { %p13328_p3 = pnand %p13327_p2, %p13321_p13 }
  0x27   : > { %13331 = shalt.err (!%p13328_p3)
}
  0x28   : > { %s13419_s26 = smov 512   ;;  %s13420_s27 = smov 256  }
  0x29   : > { %s13421_s28 = smov 16   ;;  %p205_p0 = scmp.lt.s32.totalorder %s13416_s17, 3 }
  0x2a   : > { %11285 = dma.hbm_to_vmem [thread:$0]  (!%p13501_p9), %s13499_s29, 163840, %s13505_s5, %s165_s6, %s13419_s26, %s13420_s27, %s13421_s28  }
  0x2b   : > { %s9945_s4 = sshll.u32 %s13492_s24, 2  ;;  %s11275_s7 = sshll.u32 %s13412_s16, 6 }
  0x2c   : > { %p15336_p10 = scmp.ge.s32.totalorder %s13416_s17, 1  ;;  %s13548_s11 = scalar_lea.hbm %s15331_s2, %s11275_s7 }
  0x2d   : > { %s192_s12 = scalar_lea.vmem [#allocation4], %s9945_s4  ;;  %s189_s29 = scalar_lea.sflag [#allocation5], %s13492_s24 }
  0x2e   : > { %p13541_p4 = pnand %p15336_p10, %p205_p0  ;;  %s200_s18 = sshll.u32 %s192_s12, 4  ;;  %s201_s18 = int_to_ptr.vmem [resolvable:$true] %s200_s18 }
  0x2f   : > { %s13332_s5 = scalar_lea.hbm %s13548_s11, 64  ;;  %s13337_s21 = scalar_lea.hbm %s15331_s2, 128 }
  0x30   : > { %s15337_s8 = scalar_select %p13541_p4, 1, 0 }
  0x31   : > { %p13333_p5 = scmp.ne.s32.totalorder %s13548_s11, %s13332_s5  ;;  %p13338_p11 = scmp.lt.u32.totalorder %s13548_s11, %s15331_s2 }
  0x32   : > { %p13339_p13 = scmp.lt.u32.totalorder %s13337_s21, %s13332_s5  ;;  %p13341_p2 = scmp.lt.u32.totalorder %s13332_s5, %s13548_s11 }
  0x33   : > { %p13335_p6 = pnand %p13333_p5, %p13304_p12 }
  0x34   : > { %p13340_p1 = por %p13339_p13, %p13338_p11 }
  0x35   : > { %p13336_p8 = pneg %p13335_p6 }
  0x36   : > { %p13342_p3 = por %p13341_p2, %p13340_p1 }
  0x38   : > { %p13343_p0 = pnand %p13342_p3, %p13336_p8 }
  0x3a   : > { %13346 = shalt.err (!%p13343_p0)
}
  0x3b   : > { %s13347_s24 = scalar_lea.vmem %s201_s18, 64  ;;  %s13422_s27 = smov [#allocation4]  }
  0x3c   : > { %p13348_p10 = scmp.ne.s32.totalorder %s201_s18, %s13347_s24  ;;  %s13352_s28 = sshll.u32 %s13422_s27, 4  ;;  %s13353_s28 = int_to_ptr.vmem [resolvable:$false] %s13352_s28 }
  0x3d   : > { %s13354_s4 = scalar_lea.vmem %s13353_s28, 128  ;;  %p13355_p7 = scmp.lt.s32.totalorder %s201_s18, %s13353_s28 }
  0x3e   : > { %p13350_p5 = pnand %p13348_p10, %p13304_p12  ;;  %p13356_p4 = scmp.lt.s32.totalorder %s13354_s4, %s13347_s24 }
  0x40   : > { %p13351_p6 = pneg %p13350_p5  ;;  %p13357_p11 = por %p13356_p4, %p13355_p7 }
  0x42   : > { %p13358_p13 = pnand %p13357_p11, %p13351_p6 }
  0x44   : > { %13361 = shalt.err (!%p13358_p13)
}
  0x45   : > { %11288 = dma.hbm_to_vmem [thread:$0]  (!%p13501_p9), %s13548_s11, 64, %s201_s18, %s189_s29  }
  0x46   : > { %p15338_p8 = scmp.ne.s32.totalorder %s15337_s8, 0 }
  0x47   : > { %s211_s7 = sand.u32 (!%p15338_p8), 1, %s13400_s13   ;;  %p15339_p12 = scmp.ne.s32.totalorder (!%p15338_p8), %s15334_s22, 0 }
  0x48   : > { %209 = sbr.rel (%p15338_p8) target bundleno = 1596 (0x63c), region = 32  ;;  %s212_s10 = scalar_lea.sflag (!%p15338_p8), [#allocation3], %s211_s7 }
  0x49   : > { %s11277_s9 = smul.u32 (!%p15338_p8), 10240, %s211_s7 }
  0x4b   : > { %s13573_s12 = scalar_lea.vmem (!%p15338_p8), [#allocation2], %s11277_s9 }
  0x4f   : > { %13387 = dma.done.wait (%p15339_p12), %s212_s10, 163840  }
  0x50   : > { %13389 = vsyncadd (%p15339_p12), %s212_s10, 4294803456  ;;  %s9949_s5 = sshll.u32 %s211_s7, 2  ;;  %s221_s30 = scalar_lea.sflag [#allocation5], %s211_s7 }
  0x51   : > { %s13579_s6 = scalar_lea.vmem [#allocation4], %s9949_s5 }
  0x52   : > { %13391 = dma.done.wait (%p15339_p12), %s221_s30, 64  }
  0x53   : > { %13393 = vsyncadd (%p15339_p12), %s221_s30, 4294967232  ;;  %v11342_v0 = vld [vmem:[%s13573_s12 + $0x4] ss:$16 sps:$4 sm:$0xff]   ;;  %v11346_v2 = vld [vmem:[%s13573_s12] ss:$16 sps:$4 sm:$0xff]   ;;  %s9950_s29 = sshll.u32 %s13408_s15, 2 }
  0x54   : > { %v11344_v1 = vld [vmem:[%s13573_s12 + $0x204] ss:$16 sps:$4 sm:$0xff]   ;;  %8124 = vmatprep.subr.bf16.mxu0 %v11342_v0  ;;  %v11347_v3 = vld [vmem:[%s13573_s12 + $0x200] ss:$16 sps:$4 sm:$0xff]   ;;  %v285_v48 = vld [vmem:[%s15329_s0 + $0x8] sm:$0xff]  ;;  %p267_p7 = scmp.lt.s32.totalorder %s9950_s29, 7 }
  0x55   : > { %8165 = vmatprep.subr.bf16.mxu1 %v11344_v1  ;;  %v11348_v4 = vld [vmem:[%s13573_s12 + $0x24] ss:$16 sps:$4 sm:$0xff]   ;;  %8125 = vmatpush1.bf16.msra.mxu0 %v11346_v2  ;;  %v11352_v6 = vld [vmem:[%s13573_s12 + $0x20] ss:$16 sps:$4 sm:$0xff]   ;;  %v13641_v51 = vcombine.high %v285_v48, %v285_v48 }
  0x56   : > { %8166 = vmatpush1.bf16.msra.mxu1 %v11347_v3  ;;  %v11350_v5 = vld [vmem:[%s13573_s12 + $0x224] ss:$16 sps:$4 sm:$0xff]   ;;  %8126 = vmatprep.subr.bf16.mxu0 %v11348_v4  ;;  %v11353_v7 = vld [vmem:[%s13573_s12 + $0x220] ss:$16 sps:$4 sm:$0xff]   ;;  %s15348_s29 = smov (!%p267_p7, %s9950_s29), 7 }
  0x57   : > { %8167 = vmatprep.subr.bf16.mxu1 %v11350_v5  ;;  %v11354_v8 = vld [vmem:[%s13573_s12 + $0x44] ss:$16 sps:$4 sm:$0xff]   ;;  %v11358_v10 = vld [vmem:[%s13573_s12 + $0x40] ss:$16 sps:$4 sm:$0xff]   ;;  %8197 = vmatprep.mubr.bf16.mxu1 %v13641_v51  ;;  %s9951_s20 = sshll.u32 %s15348_s29, 3 }
  0x58   : > { %v11356_v9 = vld [vmem:[%s13573_s12 + $0x244] ss:$16 sps:$4 sm:$0xff]   ;;  %v11359_v11 = vld [vmem:[%s13573_s12 + $0x240] ss:$16 sps:$4 sm:$0xff]   ;;  %s14645_s26 = scalar_lea.vmem %s15332_s3, %s9951_s20 }
  0x59   : > { %8127 = vmatpush1.bf16.msra.mxu0 %v11352_v6  ;;  %v11360_v12 = vld [vmem:[%s13573_s12 + $0x64] ss:$16 sps:$4 sm:$0xff]   ;;  %v11364_v14 = vld [vmem:[%s13573_s12 + $0x60] ss:$16 sps:$4 sm:$0xff]  }
  0x5a   : > { %8168 = vmatpush1.bf16.msra.mxu1 %v11353_v7  ;;  %8128 = vmatprep.subr.bf16.mxu0 %v11354_v8  ;;  %v11362_v13 = vld [vmem:[%s13573_s12 + $0x264] ss:$16 sps:$4 sm:$0xff]   ;;  %v11365_v15 = vld [vmem:[%s13573_s12 + $0x260] ss:$16 sps:$4 sm:$0xff]   ;;  %v13665_v7 = vcombine.low %v285_v48, %v285_v48 }
  0x5b   : > { %8169 = vmatprep.subr.bf16.mxu1 %v11356_v9  ;;  %v11366_v16 = vld [vmem:[%s13573_s12 + $0x84] ss:$16 sps:$4 sm:$0xff]   ;;  %v11370_v18 = vld [vmem:[%s13573_s12 + $0x80] ss:$16 sps:$4 sm:$0xff]  }
  0x5c   : > { %v11368_v17 = vld [vmem:[%s13573_s12 + $0x284] ss:$16 sps:$4 sm:$0xff]   ;;  %v11371_v19 = vld [vmem:[%s13573_s12 + $0x280] ss:$16 sps:$4 sm:$0xff]  }
  0x5d   : > { %8129 = vmatpush1.bf16.msra.mxu0 %v11358_v10  ;;  %v11372_v20 = vld [vmem:[%s13573_s12 + $0xa4] ss:$16 sps:$4 sm:$0xff]   ;;  %v11376_v22 = vld [vmem:[%s13573_s12 + $0xa0] ss:$16 sps:$4 sm:$0xff]  }
  0x5e   : > { %8170 = vmatpush1.bf16.msra.mxu1 %v11359_v11  ;;  %8130 = vmatprep.subr.bf16.mxu0 %v11360_v12  ;;  %v11374_v21 = vld [vmem:[%s13573_s12 + $0x2a4] ss:$16 sps:$4 sm:$0xff]   ;;  %v11377_v23 = vld [vmem:[%s13573_s12 + $0x2a0] ss:$16 sps:$4 sm:$0xff]  }
  0x5f   : > { %8171 = vmatprep.subr.bf16.mxu1 %v11362_v13  ;;  %v11378_v24 = vld [vmem:[%s13573_s12 + $0xc4] ss:$16 sps:$4 sm:$0xff]   ;;  %v11382_v26 = vld [vmem:[%s13573_s12 + $0xc0] ss:$16 sps:$4 sm:$0xff]  }
  0x60   : > { %v11380_v25 = vld [vmem:[%s13573_s12 + $0x2c4] ss:$16 sps:$4 sm:$0xff]   ;;  %v11383_v27 = vld [vmem:[%s13573_s12 + $0x2c0] ss:$16 sps:$4 sm:$0xff]  }
  0x61   : > { %8131 = vmatpush1.bf16.msra.mxu0 %v11364_v14  ;;  %v11384_v28 = vld [vmem:[%s13573_s12 + $0xe4] ss:$16 sps:$4 sm:$0xff]   ;;  %v11388_v30 = vld [vmem:[%s13573_s12 + $0xe0] ss:$16 sps:$4 sm:$0xff]  }
  0x62   : > { %8172 = vmatpush1.bf16.msra.mxu1 %v11365_v15  ;;  %8132 = vmatprep.subr.bf16.mxu0 %v11366_v16  ;;  %v11386_v29 = vld [vmem:[%s13573_s12 + $0x2e4] ss:$16 sps:$4 sm:$0xff]   ;;  %v11389_v31 = vld [vmem:[%s13573_s12 + $0x2e0] ss:$16 sps:$4 sm:$0xff]  }
  0x63   : > { %8173 = vmatprep.subr.bf16.mxu1 %v11368_v17  ;;  %v11390_v32 = vld [vmem:[%s13573_s12 + $0x104] ss:$16 sps:$4 sm:$0xff]   ;;  %v11394_v34 = vld [vmem:[%s13573_s12 + $0x100] ss:$16 sps:$4 sm:$0xff]  }
  0x64   : > { %v11392_v33 = vld [vmem:[%s13573_s12 + $0x304] ss:$16 sps:$4 sm:$0xff]   ;;  %v11395_v35 = vld [vmem:[%s13573_s12 + $0x300] ss:$16 sps:$4 sm:$0xff]  }
  0x65   : > { %8133 = vmatpush1.bf16.msra.mxu0 %v11370_v18  ;;  %v11396_v36 = vld [vmem:[%s13573_s12 + $0x124] ss:$16 sps:$4 sm:$0xff]   ;;  %v11400_v38 = vld [vmem:[%s13573_s12 + $0x120] ss:$16 sps:$4 sm:$0xff]  }
  0x66   : > { %8174 = vmatpush1.bf16.msra.mxu1 %v11371_v19  ;;  %8134 = vmatprep.subr.bf16.mxu0 %v11372_v20  ;;  %v11398_v37 = vld [vmem:[%s13573_s12 + $0x324] ss:$16 sps:$4 sm:$0xff]   ;;  %v11401_v39 = vld [vmem:[%s13573_s12 + $0x320] ss:$16 sps:$4 sm:$0xff]  }
  0x67   : > { %8175 = vmatprep.subr.bf16.mxu1 %v11374_v21  ;;  %v11402_v40 = vld [vmem:[%s13573_s12 + $0x144] ss:$16 sps:$4 sm:$0xff]   ;;  %v11406_v42 = vld [vmem:[%s13573_s12 + $0x140] ss:$16 sps:$4 sm:$0xff]  }
  0x68   : > { %v11404_v41 = vld [vmem:[%s13573_s12 + $0x344] ss:$16 sps:$4 sm:$0xff]   ;;  %v11407_v43 = vld [vmem:[%s13573_s12 + $0x340] ss:$16 sps:$4 sm:$0xff]  }
  0x69   : > { %8135 = vmatpush1.bf16.msra.mxu0 %v11376_v22  ;;  %v11408_v44 = vld [vmem:[%s13573_s12 + $0x164] ss:$16 sps:$4 sm:$0xff]   ;;  %v11412_v49 = vld [vmem:[%s13573_s12 + $0x160] ss:$16 sps:$4 sm:$0xff]  }
  0x6a   : > { %8176 = vmatpush1.bf16.msra.mxu1 %v11377_v23  ;;  %8136 = vmatprep.subr.bf16.mxu0 %v11378_v24  ;;  %v11410_v45 = vld [vmem:[%s13573_s12 + $0x364] ss:$16 sps:$4 sm:$0xff]   ;;  %v11413_v50 = vld [vmem:[%s13573_s12 + $0x360] ss:$16 sps:$4 sm:$0xff]  }
  0x6b   : > { %8177 = vmatprep.subr.bf16.mxu1 %v11380_v25  ;;  %v284_v46 = vld [vmem:[%s15329_s0] sm:$0xff] }
  0x6c   : > { %v13634_v47 = vcombine.high %v284_v46, %v284_v46  ;;  %v11414_v52 = vld [vmem:[%s13573_s12 + $0x184] ss:$16 sps:$4 sm:$0xff]   ;;  %v11418_v54 = vld [vmem:[%s13573_s12 + $0x180] ss:$16 sps:$4 sm:$0xff]   ;;  %v13663_v6 = vcombine.low %v284_v46, %v284_v46 }
  0x6d   : > { %8137 = vmatpush1.bf16.msra.mxu0 %v11382_v26  ;;  %v11416_v53 = vld [vmem:[%s13573_s12 + $0x384] ss:$16 sps:$4 sm:$0xff]   ;;  %v11419_v55 = vld [vmem:[%s13573_s12 + $0x380] ss:$16 sps:$4 sm:$0xff]  }
  0x6e   : > { %8178 = vmatpush1.bf16.msra.mxu1 %v11383_v27  ;;  %8138 = vmatprep.subr.bf16.mxu0 %v11384_v28  ;;  %v11420_v56 = vld [vmem:[%s13573_s12 + $0x1a4] ss:$16 sps:$4 sm:$0xff]   ;;  %v11424_v58 = vld [vmem:[%s13573_s12 + $0x1a0] ss:$16 sps:$4 sm:$0xff]  }
  0x6f   : > { %8179 = vmatprep.subr.bf16.mxu1 %v11386_v29  ;;  %8156 = vmatprep.mubr.bf16.mxu0 %v13634_v47  ;;  %v11422_v57 = vld [vmem:[%s13573_s12 + $0x3a4] ss:$16 sps:$4 sm:$0xff]   ;;  %v11425_v59 = vld [vmem:[%s13573_s12 + $0x3a0] ss:$16 sps:$4 sm:$0xff]  }
  0x70   : > { %v11426_v60 = vld [vmem:[%s13573_s12 + $0x1c4] ss:$16 sps:$4 sm:$0xff]   ;;  %v11430_v62 = vld [vmem:[%s13573_s12 + $0x1c0] ss:$16 sps:$4 sm:$0xff]  }
  0x71   : > { %8139 = vmatpush1.bf16.msra.mxu0 %v11388_v30  ;;  %v11428_v61 = vld [vmem:[%s13573_s12 + $0x3c4] ss:$16 sps:$4 sm:$0xff]   ;;  %v11431_v63 = vld [vmem:[%s13573_s12 + $0x3c0] ss:$16 sps:$4 sm:$0xff]  }
  0x72   : > { %8180 = vmatpush1.bf16.msra.mxu1 %v11389_v31  ;;  %8140 = vmatprep.subr.bf16.mxu0 %v11390_v32  ;;  %v11432_v0 = vld [vmem:[%s13573_s12 + $0x1e4] ss:$16 sps:$4 sm:$0xff]   ;;  %v11436_v2 = vld [vmem:[%s13573_s12 + $0x1e0] ss:$16 sps:$4 sm:$0xff]  }
  0x73   : > { %8181 = vmatprep.subr.bf16.mxu1 %v11392_v33  ;;  %v11434_v1 = vld [vmem:[%s13573_s12 + $0x3e4] ss:$16 sps:$4 sm:$0xff]   ;;  %v11437_v3 = vld [vmem:[%s13573_s12 + $0x3e0] ss:$16 sps:$4 sm:$0xff]   ;;  %v13701_v33 = vld [vmem:[%s15329_s0 + $0x18] sm:$0xff] }
  0x74   : > { %v11444_v4 = vld [vmem:[%s13573_s12 + $0x404] ss:$16 sps:$4 sm:$0xff]   ;;  %v11442_v8 = vld [vmem:[%s13573_s12 + $0x400] ss:$16 sps:$4 sm:$0xff]  }
  0x75   : > { %8141 = vmatpush1.bf16.msra.mxu0 %v11394_v34  ;;  %v11447_v5 = vld [vmem:[%s13573_s12 + $0x604] ss:$16 sps:$4 sm:$0xff]   ;;  %v11445_v9 = vld [vmem:[%s13573_s12 + $0x600] ss:$16 sps:$4 sm:$0xff]  }
  0x76   : > { %8182 = vmatpush1.bf16.msra.mxu1 %v11395_v35  ;;  %8142 = vmatprep.subr.bf16.mxu0 %v11396_v36  ;;  %v11450_v10 = vld [vmem:[%s13573_s12 + $0x424] ss:$16 sps:$4 sm:$0xff]   ;;  %v11448_v12 = vld [vmem:[%s13573_s12 + $0x420] ss:$16 sps:$4 sm:$0xff]  }
  0x77   : > { %8183 = vmatprep.subr.bf16.mxu1 %v11398_v37  ;;  %v11453_v11 = vld [vmem:[%s13573_s12 + $0x624] ss:$16 sps:$4 sm:$0xff]   ;;  %v11451_v13 = vld [vmem:[%s13573_s12 + $0x620] ss:$16 sps:$4 sm:$0xff]   ;;  %v13711_v37 = vcombine.high %v13701_v33, %v13701_v33 }
  0x78   : > { %v11456_v14 = vld [vmem:[%s13573_s12 + $0x444] ss:$16 sps:$4 sm:$0xff]   ;;  %v11454_v16 = vld [vmem:[%s13573_s12 + $0x440] ss:$16 sps:$4 sm:$0xff]  }
  0x79   : > { %8143 = vmatpush1.bf16.msra.mxu0 %v11400_v38  ;;  %v11459_v15 = vld [vmem:[%s13573_s12 + $0x644] ss:$16 sps:$4 sm:$0xff]   ;;  %v11457_v17 = vld [vmem:[%s13573_s12 + $0x640] ss:$16 sps:$4 sm:$0xff]  }
  0x7a   : > { %8184 = vmatpush1.bf16.msra.mxu1 %v11401_v39  ;;  %8144 = vmatprep.subr.bf16.mxu0 %v11402_v40  ;;  %v11462_v18 = vld [vmem:[%s13573_s12 + $0x464] ss:$16 sps:$4 sm:$0xff]   ;;  %v11460_v20 = vld [vmem:[%s13573_s12 + $0x460] ss:$16 sps:$4 sm:$0xff]  }
  0x7b   : > { %8185 = vmatprep.subr.bf16.mxu1 %v11404_v41  ;;  %v11465_v19 = vld [vmem:[%s13573_s12 + $0x664] ss:$16 sps:$4 sm:$0xff]   ;;  %v11463_v21 = vld [vmem:[%s13573_s12 + $0x660] ss:$16 sps:$4 sm:$0xff]  }
  0x7c   : > { %v11468_v22 = vld [vmem:[%s13573_s12 + $0x484] ss:$16 sps:$4 sm:$0xff]   ;;  %v11466_v24 = vld [vmem:[%s13573_s12 + $0x480] ss:$16 sps:$4 sm:$0xff]  }
  0x7d   : > { %8145 = vmatpush1.bf16.msra.mxu0 %v11406_v42  ;;  %v11471_v23 = vld [vmem:[%s13573_s12 + $0x684] ss:$16 sps:$4 sm:$0xff]   ;;  %v11469_v25 = vld [vmem:[%s13573_s12 + $0x680] ss:$16 sps:$4 sm:$0xff]  }
  0x7e   : > { %8186 = vmatpush1.bf16.msra.mxu1 %v11407_v43  ;;  %8146 = vmatprep.subr.bf16.mxu0 %v11408_v44  ;;  %v11474_v26 = vld [vmem:[%s13573_s12 + $0x4a4] ss:$16 sps:$4 sm:$0xff]   ;;  %v11472_v28 = vld [vmem:[%s13573_s12 + $0x4a0] ss:$16 sps:$4 sm:$0xff]  }
  0x7f   : > { %8187 = vmatprep.subr.bf16.mxu1 %v11410_v45  ;;  %v11477_v27 = vld [vmem:[%s13573_s12 + $0x6a4] ss:$16 sps:$4 sm:$0xff]   ;;  %v11475_v29 = vld [vmem:[%s13573_s12 + $0x6a0] ss:$16 sps:$4 sm:$0xff]  }
  0x80   : > { %v11480_v30 = vld [vmem:[%s13573_s12 + $0x4c4] ss:$16 sps:$4 sm:$0xff]   ;;  %v11478_v34 = vld [vmem:[%s13573_s12 + $0x4c0] ss:$16 sps:$4 sm:$0xff]  }
  0x81   : > { %8147 = vmatpush1.bf16.msra.mxu0 %v11412_v49  ;;  %v11483_v31 = vld [vmem:[%s13573_s12 + $0x6c4] ss:$16 sps:$4 sm:$0xff]   ;;  %v11481_v35 = vld [vmem:[%s13573_s12 + $0x6c0] ss:$16 sps:$4 sm:$0xff]  }
  0x82   : > { %8188 = vmatpush1.bf16.msra.mxu1 %v11413_v50  ;;  %8148 = vmatprep.subr.bf16.mxu0 %v11414_v52  ;;  %v13696_v32 = vld [vmem:[%s15329_s0 + $0x10] sm:$0xff] }
  0x83   : > { %8189 = vmatprep.subr.bf16.mxu1 %v11416_v53  ;;  %v13707_v36 = vcombine.high %v13696_v32, %v13696_v32  ;;  %v11486_v38 = vld [vmem:[%s13573_s12 + $0x4e4] ss:$16 sps:$4 sm:$0xff]   ;;  %v11484_v40 = vld [vmem:[%s13573_s12 + $0x4e0] ss:$16 sps:$4 sm:$0xff]  }
  0x84   : > { %v11489_v39 = vld [vmem:[%s13573_s12 + $0x6e4] ss:$16 sps:$4 sm:$0xff]   ;;  %v11487_v41 = vld [vmem:[%s13573_s12 + $0x6e0] ss:$16 sps:$4 sm:$0xff]  }
  0x85   : > { %8149 = vmatpush1.bf16.msra.mxu0 %v11418_v54  ;;  %v11492_v42 = vld [vmem:[%s13573_s12 + $0x504] ss:$16 sps:$4 sm:$0xff]   ;;  %v11490_v44 = vld [vmem:[%s13573_s12 + $0x500] ss:$16 sps:$4 sm:$0xff]  }
  0x86   : > { %8190 = vmatpush1.bf16.msra.mxu1 %v11419_v55  ;;  %8150 = vmatprep.subr.bf16.mxu0 %v11420_v56  ;;  %v11495_v43 = vld [vmem:[%s13573_s12 + $0x704] ss:$16 sps:$4 sm:$0xff]   ;;  %v11493_v45 = vld [vmem:[%s13573_s12 + $0x700] ss:$16 sps:$4 sm:$0xff]  }
  0x87   : > { %8191 = vmatprep.subr.bf16.mxu1 %v11422_v57  ;;  %v11498_v46 = vld [vmem:[%s13573_s12 + $0x524] ss:$16 sps:$4 sm:$0xff]   ;;  %v11496_v49 = vld [vmem:[%s13573_s12 + $0x520] ss:$16 sps:$4 sm:$0xff]  }
  0x88   : > { %v11501_v48 = vld [vmem:[%s13573_s12 + $0x724] ss:$16 sps:$4 sm:$0xff]   ;;  %v11499_v50 = vld [vmem:[%s13573_s12 + $0x720] ss:$16 sps:$4 sm:$0xff]  }
  0x89   : > { %8151 = vmatpush1.bf16.msra.mxu0 %v11424_v58  ;;  %v11504_v52 = vld [vmem:[%s13573_s12 + $0x544] ss:$16 sps:$4 sm:$0xff]   ;;  %v11502_v54 = vld [vmem:[%s13573_s12 + $0x540] ss:$16 sps:$4 sm:$0xff]  }
  0x8a   : > { %8192 = vmatpush1.bf16.msra.mxu1 %v11425_v59  ;;  %8152 = vmatprep.subr.bf16.mxu0 %v11426_v60  ;;  %v11507_v53 = vld [vmem:[%s13573_s12 + $0x744] ss:$16 sps:$4 sm:$0xff]   ;;  %v11505_v55 = vld [vmem:[%s13573_s12 + $0x740] ss:$16 sps:$4 sm:$0xff]  }
  0x8b   : > { %8193 = vmatprep.subr.bf16.mxu1 %v11428_v61  ;;  %v11510_v56 = vld [vmem:[%s13573_s12 + $0x564] ss:$16 sps:$4 sm:$0xff]   ;;  %v11508_v58 = vld [vmem:[%s13573_s12 + $0x560] ss:$16 sps:$4 sm:$0xff]  }
  0x8c   : > { %v11513_v57 = vld [vmem:[%s13573_s12 + $0x764] ss:$16 sps:$4 sm:$0xff]   ;;  %v11511_v59 = vld [vmem:[%s13573_s12 + $0x760] ss:$16 sps:$4 sm:$0xff]  }
  0x8d   : > { %8153 = vmatpush1.bf16.msra.mxu0 %v11430_v62  ;;  %v11516_v60 = vld [vmem:[%s13573_s12 + $0x584] ss:$16 sps:$4 sm:$0xff]   ;;  %v11514_v62 = vld [vmem:[%s13573_s12 + $0x580] ss:$16 sps:$4 sm:$0xff]  }
  0x8e   : > { %8194 = vmatpush1.bf16.msra.mxu1 %v11431_v63  ;;  %8154 = vmatprep.subr.bf16.mxu0 %v11432_v0  ;;  %v11519_v61 = vld [vmem:[%s13573_s12 + $0x784] ss:$16 sps:$4 sm:$0xff]   ;;  %v11517_v63 = vld [vmem:[%s13573_s12 + $0x780] ss:$16 sps:$4 sm:$0xff]  }
  0x8f   : > { %8195 = vmatprep.subr.bf16.mxu1 %v11434_v1  ;;  %v11522_v0 = vld [vmem:[%s13573_s12 + $0x5a4] ss:$16 sps:$4 sm:$0xff]  }
  0x90   : > { %v11525_v1 = vld [vmem:[%s13573_s12 + $0x7a4] ss:$16 sps:$4 sm:$0xff]  }
  0x91   : > { %8155 = vmatpush1.bf16.msra.mxu0 %v11436_v2  ;;  %v11520_v2 = vld [vmem:[%s13573_s12 + $0x5a0] ss:$16 sps:$4 sm:$0xff]  }
  0x92   : > { %8196 = vmatpush1.bf16.msra.mxu1 %v11437_v3  ;;  %8206 = vmatprep.subr.bf16.mxu0 %v11444_v4  ;;  %v11523_v3 = vld [vmem:[%s13573_s12 + $0x7a0] ss:$16 sps:$4 sm:$0xff]   ;;  %v11528_v4 = vld [vmem:[%s13573_s12 + $0x5c4] ss:$16 sps:$4 sm:$0xff]  }
  0x93   : > { %8247 = vmatprep.subr.bf16.mxu1 %v11447_v5  ;;  %v11531_v5 = vld [vmem:[%s13573_s12 + $0x7c4] ss:$16 sps:$4 sm:$0xff]  }
  0x94   : > { %8157 = vmatmul.mubr.bf16.vlgmr.msra.gmra.mrb[0].mxu0 %v13663_v6 }
  0x95   : > { %8198 = vmatmul.mubr.bf16.vlgmr.msra.gmra.mrb[0].mxu1 %v13665_v7  ;;  %8207 = vmatpush1.bf16.msra.mxu0 %v11442_v8  ;;  %v11526_v8 = vld [vmem:[%s13573_s12 + $0x5c0] ss:$16 sps:$4 sm:$0xff]  }
  0x96   : > { %8248 = vmatpush1.bf16.msra.mxu1 %v11445_v9  ;;  %8208 = vmatprep.subr.bf16.mxu0 %v11450_v10  ;;  %v11529_v9 = vld [vmem:[%s13573_s12 + $0x7c0] ss:$16 sps:$4 sm:$0xff]   ;;  %v11534_v10 = vld [vmem:[%s13573_s12 + $0x5e4] ss:$16 sps:$4 sm:$0xff]  }
  0x97   : > { %8249 = vmatprep.subr.bf16.mxu1 %v11453_v11  ;;  %8238 = vmatprep.mubr.bf16.mxu0 %v13707_v36  ;;  %v11537_v11 = vld [vmem:[%s13573_s12 + $0x7e4] ss:$16 sps:$4 sm:$0xff]  }
  0x98   : > { %8279 = vmatprep.mubr.bf16.mxu1 %v13711_v37 }
  0x99   : > { %8209 = vmatpush1.bf16.msra.mxu0 %v11448_v12  ;;  %v11532_v12 = vld [vmem:[%s13573_s12 + $0x5e0] ss:$16 sps:$4 sm:$0xff]  }
  0x9a   : > { %8250 = vmatpush1.bf16.msra.mxu1 %v11451_v13  ;;  %8210 = vmatprep.subr.bf16.mxu0 %v11456_v14  ;;  %v11535_v13 = vld [vmem:[%s13573_s12 + $0x7e0] ss:$16 sps:$4 sm:$0xff]   ;;  %v11544_v14 = vld [vmem:[%s13573_s12 + $0x804] ss:$16 sps:$4 sm:$0xff]  }
  0x9b   : > { %8251 = vmatprep.subr.bf16.mxu1 %v11459_v15  ;;  %v11547_v15 = vld [vmem:[%s13573_s12 + $0xa04] ss:$16 sps:$4 sm:$0xff]  }
  0x9d   : > { %8211 = vmatpush1.bf16.msra.mxu0 %v11454_v16  ;;  %v13755_v16 = vcombine.low %v13696_v32, %v13696_v32  ;;  %v11562_v32 = vld [vmem:[%s13573_s12 + $0x864] ss:$16 sps:$4 sm:$0xff]  }
  0x9e   : > { %8252 = vmatpush1.bf16.msra.mxu1 %v11457_v17  ;;  %8212 = vmatprep.subr.bf16.mxu0 %v11462_v18  ;;  %v13759_v17 = vcombine.low %v13701_v33, %v13701_v33  ;;  %v11542_v18 = vld [vmem:[%s13573_s12 + $0x800] ss:$16 sps:$4 sm:$0xff]   ;;  %v11565_v33 = vld [vmem:[%s13573_s12 + $0xa64] ss:$16 sps:$4 sm:$0xff]  }
  0x9f   : > { %8253 = vmatprep.subr.bf16.mxu1 %v11465_v19  ;;  %v11545_v19 = vld [vmem:[%s13573_s12 + $0xa00] ss:$16 sps:$4 sm:$0xff]  }
  0xa1   : > { %8213 = vmatpush1.bf16.msra.mxu0 %v11460_v20  ;;  %v11550_v20 = vld [vmem:[%s13573_s12 + $0x824] ss:$16 sps:$4 sm:$0xff]  }
  0xa2   : > { %8254 = vmatpush1.bf16.msra.mxu1 %v11463_v21  ;;  %8214 = vmatprep.subr.bf16.mxu0 %v11468_v22  ;;  %v11553_v21 = vld [vmem:[%s13573_s12 + $0xa24] ss:$16 sps:$4 sm:$0xff]  }
  0xa3   : > { %8255 = vmatprep.subr.bf16.mxu1 %v11471_v23  ;;  %v13768_v22 = vld [vmem:[%s15329_s0 + $0x20] sm:$0xff]  ;;  %v13773_v23 = vld [vmem:[%s15329_s0 + $0x28] sm:$0xff] }
  0xa5   : > { %8215 = vmatpush1.bf16.msra.mxu0 %v11466_v24  ;;  %v13777_v24 = vcombine.high %v13768_v22, %v13768_v22 }
  0xa6   : > { %8256 = vmatpush1.bf16.msra.mxu1 %v11469_v25  ;;  %8216 = vmatprep.subr.bf16.mxu0 %v11474_v26  ;;  %v13781_v25 = vcombine.high %v13773_v23, %v13773_v23  ;;  %v11548_v26 = vld [vmem:[%s13573_s12 + $0x820] ss:$16 sps:$4 sm:$0xff]  }
  0xa7   : > { %8257 = vmatprep.subr.bf16.mxu1 %v11477_v27  ;;  %v11551_v27 = vld [vmem:[%s13573_s12 + $0xa20] ss:$16 sps:$4 sm:$0xff]  }
  0xa9   : > { %8217 = vmatpush1.bf16.msra.mxu0 %v11472_v28  ;;  %v11556_v28 = vld [vmem:[%s13573_s12 + $0x844] ss:$16 sps:$4 sm:$0xff]  }
  0xaa   : > { %8258 = vmatpush1.bf16.msra.mxu1 %v11475_v29  ;;  %8218 = vmatprep.subr.bf16.mxu0 %v11480_v30  ;;  %v11559_v29 = vld [vmem:[%s13573_s12 + $0xa44] ss:$16 sps:$4 sm:$0xff]   ;;  %v11554_v30 = vld [vmem:[%s13573_s12 + $0x840] ss:$16 sps:$4 sm:$0xff]  }
  0xab   : > { %8259 = vmatprep.subr.bf16.mxu1 %v11483_v31  ;;  %v11557_v31 = vld [vmem:[%s13573_s12 + $0xa40] ss:$16 sps:$4 sm:$0xff]  }
  0xad   : > { %8219 = vmatpush1.bf16.msra.mxu0 %v11478_v34  ;;  %v11560_v34 = vld [vmem:[%s13573_s12 + $0x860] ss:$16 sps:$4 sm:$0xff]  }
  0xae   : > { %8260 = vmatpush1.bf16.msra.mxu1 %v11481_v35  ;;  %8220 = vmatprep.subr.bf16.mxu0 %v11486_v38  ;;  %v11563_v35 = vld [vmem:[%s13573_s12 + $0xa60] ss:$16 sps:$4 sm:$0xff]   ;;  %v11568_v38 = vld [vmem:[%s13573_s12 + $0x884] ss:$16 sps:$4 sm:$0xff]  }
  0xaf   : > { %8261 = vmatprep.subr.bf16.mxu1 %v11489_v39  ;;  %v11571_v39 = vld [vmem:[%s13573_s12 + $0xa84] ss:$16 sps:$4 sm:$0xff]  }
  0xb1   : > { %8221 = vmatpush1.bf16.msra.mxu0 %v11484_v40  ;;  %v11566_v40 = vld [vmem:[%s13573_s12 + $0x880] ss:$16 sps:$4 sm:$0xff]  }
  0xb2   : > { %8262 = vmatpush1.bf16.msra.mxu1 %v11487_v41  ;;  %8222 = vmatprep.subr.bf16.mxu0 %v11492_v42  ;;  %v11569_v41 = vld [vmem:[%s13573_s12 + $0xa80] ss:$16 sps:$4 sm:$0xff]   ;;  %v11574_v42 = vld [vmem:[%s13573_s12 + $0x8a4] ss:$16 sps:$4 sm:$0xff]  }
  0xb3   : > { %8263 = vmatprep.subr.bf16.mxu1 %v11495_v43  ;;  %v11577_v43 = vld [vmem:[%s13573_s12 + $0xaa4] ss:$16 sps:$4 sm:$0xff]  }
  0xb5   : > { %8223 = vmatpush1.bf16.msra.mxu0 %v11490_v44  ;;  %v11572_v44 = vld [vmem:[%s13573_s12 + $0x8a0] ss:$16 sps:$4 sm:$0xff]  }
  0xb6   : > { %8264 = vmatpush1.bf16.msra.mxu1 %v11493_v45  ;;  %8224 = vmatprep.subr.bf16.mxu0 %v11498_v46  ;;  %v11575_v45 = vld [vmem:[%s13573_s12 + $0xaa0] ss:$16 sps:$4 sm:$0xff]   ;;  %v11580_v46 = vld [vmem:[%s13573_s12 + $0x8c4] ss:$16 sps:$4 sm:$0xff]  }
  0xb7   : > { %8265 = vmatprep.subr.bf16.mxu1 %v11501_v48  ;;  %v11583_v48 = vld [vmem:[%s13573_s12 + $0xac4] ss:$16 sps:$4 sm:$0xff]  }
  0xb9   : > { %8225 = vmatpush1.bf16.msra.mxu0 %v11496_v49  ;;  %v11578_v49 = vld [vmem:[%s13573_s12 + $0x8c0] ss:$16 sps:$4 sm:$0xff]  }
  0xba   : > { %8266 = vmatpush1.bf16.msra.mxu1 %v11499_v50  ;;  %8226 = vmatprep.subr.bf16.mxu0 %v11504_v52  ;;  %v11581_v50 = vld [vmem:[%s13573_s12 + $0xac0] ss:$16 sps:$4 sm:$0xff]   ;;  %v11586_v52 = vld [vmem:[%s13573_s12 + $0x8e4] ss:$16 sps:$4 sm:$0xff]  }
  0xbb   : > { %8267 = vmatprep.subr.bf16.mxu1 %v11507_v53  ;;  %v11589_v53 = vld [vmem:[%s13573_s12 + $0xae4] ss:$16 sps:$4 sm:$0xff]  }
  0xbd   : > { %8227 = vmatpush1.bf16.msra.mxu0 %v11502_v54  ;;  %v11584_v54 = vld [vmem:[%s13573_s12 + $0x8e0] ss:$16 sps:$4 sm:$0xff]  }
  0xbe   : > { %8268 = vmatpush1.bf16.msra.mxu1 %v11505_v55  ;;  %8228 = vmatprep.subr.bf16.mxu0 %v11510_v56  ;;  %v11587_v55 = vld [vmem:[%s13573_s12 + $0xae0] ss:$16 sps:$4 sm:$0xff]   ;;  %v11592_v56 = vld [vmem:[%s13573_s12 + $0x904] ss:$16 sps:$4 sm:$0xff]  }
  0xbf   : > { %8269 = vmatprep.subr.bf16.mxu1 %v11513_v57  ;;  %v11595_v57 = vld [vmem:[%s13573_s12 + $0xb04] ss:$16 sps:$4 sm:$0xff]  }
  0xc1   : > { %8229 = vmatpush1.bf16.msra.mxu0 %v11508_v58  ;;  %v11590_v58 = vld [vmem:[%s13573_s12 + $0x900] ss:$16 sps:$4 sm:$0xff]  }
  0xc2   : > { %8270 = vmatpush1.bf16.msra.mxu1 %v11511_v59  ;;  %8230 = vmatprep.subr.bf16.mxu0 %v11516_v60  ;;  %v11593_v59 = vld [vmem:[%s13573_s12 + $0xb00] ss:$16 sps:$4 sm:$0xff]   ;;  %v11598_v60 = vld [vmem:[%s13573_s12 + $0x924] ss:$16 sps:$4 sm:$0xff]  }
  0xc3   : > { %8271 = vmatprep.subr.bf16.mxu1 %v11519_v61  ;;  %v11601_v61 = vld [vmem:[%s13573_s12 + $0xb24] ss:$16 sps:$4 sm:$0xff]  }
  0xc5   : > { %8231 = vmatpush1.bf16.msra.mxu0 %v11514_v62  ;;  %v11596_v62 = vld [vmem:[%s13573_s12 + $0x920] ss:$16 sps:$4 sm:$0xff]  }
  0xc6   : > { %8272 = vmatpush1.bf16.msra.mxu1 %v11517_v63  ;;  %8232 = vmatprep.subr.bf16.mxu0 %v11522_v0  ;;  %v11599_v63 = vld [vmem:[%s13573_s12 + $0xb20] ss:$16 sps:$4 sm:$0xff]   ;;  %v11604_v0 = vld [vmem:[%s13573_s12 + $0x944] ss:$16 sps:$4 sm:$0xff]  }
  0xc7   : > { %8273 = vmatprep.subr.bf16.mxu1 %v11525_v1  ;;  %v11607_v1 = vld [vmem:[%s13573_s12 + $0xb44] ss:$16 sps:$4 sm:$0xff]  }
  0xc9   : > { %8233 = vmatpush1.bf16.msra.mxu0 %v11520_v2  ;;  %v11602_v2 = vld [vmem:[%s13573_s12 + $0x940] ss:$16 sps:$4 sm:$0xff]  }
  0xca   : > { %8274 = vmatpush1.bf16.msra.mxu1 %v11523_v3  ;;  %8234 = vmatprep.subr.bf16.mxu0 %v11528_v4  ;;  %v11605_v3 = vld [vmem:[%s13573_s12 + $0xb40] ss:$16 sps:$4 sm:$0xff]   ;;  %v11610_v4 = vld [vmem:[%s13573_s12 + $0x964] ss:$16 sps:$4 sm:$0xff]  }
  0xcb   : > { %8275 = vmatprep.subr.bf16.mxu1 %v11531_v5  ;;  %v11613_v5 = vld [vmem:[%s13573_s12 + $0xb64] ss:$16 sps:$4 sm:$0xff]  }
  0xcd   : > { %8235 = vmatpush1.bf16.msra.mxu0 %v11526_v8  ;;  %v11608_v8 = vld [vmem:[%s13573_s12 + $0x960] ss:$16 sps:$4 sm:$0xff]  }
  0xce   : > { %8276 = vmatpush1.bf16.msra.mxu1 %v11529_v9  ;;  %8236 = vmatprep.subr.bf16.mxu0 %v11534_v10  ;;  %v11611_v9 = vld [vmem:[%s13573_s12 + $0xb60] ss:$16 sps:$4 sm:$0xff]   ;;  %v11616_v10 = vld [vmem:[%s13573_s12 + $0x984] ss:$16 sps:$4 sm:$0xff]  }
  0xcf   : > { %8277 = vmatprep.subr.bf16.mxu1 %v11537_v11  ;;  %v11619_v11 = vld [vmem:[%s13573_s12 + $0xb84] ss:$16 sps:$4 sm:$0xff]  }
  0xd1   : > { %8237 = vmatpush1.bf16.msra.mxu0 %v11532_v12  ;;  %v11614_v12 = vld [vmem:[%s13573_s12 + $0x980] ss:$16 sps:$4 sm:$0xff]  }
  0xd2   : > { %8278 = vmatpush1.bf16.msra.mxu1 %v11535_v13  ;;  %8288 = vmatprep.subr.bf16.mxu0 %v11544_v14  ;;  %v11617_v13 = vld [vmem:[%s13573_s12 + $0xb80] ss:$16 sps:$4 sm:$0xff]   ;;  %v11622_v14 = vld [vmem:[%s13573_s12 + $0x9a4] ss:$16 sps:$4 sm:$0xff]  }
  0xd3   : > { %8329 = vmatprep.subr.bf16.mxu1 %v11547_v15  ;;  %v11625_v15 = vld [vmem:[%s13573_s12 + $0xba4] ss:$16 sps:$4 sm:$0xff]  }
  0xd4   : > { %8239 = vmatmul.mubr.bf16.vlgmr.msra.gmra.mrb[4].mxu0 %v13755_v16 }
  0xd5   : > { %8280 = vmatmul.mubr.bf16.vlgmr.msra.gmra.mrb[4].mxu1 %v13759_v17  ;;  %8289 = vmatpush1.bf16.msra.mxu0 %v11542_v18  ;;  %v11620_v18 = vld [vmem:[%s13573_s12 + $0x9a0] ss:$16 sps:$4 sm:$0xff]  }
  0xd6   : > { %8330 = vmatpush1.bf16.msra.mxu1 %v11545_v19  ;;  %8290 = vmatprep.subr.bf16.mxu0 %v11550_v20  ;;  %v11623_v19 = vld [vmem:[%s13573_s12 + $0xba0] ss:$16 sps:$4 sm:$0xff]   ;;  %v11628_v20 = vld [vmem:[%s13573_s12 + $0x9c4] ss:$16 sps:$4 sm:$0xff]  }
  0xd7   : > { %8331 = vmatprep.subr.bf16.mxu1 %v11553_v21  ;;  %8320 = vmatprep.mubr.bf16.mxu0 %v13777_v24  ;;  %v11631_v21 = vld [vmem:[%s13573_s12 + $0xbc4] ss:$16 sps:$4 sm:$0xff]  }
  0xd8   : > { %8361 = vmatprep.mubr.bf16.mxu1 %v13781_v25 }
  0xd9   : > { %8291 = vmatpush1.bf16.msra.mxu0 %v11548_v26  ;;  %v11626_v26 = vld [vmem:[%s13573_s12 + $0x9c0] ss:$16 sps:$4 sm:$0xff]  }
  0xda   : > { %8332 = vmatpush1.bf16.msra.mxu1 %v11551_v27  ;;  %8292 = vmatprep.subr.bf16.mxu0 %v11556_v28  ;;  %v11629_v27 = vld [vmem:[%s13573_s12 + $0xbc0] ss:$16 sps:$4 sm:$0xff]   ;;  %v11634_v28 = vld [vmem:[%s13573_s12 + $0x9e4] ss:$16 sps:$4 sm:$0xff]  }
  0xdb   : > { %8333 = vmatprep.subr.bf16.mxu1 %v11559_v29  ;;  %v11637_v29 = vld [vmem:[%s13573_s12 + $0xbe4] ss:$16 sps:$4 sm:$0xff]  }
  0xdd   : > { %8293 = vmatpush1.bf16.msra.mxu0 %v11554_v30  ;;  %v11632_v30 = vld [vmem:[%s13573_s12 + $0x9e0] ss:$16 sps:$4 sm:$0xff]  }
  0xde   : > { %8334 = vmatpush1.bf16.msra.mxu1 %v11557_v31  ;;  %8294 = vmatprep.subr.bf16.mxu0 %v11562_v32  ;;  %v11635_v31 = vld [vmem:[%s13573_s12 + $0xbe0] ss:$16 sps:$4 sm:$0xff]   ;;  %v11644_v32 = vld [vmem:[%s13573_s12 + $0xc04] ss:$16 sps:$4 sm:$0xff]  }
  0xdf   : > { %8335 = vmatprep.subr.bf16.mxu1 %v11565_v33  ;;  %v11647_v33 = vld [vmem:[%s13573_s12 + $0xe04] ss:$16 sps:$4 sm:$0xff]  }
  0xe1   : > { %8295 = vmatpush1.bf16.msra.mxu0 %v11560_v34  ;;  %v11642_v34 = vld [vmem:[%s13573_s12 + $0xc00] ss:$16 sps:$4 sm:$0xff]  }
  0xe2   : > { %8336 = vmatpush1.bf16.msra.mxu1 %v11563_v35  ;;  %8296 = vmatprep.subr.bf16.mxu0 %v11568_v38  ;;  %v11645_v35 = vld [vmem:[%s13573_s12 + $0xe00] ss:$16 sps:$4 sm:$0xff]   ;;  %v13851_v38 = vcombine.low %v13768_v22, %v13768_v22  ;;  %v11650_v22 = vld [vmem:[%s13573_s12 + $0xc24] ss:$16 sps:$4 sm:$0xff]  }
  0xe3   : > { %8337 = vmatprep.subr.bf16.mxu1 %v11571_v39  ;;  %v13855_v39 = vcombine.low %v13773_v23, %v13773_v23  ;;  %v11653_v23 = vld [vmem:[%s13573_s12 + $0xe24] ss:$16 sps:$4 sm:$0xff]  }
  0xe5   : > { %8297 = vmatpush1.bf16.msra.mxu0 %v11566_v40  ;;  %v13860_v40 = vld [vmem:[%s15329_s0 + $0x30] sm:$0xff] }
  0xe6   : > { %8338 = vmatpush1.bf16.msra.mxu1 %v11569_v41  ;;  %8298 = vmatprep.subr.bf16.mxu0 %v11574_v42  ;;  %v13865_v41 = vld [vmem:[%s15329_s0 + $0x38] sm:$0xff]  ;;  %v13871_v42 = vcombine.high %v13860_v40, %v13860_v40 }
  0xe7   : > { %8339 = vmatprep.subr.bf16.mxu1 %v11577_v43  ;;  %v13875_v43 = vcombine.high %v13865_v41, %v13865_v41 }
  0xe9   : > { %8299 = vmatpush1.bf16.msra.mxu0 %v11572_v44  ;;  %v11648_v44 = vld [vmem:[%s13573_s12 + $0xc20] ss:$16 sps:$4 sm:$0xff]  }
  0xea   : > { %8340 = vmatpush1.bf16.msra.mxu1 %v11575_v45  ;;  %8300 = vmatprep.subr.bf16.mxu0 %v11580_v46  ;;  %v11651_v45 = vld [vmem:[%s13573_s12 + $0xe20] ss:$16 sps:$4 sm:$0xff]   ;;  %v11656_v46 = vld [vmem:[%s13573_s12 + $0xc44] ss:$16 sps:$4 sm:$0xff]  }
  0xeb   : > { %8341 = vmatprep.subr.bf16.mxu1 %v11583_v48  ;;  %v11659_v48 = vld [vmem:[%s13573_s12 + $0xe44] ss:$16 sps:$4 sm:$0xff]  }
  0xed   : > { %8301 = vmatpush1.bf16.msra.mxu0 %v11578_v49  ;;  %v11654_v49 = vld [vmem:[%s13573_s12 + $0xc40] ss:$16 sps:$4 sm:$0xff]  }
  0xee   : > { %8342 = vmatpush1.bf16.msra.mxu1 %v11581_v50  ;;  %8302 = vmatprep.subr.bf16.mxu0 %v11586_v52  ;;  %v11657_v50 = vld [vmem:[%s13573_s12 + $0xe40] ss:$16 sps:$4 sm:$0xff]   ;;  %v11662_v52 = vld [vmem:[%s13573_s12 + $0xc64] ss:$16 sps:$4 sm:$0xff]  }
  0xef   : > { %8343 = vmatprep.subr.bf16.mxu1 %v11589_v53  ;;  %v11665_v53 = vld [vmem:[%s13573_s12 + $0xe64] ss:$16 sps:$4 sm:$0xff]  }
  0xf1   : > { %8303 = vmatpush1.bf16.msra.mxu0 %v11584_v54  ;;  %v11660_v54 = vld [vmem:[%s13573_s12 + $0xc60] ss:$16 sps:$4 sm:$0xff]  }
  0xf2   : > { %8344 = vmatpush1.bf16.msra.mxu1 %v11587_v55  ;;  %8304 = vmatprep.subr.bf16.mxu0 %v11592_v56  ;;  %v11663_v55 = vld [vmem:[%s13573_s12 + $0xe60] ss:$16 sps:$4 sm:$0xff]   ;;  %v11668_v56 = vld [vmem:[%s13573_s12 + $0xc84] ss:$16 sps:$4 sm:$0xff]  }
  0xf3   : > { %8345 = vmatprep.subr.bf16.mxu1 %v11595_v57  ;;  %v11671_v57 = vld [vmem:[%s13573_s12 + $0xe84] ss:$16 sps:$4 sm:$0xff]  }
  0xf5   : > { %8305 = vmatpush1.bf16.msra.mxu0 %v11590_v58  ;;  %v11666_v58 = vld [vmem:[%s13573_s12 + $0xc80] ss:$16 sps:$4 sm:$0xff]  }
  0xf6   : > { %8346 = vmatpush1.bf16.msra.mxu1 %v11593_v59  ;;  %8306 = vmatprep.subr.bf16.mxu0 %v11598_v60  ;;  %v11669_v59 = vld [vmem:[%s13573_s12 + $0xe80] ss:$16 sps:$4 sm:$0xff]   ;;  %v11674_v60 = vld [vmem:[%s13573_s12 + $0xca4] ss:$16 sps:$4 sm:$0xff]  }
  0xf7   : > { %8347 = vmatprep.subr.bf16.mxu1 %v11601_v61  ;;  %v11677_v61 = vld [vmem:[%s13573_s12 + $0xea4] ss:$16 sps:$4 sm:$0xff]  }
  0xf9   : > { %8307 = vmatpush1.bf16.msra.mxu0 %v11596_v62  ;;  %v11672_v62 = vld [vmem:[%s13573_s12 + $0xca0] ss:$16 sps:$4 sm:$0xff]  }
  0xfa   : > { %8348 = vmatpush1.bf16.msra.mxu1 %v11599_v63  ;;  %8308 = vmatprep.subr.bf16.mxu0 %v11604_v0  ;;  %v11675_v63 = vld [vmem:[%s13573_s12 + $0xea0] ss:$16 sps:$4 sm:$0xff]   ;;  %v11680_v0 = vld [vmem:[%s13573_s12 + $0xcc4] ss:$16 sps:$4 sm:$0xff]  }
  0xfb   : > { %8349 = vmatprep.subr.bf16.mxu1 %v11607_v1  ;;  %v11683_v1 = vld [vmem:[%s13573_s12 + $0xec4] ss:$16 sps:$4 sm:$0xff]  }
  0xfd   : > { %8309 = vmatpush1.bf16.msra.mxu0 %v11602_v2  ;;  %v11678_v2 = vld [vmem:[%s13573_s12 + $0xcc0] ss:$16 sps:$4 sm:$0xff]  }
  0xfe   : > { %8350 = vmatpush1.bf16.msra.mxu1 %v11605_v3  ;;  %8310 = vmatprep.subr.bf16.mxu0 %v11610_v4  ;;  %v11681_v3 = vld [vmem:[%s13573_s12 + $0xec0] ss:$16 sps:$4 sm:$0xff]   ;;  %v11686_v4 = vld [vmem:[%s13573_s12 + $0xce4] ss:$16 sps:$4 sm:$0xff]  }
  0xff   : > { %8351 = vmatprep.subr.bf16.mxu1 %v11613_v5  ;;  %v11689_v5 = vld [vmem:[%s13573_s12 + $0xee4] ss:$16 sps:$4 sm:$0xff]  }
 0x101   : > { %8311 = vmatpush1.bf16.msra.mxu0 %v11608_v8  ;;  %v11684_v8 = vld [vmem:[%s13573_s12 + $0xce0] ss:$16 sps:$4 sm:$0xff]  }
 0x102   : > { %8352 = vmatpush1.bf16.msra.mxu1 %v11611_v9  ;;  %8312 = vmatprep.subr.bf16.mxu0 %v11616_v10  ;;  %v11687_v9 = vld [vmem:[%s13573_s12 + $0xee0] ss:$16 sps:$4 sm:$0xff]   ;;  %v11692_v10 = vld [vmem:[%s13573_s12 + $0xd04] ss:$16 sps:$4 sm:$0xff]  }
 0x103   : > { %8353 = vmatprep.subr.bf16.mxu1 %v11619_v11  ;;  %v11695_v11 = vld [vmem:[%s13573_s12 + $0xf04] ss:$16 sps:$4 sm:$0xff]  }
 0x105   : > { %8313 = vmatpush1.bf16.msra.mxu0 %v11614_v12  ;;  %v11690_v12 = vld [vmem:[%s13573_s12 + $0xd00] ss:$16 sps:$4 sm:$0xff]  }
 0x106   : > { %8354 = vmatpush1.bf16.msra.mxu1 %v11617_v13  ;;  %8314 = vmatprep.subr.bf16.mxu0 %v11622_v14  ;;  %v11693_v13 = vld [vmem:[%s13573_s12 + $0xf00] ss:$16 sps:$4 sm:$0xff]   ;;  %v11698_v14 = vld [vmem:[%s13573_s12 + $0xd24] ss:$16 sps:$4 sm:$0xff]  }
 0x107   : > { %8355 = vmatprep.subr.bf16.mxu1 %v11625_v15  ;;  %v11701_v15 = vld [vmem:[%s13573_s12 + $0xf24] ss:$16 sps:$4 sm:$0xff]  }
 0x109   : > { %8315 = vmatpush1.bf16.msra.mxu0 %v11620_v18  ;;  %v11696_v18 = vld [vmem:[%s13573_s12 + $0xd20] ss:$16 sps:$4 sm:$0xff]  }
 0x10a   : > { %8356 = vmatpush1.bf16.msra.mxu1 %v11623_v19  ;;  %8316 = vmatprep.subr.bf16.mxu0 %v11628_v20  ;;  %v11699_v19 = vld [vmem:[%s13573_s12 + $0xf20] ss:$16 sps:$4 sm:$0xff]   ;;  %v11704_v20 = vld [vmem:[%s13573_s12 + $0xd44] ss:$16 sps:$4 sm:$0xff]  }
 0x10b   : > { %8357 = vmatprep.subr.bf16.mxu1 %v11631_v21  ;;  %v11707_v21 = vld [vmem:[%s13573_s12 + $0xf44] ss:$16 sps:$4 sm:$0xff]  }
 0x10d   : > { %8317 = vmatpush1.bf16.msra.mxu0 %v11626_v26  ;;  %v11702_v26 = vld [vmem:[%s13573_s12 + $0xd40] ss:$16 sps:$4 sm:$0xff]  }
 0x10e   : > { %8358 = vmatpush1.bf16.msra.mxu1 %v11629_v27  ;;  %8318 = vmatprep.subr.bf16.mxu0 %v11634_v28  ;;  %v11705_v27 = vld [vmem:[%s13573_s12 + $0xf40] ss:$16 sps:$4 sm:$0xff]   ;;  %v11710_v28 = vld [vmem:[%s13573_s12 + $0xd64] ss:$16 sps:$4 sm:$0xff]  }
 0x10f   : > { %8359 = vmatprep.subr.bf16.mxu1 %v11637_v29  ;;  %v11713_v29 = vld [vmem:[%s13573_s12 + $0xf64] ss:$16 sps:$4 sm:$0xff]  }
 0x111   : > { %8319 = vmatpush1.bf16.msra.mxu0 %v11632_v30  ;;  %v11708_v30 = vld [vmem:[%s13573_s12 + $0xd60] ss:$16 sps:$4 sm:$0xff]  }
 0x112   : > { %8360 = vmatpush1.bf16.msra.mxu1 %v11635_v31  ;;  %8370 = vmatprep.subr.bf16.mxu0 %v11644_v32  ;;  %v11711_v31 = vld [vmem:[%s13573_s12 + $0xf60] ss:$16 sps:$4 sm:$0xff]   ;;  %v11716_v32 = vld [vmem:[%s13573_s12 + $0xd84] ss:$16 sps:$4 sm:$0xff]  }
 0x113   : > { %8411 = vmatprep.subr.bf16.mxu1 %v11647_v33  ;;  %v11719_v33 = vld [vmem:[%s13573_s12 + $0xf84] ss:$16 sps:$4 sm:$0xff]  }
 0x114   : > { %8321 = vmatmul.mubr.bf16.vlgmr.msra.gmra.mrb[8].mxu0 %v13851_v38 }
 0x115   : > { %8362 = vmatmul.mubr.bf16.vlgmr.msra.gmra.mrb[8].mxu1 %v13855_v39  ;;  %8371 = vmatpush1.bf16.msra.mxu0 %v11642_v34  ;;  %v11714_v34 = vld [vmem:[%s13573_s12 + $0xd80] ss:$16 sps:$4 sm:$0xff]  }
 0x116   : > { %8412 = vmatpush1.bf16.msra.mxu1 %v11645_v35  ;;  %8372 = vmatprep.subr.bf16.mxu0 %v11650_v22  ;;  %v11717_v35 = vld [vmem:[%s13573_s12 + $0xf80] ss:$16 sps:$4 sm:$0xff]   ;;  %v11722_v22 = vld [vmem:[%s13573_s12 + $0xda4] ss:$16 sps:$4 sm:$0xff]  }
 0x117   : > { %8413 = vmatprep.subr.bf16.mxu1 %v11653_v23  ;;  %8402 = vmatprep.mubr.bf16.mxu0 %v13871_v42  ;;  %v11725_v23 = vld [vmem:[%s13573_s12 + $0xfa4] ss:$16 sps:$4 sm:$0xff]  }
 0x118   : > { %8443 = vmatprep.mubr.bf16.mxu1 %v13875_v43 }
 0x119   : > { %8373 = vmatpush1.bf16.msra.mxu0 %v11648_v44  ;;  %v11720_v44 = vld [vmem:[%s13573_s12 + $0xda0] ss:$16 sps:$4 sm:$0xff]  }
 0x11a   : > { %8414 = vmatpush1.bf16.msra.mxu1 %v11651_v45  ;;  %8374 = vmatprep.subr.bf16.mxu0 %v11656_v46  ;;  %v11723_v45 = vld [vmem:[%s13573_s12 + $0xfa0] ss:$16 sps:$4 sm:$0xff]   ;;  %v11728_v46 = vld [vmem:[%s13573_s12 + $0xdc4] ss:$16 sps:$4 sm:$0xff]  }
 0x11b   : > { %8415 = vmatprep.subr.bf16.mxu1 %v11659_v48  ;;  %v11731_v48 = vld [vmem:[%s13573_s12 + $0xfc4] ss:$16 sps:$4 sm:$0xff]  }
 0x11d   : > { %8375 = vmatpush1.bf16.msra.mxu0 %v11654_v49  ;;  %v11726_v49 = vld [vmem:[%s13573_s12 + $0xdc0] ss:$16 sps:$4 sm:$0xff]  }
 0x11e   : > { %8416 = vmatpush1.bf16.msra.mxu1 %v11657_v50  ;;  %8376 = vmatprep.subr.bf16.mxu0 %v11662_v52  ;;  %v11729_v50 = vld [vmem:[%s13573_s12 + $0xfc0] ss:$16 sps:$4 sm:$0xff]   ;;  %v11734_v52 = vld [vmem:[%s13573_s12 + $0xde4] ss:$16 sps:$4 sm:$0xff]  }
 0x11f   : > { %8417 = vmatprep.subr.bf16.mxu1 %v11665_v53  ;;  %v11737_v53 = vld [vmem:[%s13573_s12 + $0xfe4] ss:$16 sps:$4 sm:$0xff]  }
 0x121   : > { %8377 = vmatpush1.bf16.msra.mxu0 %v11660_v54  ;;  %v11732_v54 = vld [vmem:[%s13573_s12 + $0xde0] ss:$16 sps:$4 sm:$0xff]  }
 0x122   : > { %8418 = vmatpush1.bf16.msra.mxu1 %v11663_v55  ;;  %8378 = vmatprep.subr.bf16.mxu0 %v11668_v56  ;;  %v11735_v55 = vld [vmem:[%s13573_s12 + $0xfe0] ss:$16 sps:$4 sm:$0xff]   ;;  %v11744_v56 = vld [vmem:[%s13573_s12 + $0x1004] ss:$16 sps:$4 sm:$0xff]  }
 0x123   : > { %8419 = vmatprep.subr.bf16.mxu1 %v11671_v57  ;;  %v11747_v57 = vld [vmem:[%s13573_s12 + $0x1204] ss:$16 sps:$4 sm:$0xff]  }
 0x125   : > { %8379 = vmatpush1.bf16.msra.mxu0 %v11666_v58  ;;  %v13944_v58 = vld [vmem:[%s15329_s0 + $0x40] sm:$0xff] }
 0x126   : > { %8420 = vmatpush1.bf16.msra.mxu1 %v11669_v59  ;;  %8380 = vmatprep.subr.bf16.mxu0 %v11674_v60  ;;  %v13948_v59 = vcombine.low %v13860_v40, %v13860_v40  ;;  %v13952_v60 = vcombine.low %v13865_v41, %v13865_v41  ;;  %v11750_v40 = vld [vmem:[%s13573_s12 + $0x1024] ss:$16 sps:$4 sm:$0xff]   ;;  %v13965_v41 = vcombine.high %v13944_v58, %v13944_v58 }
 0x127   : > { %8421 = vmatprep.subr.bf16.mxu1 %v11677_v61  ;;  %v13957_v61 = vld [vmem:[%s15329_s0 + $0x48] sm:$0xff] }
 0x129   : > { %8381 = vmatpush1.bf16.msra.mxu0 %v11672_v62  ;;  %v11742_v62 = vld [vmem:[%s13573_s12 + $0x1000] ss:$16 sps:$4 sm:$0xff]  }
 0x12a   : > { %8422 = vmatpush1.bf16.msra.mxu1 %v11675_v63  ;;  %8382 = vmatprep.subr.bf16.mxu0 %v11680_v0  ;;  %v11745_v63 = vld [vmem:[%s13573_s12 + $0x1200] ss:$16 sps:$4 sm:$0xff]   ;;  %v11753_v0 = vld [vmem:[%s13573_s12 + $0x1224] ss:$16 sps:$4 sm:$0xff]  }
 0x12b   : > { %8423 = vmatprep.subr.bf16.mxu1 %v11683_v1  ;;  %v13969_v1 = vcombine.high %v13957_v61, %v13957_v61 }
 0x12d   : > { %8383 = vmatpush1.bf16.msra.mxu0 %v11678_v2  ;;  %v11748_v2 = vld [vmem:[%s13573_s12 + $0x1020] ss:$16 sps:$4 sm:$0xff]  }
 0x12e   : > { %8424 = vmatpush1.bf16.msra.mxu1 %v11681_v3  ;;  %8384 = vmatprep.subr.bf16.mxu0 %v11686_v4  ;;  %v11751_v3 = vld [vmem:[%s13573_s12 + $0x1220] ss:$16 sps:$4 sm:$0xff]   ;;  %v11756_v4 = vld [vmem:[%s13573_s12 + $0x1044] ss:$16 sps:$4 sm:$0xff]  }
 0x12f   : > { %8425 = vmatprep.subr.bf16.mxu1 %v11689_v5  ;;  %v11759_v5 = vld [vmem:[%s13573_s12 + $0x1244] ss:$16 sps:$4 sm:$0xff]  }
 0x131   : > { %8385 = vmatpush1.bf16.msra.mxu0 %v11684_v8  ;;  %v11754_v8 = vld [vmem:[%s13573_s12 + $0x1040] ss:$16 sps:$4 sm:$0xff]  }
 0x132   : > { %8426 = vmatpush1.bf16.msra.mxu1 %v11687_v9  ;;  %8386 = vmatprep.subr.bf16.mxu0 %v11692_v10  ;;  %v11757_v9 = vld [vmem:[%s13573_s12 + $0x1240] ss:$16 sps:$4 sm:$0xff]   ;;  %v11762_v10 = vld [vmem:[%s13573_s12 + $0x1064] ss:$16 sps:$4 sm:$0xff]  }
 0x133   : > { %8427 = vmatprep.subr.bf16.mxu1 %v11695_v11  ;;  %v11765_v11 = vld [vmem:[%s13573_s12 + $0x1264] ss:$16 sps:$4 sm:$0xff]  }
 0x135   : > { %8387 = vmatpush1.bf16.msra.mxu0 %v11690_v12  ;;  %v11760_v12 = vld [vmem:[%s13573_s12 + $0x1060] ss:$16 sps:$4 sm:$0xff]  }
 0x136   : > { %8428 = vmatpush1.bf16.msra.mxu1 %v11693_v13  ;;  %8388 = vmatprep.subr.bf16.mxu0 %v11698_v14  ;;  %v11763_v13 = vld [vmem:[%s13573_s12 + $0x1260] ss:$16 sps:$4 sm:$0xff]   ;;  %v11768_v14 = vld [vmem:[%s13573_s12 + $0x1084] ss:$16 sps:$4 sm:$0xff]  }
 0x137   : > { %8429 = vmatprep.subr.bf16.mxu1 %v11701_v15  ;;  %v11771_v15 = vld [vmem:[%s13573_s12 + $0x1284] ss:$16 sps:$4 sm:$0xff]  }
 0x139   : > { %8389 = vmatpush1.bf16.msra.mxu0 %v11696_v18  ;;  %v11766_v18 = vld [vmem:[%s13573_s12 + $0x1080] ss:$16 sps:$4 sm:$0xff]  }
 0x13a   : > { %8430 = vmatpush1.bf16.msra.mxu1 %v11699_v19  ;;  %8390 = vmatprep.subr.bf16.mxu0 %v11704_v20  ;;  %v11769_v19 = vld [vmem:[%s13573_s12 + $0x1280] ss:$16 sps:$4 sm:$0xff]   ;;  %v11774_v20 = vld [vmem:[%s13573_s12 + $0x10a4] ss:$16 sps:$4 sm:$0xff]  }
 0x13b   : > { %8431 = vmatprep.subr.bf16.mxu1 %v11707_v21  ;;  %v11777_v21 = vld [vmem:[%s13573_s12 + $0x12a4] ss:$16 sps:$4 sm:$0xff]  }
 0x13d   : > { %8391 = vmatpush1.bf16.msra.mxu0 %v11702_v26  ;;  %v11772_v26 = vld [vmem:[%s13573_s12 + $0x10a0] ss:$16 sps:$4 sm:$0xff]  }
 0x13e   : > { %8432 = vmatpush1.bf16.msra.mxu1 %v11705_v27  ;;  %8392 = vmatprep.subr.bf16.mxu0 %v11710_v28  ;;  %v11775_v27 = vld [vmem:[%s13573_s12 + $0x12a0] ss:$16 sps:$4 sm:$0xff]   ;;  %v11780_v28 = vld [vmem:[%s13573_s12 + $0x10c4] ss:$16 sps:$4 sm:$0xff]  }
 0x13f   : > { %8433 = vmatprep.subr.bf16.mxu1 %v11713_v29  ;;  %v11783_v29 = vld [vmem:[%s13573_s12 + $0x12c4] ss:$16 sps:$4 sm:$0xff]  }
 0x141   : > { %8393 = vmatpush1.bf16.msra.mxu0 %v11708_v30 }
 0x142   : > { %8434 = vmatpush1.bf16.msra.mxu1 %v11711_v31  ;;  %8394 = vmatprep.subr.bf16.mxu0 %v11716_v32  ;;  %v11778_v32 = vld [vmem:[%s13573_s12 + $0x10c0] ss:$16 sps:$4 sm:$0xff]  }
 0x143   : > { %8435 = vmatprep.subr.bf16.mxu1 %v11719_v33  ;;  %v11781_v33 = vld [vmem:[%s13573_s12 + $0x12c0] ss:$16 sps:$4 sm:$0xff]  }
 0x145   : > { %8395 = vmatpush1.bf16.msra.mxu0 %v11714_v34 }
 0x146   : > { %8436 = vmatpush1.bf16.msra.mxu1 %v11717_v35  ;;  %8396 = vmatprep.subr.bf16.mxu0 %v11722_v22 }
 0x147   : > { %8437 = vmatprep.subr.bf16.mxu1 %v11725_v23 }
 0x149   : > { %8397 = vmatpush1.bf16.msra.mxu0 %v11720_v44 }
 0x14a   : > { %8438 = vmatpush1.bf16.msra.mxu1 %v11723_v45  ;;  %8398 = vmatprep.subr.bf16.mxu0 %v11728_v46 }
 0x14b   : > { %8439 = vmatprep.subr.bf16.mxu1 %v11731_v48 }
 0x14d   : > { %8399 = vmatpush1.bf16.msra.mxu0 %v11726_v49  ;;  %v11786_v49 = vld [vmem:[%s13573_s12 + $0x10e4] ss:$16 sps:$4 sm:$0xff]  }
 0x14e   : > { %8440 = vmatpush1.bf16.msra.mxu1 %v11729_v50  ;;  %8400 = vmatprep.subr.bf16.mxu0 %v11734_v52  ;;  %v11789_v50 = vld [vmem:[%s13573_s12 + $0x12e4] ss:$16 sps:$4 sm:$0xff]   ;;  %v11784_v52 = vld [vmem:[%s13573_s12 + $0x10e0] ss:$16 sps:$4 sm:$0xff]  }
 0x14f   : > { %8441 = vmatprep.subr.bf16.mxu1 %v11737_v53  ;;  %v11787_v53 = vld [vmem:[%s13573_s12 + $0x12e0] ss:$16 sps:$4 sm:$0xff]  }
 0x151   : > { %8401 = vmatpush1.bf16.msra.mxu0 %v11732_v54  ;;  %v11792_v54 = vld [vmem:[%s13573_s12 + $0x1104] ss:$16 sps:$4 sm:$0xff]  }
 0x152   : > { %8442 = vmatpush1.bf16.msra.mxu1 %v11735_v55  ;;  %8452 = vmatprep.subr.bf16.mxu0 %v11744_v56  ;;  %v11795_v55 = vld [vmem:[%s13573_s12 + $0x1304] ss:$16 sps:$4 sm:$0xff]   ;;  %v11790_v56 = vld [vmem:[%s13573_s12 + $0x1100] ss:$16 sps:$4 sm:$0xff]  }
 0x153   : > { %8493 = vmatprep.subr.bf16.mxu1 %v11747_v57  ;;  %v11793_v57 = vld [vmem:[%s13573_s12 + $0x1300] ss:$16 sps:$4 sm:$0xff]  }
 0x154   : > { %8403 = vmatmul.mubr.bf16.vlgmr.msra.gmra.mrb[12].mxu0 %v13948_v59 }
 0x155   : > { %8444 = vmatmul.mubr.bf16.vlgmr.msra.gmra.mrb[12].mxu1 %v13952_v60  ;;  %8453 = vmatpush1.bf16.msra.mxu0 %v11742_v62  ;;  %v11798_v62 = vld [vmem:[%s13573_s12 + $0x1124] ss:$16 sps:$4 sm:$0xff]  }
 0x156   : > { %8494 = vmatpush1.bf16.msra.mxu1 %v11745_v63  ;;  %8454 = vmatprep.subr.bf16.mxu0 %v11750_v40  ;;  %v11801_v63 = vld [vmem:[%s13573_s12 + $0x1324] ss:$16 sps:$4 sm:$0xff]   ;;  %v11796_v40 = vld [vmem:[%s13573_s12 + $0x1120] ss:$16 sps:$4 sm:$0xff]  }
 0x157   : > { %8495 = vmatprep.subr.bf16.mxu1 %v11753_v0  ;;  %8484 = vmatprep.mubr.bf16.mxu0 %v13965_v41  ;;  %v11799_v0 = vld [vmem:[%s13573_s12 + $0x1320] ss:$16 sps:$4 sm:$0xff]  }
 0x158   : > { %8525 = vmatprep.mubr.bf16.mxu1 %v13969_v1 }
 0x159   : > { %8455 = vmatpush1.bf16.msra.mxu0 %v11748_v2  ;;  %v11804_v2 = vld [vmem:[%s13573_s12 + $0x1144] ss:$16 sps:$4 sm:$0xff]  }
 0x15a   : > { %8496 = vmatpush1.bf16.msra.mxu1 %v11751_v3  ;;  %8456 = vmatprep.subr.bf16.mxu0 %v11756_v4  ;;  %v11807_v3 = vld [vmem:[%s13573_s12 + $0x1344] ss:$16 sps:$4 sm:$0xff]   ;;  %v11802_v4 = vld [vmem:[%s13573_s12 + $0x1140] ss:$16 sps:$4 sm:$0xff]  }
 0x15b   : > { %8497 = vmatprep.subr.bf16.mxu1 %v11759_v5  ;;  %v11805_v5 = vld [vmem:[%s13573_s12 + $0x1340] ss:$16 sps:$4 sm:$0xff]  }
 0x15d   : > { %8457 = vmatpush1.bf16.msra.mxu0 %v11754_v8  ;;  %v11810_v8 = vld [vmem:[%s13573_s12 + $0x1164] ss:$16 sps:$4 sm:$0xff]  }
 0x15e   : > { %8498 = vmatpush1.bf16.msra.mxu1 %v11757_v9  ;;  %8458 = vmatprep.subr.bf16.mxu0 %v11762_v10  ;;  %v11813_v9 = vld [vmem:[%s13573_s12 + $0x1364] ss:$16 sps:$4 sm:$0xff]   ;;  %v11808_v10 = vld [vmem:[%s13573_s12 + $0x1160] ss:$16 sps:$4 sm:$0xff]  }
 0x15f   : > { %8499 = vmatprep.subr.bf16.mxu1 %v11765_v11  ;;  %v11811_v11 = vld [vmem:[%s13573_s12 + $0x1360] ss:$16 sps:$4 sm:$0xff]  }
 0x161   : > { %8459 = vmatpush1.bf16.msra.mxu0 %v11760_v12  ;;  %v11816_v12 = vld [vmem:[%s13573_s12 + $0x1184] ss:$16 sps:$4 sm:$0xff]  }
 0x162   : > { %8500 = vmatpush1.bf16.msra.mxu1 %v11763_v13  ;;  %8460 = vmatprep.subr.bf16.mxu0 %v11768_v14  ;;  %v11819_v13 = vld [vmem:[%s13573_s12 + $0x1384] ss:$16 sps:$4 sm:$0xff]   ;;  %v11814_v14 = vld [vmem:[%s13573_s12 + $0x1180] ss:$16 sps:$4 sm:$0xff]  }
 0x163   : > { %8501 = vmatprep.subr.bf16.mxu1 %v11771_v15  ;;  %v11817_v15 = vld [vmem:[%s13573_s12 + $0x1380] ss:$16 sps:$4 sm:$0xff]  }
 0x165   : > { %8461 = vmatpush1.bf16.msra.mxu0 %v11766_v18  ;;  %v11822_v18 = vld [vmem:[%s13573_s12 + $0x11a4] ss:$16 sps:$4 sm:$0xff]  }
 0x166   : > { %8502 = vmatpush1.bf16.msra.mxu1 %v11769_v19  ;;  %8462 = vmatprep.subr.bf16.mxu0 %v11774_v20  ;;  %v11825_v19 = vld [vmem:[%s13573_s12 + $0x13a4] ss:$16 sps:$4 sm:$0xff]   ;;  %v11820_v20 = vld [vmem:[%s13573_s12 + $0x11a0] ss:$16 sps:$4 sm:$0xff]  }
 0x167   : > { %8503 = vmatprep.subr.bf16.mxu1 %v11777_v21  ;;  %v8158_v30 = vpop.f32.mrb[0].mxu0  ;;  %v11823_v21 = vld [vmem:[%s13573_s12 + $0x13a0] ss:$16 sps:$4 sm:$0xff]  }
 0x168   : > { %v8199_v31 = vpop.f32.mrb[0].mxu1  ;;  %v8160_v35 = vpop.f32.mrb[1].mxu0 }
 0x169   : > { %v13997_v34 = vadd.f32 %v8199_v31, %v8158_v30  ;;  %v8201_v22 = vpop.f32.mrb[1].mxu1  ;;  %v8162_v44 = vpop.f32.mrb[2].mxu0  ;;  %8463 = vmatpush1.bf16.msra.mxu0 %v11772_v26  ;;  %v11828_v26 = vld [vmem:[%s13573_s12 + $0x11c4] ss:$16 sps:$4 sm:$0xff]  }
 0x16a   : > { %v13999_v23 = vadd.f32 %v8201_v22, %v8160_v35  ;;  %v8203_v45 = vpop.f32.mrb[2].mxu1  ;;  %8504 = vmatpush1.bf16.msra.mxu1 %v11775_v27  ;;  %v8163_v46 = vpop.f32.mrb[3].mxu0  ;;  %8464 = vmatprep.subr.bf16.mxu0 %v11780_v28  ;;  %v11831_v27 = vld [vmem:[%s13573_s12 + $0x13c4] ss:$16 sps:$4 sm:$0xff]   ;;  %v11826_v28 = vld [vmem:[%s13573_s12 + $0x11c0] ss:$16 sps:$4 sm:$0xff]  }
 0x16b   : > { %v8204_v48 = vpop.f32.mrb[3].mxu1  ;;  %8505 = vmatprep.subr.bf16.mxu1 %v11783_v29  ;;  %v11829_v29 = vld [vmem:[%s13573_s12 + $0x13c0] ss:$16 sps:$4 sm:$0xff]   ;;  %v11834_v30 = vld [vmem:[%s13573_s12 + $0x11e4] ss:$16 sps:$4 sm:$0xff]   ;;  %v14043_v46 = vcombine.low %v13944_v58, %v13944_v58 }
 0x16c   : > { %v11837_v31 = vld [vmem:[%s13573_s12 + $0x13e4] ss:$16 sps:$4 sm:$0xff]   ;;  %v11842_v44 = vld [vmem:[%s13573_s12 + $0x1400] ss:$16 sps:$4 sm:$0xff]   ;;  %v14047_v48 = vcombine.low %v13957_v61, %v13957_v61 }
 0x16d   : > { %8465 = vmatpush1.bf16.msra.mxu0 %v11778_v32  ;;  %v11832_v32 = vld [vmem:[%s13573_s12 + $0x11e0] ss:$16 sps:$4 sm:$0xff]   ;;  %v11844_v35 = vld [vmem:[%s13573_s12 + $0x1404] ss:$16 sps:$4 sm:$0xff]  }
 0x16e   : > { %8506 = vmatpush1.bf16.msra.mxu1 %v11781_v33  ;;  %8466 = vmatprep.subr.bf16.mxu0 %v11786_v49  ;;  %v11835_v33 = vld [vmem:[%s13573_s12 + $0x13e0] ss:$16 sps:$4 sm:$0xff]   ;;  %v11847_v22 = vld [vmem:[%s13573_s12 + $0x1604] ss:$16 sps:$4 sm:$0xff]  }
 0x16f   : > { %8507 = vmatprep.subr.bf16.mxu1 %v11789_v50  ;;  %v11845_v45 = vld [vmem:[%s13573_s12 + $0x1600] ss:$16 sps:$4 sm:$0xff]   ;;  %v14057_v50 = vld [vmem:[%s15329_s0 + $0x58] sm:$0xff]  ;;  %v11850_v58 = vld [vmem:[%s13573_s12 + $0x1424] ss:$16 sps:$4 sm:$0xff]  }
 0x170   : > { %v14052_v49 = vld [vmem:[%s15329_s0 + $0x50] sm:$0xff] }
 0x171   : > { %8467 = vmatpush1.bf16.msra.mxu0 %v11784_v52  ;;  %v11853_v61 = vld [vmem:[%s13573_s12 + $0x1624] ss:$16 sps:$4 sm:$0xff]   ;;  %v14063_v52 = vcombine.high %v14052_v49, %v14052_v49 }
 0x172   : > { %8508 = vmatpush1.bf16.msra.mxu1 %v11787_v53  ;;  %8468 = vmatprep.subr.bf16.mxu0 %v11792_v54  ;;  %v14067_v53 = vcombine.high %v14057_v50, %v14057_v50  ;;  %v11848_v54 = vld [vmem:[%s13573_s12 + $0x1420] ss:$16 sps:$4 sm:$0xff]  }
 0x173   : > { %8509 = vmatprep.subr.bf16.mxu1 %v11795_v55  ;;  %v11851_v55 = vld [vmem:[%s13573_s12 + $0x1620] ss:$16 sps:$4 sm:$0xff]  }
 0x175   : > { %8469 = vmatpush1.bf16.msra.mxu0 %v11790_v56  ;;  %v11856_v56 = vld [vmem:[%s13573_s12 + $0x1444] ss:$16 sps:$4 sm:$0xff]  }
 0x176   : > { %8510 = vmatpush1.bf16.msra.mxu1 %v11793_v57  ;;  %8470 = vmatprep.subr.bf16.mxu0 %v11798_v62  ;;  %v11859_v57 = vld [vmem:[%s13573_s12 + $0x1644] ss:$16 sps:$4 sm:$0xff]   ;;  %v11854_v62 = vld [vmem:[%s13573_s12 + $0x1440] ss:$16 sps:$4 sm:$0xff]  }
 0x177   : > { %8511 = vmatprep.subr.bf16.mxu1 %v11801_v63  ;;  %v11857_v63 = vld [vmem:[%s13573_s12 + $0x1640] ss:$16 sps:$4 sm:$0xff]  }
 0x179   : > { %8471 = vmatpush1.bf16.msra.mxu0 %v11796_v40  ;;  %v11862_v40 = vld [vmem:[%s13573_s12 + $0x1464] ss:$16 sps:$4 sm:$0xff]  }
 0x17a   : > { %8512 = vmatpush1.bf16.msra.mxu1 %v11799_v0  ;;  %8472 = vmatprep.subr.bf16.mxu0 %v11804_v2  ;;  %v11865_v0 = vld [vmem:[%s13573_s12 + $0x1664] ss:$16 sps:$4 sm:$0xff]   ;;  %v11860_v2 = vld [vmem:[%s13573_s12 + $0x1460] ss:$16 sps:$4 sm:$0xff]  }
 0x17b   : > { %8513 = vmatprep.subr.bf16.mxu1 %v11807_v3  ;;  %v11863_v3 = vld [vmem:[%s13573_s12 + $0x1660] ss:$16 sps:$4 sm:$0xff]  }
 0x17d   : > { %8473 = vmatpush1.bf16.msra.mxu0 %v11802_v4  ;;  %v11868_v4 = vld [vmem:[%s13573_s12 + $0x1484] ss:$16 sps:$4 sm:$0xff]  }
 0x17e   : > { %8514 = vmatpush1.bf16.msra.mxu1 %v11805_v5  ;;  %8474 = vmatprep.subr.bf16.mxu0 %v11810_v8  ;;  %v11871_v5 = vld [vmem:[%s13573_s12 + $0x1684] ss:$16 sps:$4 sm:$0xff]   ;;  %v11866_v8 = vld [vmem:[%s13573_s12 + $0x1480] ss:$16 sps:$4 sm:$0xff]  }
 0x17f   : > { %8515 = vmatprep.subr.bf16.mxu1 %v11813_v9  ;;  %v11869_v9 = vld [vmem:[%s13573_s12 + $0x1680] ss:$16 sps:$4 sm:$0xff]  }
 0x181   : > { %8475 = vmatpush1.bf16.msra.mxu0 %v11808_v10  ;;  %v11874_v10 = vld [vmem:[%s13573_s12 + $0x14a4] ss:$16 sps:$4 sm:$0xff]  }
 0x182   : > { %8516 = vmatpush1.bf16.msra.mxu1 %v11811_v11  ;;  %8476 = vmatprep.subr.bf16.mxu0 %v11816_v12  ;;  %v11877_v11 = vld [vmem:[%s13573_s12 + $0x16a4] ss:$16 sps:$4 sm:$0xff]   ;;  %v11872_v12 = vld [vmem:[%s13573_s12 + $0x14a0] ss:$16 sps:$4 sm:$0xff]  }
 0x183   : > { %8517 = vmatprep.subr.bf16.mxu1 %v11819_v13  ;;  %v11875_v13 = vld [vmem:[%s13573_s12 + $0x16a0] ss:$16 sps:$4 sm:$0xff]  }
 0x185   : > { %8477 = vmatpush1.bf16.msra.mxu0 %v11814_v14  ;;  %v11880_v14 = vld [vmem:[%s13573_s12 + $0x14c4] ss:$16 sps:$4 sm:$0xff]  }
 0x186   : > { %8518 = vmatpush1.bf16.msra.mxu1 %v11817_v15  ;;  %8478 = vmatprep.subr.bf16.mxu0 %v11822_v18  ;;  %v11883_v15 = vld [vmem:[%s13573_s12 + $0x16c4] ss:$16 sps:$4 sm:$0xff]  }
 0x187   : > { %8519 = vmatprep.subr.bf16.mxu1 %v11825_v19 }
 0x189   : > { %8479 = vmatpush1.bf16.msra.mxu0 %v11820_v20  ;;  %v11878_v20 = vld [vmem:[%s13573_s12 + $0x14c0] ss:$16 sps:$4 sm:$0xff]  }
 0x18a   : > { %8520 = vmatpush1.bf16.msra.mxu1 %v11823_v21  ;;  %8480 = vmatprep.subr.bf16.mxu0 %v11828_v26  ;;  %v11881_v21 = vld [vmem:[%s13573_s12 + $0x16c0] ss:$16 sps:$4 sm:$0xff]  }
 0x18b   : > { %8521 = vmatprep.subr.bf16.mxu1 %v11831_v27 }
 0x18d   : > { %8481 = vmatpush1.bf16.msra.mxu0 %v11826_v28 }
 0x18e   : > { %8522 = vmatpush1.bf16.msra.mxu1 %v11829_v29  ;;  %8482 = vmatprep.subr.bf16.mxu0 %v11834_v30 }
 0x18f   : > { %8523 = vmatprep.subr.bf16.mxu1 %v11837_v31 }
 0x191   : > { %8483 = vmatpush1.bf16.msra.mxu0 %v11832_v32 }
 0x192   : > { %8524 = vmatpush1.bf16.msra.mxu1 %v11835_v33  ;;  %8534 = vmatprep.subr.bf16.mxu0 %v11844_v35 }
 0x193   : > { %8575 = vmatprep.subr.bf16.mxu1 %v11847_v22  ;;  %v11889_v22 = vld [vmem:[%s13573_s12 + $0x16e4] ss:$16 sps:$4 sm:$0xff]  }
 0x194   : > { %8485 = vmatmul.mubr.bf16.vlgmr.msra.gmra.mrb[16].mxu0 %v14043_v46 }
 0x195   : > { %8526 = vmatmul.mubr.bf16.vlgmr.msra.gmra.mrb[16].mxu1 %v14047_v48  ;;  %8535 = vmatpush1.bf16.msra.mxu0 %v11842_v44 }
 0x196   : > { %8576 = vmatpush1.bf16.msra.mxu1 %v11845_v45  ;;  %8536 = vmatprep.subr.bf16.mxu0 %v11850_v58  ;;  %v11887_v45 = vld [vmem:[%s13573_s12 + $0x16e0] ss:$16 sps:$4 sm:$0xff]   ;;  %v11892_v58 = vld [vmem:[%s13573_s12 + $0x1504] ss:$16 sps:$4 sm:$0xff]  }
 0x197   : > { %8577 = vmatprep.subr.bf16.mxu1 %v11853_v61  ;;  %8566 = vmatprep.mubr.bf16.mxu0 %v14063_v52  ;;  %v11895_v61 = vld [vmem:[%s13573_s12 + $0x1704] ss:$16 sps:$4 sm:$0xff]  }
 0x198   : > { %8607 = vmatprep.mubr.bf16.mxu1 %v14067_v53 }
 0x199   : > { %8537 = vmatpush1.bf16.msra.mxu0 %v11848_v54  ;;  %v11890_v54 = vld [vmem:[%s13573_s12 + $0x1500] ss:$16 sps:$4 sm:$0xff]  }
 0x19a   : > { %8578 = vmatpush1.bf16.msra.mxu1 %v11851_v55  ;;  %8538 = vmatprep.subr.bf16.mxu0 %v11856_v56  ;;  %v11893_v55 = vld [vmem:[%s13573_s12 + $0x1700] ss:$16 sps:$4 sm:$0xff]   ;;  %v11898_v56 = vld [vmem:[%s13573_s12 + $0x1524] ss:$16 sps:$4 sm:$0xff]  }
 0x19b   : > { %8579 = vmatprep.subr.bf16.mxu1 %v11859_v57  ;;  %v11901_v57 = vld [vmem:[%s13573_s12 + $0x1724] ss:$16 sps:$4 sm:$0xff]  }
 0x19d   : > { %8539 = vmatpush1.bf16.msra.mxu0 %v11854_v62  ;;  %v11896_v62 = vld [vmem:[%s13573_s12 + $0x1520] ss:$16 sps:$4 sm:$0xff]  }
 0x19e   : > { %8580 = vmatpush1.bf16.msra.mxu1 %v11857_v63  ;;  %8540 = vmatprep.subr.bf16.mxu0 %v11862_v40  ;;  %v11899_v63 = vld [vmem:[%s13573_s12 + $0x1720] ss:$16 sps:$4 sm:$0xff]   ;;  %v11904_v40 = vld [vmem:[%s13573_s12 + $0x1544] ss:$16 sps:$4 sm:$0xff]  }
 0x19f   : > { %8581 = vmatprep.subr.bf16.mxu1 %v11865_v0  ;;  %v11907_v0 = vld [vmem:[%s13573_s12 + $0x1744] ss:$16 sps:$4 sm:$0xff]  }
 0x1a1   : > { %8541 = vmatpush1.bf16.msra.mxu0 %v11860_v2  ;;  %v11902_v2 = vld [vmem:[%s13573_s12 + $0x1540] ss:$16 sps:$4 sm:$0xff]  }
 0x1a2   : > { %8582 = vmatpush1.bf16.msra.mxu1 %v11863_v3  ;;  %8542 = vmatprep.subr.bf16.mxu0 %v11868_v4  ;;  %v11905_v3 = vld [vmem:[%s13573_s12 + $0x1740] ss:$16 sps:$4 sm:$0xff]   ;;  %v11910_v4 = vld [vmem:[%s13573_s12 + $0x1564] ss:$16 sps:$4 sm:$0xff]  }
 0x1a3   : > { %8583 = vmatprep.subr.bf16.mxu1 %v11871_v5  ;;  %v11913_v5 = vld [vmem:[%s13573_s12 + $0x1764] ss:$16 sps:$4 sm:$0xff]  }
 0x1a5   : > { %8543 = vmatpush1.bf16.msra.mxu0 %v11866_v8  ;;  %v11908_v8 = vld [vmem:[%s13573_s12 + $0x1560] ss:$16 sps:$4 sm:$0xff]  }
 0x1a6   : > { %8584 = vmatpush1.bf16.msra.mxu1 %v11869_v9  ;;  %8544 = vmatprep.subr.bf16.mxu0 %v11874_v10  ;;  %v11911_v9 = vld [vmem:[%s13573_s12 + $0x1760] ss:$16 sps:$4 sm:$0xff]   ;;  %v11916_v10 = vld [vmem:[%s13573_s12 + $0x1584] ss:$16 sps:$4 sm:$0xff]  }
 0x1a7   : > { %8585 = vmatprep.subr.bf16.mxu1 %v11877_v11  ;;  %v8240_v18 = vpop.f32.mrb[4].mxu0  ;;  %v11919_v11 = vld [vmem:[%s13573_s12 + $0x1784] ss:$16 sps:$4 sm:$0xff]  }
 0x1a8   : > { %v8281_v19 = vpop.f32.mrb[4].mxu1  ;;  %v8241_v26 = vadd.f32 %v8240_v18, %v13997_v34  ;;  %v8242_v27 = vpop.f32.mrb[5].mxu0  ;;  %v11886_v34 = vld [vmem:[%s13573_s12 + $0x14e4] ss:$16 sps:$4 sm:$0xff]   ;;  %v11920_v18 = vld [vmem:[%s13573_s12 + $0x15a0] ss:$16 sps:$4 sm:$0xff]  }
 0x1a9   : > { %v8283_v28 = vpop.f32.mrb[5].mxu1  ;;  %v8243_v29 = vadd.f32 %v8242_v27, %v13999_v23  ;;  %v8244_v30 = vpop.f32.mrb[6].mxu0  ;;  %8545 = vmatpush1.bf16.msra.mxu0 %v11872_v12  ;;  %v11884_v23 = vld [vmem:[%s13573_s12 + $0x14e0] ss:$16 sps:$4 sm:$0xff]  }
 0x1aa   : > { %v8285_v31 = vpop.f32.mrb[6].mxu1  ;;  %8586 = vmatpush1.bf16.msra.mxu1 %v11875_v13  ;;  %v14097_v32 = vadd.f32 %v8281_v19, %v8241_v26  ;;  %v8245_v33 = vpop.f32.mrb[7].mxu0  ;;  %8546 = vmatprep.subr.bf16.mxu0 %v11880_v14  ;;  %v11914_v12 = vld [vmem:[%s13573_s12 + $0x1580] ss:$16 sps:$4 sm:$0xff]   ;;  %v11922_v14 = vld [vmem:[%s13573_s12 + $0x15a4] ss:$16 sps:$4 sm:$0xff]  }
 0x1ab   : > { %v8286_v35 = vpop.f32.mrb[7].mxu1  ;;  %8587 = vmatprep.subr.bf16.mxu1 %v11883_v15  ;;  %v14101_v44 = vadd.f32 %v8283_v28, %v8243_v29  ;;  %v11917_v13 = vld [vmem:[%s13573_s12 + $0x1780] ss:$16 sps:$4 sm:$0xff]   ;;  %v11925_v15 = vld [vmem:[%s13573_s12 + $0x17a4] ss:$16 sps:$4 sm:$0xff]  }
 0x1ac   : > { %v11923_v19 = vld [vmem:[%s13573_s12 + $0x17a0] ss:$16 sps:$4 sm:$0xff]   ;;  %v11934_v28 = vld [vmem:[%s13573_s12 + $0x15e4] ss:$16 sps:$4 sm:$0xff]  }
 0x1ad   : > { %8547 = vmatpush1.bf16.msra.mxu0 %v11878_v20  ;;  %v11928_v20 = vld [vmem:[%s13573_s12 + $0x15c4] ss:$16 sps:$4 sm:$0xff]   ;;  %v11926_v26 = vld [vmem:[%s13573_s12 + $0x15c0] ss:$16 sps:$4 sm:$0xff]  }
 0x1ae   : > { %8588 = vmatpush1.bf16.msra.mxu1 %v11881_v21  ;;  %8548 = vmatprep.subr.bf16.mxu0 %v11886_v34  ;;  %v11931_v21 = vld [vmem:[%s13573_s12 + $0x17c4] ss:$16 sps:$4 sm:$0xff]   ;;  %v11929_v27 = vld [vmem:[%s13573_s12 + $0x17c0] ss:$16 sps:$4 sm:$0xff]  }
 0x1af   : > { %8589 = vmatprep.subr.bf16.mxu1 %v11889_v22  ;;  %v11937_v29 = vld [vmem:[%s13573_s12 + $0x17e4] ss:$16 sps:$4 sm:$0xff]   ;;  %v11932_v30 = vld [vmem:[%s13573_s12 + $0x15e0] ss:$16 sps:$4 sm:$0xff]  }
 0x1b0   : > { %v11935_v31 = vld [vmem:[%s13573_s12 + $0x17e0] ss:$16 sps:$4 sm:$0xff]   ;;  %v11944_v33 = vld [vmem:[%s13573_s12 + $0x1804] ss:$16 sps:$4 sm:$0xff]  }
 0x1b1   : > { %8549 = vmatpush1.bf16.msra.mxu0 %v11884_v23  ;;  %v11947_v35 = vld [vmem:[%s13573_s12 + $0x1a04] ss:$16 sps:$4 sm:$0xff]   ;;  %v11942_v34 = vld [vmem:[%s13573_s12 + $0x1800] ss:$16 sps:$4 sm:$0xff]   ;;  %v14143_v23 = vcombine.low %v14052_v49, %v14052_v49 }
 0x1b2   : > { %8590 = vmatpush1.bf16.msra.mxu1 %v11887_v45  ;;  %8550 = vmatprep.subr.bf16.mxu0 %v11892_v58  ;;  %v11945_v22 = vld [vmem:[%s13573_s12 + $0x1a00] ss:$16 sps:$4 sm:$0xff]   ;;  %v14147_v45 = vcombine.low %v14057_v50, %v14057_v50  ;;  %v11950_v49 = vld [vmem:[%s13573_s12 + $0x1824] ss:$16 sps:$4 sm:$0xff]  }
 0x1b3   : > { %8591 = vmatprep.subr.bf16.mxu1 %v11895_v61  ;;  %v14152_v58 = vld [vmem:[%s15329_s0 + $0x60] sm:$0xff]  ;;  %v14157_v61 = vld [vmem:[%s15329_s0 + $0x68] sm:$0xff] }
 0x1b4   : > { %v11953_v50 = vld [vmem:[%s13573_s12 + $0x1a24] ss:$16 sps:$4 sm:$0xff]  }
 0x1b5   : > { %8551 = vmatpush1.bf16.msra.mxu0 %v11890_v54  ;;  %v14163_v54 = vcombine.high %v14152_v58, %v14152_v58 }
 0x1b6   : > { %8592 = vmatpush1.bf16.msra.mxu1 %v11893_v55  ;;  %8552 = vmatprep.subr.bf16.mxu0 %v11898_v56  ;;  %v14167_v55 = vcombine.high %v14157_v61, %v14157_v61  ;;  %v11948_v56 = vld [vmem:[%s13573_s12 + $0x1820] ss:$16 sps:$4 sm:$0xff]  }
 0x1b7   : > { %8593 = vmatprep.subr.bf16.mxu1 %v11901_v57  ;;  %v11951_v57 = vld [vmem:[%s13573_s12 + $0x1a20] ss:$16 sps:$4 sm:$0xff]  }
 0x1b9   : > { %8553 = vmatpush1.bf16.msra.mxu0 %v11896_v62  ;;  %v11956_v62 = vld [vmem:[%s13573_s12 + $0x1844] ss:$16 sps:$4 sm:$0xff]  }
 0x1ba   : > { %8594 = vmatpush1.bf16.msra.mxu1 %v11899_v63  ;;  %8554 = vmatprep.subr.bf16.mxu0 %v11904_v40  ;;  %v11959_v63 = vld [vmem:[%s13573_s12 + $0x1a44] ss:$16 sps:$4 sm:$0xff]   ;;  %v11954_v40 = vld [vmem:[%s13573_s12 + $0x1840] ss:$16 sps:$4 sm:$0xff]  }
 0x1bb   : > { %8595 = vmatprep.subr.bf16.mxu1 %v11907_v0  ;;  %v11957_v0 = vld [vmem:[%s13573_s12 + $0x1a40] ss:$16 sps:$4 sm:$0xff]  }
 0x1bd   : > { %8555 = vmatpush1.bf16.msra.mxu0 %v11902_v2  ;;  %v11962_v2 = vld [vmem:[%s13573_s12 + $0x1864] ss:$16 sps:$4 sm:$0xff]  }
 0x1be   : > { %8596 = vmatpush1.bf16.msra.mxu1 %v11905_v3  ;;  %8556 = vmatprep.subr.bf16.mxu0 %v11910_v4  ;;  %v11965_v3 = vld [vmem:[%s13573_s12 + $0x1a64] ss:$16 sps:$4 sm:$0xff]   ;;  %v11960_v4 = vld [vmem:[%s13573_s12 + $0x1860] ss:$16 sps:$4 sm:$0xff]  }
 0x1bf   : > { %8597 = vmatprep.subr.bf16.mxu1 %v11913_v5  ;;  %v11963_v5 = vld [vmem:[%s13573_s12 + $0x1a60] ss:$16 sps:$4 sm:$0xff]  }
 0x1c1   : > { %8557 = vmatpush1.bf16.msra.mxu0 %v11908_v8  ;;  %v11968_v8 = vld [vmem:[%s13573_s12 + $0x1884] ss:$16 sps:$4 sm:$0xff]  }
 0x1c2   : > { %8598 = vmatpush1.bf16.msra.mxu1 %v11911_v9  ;;  %8558 = vmatprep.subr.bf16.mxu0 %v11916_v10  ;;  %v11971_v9 = vld [vmem:[%s13573_s12 + $0x1a84] ss:$16 sps:$4 sm:$0xff]   ;;  %v11966_v10 = vld [vmem:[%s13573_s12 + $0x1880] ss:$16 sps:$4 sm:$0xff]  }
 0x1c3   : > { %8599 = vmatprep.subr.bf16.mxu1 %v11919_v11  ;;  %v11969_v11 = vld [vmem:[%s13573_s12 + $0x1a80] ss:$16 sps:$4 sm:$0xff]  }
 0x1c5   : > { %8559 = vmatpush1.bf16.msra.mxu0 %v11914_v12  ;;  %v11974_v12 = vld [vmem:[%s13573_s12 + $0x18a4] ss:$16 sps:$4 sm:$0xff]  }
 0x1c6   : > { %8600 = vmatpush1.bf16.msra.mxu1 %v11917_v13  ;;  %8560 = vmatprep.subr.bf16.mxu0 %v11922_v14  ;;  %v11977_v13 = vld [vmem:[%s13573_s12 + $0x1aa4] ss:$16 sps:$4 sm:$0xff]   ;;  %v11972_v14 = vld [vmem:[%s13573_s12 + $0x18a0] ss:$16 sps:$4 sm:$0xff]  }
 0x1c7   : > { %8601 = vmatprep.subr.bf16.mxu1 %v11925_v15  ;;  %v11975_v15 = vld [vmem:[%s13573_s12 + $0x1aa0] ss:$16 sps:$4 sm:$0xff]  }
 0x1c9   : > { %8561 = vmatpush1.bf16.msra.mxu0 %v11920_v18  ;;  %v11980_v18 = vld [vmem:[%s13573_s12 + $0x18c4] ss:$16 sps:$4 sm:$0xff]  }
 0x1ca   : > { %8602 = vmatpush1.bf16.msra.mxu1 %v11923_v19  ;;  %8562 = vmatprep.subr.bf16.mxu0 %v11928_v20  ;;  %v11983_v19 = vld [vmem:[%s13573_s12 + $0x1ac4] ss:$16 sps:$4 sm:$0xff]  }
 0x1cb   : > { %8603 = vmatprep.subr.bf16.mxu1 %v11931_v21 }
 0x1cd   : > { %8563 = vmatpush1.bf16.msra.mxu0 %v11926_v26  ;;  %v11978_v26 = vld [vmem:[%s13573_s12 + $0x18c0] ss:$16 sps:$4 sm:$0xff]  }
 0x1ce   : > { %8604 = vmatpush1.bf16.msra.mxu1 %v11929_v27  ;;  %8564 = vmatprep.subr.bf16.mxu0 %v11934_v28  ;;  %v11981_v27 = vld [vmem:[%s13573_s12 + $0x1ac0] ss:$16 sps:$4 sm:$0xff]  }
 0x1cf   : > { %8605 = vmatprep.subr.bf16.mxu1 %v11937_v29 }
 0x1d1   : > { %8565 = vmatpush1.bf16.msra.mxu0 %v11932_v30 }
 0x1d2   : > { %8606 = vmatpush1.bf16.msra.mxu1 %v11935_v31  ;;  %8616 = vmatprep.subr.bf16.mxu0 %v11944_v33 }
 0x1d3   : > { %8657 = vmatprep.subr.bf16.mxu1 %v11947_v35 }
 0x1d4   : > { %8567 = vmatmul.mubr.bf16.vlgmr.msra.gmra.mrb[20].mxu0 %v14143_v23 }
 0x1d5   : > { %8608 = vmatmul.mubr.bf16.vlgmr.msra.gmra.mrb[20].mxu1 %v14147_v45  ;;  %8617 = vmatpush1.bf16.msra.mxu0 %v11942_v34 }
 0x1d6   : > { %8658 = vmatpush1.bf16.msra.mxu1 %v11945_v22  ;;  %8618 = vmatprep.subr.bf16.mxu0 %v11950_v49 }
 0x1d7   : > { %8659 = vmatprep.subr.bf16.mxu1 %v11953_v50  ;;  %8648 = vmatprep.mubr.bf16.mxu0 %v14163_v54  ;;  %v11989_v50 = vld [vmem:[%s13573_s12 + $0x1ae4] ss:$16 sps:$4 sm:$0xff]  }
 0x1d8   : > { %8689 = vmatprep.mubr.bf16.mxu1 %v14167_v55 }
 0x1d9   : > { %8619 = vmatpush1.bf16.msra.mxu0 %v11948_v56 }
 0x1da   : > { %8660 = vmatpush1.bf16.msra.mxu1 %v11951_v57  ;;  %8620 = vmatprep.subr.bf16.mxu0 %v11956_v62  ;;  %v11987_v57 = vld [vmem:[%s13573_s12 + $0x1ae0] ss:$16 sps:$4 sm:$0xff]   ;;  %v11992_v62 = vld [vmem:[%s13573_s12 + $0x1904] ss:$16 sps:$4 sm:$0xff]  }
 0x1db   : > { %8661 = vmatprep.subr.bf16.mxu1 %v11959_v63  ;;  %v11995_v63 = vld [vmem:[%s13573_s12 + $0x1b04] ss:$16 sps:$4 sm:$0xff]  }
 0x1dd   : > { %8621 = vmatpush1.bf16.msra.mxu0 %v11954_v40  ;;  %v11990_v40 = vld [vmem:[%s13573_s12 + $0x1900] ss:$16 sps:$4 sm:$0xff]  }
 0x1de   : > { %8662 = vmatpush1.bf16.msra.mxu1 %v11957_v0  ;;  %8622 = vmatprep.subr.bf16.mxu0 %v11962_v2  ;;  %v11993_v0 = vld [vmem:[%s13573_s12 + $0x1b00] ss:$16 sps:$4 sm:$0xff]   ;;  %v11998_v2 = vld [vmem:[%s13573_s12 + $0x1924] ss:$16 sps:$4 sm:$0xff]  }
 0x1df   : > { %8663 = vmatprep.subr.bf16.mxu1 %v11965_v3  ;;  %v12001_v3 = vld [vmem:[%s13573_s12 + $0x1b24] ss:$16 sps:$4 sm:$0xff]  }
 0x1e1   : > { %8623 = vmatpush1.bf16.msra.mxu0 %v11960_v4  ;;  %v11996_v4 = vld [vmem:[%s13573_s12 + $0x1920] ss:$16 sps:$4 sm:$0xff]  }
 0x1e2   : > { %8664 = vmatpush1.bf16.msra.mxu1 %v11963_v5  ;;  %8624 = vmatprep.subr.bf16.mxu0 %v11968_v8  ;;  %v11999_v5 = vld [vmem:[%s13573_s12 + $0x1b20] ss:$16 sps:$4 sm:$0xff]   ;;  %v12004_v8 = vld [vmem:[%s13573_s12 + $0x1944] ss:$16 sps:$4 sm:$0xff]  }
 0x1e3   : > { %8665 = vmatprep.subr.bf16.mxu1 %v11971_v9  ;;  %v12007_v9 = vld [vmem:[%s13573_s12 + $0x1b44] ss:$16 sps:$4 sm:$0xff]  }
 0x1e5   : > { %8625 = vmatpush1.bf16.msra.mxu0 %v11966_v10  ;;  %v12002_v10 = vld [vmem:[%s13573_s12 + $0x1940] ss:$16 sps:$4 sm:$0xff]  }
 0x1e6   : > { %8666 = vmatpush1.bf16.msra.mxu1 %v11969_v11  ;;  %8626 = vmatprep.subr.bf16.mxu0 %v11974_v12  ;;  %v12005_v11 = vld [vmem:[%s13573_s12 + $0x1b40] ss:$16 sps:$4 sm:$0xff]   ;;  %v12010_v12 = vld [vmem:[%s13573_s12 + $0x1964] ss:$16 sps:$4 sm:$0xff]  }
 0x1e7   : > { %8667 = vmatprep.subr.bf16.mxu1 %v11977_v13  ;;  %v8322_v20 = vpop.f32.mrb[8].mxu0  ;;  %v12013_v13 = vld [vmem:[%s13573_s12 + $0x1b64] ss:$16 sps:$4 sm:$0xff]  }
 0x1e8   : > { %v8363_v21 = vpop.f32.mrb[8].mxu1  ;;  %v8323_v28 = vadd.f32 %v8322_v20, %v14097_v32  ;;  %v8324_v29 = vpop.f32.mrb[9].mxu0  ;;  %v11986_v32 = vld [vmem:[%s13573_s12 + $0x18e4] ss:$16 sps:$4 sm:$0xff]   ;;  %v12014_v20 = vld [vmem:[%s13573_s12 + $0x1980] ss:$16 sps:$4 sm:$0xff]  }
 0x1e9   : > { %v8365_v30 = vpop.f32.mrb[9].mxu1  ;;  %v8325_v31 = vadd.f32 %v8324_v29, %v14101_v44  ;;  %v8326_v33 = vpop.f32.mrb[10].mxu0  ;;  %8627 = vmatpush1.bf16.msra.mxu0 %v11972_v14  ;;  %v11984_v44 = vld [vmem:[%s13573_s12 + $0x18e0] ss:$16 sps:$4 sm:$0xff]  }
 0x1ea   : > { %v8367_v35 = vpop.f32.mrb[10].mxu1  ;;  %8668 = vmatpush1.bf16.msra.mxu1 %v11975_v15  ;;  %v14197_v34 = vadd.f32 %v8363_v21, %v8323_v28  ;;  %v8327_v22 = vpop.f32.mrb[11].mxu0  ;;  %8628 = vmatprep.subr.bf16.mxu0 %v11980_v18  ;;  %v12008_v14 = vld [vmem:[%s13573_s12 + $0x1960] ss:$16 sps:$4 sm:$0xff]   ;;  %v12016_v18 = vld [vmem:[%s13573_s12 + $0x1984] ss:$16 sps:$4 sm:$0xff]  }
 0x1eb   : > { %v8368_v49 = vpop.f32.mrb[11].mxu1  ;;  %8669 = vmatprep.subr.bf16.mxu1 %v11983_v19  ;;  %v14201_v56 = vadd.f32 %v8365_v30, %v8325_v31  ;;  %v12011_v15 = vld [vmem:[%s13573_s12 + $0x1b60] ss:$16 sps:$4 sm:$0xff]   ;;  %v12019_v19 = vld [vmem:[%s13573_s12 + $0x1b84] ss:$16 sps:$4 sm:$0xff]  }
 0x1ec   : > { %v12017_v21 = vld [vmem:[%s13573_s12 + $0x1b80] ss:$16 sps:$4 sm:$0xff]   ;;  %v12028_v30 = vld [vmem:[%s13573_s12 + $0x19c4] ss:$16 sps:$4 sm:$0xff]  }
 0x1ed   : > { %8629 = vmatpush1.bf16.msra.mxu0 %v11978_v26  ;;  %v12022_v26 = vld [vmem:[%s13573_s12 + $0x19a4] ss:$16 sps:$4 sm:$0xff]   ;;  %v12020_v28 = vld [vmem:[%s13573_s12 + $0x19a0] ss:$16 sps:$4 sm:$0xff]  }
 0x1ee   : > { %8670 = vmatpush1.bf16.msra.mxu1 %v11981_v27  ;;  %8630 = vmatprep.subr.bf16.mxu0 %v11986_v32  ;;  %v12025_v27 = vld [vmem:[%s13573_s12 + $0x1ba4] ss:$16 sps:$4 sm:$0xff]   ;;  %v12023_v29 = vld [vmem:[%s13573_s12 + $0x1ba0] ss:$16 sps:$4 sm:$0xff]  }
 0x1ef   : > { %8671 = vmatprep.subr.bf16.mxu1 %v11989_v50  ;;  %v12031_v31 = vld [vmem:[%s13573_s12 + $0x1bc4] ss:$16 sps:$4 sm:$0xff]   ;;  %v12026_v33 = vld [vmem:[%s13573_s12 + $0x19c0] ss:$16 sps:$4 sm:$0xff]  }
 0x1f0   : > { %v12029_v35 = vld [vmem:[%s13573_s12 + $0x1bc0] ss:$16 sps:$4 sm:$0xff]   ;;  %v12034_v22 = vld [vmem:[%s13573_s12 + $0x19e4] ss:$16 sps:$4 sm:$0xff]  }
 0x1f1   : > { %8631 = vmatpush1.bf16.msra.mxu0 %v11984_v44  ;;  %v12037_v49 = vld [vmem:[%s13573_s12 + $0x1be4] ss:$16 sps:$4 sm:$0xff]   ;;  %v12032_v32 = vld [vmem:[%s13573_s12 + $0x19e0] ss:$16 sps:$4 sm:$0xff]  }
 0x1f2   : > { %8672 = vmatpush1.bf16.msra.mxu1 %v11987_v57  ;;  %8632 = vmatprep.subr.bf16.mxu0 %v11992_v62  ;;  %v12035_v50 = vld [vmem:[%s13573_s12 + $0x1be0] ss:$16 sps:$4 sm:$0xff]   ;;  %v12044_v44 = vld [vmem:[%s13573_s12 + $0x1c04] ss:$16 sps:$4 sm:$0xff]  }
 0x1f3   : > { %8673 = vmatprep.subr.bf16.mxu1 %v11995_v63  ;;  %v12047_v57 = vld [vmem:[%s13573_s12 + $0x1e04] ss:$16 sps:$4 sm:$0xff]   ;;  %v12042_v62 = vld [vmem:[%s13573_s12 + $0x1c00] ss:$16 sps:$4 sm:$0xff]  }
 0x1f4   : > { %v12045_v63 = vld [vmem:[%s13573_s12 + $0x1e00] ss:$16 sps:$4 sm:$0xff]  }
 0x1f5   : > { %8633 = vmatpush1.bf16.msra.mxu0 %v11990_v40  ;;  %v14243_v40 = vcombine.low %v14152_v58, %v14152_v58  ;;  %v12050_v58 = vld [vmem:[%s13573_s12 + $0x1c24] ss:$16 sps:$4 sm:$0xff]  }
 0x1f6   : > { %8674 = vmatpush1.bf16.msra.mxu1 %v11993_v0  ;;  %8634 = vmatprep.subr.bf16.mxu0 %v11998_v2  ;;  %v14247_v0 = vcombine.low %v14157_v61, %v14157_v61  ;;  %v14252_v2 = vld [vmem:[%s15329_s0 + $0x70] sm:$0xff] }
 0x1f7   : > { %8675 = vmatprep.subr.bf16.mxu1 %v12001_v3  ;;  %v14257_v3 = vld [vmem:[%s15329_s0 + $0x78] sm:$0xff]  ;;  %v12053_v61 = vld [vmem:[%s13573_s12 + $0x1e24] ss:$16 sps:$4 sm:$0xff]  }
 0x1f9   : > { %8635 = vmatpush1.bf16.msra.mxu0 %v11996_v4  ;;  %v14263_v4 = vcombine.high %v14252_v2, %v14252_v2 }
 0x1fa   : > { %8676 = vmatpush1.bf16.msra.mxu1 %v11999_v5  ;;  %8636 = vmatprep.subr.bf16.mxu0 %v12004_v8  ;;  %v14267_v5 = vcombine.high %v14257_v3, %v14257_v3  ;;  %v12048_v8 = vld [vmem:[%s13573_s12 + $0x1c20] ss:$16 sps:$4 sm:$0xff]  }
 0x1fb   : > { %8677 = vmatprep.subr.bf16.mxu1 %v12007_v9  ;;  %v12051_v9 = vld [vmem:[%s13573_s12 + $0x1e20] ss:$16 sps:$4 sm:$0xff]  }
 0x1fd   : > { %8637 = vmatpush1.bf16.msra.mxu0 %v12002_v10  ;;  %v12056_v10 = vld [vmem:[%s13573_s12 + $0x1c44] ss:$16 sps:$4 sm:$0xff]  }
 0x1fe   : > { %8678 = vmatpush1.bf16.msra.mxu1 %v12005_v11  ;;  %8638 = vmatprep.subr.bf16.mxu0 %v12010_v12  ;;  %v12059_v11 = vld [vmem:[%s13573_s12 + $0x1e44] ss:$16 sps:$4 sm:$0xff]   ;;  %v12054_v12 = vld [vmem:[%s13573_s12 + $0x1c40] ss:$16 sps:$4 sm:$0xff]  }
 0x1ff   : > { %8679 = vmatprep.subr.bf16.mxu1 %v12013_v13  ;;  %v12057_v13 = vld [vmem:[%s13573_s12 + $0x1e40] ss:$16 sps:$4 sm:$0xff]  }
 0x201   : > { %8639 = vmatpush1.bf16.msra.mxu0 %v12008_v14  ;;  %v12062_v14 = vld [vmem:[%s13573_s12 + $0x1c64] ss:$16 sps:$4 sm:$0xff]  }
 0x202   : > { %8680 = vmatpush1.bf16.msra.mxu1 %v12011_v15  ;;  %8640 = vmatprep.subr.bf16.mxu0 %v12016_v18  ;;  %v12065_v15 = vld [vmem:[%s13573_s12 + $0x1e64] ss:$16 sps:$4 sm:$0xff]   ;;  %v12060_v18 = vld [vmem:[%s13573_s12 + $0x1c60] ss:$16 sps:$4 sm:$0xff]  }
 0x203   : > { %8681 = vmatprep.subr.bf16.mxu1 %v12019_v19  ;;  %v12063_v19 = vld [vmem:[%s13573_s12 + $0x1e60] ss:$16 sps:$4 sm:$0xff]  }
 0x205   : > { %8641 = vmatpush1.bf16.msra.mxu0 %v12014_v20  ;;  %v12068_v20 = vld [vmem:[%s13573_s12 + $0x1c84] ss:$16 sps:$4 sm:$0xff]  }
 0x206   : > { %8682 = vmatpush1.bf16.msra.mxu1 %v12017_v21  ;;  %8642 = vmatprep.subr.bf16.mxu0 %v12022_v26  ;;  %v12071_v21 = vld [vmem:[%s13573_s12 + $0x1e84] ss:$16 sps:$4 sm:$0xff]   ;;  %v12066_v26 = vld [vmem:[%s13573_s12 + $0x1c80] ss:$16 sps:$4 sm:$0xff]  }
 0x207   : > { %8683 = vmatprep.subr.bf16.mxu1 %v12025_v27  ;;  %v12069_v27 = vld [vmem:[%s13573_s12 + $0x1e80] ss:$16 sps:$4 sm:$0xff]  }
 0x209   : > { %8643 = vmatpush1.bf16.msra.mxu0 %v12020_v28  ;;  %v12074_v28 = vld [vmem:[%s13573_s12 + $0x1ca4] ss:$16 sps:$4 sm:$0xff]  }
 0x20a   : > { %8684 = vmatpush1.bf16.msra.mxu1 %v12023_v29  ;;  %8644 = vmatprep.subr.bf16.mxu0 %v12028_v30  ;;  %v12077_v29 = vld [vmem:[%s13573_s12 + $0x1ea4] ss:$16 sps:$4 sm:$0xff]   ;;  %v12072_v30 = vld [vmem:[%s13573_s12 + $0x1ca0] ss:$16 sps:$4 sm:$0xff]  }
 0x20b   : > { %8685 = vmatprep.subr.bf16.mxu1 %v12031_v31  ;;  %v12075_v31 = vld [vmem:[%s13573_s12 + $0x1ea0] ss:$16 sps:$4 sm:$0xff]  }
 0x20d   : > { %8645 = vmatpush1.bf16.msra.mxu0 %v12026_v33  ;;  %v12080_v33 = vld [vmem:[%s13573_s12 + $0x1cc4] ss:$16 sps:$4 sm:$0xff]  }
 0x20e   : > { %8686 = vmatpush1.bf16.msra.mxu1 %v12029_v35  ;;  %8646 = vmatprep.subr.bf16.mxu0 %v12034_v22  ;;  %v12083_v35 = vld [vmem:[%s13573_s12 + $0x1ec4] ss:$16 sps:$4 sm:$0xff]  }
 0x20f   : > { %8687 = vmatprep.subr.bf16.mxu1 %v12037_v49 }
 0x211   : > { %8647 = vmatpush1.bf16.msra.mxu0 %v12032_v32  ;;  %v12078_v32 = vld [vmem:[%s13573_s12 + $0x1cc0] ss:$16 sps:$4 sm:$0xff]  }
 0x212   : > { %8688 = vmatpush1.bf16.msra.mxu1 %v12035_v50  ;;  %8698 = vmatprep.subr.bf16.mxu0 %v12044_v44  ;;  %v12081_v50 = vld [vmem:[%s13573_s12 + $0x1ec0] ss:$16 sps:$4 sm:$0xff]  }
 0x213   : > { %8739 = vmatprep.subr.bf16.mxu1 %v12047_v57 }
 0x214   : > { %8649 = vmatmul.mubr.bf16.vlgmr.msra.gmra.mrb[24].mxu0 %v14243_v40 }
 0x215   : > { %8690 = vmatmul.mubr.bf16.vlgmr.msra.gmra.mrb[24].mxu1 %v14247_v0  ;;  %8699 = vmatpush1.bf16.msra.mxu0 %v12042_v62 }
 0x216   : > { %8740 = vmatpush1.bf16.msra.mxu1 %v12045_v63  ;;  %8700 = vmatprep.subr.bf16.mxu0 %v12050_v58 }
 0x217   : > { %8741 = vmatprep.subr.bf16.mxu1 %v12053_v61  ;;  %8730 = vmatprep.mubr.bf16.mxu0 %v14263_v4 }
 0x218   : > { %8771 = vmatprep.mubr.bf16.mxu1 %v14267_v5 }
 0x219   : > { %8701 = vmatpush1.bf16.msra.mxu0 %v12048_v8 }
 0x21a   : > { %8742 = vmatpush1.bf16.msra.mxu1 %v12051_v9  ;;  %8702 = vmatprep.subr.bf16.mxu0 %v12056_v10 }
 0x21b   : > { %8743 = vmatprep.subr.bf16.mxu1 %v12059_v11  ;;  %v12089_v11 = vld [vmem:[%s13573_s12 + $0x1ee4] ss:$16 sps:$4 sm:$0xff]  }
 0x21d   : > { %8703 = vmatpush1.bf16.msra.mxu0 %v12054_v12 }
 0x21e   : > { %8744 = vmatpush1.bf16.msra.mxu1 %v12057_v13  ;;  %8704 = vmatprep.subr.bf16.mxu0 %v12062_v14  ;;  %v12087_v13 = vld [vmem:[%s13573_s12 + $0x1ee0] ss:$16 sps:$4 sm:$0xff]   ;;  %v12092_v14 = vld [vmem:[%s13573_s12 + $0x1d04] ss:$16 sps:$4 sm:$0xff]  }
 0x21f   : > { %8745 = vmatprep.subr.bf16.mxu1 %v12065_v15  ;;  %v12095_v15 = vld [vmem:[%s13573_s12 + $0x1f04] ss:$16 sps:$4 sm:$0xff]  }
 0x221   : > { %8705 = vmatpush1.bf16.msra.mxu0 %v12060_v18  ;;  %v12090_v18 = vld [vmem:[%s13573_s12 + $0x1d00] ss:$16 sps:$4 sm:$0xff]  }
 0x222   : > { %8746 = vmatpush1.bf16.msra.mxu1 %v12063_v19  ;;  %8706 = vmatprep.subr.bf16.mxu0 %v12068_v20  ;;  %v12093_v19 = vld [vmem:[%s13573_s12 + $0x1f00] ss:$16 sps:$4 sm:$0xff]   ;;  %v12098_v20 = vld [vmem:[%s13573_s12 + $0x1d24] ss:$16 sps:$4 sm:$0xff]  }
 0x223   : > { %8747 = vmatprep.subr.bf16.mxu1 %v12071_v21  ;;  %v12101_v21 = vld [vmem:[%s13573_s12 + $0x1f24] ss:$16 sps:$4 sm:$0xff]  }
 0x225   : > { %8707 = vmatpush1.bf16.msra.mxu0 %v12066_v26  ;;  %v12096_v26 = vld [vmem:[%s13573_s12 + $0x1d20] ss:$16 sps:$4 sm:$0xff]  }
 0x226   : > { %8748 = vmatpush1.bf16.msra.mxu1 %v12069_v27  ;;  %8708 = vmatprep.subr.bf16.mxu0 %v12074_v28  ;;  %v12099_v27 = vld [vmem:[%s13573_s12 + $0x1f20] ss:$16 sps:$4 sm:$0xff]   ;;  %v12104_v28 = vld [vmem:[%s13573_s12 + $0x1d44] ss:$16 sps:$4 sm:$0xff]  }
 0x227   : > { %8749 = vmatprep.subr.bf16.mxu1 %v12077_v29  ;;  %v8404_v22 = vpop.f32.mrb[12].mxu0  ;;  %v12107_v29 = vld [vmem:[%s13573_s12 + $0x1f44] ss:$16 sps:$4 sm:$0xff]  }
 0x228   : > { %v8445_v49 = vpop.f32.mrb[12].mxu1  ;;  %v8405_v44 = vadd.f32 %v8404_v22, %v14197_v34  ;;  %v8406_v57 = vpop.f32.mrb[13].mxu0  ;;  %v12086_v34 = vld [vmem:[%s13573_s12 + $0x1ce4] ss:$16 sps:$4 sm:$0xff]   ;;  %v12108_v22 = vld [vmem:[%s13573_s12 + $0x1d60] ss:$16 sps:$4 sm:$0xff]  }
 0x229   : > { %v8447_v62 = vpop.f32.mrb[13].mxu1  ;;  %v8407_v63 = vadd.f32 %v8406_v57, %v14201_v56  ;;  %v8408_v58 = vpop.f32.mrb[14].mxu0  ;;  %8709 = vmatpush1.bf16.msra.mxu0 %v12072_v30  ;;  %v12084_v56 = vld [vmem:[%s13573_s12 + $0x1ce0] ss:$16 sps:$4 sm:$0xff]  }
 0x22a   : > { %v8449_v61 = vpop.f32.mrb[14].mxu1  ;;  %8750 = vmatpush1.bf16.msra.mxu1 %v12075_v31  ;;  %v14297_v8 = vadd.f32 %v8445_v49, %v8405_v44  ;;  %v8409_v9 = vpop.f32.mrb[15].mxu0  ;;  %8710 = vmatprep.subr.bf16.mxu0 %v12080_v33  ;;  %v12102_v30 = vld [vmem:[%s13573_s12 + $0x1d40] ss:$16 sps:$4 sm:$0xff]   ;;  %v12110_v33 = vld [vmem:[%s13573_s12 + $0x1d64] ss:$16 sps:$4 sm:$0xff]  }
 0x22b   : > { %v8450_v10 = vpop.f32.mrb[15].mxu1  ;;  %8751 = vmatprep.subr.bf16.mxu1 %v12083_v35  ;;  %v14301_v12 = vadd.f32 %v8447_v62, %v8407_v63  ;;  %v12105_v31 = vld [vmem:[%s13573_s12 + $0x1f40] ss:$16 sps:$4 sm:$0xff]   ;;  %v12113_v35 = vld [vmem:[%s13573_s12 + $0x1f64] ss:$16 sps:$4 sm:$0xff]  }
 0x22c   : > { %v12111_v49 = vld [vmem:[%s13573_s12 + $0x1f60] ss:$16 sps:$4 sm:$0xff]   ;;  %v12122_v62 = vld [vmem:[%s13573_s12 + $0x1da4] ss:$16 sps:$4 sm:$0xff]  }
 0x22d   : > { %8711 = vmatpush1.bf16.msra.mxu0 %v12078_v32  ;;  %v12116_v32 = vld [vmem:[%s13573_s12 + $0x1d84] ss:$16 sps:$4 sm:$0xff]   ;;  %v12114_v44 = vld [vmem:[%s13573_s12 + $0x1d80] ss:$16 sps:$4 sm:$0xff]  }
 0x22e   : > { %8752 = vmatpush1.bf16.msra.mxu1 %v12081_v50  ;;  %8712 = vmatprep.subr.bf16.mxu0 %v12086_v34  ;;  %v12119_v50 = vld [vmem:[%s13573_s12 + $0x1f84] ss:$16 sps:$4 sm:$0xff]   ;;  %v12117_v57 = vld [vmem:[%s13573_s12 + $0x1f80] ss:$16 sps:$4 sm:$0xff]  }
 0x22f   : > { %8753 = vmatprep.subr.bf16.mxu1 %v12089_v11  ;;  %v12125_v63 = vld [vmem:[%s13573_s12 + $0x1fa4] ss:$16 sps:$4 sm:$0xff]   ;;  %v12120_v58 = vld [vmem:[%s13573_s12 + $0x1da0] ss:$16 sps:$4 sm:$0xff]  }
 0x230   : > { %v12123_v61 = vld [vmem:[%s13573_s12 + $0x1fa0] ss:$16 sps:$4 sm:$0xff]   ;;  %v12128_v9 = vld [vmem:[%s13573_s12 + $0x1dc4] ss:$16 sps:$4 sm:$0xff]  }
 0x231   : > { %8713 = vmatpush1.bf16.msra.mxu0 %v12084_v56  ;;  %v12131_v10 = vld [vmem:[%s13573_s12 + $0x1fc4] ss:$16 sps:$4 sm:$0xff]   ;;  %v12126_v34 = vld [vmem:[%s13573_s12 + $0x1dc0] ss:$16 sps:$4 sm:$0xff]  }
 0x232   : > { %8754 = vmatpush1.bf16.msra.mxu1 %v12087_v13  ;;  %8714 = vmatprep.subr.bf16.mxu0 %v12092_v14  ;;  %v12129_v11 = vld [vmem:[%s13573_s12 + $0x1fc0] ss:$16 sps:$4 sm:$0xff]   ;;  %v12134_v56 = vld [vmem:[%s13573_s12 + $0x1de4] ss:$16 sps:$4 sm:$0xff]  }
 0x233   : > { %8755 = vmatprep.subr.bf16.mxu1 %v12095_v15  ;;  %v12137_v13 = vld [vmem:[%s13573_s12 + $0x1fe4] ss:$16 sps:$4 sm:$0xff]   ;;  %v12132_v14 = vld [vmem:[%s13573_s12 + $0x1de0] ss:$16 sps:$4 sm:$0xff]  }
 0x234   : > { %v12135_v15 = vld [vmem:[%s13573_s12 + $0x1fe0] ss:$16 sps:$4 sm:$0xff]  }
 0x235   : > { %8715 = vmatpush1.bf16.msra.mxu0 %v12090_v18  ;;  %v12144_v18 = vld [vmem:[%s13573_s12 + $0x2004] ss:$16 sps:$4 sm:$0xff]  }
 0x236   : > { %8756 = vmatpush1.bf16.msra.mxu1 %v12093_v19  ;;  %8716 = vmatprep.subr.bf16.mxu0 %v12098_v20  ;;  %v12147_v19 = vld [vmem:[%s13573_s12 + $0x2204] ss:$16 sps:$4 sm:$0xff]   ;;  %v12142_v20 = vld [vmem:[%s13573_s12 + $0x2000] ss:$16 sps:$4 sm:$0xff]  }
 0x237   : > { %8757 = vmatprep.subr.bf16.mxu1 %v12101_v21  ;;  %v12145_v21 = vld [vmem:[%s13573_s12 + $0x2200] ss:$16 sps:$4 sm:$0xff]  }
 0x239   : > { %8717 = vmatpush1.bf16.msra.mxu0 %v12096_v26  ;;  %v14343_v26 = vcombine.low %v14252_v2, %v14252_v2  ;;  %v12150_v2 = vld [vmem:[%s13573_s12 + $0x2024] ss:$16 sps:$4 sm:$0xff]  }
 0x23a   : > { %8758 = vmatpush1.bf16.msra.mxu1 %v12099_v27  ;;  %8718 = vmatprep.subr.bf16.mxu0 %v12104_v28  ;;  %v14347_v27 = vcombine.low %v14257_v3, %v14257_v3  ;;  %v14352_v28 = vld [vmem:[%s15329_s0 + $0x80] sm:$0xff] }
 0x23b   : > { %8759 = vmatprep.subr.bf16.mxu1 %v12107_v29  ;;  %v14357_v29 = vld [vmem:[%s15329_s0 + $0x88] sm:$0xff]  ;;  %v12153_v3 = vld [vmem:[%s13573_s12 + $0x2224] ss:$16 sps:$4 sm:$0xff]  }
 0x23d   : > { %8719 = vmatpush1.bf16.msra.mxu0 %v12102_v30  ;;  %v14363_v30 = vcombine.high %v14352_v28, %v14352_v28 }
 0x23e   : > { %8760 = vmatpush1.bf16.msra.mxu1 %v12105_v31  ;;  %8720 = vmatprep.subr.bf16.mxu0 %v12110_v33  ;;  %v14367_v31 = vcombine.high %v14357_v29, %v14357_v29  ;;  %v12148_v33 = vld [vmem:[%s13573_s12 + $0x2020] ss:$16 sps:$4 sm:$0xff]  }
 0x23f   : > { %8761 = vmatprep.subr.bf16.mxu1 %v12113_v35  ;;  %v12151_v35 = vld [vmem:[%s13573_s12 + $0x2220] ss:$16 sps:$4 sm:$0xff]  }
 0x241   : > { %8721 = vmatpush1.bf16.msra.mxu0 %v12108_v22  ;;  %v12156_v22 = vld [vmem:[%s13573_s12 + $0x2044] ss:$16 sps:$4 sm:$0xff]  }
 0x242   : > { %8762 = vmatpush1.bf16.msra.mxu1 %v12111_v49  ;;  %8722 = vmatprep.subr.bf16.mxu0 %v12116_v32  ;;  %v12159_v49 = vld [vmem:[%s13573_s12 + $0x2244] ss:$16 sps:$4 sm:$0xff]   ;;  %v12154_v32 = vld [vmem:[%s13573_s12 + $0x2040] ss:$16 sps:$4 sm:$0xff]  }
 0x243   : > { %8763 = vmatprep.subr.bf16.mxu1 %v12119_v50  ;;  %v12157_v50 = vld [vmem:[%s13573_s12 + $0x2240] ss:$16 sps:$4 sm:$0xff]  }
 0x245   : > { %8723 = vmatpush1.bf16.msra.mxu0 %v12114_v44  ;;  %v12162_v44 = vld [vmem:[%s13573_s12 + $0x2064] ss:$16 sps:$4 sm:$0xff]  }
 0x246   : > { %8764 = vmatpush1.bf16.msra.mxu1 %v12117_v57  ;;  %8724 = vmatprep.subr.bf16.mxu0 %v12122_v62  ;;  %v12165_v57 = vld [vmem:[%s13573_s12 + $0x2264] ss:$16 sps:$4 sm:$0xff]   ;;  %v12160_v62 = vld [vmem:[%s13573_s12 + $0x2060] ss:$16 sps:$4 sm:$0xff]  }
 0x247   : > { %8765 = vmatprep.subr.bf16.mxu1 %v12125_v63  ;;  %v12163_v63 = vld [vmem:[%s13573_s12 + $0x2260] ss:$16 sps:$4 sm:$0xff]  }
 0x249   : > { %8725 = vmatpush1.bf16.msra.mxu0 %v12120_v58  ;;  %v12168_v58 = vld [vmem:[%s13573_s12 + $0x2084] ss:$16 sps:$4 sm:$0xff]  }
 0x24a   : > { %8766 = vmatpush1.bf16.msra.mxu1 %v12123_v61  ;;  %8726 = vmatprep.subr.bf16.mxu0 %v12128_v9  ;;  %v12171_v61 = vld [vmem:[%s13573_s12 + $0x2284] ss:$16 sps:$4 sm:$0xff]   ;;  %v12166_v9 = vld [vmem:[%s13573_s12 + $0x2080] ss:$16 sps:$4 sm:$0xff]  }
 0x24b   : > { %8767 = vmatprep.subr.bf16.mxu1 %v12131_v10  ;;  %v12169_v10 = vld [vmem:[%s13573_s12 + $0x2280] ss:$16 sps:$4 sm:$0xff]  }
 0x24d   : > { %8727 = vmatpush1.bf16.msra.mxu0 %v12126_v34  ;;  %v12174_v34 = vld [vmem:[%s13573_s12 + $0x20a4] ss:$16 sps:$4 sm:$0xff]  }
 0x24e   : > { %8768 = vmatpush1.bf16.msra.mxu1 %v12129_v11  ;;  %8728 = vmatprep.subr.bf16.mxu0 %v12134_v56  ;;  %v12177_v11 = vld [vmem:[%s13573_s12 + $0x22a4] ss:$16 sps:$4 sm:$0xff]   ;;  %v12172_v56 = vld [vmem:[%s13573_s12 + $0x20a0] ss:$16 sps:$4 sm:$0xff]  }
 0x24f   : > { %8769 = vmatprep.subr.bf16.mxu1 %v12137_v13  ;;  %v12175_v13 = vld [vmem:[%s13573_s12 + $0x22a0] ss:$16 sps:$4 sm:$0xff]  }
 0x251   : > { %8729 = vmatpush1.bf16.msra.mxu0 %v12132_v14  ;;  %v12180_v14 = vld [vmem:[%s13573_s12 + $0x20c4] ss:$16 sps:$4 sm:$0xff]  }
 0x252   : > { %8770 = vmatpush1.bf16.msra.mxu1 %v12135_v15  ;;  %8780 = vmatprep.subr.bf16.mxu0 %v12144_v18  ;;  %v12183_v15 = vld [vmem:[%s13573_s12 + $0x22c4] ss:$16 sps:$4 sm:$0xff]  }
 0x253   : > { %8821 = vmatprep.subr.bf16.mxu1 %v12147_v19 }
 0x254   : > { %8731 = vmatmul.mubr.bf16.vlgmr.msra.gmra.mrb[28].mxu0 %v14343_v26 }
 0x255   : > { %8772 = vmatmul.mubr.bf16.vlgmr.msra.gmra.mrb[28].mxu1 %v14347_v27  ;;  %8781 = vmatpush1.bf16.msra.mxu0 %v12142_v20  ;;  %v12178_v20 = vld [vmem:[%s13573_s12 + $0x20c0] ss:$16 sps:$4 sm:$0xff]  }
 0x256   : > { %8822 = vmatpush1.bf16.msra.mxu1 %v12145_v21  ;;  %8782 = vmatprep.subr.bf16.mxu0 %v12150_v2  ;;  %v12181_v21 = vld [vmem:[%s13573_s12 + $0x22c0] ss:$16 sps:$4 sm:$0xff]  }
 0x257   : > { %8823 = vmatprep.subr.bf16.mxu1 %v12153_v3  ;;  %8812 = vmatprep.mubr.bf16.mxu0 %v14363_v30 }
 0x258   : > { %8853 = vmatprep.mubr.bf16.mxu1 %v14367_v31 }
 0x259   : > { %8783 = vmatpush1.bf16.msra.mxu0 %v12148_v33 }
 0x25a   : > { %8824 = vmatpush1.bf16.msra.mxu1 %v12151_v35  ;;  %8784 = vmatprep.subr.bf16.mxu0 %v12156_v22 }
 0x25b   : > { %8825 = vmatprep.subr.bf16.mxu1 %v12159_v49 }
 0x25d   : > { %8785 = vmatpush1.bf16.msra.mxu0 %v12154_v32 }
 0x25e   : > { %8826 = vmatpush1.bf16.msra.mxu1 %v12157_v50  ;;  %8786 = vmatprep.subr.bf16.mxu0 %v12162_v44 }
 0x25f   : > { %8827 = vmatprep.subr.bf16.mxu1 %v12165_v57  ;;  %v12189_v57 = vld [vmem:[%s13573_s12 + $0x22e4] ss:$16 sps:$4 sm:$0xff]  }
 0x261   : > { %8787 = vmatpush1.bf16.msra.mxu0 %v12160_v62 }
 0x262   : > { %8828 = vmatpush1.bf16.msra.mxu1 %v12163_v63  ;;  %8788 = vmatprep.subr.bf16.mxu0 %v12168_v58  ;;  %v12187_v63 = vld [vmem:[%s13573_s12 + $0x22e0] ss:$16 sps:$4 sm:$0xff]   ;;  %v12192_v58 = vld [vmem:[%s13573_s12 + $0x2104] ss:$16 sps:$4 sm:$0xff]  }
 0x263   : > { %8829 = vmatprep.subr.bf16.mxu1 %v12171_v61  ;;  %v12195_v61 = vld [vmem:[%s13573_s12 + $0x2304] ss:$16 sps:$4 sm:$0xff]  }
 0x265   : > { %8789 = vmatpush1.bf16.msra.mxu0 %v12166_v9  ;;  %v12190_v9 = vld [vmem:[%s13573_s12 + $0x2100] ss:$16 sps:$4 sm:$0xff]  }
 0x266   : > { %8830 = vmatpush1.bf16.msra.mxu1 %v12169_v10  ;;  %8790 = vmatprep.subr.bf16.mxu0 %v12174_v34  ;;  %v12193_v10 = vld [vmem:[%s13573_s12 + $0x2300] ss:$16 sps:$4 sm:$0xff]   ;;  %v12198_v34 = vld [vmem:[%s13573_s12 + $0x2124] ss:$16 sps:$4 sm:$0xff]  }
 0x267   : > { %8831 = vmatprep.subr.bf16.mxu1 %v12177_v11  ;;  %v8486_v18 = vpop.f32.mrb[16].mxu0  ;;  %v12201_v11 = vld [vmem:[%s13573_s12 + $0x2324] ss:$16 sps:$4 sm:$0xff]  }
 0x268   : > { %v8527_v19 = vpop.f32.mrb[16].mxu1  ;;  %v8487_v2 = vadd.f32 %v8486_v18, %v14297_v8  ;;  %v8488_v3 = vpop.f32.mrb[17].mxu0  ;;  %v12186_v8 = vld [vmem:[%s13573_s12 + $0x20e4] ss:$16 sps:$4 sm:$0xff]   ;;  %v12202_v18 = vld [vmem:[%s13573_s12 + $0x2140] ss:$16 sps:$4 sm:$0xff]  }
 0x269   : > { %v8529_v33 = vpop.f32.mrb[17].mxu1  ;;  %v8489_v35 = vadd.f32 %v8488_v3, %v14301_v12  ;;  %v8490_v22 = vpop.f32.mrb[18].mxu0  ;;  %8791 = vmatpush1.bf16.msra.mxu0 %v12172_v56  ;;  %v12184_v12 = vld [vmem:[%s13573_s12 + $0x20e0] ss:$16 sps:$4 sm:$0xff]  }
 0x26a   : > { %v8531_v49 = vpop.f32.mrb[18].mxu1  ;;  %8832 = vmatpush1.bf16.msra.mxu1 %v12175_v13  ;;  %v14397_v32 = vadd.f32 %v8527_v19, %v8487_v2  ;;  %v8491_v50 = vpop.f32.mrb[19].mxu0  ;;  %8792 = vmatprep.subr.bf16.mxu0 %v12180_v14  ;;  %v12196_v56 = vld [vmem:[%s13573_s12 + $0x2120] ss:$16 sps:$4 sm:$0xff]   ;;  %v12204_v14 = vld [vmem:[%s13573_s12 + $0x2144] ss:$16 sps:$4 sm:$0xff]  }
 0x26b   : > { %v8532_v44 = vpop.f32.mrb[19].mxu1  ;;  %8833 = vmatprep.subr.bf16.mxu1 %v12183_v15  ;;  %v14401_v62 = vadd.f32 %v8529_v33, %v8489_v35  ;;  %v12199_v13 = vld [vmem:[%s13573_s12 + $0x2320] ss:$16 sps:$4 sm:$0xff]   ;;  %v12207_v15 = vld [vmem:[%s13573_s12 + $0x2344] ss:$16 sps:$4 sm:$0xff]  }
 0x26c   : > { %v12205_v19 = vld [vmem:[%s13573_s12 + $0x2340] ss:$16 sps:$4 sm:$0xff]   ;;  %v12216_v33 = vld [vmem:[%s13573_s12 + $0x2184] ss:$16 sps:$4 sm:$0xff]  }
 0x26d   : > { %8793 = vmatpush1.bf16.msra.mxu0 %v12178_v20  ;;  %v12210_v20 = vld [vmem:[%s13573_s12 + $0x2164] ss:$16 sps:$4 sm:$0xff]   ;;  %v12208_v2 = vld [vmem:[%s13573_s12 + $0x2160] ss:$16 sps:$4 sm:$0xff]  }
 0x26e   : > { %8834 = vmatpush1.bf16.msra.mxu1 %v12181_v21  ;;  %8794 = vmatprep.subr.bf16.mxu0 %v12186_v8  ;;  %v12213_v21 = vld [vmem:[%s13573_s12 + $0x2364] ss:$16 sps:$4 sm:$0xff]   ;;  %v12211_v3 = vld [vmem:[%s13573_s12 + $0x2360] ss:$16 sps:$4 sm:$0xff]  }
 0x26f   : > { %8835 = vmatprep.subr.bf16.mxu1 %v12189_v57  ;;  %v12219_v35 = vld [vmem:[%s13573_s12 + $0x2384] ss:$16 sps:$4 sm:$0xff]   ;;  %v12214_v22 = vld [vmem:[%s13573_s12 + $0x2180] ss:$16 sps:$4 sm:$0xff]  }
 0x270   : > { %v12217_v49 = vld [vmem:[%s13573_s12 + $0x2380] ss:$16 sps:$4 sm:$0xff]   ;;  %v12222_v50 = vld [vmem:[%s13573_s12 + $0x21a4] ss:$16 sps:$4 sm:$0xff]  }
 0x271   : > { %8795 = vmatpush1.bf16.msra.mxu0 %v12184_v12  ;;  %v12225_v44 = vld [vmem:[%s13573_s12 + $0x23a4] ss:$16 sps:$4 sm:$0xff]   ;;  %v12220_v8 = vld [vmem:[%s13573_s12 + $0x21a0] ss:$16 sps:$4 sm:$0xff]  }
 0x272   : > { %8836 = vmatpush1.bf16.msra.mxu1 %v12187_v63  ;;  %8796 = vmatprep.subr.bf16.mxu0 %v12192_v58  ;;  %v12223_v57 = vld [vmem:[%s13573_s12 + $0x23a0] ss:$16 sps:$4 sm:$0xff]   ;;  %v12228_v12 = vld [vmem:[%s13573_s12 + $0x21c4] ss:$16 sps:$4 sm:$0xff]  }
 0x273   : > { %8837 = vmatprep.subr.bf16.mxu1 %v12195_v61  ;;  %v12231_v63 = vld [vmem:[%s13573_s12 + $0x23c4] ss:$16 sps:$4 sm:$0xff]   ;;  %v12226_v58 = vld [vmem:[%s13573_s12 + $0x21c0] ss:$16 sps:$4 sm:$0xff]  }
 0x274   : > { %v12229_v61 = vld [vmem:[%s13573_s12 + $0x23c0] ss:$16 sps:$4 sm:$0xff]  }
 0x275   : > { %8797 = vmatpush1.bf16.msra.mxu0 %v12190_v9  ;;  %v12234_v9 = vld [vmem:[%s13573_s12 + $0x21e4] ss:$16 sps:$4 sm:$0xff]  }
 0x276   : > { %8838 = vmatpush1.bf16.msra.mxu1 %v12193_v10  ;;  %8798 = vmatprep.subr.bf16.mxu0 %v12198_v34  ;;  %v12237_v10 = vld [vmem:[%s13573_s12 + $0x23e4] ss:$16 sps:$4 sm:$0xff]   ;;  %v12232_v34 = vld [vmem:[%s13573_s12 + $0x21e0] ss:$16 sps:$4 sm:$0xff]  }
 0x277   : > { %8839 = vmatprep.subr.bf16.mxu1 %v12201_v11  ;;  %v12235_v11 = vld [vmem:[%s13573_s12 + $0x23e0] ss:$16 sps:$4 sm:$0xff]  }
 0x279   : > { %8799 = vmatpush1.bf16.msra.mxu0 %v12196_v56  ;;  %v12244_v56 = vld [vmem:[%s13573_s12 + $0x2404] ss:$16 sps:$4 sm:$0xff]  }
 0x27a   : > { %8840 = vmatpush1.bf16.msra.mxu1 %v12199_v13  ;;  %8800 = vmatprep.subr.bf16.mxu0 %v12204_v14  ;;  %v12247_v13 = vld [vmem:[%s13573_s12 + $0x2604] ss:$16 sps:$4 sm:$0xff]  }
 0x27b   : > { %8841 = vmatprep.subr.bf16.mxu1 %v12207_v15  ;;  %v14442_v14 = vld [vmem:[%s15329_s0 + $0x90] sm:$0xff]  ;;  %v14447_v15 = vld [vmem:[%s15329_s0 + $0x98] sm:$0xff] }
 0x27d   : > { %8801 = vmatpush1.bf16.msra.mxu0 %v12202_v18  ;;  %v12242_v18 = vld [vmem:[%s13573_s12 + $0x2400] ss:$16 sps:$4 sm:$0xff]  }
 0x27e   : > { %8842 = vmatpush1.bf16.msra.mxu1 %v12205_v19  ;;  %8802 = vmatprep.subr.bf16.mxu0 %v12210_v20  ;;  %v12245_v19 = vld [vmem:[%s13573_s12 + $0x2600] ss:$16 sps:$4 sm:$0xff]   ;;  %v14453_v20 = vcombine.low %v14352_v28, %v14352_v28  ;;  %v14467_v28 = vcombine.high %v14447_v15, %v14447_v15 }
 0x27f   : > { %8843 = vmatprep.subr.bf16.mxu1 %v12213_v21  ;;  %v14457_v21 = vcombine.low %v14357_v29, %v14357_v29  ;;  %v12248_v29 = vld [vmem:[%s13573_s12 + $0x2420] ss:$16 sps:$4 sm:$0xff]  }
 0x281   : > { %8803 = vmatpush1.bf16.msra.mxu0 %v12208_v2  ;;  %v12250_v2 = vld [vmem:[%s13573_s12 + $0x2424] ss:$16 sps:$4 sm:$0xff]  }
 0x282   : > { %8844 = vmatpush1.bf16.msra.mxu1 %v12211_v3  ;;  %8804 = vmatprep.subr.bf16.mxu0 %v12216_v33  ;;  %v12253_v3 = vld [vmem:[%s13573_s12 + $0x2624] ss:$16 sps:$4 sm:$0xff]   ;;  %v14463_v33 = vcombine.high %v14442_v14, %v14442_v14 }
 0x283   : > { %8845 = vmatprep.subr.bf16.mxu1 %v12219_v35  ;;  %v12251_v35 = vld [vmem:[%s13573_s12 + $0x2620] ss:$16 sps:$4 sm:$0xff]  }
 0x285   : > { %8805 = vmatpush1.bf16.msra.mxu0 %v12214_v22  ;;  %v12256_v22 = vld [vmem:[%s13573_s12 + $0x2444] ss:$16 sps:$4 sm:$0xff]  }
 0x286   : > { %8846 = vmatpush1.bf16.msra.mxu1 %v12217_v49  ;;  %8806 = vmatprep.subr.bf16.mxu0 %v12222_v50  ;;  %v12259_v49 = vld [vmem:[%s13573_s12 + $0x2644] ss:$16 sps:$4 sm:$0xff]   ;;  %v12254_v50 = vld [vmem:[%s13573_s12 + $0x2440] ss:$16 sps:$4 sm:$0xff]  }
 0x287   : > { %8847 = vmatprep.subr.bf16.mxu1 %v12225_v44  ;;  %v12257_v44 = vld [vmem:[%s13573_s12 + $0x2640] ss:$16 sps:$4 sm:$0xff]  }
 0x289   : > { %8807 = vmatpush1.bf16.msra.mxu0 %v12220_v8  ;;  %v12262_v8 = vld [vmem:[%s13573_s12 + $0x2464] ss:$16 sps:$4 sm:$0xff]  }
 0x28a   : > { %8848 = vmatpush1.bf16.msra.mxu1 %v12223_v57  ;;  %8808 = vmatprep.subr.bf16.mxu0 %v12228_v12  ;;  %v12265_v57 = vld [vmem:[%s13573_s12 + $0x2664] ss:$16 sps:$4 sm:$0xff]   ;;  %v12260_v12 = vld [vmem:[%s13573_s12 + $0x2460] ss:$16 sps:$4 sm:$0xff]  }
 0x28b   : > { %8849 = vmatprep.subr.bf16.mxu1 %v12231_v63  ;;  %v12263_v63 = vld [vmem:[%s13573_s12 + $0x2660] ss:$16 sps:$4 sm:$0xff]  }
 0x28d   : > { %8809 = vmatpush1.bf16.msra.mxu0 %v12226_v58  ;;  %v12268_v58 = vld [vmem:[%s13573_s12 + $0x2484] ss:$16 sps:$4 sm:$0xff]  }
 0x28e   : > { %8850 = vmatpush1.bf16.msra.mxu1 %v12229_v61  ;;  %8810 = vmatprep.subr.bf16.mxu0 %v12234_v9  ;;  %v12271_v61 = vld [vmem:[%s13573_s12 + $0x2684] ss:$16 sps:$4 sm:$0xff]   ;;  %v12266_v9 = vld [vmem:[%s13573_s12 + $0x2480] ss:$16 sps:$4 sm:$0xff]  }
 0x28f   : > { %8851 = vmatprep.subr.bf16.mxu1 %v12237_v10  ;;  %v12269_v10 = vld [vmem:[%s13573_s12 + $0x2680] ss:$16 sps:$4 sm:$0xff]  }
 0x291   : > { %8811 = vmatpush1.bf16.msra.mxu0 %v12232_v34  ;;  %v12274_v34 = vld [vmem:[%s13573_s12 + $0x24a4] ss:$16 sps:$4 sm:$0xff]  }
 0x292   : > { %8852 = vmatpush1.bf16.msra.mxu1 %v12235_v11  ;;  %8862 = vmatprep.subr.bf16.mxu0 %v12244_v56  ;;  %v12277_v11 = vld [vmem:[%s13573_s12 + $0x26a4] ss:$16 sps:$4 sm:$0xff]   ;;  %v12272_v56 = vld [vmem:[%s13573_s12 + $0x24a0] ss:$16 sps:$4 sm:$0xff]  }
 0x293   : > { %8903 = vmatprep.subr.bf16.mxu1 %v12247_v13  ;;  %v12275_v13 = vld [vmem:[%s13573_s12 + $0x26a0] ss:$16 sps:$4 sm:$0xff]  }
 0x294   : > { %8813 = vmatmul.mubr.bf16.vlgmr.msra.gmra.mrb[32].mxu0 %v14453_v20 }
 0x295   : > { %8854 = vmatmul.mubr.bf16.vlgmr.msra.gmra.mrb[32].mxu1 %v14457_v21  ;;  %8863 = vmatpush1.bf16.msra.mxu0 %v12242_v18  ;;  %v12280_v18 = vld [vmem:[%s13573_s12 + $0x24c4] ss:$16 sps:$4 sm:$0xff]  }
 0x296   : > { %8904 = vmatpush1.bf16.msra.mxu1 %v12245_v19  ;;  %8864 = vmatprep.subr.bf16.mxu0 %v12250_v2  ;;  %v12283_v19 = vld [vmem:[%s13573_s12 + $0x26c4] ss:$16 sps:$4 sm:$0xff]  }
 0x297   : > { %8905 = vmatprep.subr.bf16.mxu1 %v12253_v3  ;;  %8894 = vmatprep.mubr.bf16.mxu0 %v14463_v33 }
 0x298   : > { %8935 = vmatprep.mubr.bf16.mxu1 %v14467_v28 }
 0x299   : > { %8865 = vmatpush1.bf16.msra.mxu0 %v12248_v29  ;;  %v12278_v29 = vld [vmem:[%s13573_s12 + $0x24c0] ss:$16 sps:$4 sm:$0xff]  }
 0x29a   : > { %8906 = vmatpush1.bf16.msra.mxu1 %v12251_v35  ;;  %8866 = vmatprep.subr.bf16.mxu0 %v12256_v22  ;;  %v12281_v35 = vld [vmem:[%s13573_s12 + $0x26c0] ss:$16 sps:$4 sm:$0xff]  }
 0x29b   : > { %8907 = vmatprep.subr.bf16.mxu1 %v12259_v49 }
 0x29d   : > { %8867 = vmatpush1.bf16.msra.mxu0 %v12254_v50 }
 0x29e   : > { %8908 = vmatpush1.bf16.msra.mxu1 %v12257_v44  ;;  %8868 = vmatprep.subr.bf16.mxu0 %v12262_v8 }
 0x29f   : > { %8909 = vmatprep.subr.bf16.mxu1 %v12265_v57 }
 0x2a1   : > { %8869 = vmatpush1.bf16.msra.mxu0 %v12260_v12 }
 0x2a2   : > { %8910 = vmatpush1.bf16.msra.mxu1 %v12263_v63  ;;  %8870 = vmatprep.subr.bf16.mxu0 %v12268_v58 }
 0x2a3   : > { %8911 = vmatprep.subr.bf16.mxu1 %v12271_v61  ;;  %v12289_v61 = vld [vmem:[%s13573_s12 + $0x26e4] ss:$16 sps:$4 sm:$0xff]  }
 0x2a5   : > { %8871 = vmatpush1.bf16.msra.mxu0 %v12266_v9 }
 0x2a6   : > { %8912 = vmatpush1.bf16.msra.mxu1 %v12269_v10  ;;  %8872 = vmatprep.subr.bf16.mxu0 %v12274_v34  ;;  %v12287_v10 = vld [vmem:[%s13573_s12 + $0x26e0] ss:$16 sps:$4 sm:$0xff]   ;;  %v12292_v34 = vld [vmem:[%s13573_s12 + $0x2504] ss:$16 sps:$4 sm:$0xff]  }
 0x2a7   : > { %8913 = vmatprep.subr.bf16.mxu1 %v12277_v11  ;;  %v8568_v2 = vpop.f32.mrb[20].mxu0  ;;  %v12295_v11 = vld [vmem:[%s13573_s12 + $0x2704] ss:$16 sps:$4 sm:$0xff]  }
 0x2a8   : > { %v8609_v3 = vpop.f32.mrb[20].mxu1  ;;  %v8569_v22 = vadd.f32 %v8568_v2, %v14397_v32  ;;  %v8570_v49 = vpop.f32.mrb[21].mxu0  ;;  %v12286_v32 = vld [vmem:[%s13573_s12 + $0x24e4] ss:$16 sps:$4 sm:$0xff]   ;;  %v12296_v2 = vld [vmem:[%s13573_s12 + $0x2520] ss:$16 sps:$4 sm:$0xff]  }
 0x2a9   : > { %v8611_v50 = vpop.f32.mrb[21].mxu1  ;;  %v8571_v44 = vadd.f32 %v8570_v49, %v14401_v62  ;;  %v8572_v8 = vpop.f32.mrb[22].mxu0  ;;  %8873 = vmatpush1.bf16.msra.mxu0 %v12272_v56  ;;  %v12284_v62 = vld [vmem:[%s13573_s12 + $0x24e0] ss:$16 sps:$4 sm:$0xff]  }
 0x2aa   : > { %v8613_v57 = vpop.f32.mrb[22].mxu1  ;;  %8914 = vmatpush1.bf16.msra.mxu1 %v12275_v13  ;;  %v14497_v12 = vadd.f32 %v8609_v3, %v8569_v22  ;;  %v8573_v63 = vpop.f32.mrb[23].mxu0  ;;  %8874 = vmatprep.subr.bf16.mxu0 %v12280_v18  ;;  %v12290_v56 = vld [vmem:[%s13573_s12 + $0x2500] ss:$16 sps:$4 sm:$0xff]   ;;  %v12298_v18 = vld [vmem:[%s13573_s12 + $0x2524] ss:$16 sps:$4 sm:$0xff]  }
 0x2ab   : > { %v8614_v58 = vpop.f32.mrb[23].mxu1  ;;  %8915 = vmatprep.subr.bf16.mxu1 %v12283_v19  ;;  %v14501_v9 = vadd.f32 %v8611_v50, %v8571_v44  ;;  %v12293_v13 = vld [vmem:[%s13573_s12 + $0x2700] ss:$16 sps:$4 sm:$0xff]   ;;  %v12301_v19 = vld [vmem:[%s13573_s12 + $0x2724] ss:$16 sps:$4 sm:$0xff]  }
 0x2ac   : > { %v12299_v3 = vld [vmem:[%s13573_s12 + $0x2720] ss:$16 sps:$4 sm:$0xff]   ;;  %v12310_v50 = vld [vmem:[%s13573_s12 + $0x2564] ss:$16 sps:$4 sm:$0xff]  }
 0x2ad   : > { %8875 = vmatpush1.bf16.msra.mxu0 %v12278_v29  ;;  %v12304_v29 = vld [vmem:[%s13573_s12 + $0x2544] ss:$16 sps:$4 sm:$0xff]   ;;  %v12302_v22 = vld [vmem:[%s13573_s12 + $0x2540] ss:$16 sps:$4 sm:$0xff]  }
 0x2ae   : > { %8916 = vmatpush1.bf16.msra.mxu1 %v12281_v35  ;;  %8876 = vmatprep.subr.bf16.mxu0 %v12286_v32  ;;  %v12307_v35 = vld [vmem:[%s13573_s12 + $0x2744] ss:$16 sps:$4 sm:$0xff]   ;;  %v12305_v49 = vld [vmem:[%s13573_s12 + $0x2740] ss:$16 sps:$4 sm:$0xff]  }
 0x2af   : > { %8917 = vmatprep.subr.bf16.mxu1 %v12289_v61  ;;  %v12313_v44 = vld [vmem:[%s13573_s12 + $0x2764] ss:$16 sps:$4 sm:$0xff]   ;;  %v12308_v8 = vld [vmem:[%s13573_s12 + $0x2560] ss:$16 sps:$4 sm:$0xff]  }
 0x2b0   : > { %v12311_v57 = vld [vmem:[%s13573_s12 + $0x2760] ss:$16 sps:$4 sm:$0xff]   ;;  %v12316_v63 = vld [vmem:[%s13573_s12 + $0x2584] ss:$16 sps:$4 sm:$0xff]  }
 0x2b1   : > { %8877 = vmatpush1.bf16.msra.mxu0 %v12284_v62  ;;  %v12319_v58 = vld [vmem:[%s13573_s12 + $0x2784] ss:$16 sps:$4 sm:$0xff]   ;;  %v12314_v32 = vld [vmem:[%s13573_s12 + $0x2580] ss:$16 sps:$4 sm:$0xff]  }
 0x2b2   : > { %8918 = vmatpush1.bf16.msra.mxu1 %v12287_v10  ;;  %8878 = vmatprep.subr.bf16.mxu0 %v12292_v34  ;;  %v12317_v61 = vld [vmem:[%s13573_s12 + $0x2780] ss:$16 sps:$4 sm:$0xff]   ;;  %v12322_v62 = vld [vmem:[%s13573_s12 + $0x25a4] ss:$16 sps:$4 sm:$0xff]  }
 0x2b3   : > { %8919 = vmatprep.subr.bf16.mxu1 %v12295_v11  ;;  %v12325_v10 = vld [vmem:[%s13573_s12 + $0x27a4] ss:$16 sps:$4 sm:$0xff]   ;;  %v12320_v34 = vld [vmem:[%s13573_s12 + $0x25a0] ss:$16 sps:$4 sm:$0xff]  }
 0x2b4   : > { %v12323_v11 = vld [vmem:[%s13573_s12 + $0x27a0] ss:$16 sps:$4 sm:$0xff]  }
 0x2b5   : > { %8879 = vmatpush1.bf16.msra.mxu0 %v12290_v56  ;;  %v12328_v56 = vld [vmem:[%s13573_s12 + $0x25c4] ss:$16 sps:$4 sm:$0xff]  }
 0x2b6   : > { %8920 = vmatpush1.bf16.msra.mxu1 %v12293_v13  ;;  %8880 = vmatprep.subr.bf16.mxu0 %v12298_v18  ;;  %v12331_v13 = vld [vmem:[%s13573_s12 + $0x27c4] ss:$16 sps:$4 sm:$0xff]   ;;  %v12326_v18 = vld [vmem:[%s13573_s12 + $0x25c0] ss:$16 sps:$4 sm:$0xff]  }
 0x2b7   : > { %8921 = vmatprep.subr.bf16.mxu1 %v12301_v19  ;;  %v12329_v19 = vld [vmem:[%s13573_s12 + $0x27c0] ss:$16 sps:$4 sm:$0xff]  }
 0x2b9   : > { %8881 = vmatpush1.bf16.msra.mxu0 %v12296_v2  ;;  %v12334_v2 = vld [vmem:[%s13573_s12 + $0x25e4] ss:$16 sps:$4 sm:$0xff]  }
 0x2ba   : > { %8922 = vmatpush1.bf16.msra.mxu1 %v12299_v3  ;;  %8882 = vmatprep.subr.bf16.mxu0 %v12304_v29  ;;  %v12337_v3 = vld [vmem:[%s13573_s12 + $0x27e4] ss:$16 sps:$4 sm:$0xff]   ;;  %v12332_v29 = vld [vmem:[%s13573_s12 + $0x25e0] ss:$16 sps:$4 sm:$0xff]  }
 0x2bb   : > { %8923 = vmatprep.subr.bf16.mxu1 %v12307_v35  ;;  %v12335_v35 = vld [vmem:[%s13573_s12 + $0x27e0] ss:$16 sps:$4 sm:$0xff]  }
 0x2bd   : > { %8883 = vmatpush1.bf16.msra.mxu0 %v12302_v22  ;;  %v12344_v22 = vld [vmem:[%s13573_s12 + $0xc] ss:$16 sps:$4 sm:$0xff]  }
 0x2be   : > { %8924 = vmatpush1.bf16.msra.mxu1 %v12305_v49  ;;  %8884 = vmatprep.subr.bf16.mxu0 %v12310_v50  ;;  %v12347_v49 = vld [vmem:[%s13573_s12 + $0x20c] ss:$16 sps:$4 sm:$0xff]   ;;  %v12342_v50 = vld [vmem:[%s13573_s12 + $0x8] ss:$16 sps:$4 sm:$0xff]  }
 0x2bf   : > { %8925 = vmatprep.subr.bf16.mxu1 %v12313_v44  ;;  %v12345_v44 = vld [vmem:[%s13573_s12 + $0x208] ss:$16 sps:$4 sm:$0xff]  }
 0x2c1   : > { %8885 = vmatpush1.bf16.msra.mxu0 %v12308_v8  ;;  %v14543_v8 = vcombine.low %v14442_v14, %v14442_v14  ;;  %v12348_v14 = vld [vmem:[%s13573_s12 + $0x28] ss:$16 sps:$4 sm:$0xff]  }
 0x2c2   : > { %8926 = vmatpush1.bf16.msra.mxu1 %v12311_v57  ;;  %8886 = vmatprep.subr.bf16.mxu0 %v12316_v63  ;;  %v14547_v57 = vcombine.low %v14447_v15, %v14447_v15  ;;  %v12350_v63 = vld [vmem:[%s13573_s12 + $0x2c] ss:$16 sps:$4 sm:$0xff]   ;;  %v12351_v15 = vld [vmem:[%s13573_s12 + $0x228] ss:$16 sps:$4 sm:$0xff]  }
 0x2c3   : > { %8927 = vmatprep.subr.bf16.mxu1 %v12319_v58  ;;  %v12353_v58 = vld [vmem:[%s13573_s12 + $0x22c] ss:$16 sps:$4 sm:$0xff]  }
 0x2c5   : > { %8887 = vmatpush1.bf16.msra.mxu0 %v12314_v32  ;;  %v12356_v32 = vld [vmem:[%s13573_s12 + $0x4c] ss:$16 sps:$4 sm:$0xff]  }
 0x2c6   : > { %8928 = vmatpush1.bf16.msra.mxu1 %v12317_v61  ;;  %8888 = vmatprep.subr.bf16.mxu0 %v12322_v62  ;;  %v12359_v61 = vld [vmem:[%s13573_s12 + $0x24c] ss:$16 sps:$4 sm:$0xff]   ;;  %v12354_v62 = vld [vmem:[%s13573_s12 + $0x48] ss:$16 sps:$4 sm:$0xff]  }
 0x2c7   : > { %8929 = vmatprep.subr.bf16.mxu1 %v12325_v10  ;;  %v12357_v10 = vld [vmem:[%s13573_s12 + $0x248] ss:$16 sps:$4 sm:$0xff]  }
 0x2c9   : > { %8889 = vmatpush1.bf16.msra.mxu0 %v12320_v34  ;;  %v12362_v34 = vld [vmem:[%s13573_s12 + $0x6c] ss:$16 sps:$4 sm:$0xff]  }
 0x2ca   : > { %8930 = vmatpush1.bf16.msra.mxu1 %v12323_v11  ;;  %8890 = vmatprep.subr.bf16.mxu0 %v12328_v56  ;;  %v12365_v11 = vld [vmem:[%s13573_s12 + $0x26c] ss:$16 sps:$4 sm:$0xff]   ;;  %v12363_v56 = vld [vmem:[%s13573_s12 + $0x268] ss:$16 sps:$4 sm:$0xff]  }
 0x2cb   : > { %8931 = vmatprep.subr.bf16.mxu1 %v12331_v13  ;;  %v12371_v13 = vld [vmem:[%s13573_s12 + $0x28c] ss:$16 sps:$4 sm:$0xff]  }
 0x2cd   : > { %8891 = vmatpush1.bf16.msra.mxu0 %v12326_v18  ;;  %v12366_v18 = vld [vmem:[%s13573_s12 + $0x88] ss:$16 sps:$4 sm:$0xff]  }
 0x2ce   : > { %8932 = vmatpush1.bf16.msra.mxu1 %v12329_v19  ;;  %8892 = vmatprep.subr.bf16.mxu0 %v12334_v2  ;;  %v12369_v19 = vld [vmem:[%s13573_s12 + $0x288] ss:$16 sps:$4 sm:$0xff]   ;;  %v12374_v2 = vld [vmem:[%s13573_s12 + $0xac] ss:$16 sps:$4 sm:$0xff]  }
 0x2cf   : > { %8933 = vmatprep.subr.bf16.mxu1 %v12337_v3  ;;  %v12377_v3 = vld [vmem:[%s13573_s12 + $0x2ac] ss:$16 sps:$4 sm:$0xff]  }
 0x2d1   : > { %8893 = vmatpush1.bf16.msra.mxu0 %v12332_v29  ;;  %v12372_v29 = vld [vmem:[%s13573_s12 + $0xa8] ss:$16 sps:$4 sm:$0xff]  }
 0x2d2   : > { %8934 = vmatpush1.bf16.msra.mxu1 %v12335_v35  ;;  %8944 = vmatprep.subr.bf16.mxu0 %v12344_v22  ;;  %v12375_v35 = vld [vmem:[%s13573_s12 + $0x2a8] ss:$16 sps:$4 sm:$0xff]   ;;  %v12380_v22 = vld [vmem:[%s13573_s12 + $0xcc] ss:$16 sps:$4 sm:$0xff]  }
 0x2d3   : > { %8985 = vmatprep.subr.bf16.mxu1 %v12347_v49  ;;  %v12383_v49 = vld [vmem:[%s13573_s12 + $0x2cc] ss:$16 sps:$4 sm:$0xff]  }
 0x2d4   : > { %8895 = vmatmul.mubr.bf16.vlgmr.msra.gmra.mrb[36].mxu0 %v14543_v8 }
 0x2d5   : > { %8936 = vmatmul.mubr.bf16.vlgmr.msra.gmra.mrb[36].mxu1 %v14547_v57  ;;  %8945 = vmatpush1.bf16.msra.mxu0 %v12342_v50 }
 0x2d6   : > { %8986 = vmatpush1.bf16.msra.mxu1 %v12345_v44  ;;  %8946 = vmatprep.subr.bf16.mxu0 %v12350_v63  ;;  %v12378_v63 = vld [vmem:[%s13573_s12 + $0xc8] ss:$16 sps:$4 sm:$0xff]  }
 0x2d7   : > { %8987 = vmatprep.subr.bf16.mxu1 %v12353_v58  ;;  %8976 = vmatprep.mubr.bf16.mxu0 %v13634_v47  ;;  %v12360_v47 = vld [vmem:[%s13573_s12 + $0x68] ss:$16 sps:$4 sm:$0xff]  }
 0x2d8   : > { %9017 = vmatprep.mubr.bf16.mxu1 %v13641_v51  ;;  %v12368_v51 = vld [vmem:[%s13573_s12 + $0x8c] ss:$16 sps:$4 sm:$0xff]   ;;  %v12381_v58 = vld [vmem:[%s13573_s12 + $0x2c8] ss:$16 sps:$4 sm:$0xff]  }
 0x2d9   : > { %8947 = vmatpush1.bf16.msra.mxu0 %v12348_v14 }
 0x2da   : > { %8988 = vmatpush1.bf16.msra.mxu1 %v12351_v15  ;;  %8948 = vmatprep.subr.bf16.mxu0 %v12356_v32 }
 0x2db   : > { %8989 = vmatprep.subr.bf16.mxu1 %v12359_v61 }
 0x2dd   : > { %8949 = vmatpush1.bf16.msra.mxu0 %v12354_v62 }
 0x2de   : > { %8990 = vmatpush1.bf16.msra.mxu1 %v12357_v10  ;;  %8950 = vmatprep.subr.bf16.mxu0 %v12362_v34 }
 0x2df   : > { %8991 = vmatprep.subr.bf16.mxu1 %v12365_v11 }
 0x2e1   : > { %8951 = vmatpush1.bf16.msra.mxu0 %v12360_v47 }
 0x2e2   : > { %8992 = vmatpush1.bf16.msra.mxu1 %v12363_v56  ;;  %8952 = vmatprep.subr.bf16.mxu0 %v12368_v51  ;;  %v12389_v56 = vld [vmem:[%s13573_s12 + $0x2ec] ss:$16 sps:$4 sm:$0xff]  }
 0x2e3   : > { %8993 = vmatprep.subr.bf16.mxu1 %v12371_v13  ;;  %v12387_v13 = vld [vmem:[%s13573_s12 + $0x2e8] ss:$16 sps:$4 sm:$0xff]  }
 0x2e5   : > { %8953 = vmatpush1.bf16.msra.mxu0 %v12366_v18  ;;  %v12392_v18 = vld [vmem:[%s13573_s12 + $0x10c] ss:$16 sps:$4 sm:$0xff]  }
 0x2e6   : > { %8994 = vmatpush1.bf16.msra.mxu1 %v12369_v19  ;;  %8954 = vmatprep.subr.bf16.mxu0 %v12374_v2  ;;  %v12395_v19 = vld [vmem:[%s13573_s12 + $0x30c] ss:$16 sps:$4 sm:$0xff]   ;;  %v12390_v2 = vld [vmem:[%s13573_s12 + $0x108] ss:$16 sps:$4 sm:$0xff]  }
 0x2e7   : > { %8995 = vmatprep.subr.bf16.mxu1 %v12377_v3  ;;  %v8650_v50 = vpop.f32.mrb[24].mxu0  ;;  %v12393_v3 = vld [vmem:[%s13573_s12 + $0x308] ss:$16 sps:$4 sm:$0xff]  }
 0x2e8   : > { %v8691_v44 = vpop.f32.mrb[24].mxu1  ;;  %v8651_v14 = vadd.f32 %v8650_v50, %v14497_v12  ;;  %v8652_v15 = vpop.f32.mrb[25].mxu0  ;;  %v12386_v12 = vld [vmem:[%s13573_s12 + $0xec] ss:$16 sps:$4 sm:$0xff]  }
 0x2e9   : > { %v8693_v32 = vpop.f32.mrb[25].mxu1  ;;  %v8653_v61 = vadd.f32 %v8652_v15, %v14501_v9  ;;  %v8654_v62 = vpop.f32.mrb[26].mxu0  ;;  %8955 = vmatpush1.bf16.msra.mxu0 %v12372_v29  ;;  %v12384_v9 = vld [vmem:[%s13573_s12 + $0xe8] ss:$16 sps:$4 sm:$0xff]   ;;  %v12398_v29 = vld [vmem:[%s13573_s12 + $0x12c] ss:$16 sps:$4 sm:$0xff]  }
 0x2ea   : > { %v8695_v10 = vpop.f32.mrb[26].mxu1  ;;  %8996 = vmatpush1.bf16.msra.mxu1 %v12375_v35  ;;  %v14579_v34 = vadd.f32 %v8691_v44, %v8651_v14  ;;  %v8655_v11 = vpop.f32.mrb[27].mxu0  ;;  %8956 = vmatprep.subr.bf16.mxu0 %v12380_v22  ;;  %v12401_v35 = vld [vmem:[%s13573_s12 + $0x32c] ss:$16 sps:$4 sm:$0xff]   ;;  %v12396_v22 = vld [vmem:[%s13573_s12 + $0x128] ss:$16 sps:$4 sm:$0xff]  }
 0x2eb   : > { %v8696_v47 = vpop.f32.mrb[27].mxu1  ;;  %8997 = vmatprep.subr.bf16.mxu1 %v12383_v49  ;;  %v14583_v51 = vadd.f32 %v8693_v32, %v8653_v61  ;;  %v12399_v49 = vld [vmem:[%s13573_s12 + $0x328] ss:$16 sps:$4 sm:$0xff]   ;;  %v12404_v50 = vld [vmem:[%s13573_s12 + $0x14c] ss:$16 sps:$4 sm:$0xff]  }
 0x2ec   : > { %v12407_v44 = vld [vmem:[%s13573_s12 + $0x34c] ss:$16 sps:$4 sm:$0xff]   ;;  %v12408_v32 = vld [vmem:[%s13573_s12 + $0x168] ss:$16 sps:$4 sm:$0xff]  }
 0x2ed   : > { %8957 = vmatpush1.bf16.msra.mxu0 %v12378_v63  ;;  %v12402_v63 = vld [vmem:[%s13573_s12 + $0x148] ss:$16 sps:$4 sm:$0xff]   ;;  %v12410_v14 = vld [vmem:[%s13573_s12 + $0x16c] ss:$16 sps:$4 sm:$0xff]  }
 0x2ee   : > { %8998 = vmatpush1.bf16.msra.mxu1 %v12381_v58  ;;  %8958 = vmatprep.subr.bf16.mxu0 %v12386_v12  ;;  %v12405_v58 = vld [vmem:[%s13573_s12 + $0x348] ss:$16 sps:$4 sm:$0xff]   ;;  %v12413_v15 = vld [vmem:[%s13573_s12 + $0x36c] ss:$16 sps:$4 sm:$0xff]  }
 0x2ef   : > { %8999 = vmatprep.subr.bf16.mxu1 %v12389_v56  ;;  %v12411_v61 = vld [vmem:[%s13573_s12 + $0x368] ss:$16 sps:$4 sm:$0xff]   ;;  %v12416_v62 = vld [vmem:[%s13573_s12 + $0x18c] ss:$16 sps:$4 sm:$0xff]  }
 0x2f0   : > { %v12419_v10 = vld [vmem:[%s13573_s12 + $0x38c] ss:$16 sps:$4 sm:$0xff]   ;;  %v12414_v11 = vld [vmem:[%s13573_s12 + $0x188] ss:$16 sps:$4 sm:$0xff]  }
 0x2f1   : > { %8959 = vmatpush1.bf16.msra.mxu0 %v12384_v9  ;;  %v12417_v47 = vld [vmem:[%s13573_s12 + $0x388] ss:$16 sps:$4 sm:$0xff]   ;;  %v12422_v12 = vld [vmem:[%s13573_s12 + $0x1ac] ss:$16 sps:$4 sm:$0xff]  }
 0x2f2   : > { %9000 = vmatpush1.bf16.msra.mxu1 %v12387_v13  ;;  %8960 = vmatprep.subr.bf16.mxu0 %v12392_v18  ;;  %v12425_v56 = vld [vmem:[%s13573_s12 + $0x3ac] ss:$16 sps:$4 sm:$0xff]   ;;  %v12420_v9 = vld [vmem:[%s13573_s12 + $0x1a8] ss:$16 sps:$4 sm:$0xff]  }
 0x2f3   : > { %9001 = vmatprep.subr.bf16.mxu1 %v12395_v19  ;;  %v12423_v13 = vld [vmem:[%s13573_s12 + $0x3a8] ss:$16 sps:$4 sm:$0xff]   ;;  %v12428_v18 = vld [vmem:[%s13573_s12 + $0x1cc] ss:$16 sps:$4 sm:$0xff]  }
 0x2f4   : > { %v12431_v19 = vld [vmem:[%s13573_s12 + $0x3cc] ss:$16 sps:$4 sm:$0xff]  }
 0x2f5   : > { %8961 = vmatpush1.bf16.msra.mxu0 %v12390_v2  ;;  %v12426_v2 = vld [vmem:[%s13573_s12 + $0x1c8] ss:$16 sps:$4 sm:$0xff]  }
 0x2f6   : > { %9002 = vmatpush1.bf16.msra.mxu1 %v12393_v3  ;;  %8962 = vmatprep.subr.bf16.mxu0 %v12398_v29  ;;  %v12429_v3 = vld [vmem:[%s13573_s12 + $0x3c8] ss:$16 sps:$4 sm:$0xff]   ;;  %v12434_v29 = vld [vmem:[%s13573_s12 + $0x1ec] ss:$16 sps:$4 sm:$0xff]  }
 0x2f7   : > { %9003 = vmatprep.subr.bf16.mxu1 %v12401_v35  ;;  %v12437_v35 = vld [vmem:[%s13573_s12 + $0x3ec] ss:$16 sps:$4 sm:$0xff]  }
 0x2f9   : > { %8963 = vmatpush1.bf16.msra.mxu0 %v12396_v22  ;;  %v12432_v22 = vld [vmem:[%s13573_s12 + $0x1e8] ss:$16 sps:$4 sm:$0xff]  }
 0x2fa   : > { %9004 = vmatpush1.bf16.msra.mxu1 %v12399_v49  ;;  %8964 = vmatprep.subr.bf16.mxu0 %v12404_v50  ;;  %v12435_v49 = vld [vmem:[%s13573_s12 + $0x3e8] ss:$16 sps:$4 sm:$0xff]   ;;  %v12440_v50 = vld [vmem:[%s13573_s12 + $0x40c] ss:$16 sps:$4 sm:$0xff]  }
 0x2fb   : > { %9005 = vmatprep.subr.bf16.mxu1 %v12407_v44  ;;  %v12443_v44 = vld [vmem:[%s13573_s12 + $0x60c] ss:$16 sps:$4 sm:$0xff]  }
 0x2fd   : > { %8965 = vmatpush1.bf16.msra.mxu0 %v12402_v63  ;;  %v12438_v63 = vld [vmem:[%s13573_s12 + $0x408] ss:$16 sps:$4 sm:$0xff]  }
 0x2fe   : > { %9006 = vmatpush1.bf16.msra.mxu1 %v12405_v58  ;;  %8966 = vmatprep.subr.bf16.mxu0 %v12410_v14  ;;  %v12441_v58 = vld [vmem:[%s13573_s12 + $0x608] ss:$16 sps:$4 sm:$0xff]   ;;  %v12446_v14 = vld [vmem:[%s13573_s12 + $0x42c] ss:$16 sps:$4 sm:$0xff]  }
 0x2ff   : > { %9007 = vmatprep.subr.bf16.mxu1 %v12413_v15  ;;  %v12449_v15 = vld [vmem:[%s13573_s12 + $0x62c] ss:$16 sps:$4 sm:$0xff]  }
 0x301   : > { %8967 = vmatpush1.bf16.msra.mxu0 %v12408_v32  ;;  %v12444_v32 = vld [vmem:[%s13573_s12 + $0x428] ss:$16 sps:$4 sm:$0xff]  }
 0x302   : > { %9008 = vmatpush1.bf16.msra.mxu1 %v12411_v61  ;;  %8968 = vmatprep.subr.bf16.mxu0 %v12416_v62  ;;  %v12447_v61 = vld [vmem:[%s13573_s12 + $0x628] ss:$16 sps:$4 sm:$0xff]   ;;  %v12452_v62 = vld [vmem:[%s13573_s12 + $0x44c] ss:$16 sps:$4 sm:$0xff]  }
 0x303   : > { %9009 = vmatprep.subr.bf16.mxu1 %v12419_v10  ;;  %v12455_v10 = vld [vmem:[%s13573_s12 + $0x64c] ss:$16 sps:$4 sm:$0xff]  }
 0x305   : > { %8969 = vmatpush1.bf16.msra.mxu0 %v12414_v11  ;;  %v12458_v11 = vld [vmem:[%s13573_s12 + $0x46c] ss:$16 sps:$4 sm:$0xff]  }
 0x306   : > { %9010 = vmatpush1.bf16.msra.mxu1 %v12417_v47  ;;  %8970 = vmatprep.subr.bf16.mxu0 %v12422_v12  ;;  %v12461_v47 = vld [vmem:[%s13573_s12 + $0x66c] ss:$16 sps:$4 sm:$0xff]   ;;  %v12456_v12 = vld [vmem:[%s13573_s12 + $0x468] ss:$16 sps:$4 sm:$0xff]  }
 0x307   : > { %9011 = vmatprep.subr.bf16.mxu1 %v12425_v56  ;;  %v12467_v56 = vld [vmem:[%s13573_s12 + $0x68c] ss:$16 sps:$4 sm:$0xff]  }
 0x309   : > { %8971 = vmatpush1.bf16.msra.mxu0 %v12420_v9  ;;  %v12462_v9 = vld [vmem:[%s13573_s12 + $0x488] ss:$16 sps:$4 sm:$0xff]  }
 0x30a   : > { %9012 = vmatpush1.bf16.msra.mxu1 %v12423_v13  ;;  %8972 = vmatprep.subr.bf16.mxu0 %v12428_v18  ;;  %v12465_v13 = vld [vmem:[%s13573_s12 + $0x688] ss:$16 sps:$4 sm:$0xff]   ;;  %v13423_v18 = vmov 0.0  }
 0x30b   : > { %9013 = vmatprep.subr.bf16.mxu1 %v12431_v19  ;;  %276 = vst [vmem:[%s14645_s26] sm:$0xff] %v13423_v18  ;;  %v12470_v19 = vld [vmem:[%s13573_s12 + $0x4ac] ss:$16 sps:$4 sm:$0xff]   ;;  %277 = vst [vmem:[%s14645_s26 + $0x8] sm:$0xff] %v13423_v18 }
 0x30c   : > { %278 = vst [vmem:[%s14645_s26 + $0x10] sm:$0xff] %v13423_v18  ;;  %279 = vst [vmem:[%s14645_s26 + $0x18] sm:$0xff] %v13423_v18  ;;  %v12497_v18 = vld [vmem:[%s13573_s12 + $0x72c] ss:$16 sps:$4 sm:$0xff]  }
 0x30d   : > { %8973 = vmatpush1.bf16.msra.mxu0 %v12426_v2  ;;  %v12473_v2 = vld [vmem:[%s13573_s12 + $0x6ac] ss:$16 sps:$4 sm:$0xff]  }
 0x30e   : > { %9014 = vmatpush1.bf16.msra.mxu1 %v12429_v3  ;;  %8974 = vmatprep.subr.bf16.mxu0 %v12434_v29  ;;  %v12468_v3 = vld [vmem:[%s13573_s12 + $0x4a8] ss:$16 sps:$4 sm:$0xff]  }
 0x30f   : > { %9015 = vmatprep.subr.bf16.mxu1 %v12437_v35  ;;  %v12471_v29 = vld [vmem:[%s13573_s12 + $0x6a8] ss:$16 sps:$4 sm:$0xff]   ;;  %v12476_v35 = vld [vmem:[%s13573_s12 + $0x4cc] ss:$16 sps:$4 sm:$0xff]  }
 0x311   : > { %8975 = vmatpush1.bf16.msra.mxu0 %v12432_v22  ;;  %v12479_v22 = vld [vmem:[%s13573_s12 + $0x6cc] ss:$16 sps:$4 sm:$0xff]  }
 0x312   : > { %9016 = vmatpush1.bf16.msra.mxu1 %v12435_v49  ;;  %9026 = vmatprep.subr.bf16.mxu0 %v12440_v50 }
 0x313   : > { %9067 = vmatprep.subr.bf16.mxu1 %v12443_v44 }
 0x314   : > { %8977 = vmatmul.mubr.bf16.vlgmr.msra.gmra.mrb[40].mxu0 %v13663_v6  ;;  %v12450_v6 = vld [vmem:[%s13573_s12 + $0x448] ss:$16 sps:$4 sm:$0xff]  }
 0x315   : > { %9018 = vmatmul.mubr.bf16.vlgmr.msra.gmra.mrb[40].mxu1 %v13665_v7  ;;  %9027 = vmatpush1.bf16.msra.mxu0 %v12438_v63  ;;  %v12453_v7 = vld [vmem:[%s13573_s12 + $0x648] ss:$16 sps:$4 sm:$0xff]  }
 0x316   : > { %9068 = vmatpush1.bf16.msra.mxu1 %v12441_v58  ;;  %9028 = vmatprep.subr.bf16.mxu0 %v12446_v14 }
 0x317   : > { %9069 = vmatprep.subr.bf16.mxu1 %v12449_v15  ;;  %9058 = vmatprep.mubr.bf16.mxu0 %v13707_v36  ;;  %v12459_v36 = vld [vmem:[%s13573_s12 + $0x668] ss:$16 sps:$4 sm:$0xff]  }
 0x318   : > { %9099 = vmatprep.mubr.bf16.mxu1 %v13711_v37  ;;  %v12464_v37 = vld [vmem:[%s13573_s12 + $0x48c] ss:$16 sps:$4 sm:$0xff]  }
 0x319   : > { %9029 = vmatpush1.bf16.msra.mxu0 %v12444_v32 }
 0x31a   : > { %9070 = vmatpush1.bf16.msra.mxu1 %v12447_v61  ;;  %9030 = vmatprep.subr.bf16.mxu0 %v12452_v62  ;;  %v12474_v61 = vld [vmem:[%s13573_s12 + $0x4c8] ss:$16 sps:$4 sm:$0xff]  }
 0x31b   : > { %9071 = vmatprep.subr.bf16.mxu1 %v12455_v10  ;;  %v12477_v62 = vld [vmem:[%s13573_s12 + $0x6c8] ss:$16 sps:$4 sm:$0xff]  }
 0x31d   : > { %9031 = vmatpush1.bf16.msra.mxu0 %v12450_v6 }
 0x31e   : > { %9072 = vmatpush1.bf16.msra.mxu1 %v12453_v7  ;;  %9032 = vmatprep.subr.bf16.mxu0 %v12458_v11 }
 0x31f   : > { %9073 = vmatprep.subr.bf16.mxu1 %v12461_v47  ;;  %v12480_v47 = vld [vmem:[%s13573_s12 + $0x4e8] ss:$16 sps:$4 sm:$0xff]  }
 0x321   : > { %9033 = vmatpush1.bf16.msra.mxu0 %v12456_v12  ;;  %v12483_v12 = vld [vmem:[%s13573_s12 + $0x6e8] ss:$16 sps:$4 sm:$0xff]  }
 0x322   : > { %9074 = vmatpush1.bf16.msra.mxu1 %v12459_v36  ;;  %9034 = vmatprep.subr.bf16.mxu0 %v12464_v37  ;;  %v12488_v36 = vld [vmem:[%s13573_s12 + $0x50c] ss:$16 sps:$4 sm:$0xff]  }
 0x323   : > { %9075 = vmatprep.subr.bf16.mxu1 %v12467_v56  ;;  %v12491_v37 = vld [vmem:[%s13573_s12 + $0x70c] ss:$16 sps:$4 sm:$0xff]   ;;  %v12486_v56 = vld [vmem:[%s13573_s12 + $0x508] ss:$16 sps:$4 sm:$0xff]  }
 0x325   : > { %9035 = vmatpush1.bf16.msra.mxu0 %v12462_v9  ;;  %v12489_v9 = vld [vmem:[%s13573_s12 + $0x708] ss:$16 sps:$4 sm:$0xff]  }
 0x326   : > { %9076 = vmatpush1.bf16.msra.mxu1 %v12465_v13  ;;  %9036 = vmatprep.subr.bf16.mxu0 %v12470_v19  ;;  %v12494_v13 = vld [vmem:[%s13573_s12 + $0x52c] ss:$16 sps:$4 sm:$0xff]   ;;  %v12492_v19 = vld [vmem:[%s13573_s12 + $0x528] ss:$16 sps:$4 sm:$0xff]  }
 0x327   : > { %9077 = vmatprep.subr.bf16.mxu1 %v12473_v2  ;;  %v8732_v49 = vpop.f32.mrb[28].mxu0  ;;  %v12495_v2 = vld [vmem:[%s13573_s12 + $0x728] ss:$16 sps:$4 sm:$0xff]  }
 0x328   : > { %v8773_v50 = vpop.f32.mrb[28].mxu1  ;;  %v8733_v44 = vadd.f32 %v8732_v49, %v14579_v34  ;;  %v8734_v63 = vpop.f32.mrb[29].mxu0  ;;  %v12482_v34 = vld [vmem:[%s13573_s12 + $0x4ec] ss:$16 sps:$4 sm:$0xff]  }
 0x329   : > { %v8775_v58 = vpop.f32.mrb[29].mxu1  ;;  %v8735_v14 = vadd.f32 %v8734_v63, %v14583_v51  ;;  %v8736_v15 = vpop.f32.mrb[30].mxu0  ;;  %9037 = vmatpush1.bf16.msra.mxu0 %v12468_v3  ;;  %v12485_v51 = vld [vmem:[%s13573_s12 + $0x6ec] ss:$16 sps:$4 sm:$0xff]   ;;  %v12507_v63 = vld [vmem:[%s13573_s12 + $0x768] ss:$16 sps:$4 sm:$0xff]  }
 0x32a   : > { %v8777_v32 = vpop.f32.mrb[30].mxu1  ;;  %9078 = vmatpush1.bf16.msra.mxu1 %v12471_v29  ;;  %v14663_v10 = vadd.f32 %v8773_v50, %v8733_v44  ;;  %v8737_v6 = vpop.f32.mrb[31].mxu0  ;;  %9038 = vmatprep.subr.bf16.mxu0 %v12476_v35  ;;  %v12500_v3 = vld [vmem:[%s13573_s12 + $0x54c] ss:$16 sps:$4 sm:$0xff]   ;;  %v12498_v35 = vld [vmem:[%s13573_s12 + $0x548] ss:$16 sps:$4 sm:$0xff]  }
 0x32b   : > { %v8778_v7 = vpop.f32.mrb[31].mxu1  ;;  %9079 = vmatprep.subr.bf16.mxu1 %v12479_v22  ;;  %v14667_v11 = vadd.f32 %v8775_v58, %v8735_v14  ;;  %v12503_v29 = vld [vmem:[%s13573_s12 + $0x74c] ss:$16 sps:$4 sm:$0xff]   ;;  %v12501_v22 = vld [vmem:[%s13573_s12 + $0x748] ss:$16 sps:$4 sm:$0xff]  }
 0x32c   : > { %v12506_v49 = vld [vmem:[%s13573_s12 + $0x56c] ss:$16 sps:$4 sm:$0xff]   ;;  %v12504_v44 = vld [vmem:[%s13573_s12 + $0x568] ss:$16 sps:$4 sm:$0xff]  }
 0x32d   : > { %9039 = vmatpush1.bf16.msra.mxu0 %v12474_v61  ;;  %v12509_v50 = vld [vmem:[%s13573_s12 + $0x76c] ss:$16 sps:$4 sm:$0xff]   ;;  %v12510_v15 = vld [vmem:[%s13573_s12 + $0x588] ss:$16 sps:$4 sm:$0xff]  }
 0x32e   : > { %9080 = vmatpush1.bf16.msra.mxu1 %v12477_v62  ;;  %9040 = vmatprep.subr.bf16.mxu0 %v12482_v34  ;;  %v12512_v58 = vld [vmem:[%s13573_s12 + $0x58c] ss:$16 sps:$4 sm:$0xff]   ;;  %v12513_v32 = vld [vmem:[%s13573_s12 + $0x788] ss:$16 sps:$4 sm:$0xff]  }
 0x32f   : > { %9081 = vmatprep.subr.bf16.mxu1 %v12485_v51  ;;  %v12515_v14 = vld [vmem:[%s13573_s12 + $0x78c] ss:$16 sps:$4 sm:$0xff]   ;;  %v12516_v6 = vld [vmem:[%s13573_s12 + $0x5a8] ss:$16 sps:$4 sm:$0xff]  }
 0x330   : > { %v12518_v61 = vld [vmem:[%s13573_s12 + $0x5ac] ss:$16 sps:$4 sm:$0xff]   ;;  %v12519_v7 = vld [vmem:[%s13573_s12 + $0x7a8] ss:$16 sps:$4 sm:$0xff]  }
 0x331   : > { %9041 = vmatpush1.bf16.msra.mxu0 %v12480_v47  ;;  %v12521_v62 = vld [vmem:[%s13573_s12 + $0x7ac] ss:$16 sps:$4 sm:$0xff]   ;;  %v12522_v47 = vld [vmem:[%s13573_s12 + $0x5c8] ss:$16 sps:$4 sm:$0xff]  }
 0x332   : > { %9082 = vmatpush1.bf16.msra.mxu1 %v12483_v12  ;;  %9042 = vmatprep.subr.bf16.mxu0 %v12488_v36  ;;  %v12524_v34 = vld [vmem:[%s13573_s12 + $0x5cc] ss:$16 sps:$4 sm:$0xff]   ;;  %v12525_v12 = vld [vmem:[%s13573_s12 + $0x7c8] ss:$16 sps:$4 sm:$0xff]  }
 0x333   : > { %9083 = vmatprep.subr.bf16.mxu1 %v12491_v37  ;;  %v12527_v51 = vld [vmem:[%s13573_s12 + $0x7cc] ss:$16 sps:$4 sm:$0xff]  }
 0x334   : > { %v12530_v36 = vld [vmem:[%s13573_s12 + $0x5ec] ss:$16 sps:$4 sm:$0xff]  }
 0x335   : > { %9043 = vmatpush1.bf16.msra.mxu0 %v12486_v56  ;;  %v12533_v37 = vld [vmem:[%s13573_s12 + $0x7ec] ss:$16 sps:$4 sm:$0xff]   ;;  %v12528_v56 = vld [vmem:[%s13573_s12 + $0x5e8] ss:$16 sps:$4 sm:$0xff]  }
 0x336   : > { %9084 = vmatpush1.bf16.msra.mxu1 %v12489_v9  ;;  %9044 = vmatprep.subr.bf16.mxu0 %v12494_v13  ;;  %v12531_v9 = vld [vmem:[%s13573_s12 + $0x7e8] ss:$16 sps:$4 sm:$0xff]   ;;  %v12536_v13 = vld [vmem:[%s13573_s12 + $0x80c] ss:$16 sps:$4 sm:$0xff]  }
 0x337   : > { %9085 = vmatprep.subr.bf16.mxu1 %v12497_v18  ;;  %v12539_v18 = vld [vmem:[%s13573_s12 + $0xa0c] ss:$16 sps:$4 sm:$0xff]  }
 0x339   : > { %9045 = vmatpush1.bf16.msra.mxu0 %v12492_v19  ;;  %v12534_v19 = vld [vmem:[%s13573_s12 + $0x808] ss:$16 sps:$4 sm:$0xff]  }
 0x33a   : > { %9086 = vmatpush1.bf16.msra.mxu1 %v12495_v2  ;;  %9046 = vmatprep.subr.bf16.mxu0 %v12500_v3  ;;  %v12537_v2 = vld [vmem:[%s13573_s12 + $0xa08] ss:$16 sps:$4 sm:$0xff]   ;;  %v12542_v3 = vld [vmem:[%s13573_s12 + $0x82c] ss:$16 sps:$4 sm:$0xff]  }
 0x33b   : > { %9087 = vmatprep.subr.bf16.mxu1 %v12503_v29  ;;  %v12545_v29 = vld [vmem:[%s13573_s12 + $0xa2c] ss:$16 sps:$4 sm:$0xff]  }
 0x33d   : > { %9047 = vmatpush1.bf16.msra.mxu0 %v12498_v35  ;;  %v12540_v35 = vld [vmem:[%s13573_s12 + $0x828] ss:$16 sps:$4 sm:$0xff]  }
 0x33e   : > { %9088 = vmatpush1.bf16.msra.mxu1 %v12501_v22  ;;  %9048 = vmatprep.subr.bf16.mxu0 %v12506_v49  ;;  %v12543_v22 = vld [vmem:[%s13573_s12 + $0xa28] ss:$16 sps:$4 sm:$0xff]   ;;  %v12548_v49 = vld [vmem:[%s13573_s12 + $0x84c] ss:$16 sps:$4 sm:$0xff]  }
 0x33f   : > { %9089 = vmatprep.subr.bf16.mxu1 %v12509_v50  ;;  %v12551_v50 = vld [vmem:[%s13573_s12 + $0xa4c] ss:$16 sps:$4 sm:$0xff]  }
 0x341   : > { %9049 = vmatpush1.bf16.msra.mxu0 %v12504_v44  ;;  %v12554_v44 = vld [vmem:[%s13573_s12 + $0x86c] ss:$16 sps:$4 sm:$0xff]  }
 0x342   : > { %9090 = vmatpush1.bf16.msra.mxu1 %v12507_v63  ;;  %9050 = vmatprep.subr.bf16.mxu0 %v12512_v58  ;;  %v12557_v63 = vld [vmem:[%s13573_s12 + $0xa6c] ss:$16 sps:$4 sm:$0xff]   ;;  %v12552_v58 = vld [vmem:[%s13573_s12 + $0x868] ss:$16 sps:$4 sm:$0xff]  }
 0x343   : > { %9091 = vmatprep.subr.bf16.mxu1 %v12515_v14  ;;  %v12563_v14 = vld [vmem:[%s13573_s12 + $0xa8c] ss:$16 sps:$4 sm:$0xff]  }
 0x345   : > { %9051 = vmatpush1.bf16.msra.mxu0 %v12510_v15  ;;  %v12558_v15 = vld [vmem:[%s13573_s12 + $0x888] ss:$16 sps:$4 sm:$0xff]  }
 0x346   : > { %9092 = vmatpush1.bf16.msra.mxu1 %v12513_v32  ;;  %9052 = vmatprep.subr.bf16.mxu0 %v12518_v61  ;;  %v12561_v32 = vld [vmem:[%s13573_s12 + $0xa88] ss:$16 sps:$4 sm:$0xff]   ;;  %v12566_v61 = vld [vmem:[%s13573_s12 + $0x8ac] ss:$16 sps:$4 sm:$0xff]  }
 0x347   : > { %9093 = vmatprep.subr.bf16.mxu1 %v12521_v62  ;;  %v12569_v62 = vld [vmem:[%s13573_s12 + $0xaac] ss:$16 sps:$4 sm:$0xff]  }
 0x349   : > { %9053 = vmatpush1.bf16.msra.mxu0 %v12516_v6  ;;  %v12564_v6 = vld [vmem:[%s13573_s12 + $0x8a8] ss:$16 sps:$4 sm:$0xff]  }
 0x34a   : > { %9094 = vmatpush1.bf16.msra.mxu1 %v12519_v7  ;;  %9054 = vmatprep.subr.bf16.mxu0 %v12524_v34  ;;  %v12567_v7 = vld [vmem:[%s13573_s12 + $0xaa8] ss:$16 sps:$4 sm:$0xff]   ;;  %v12572_v34 = vld [vmem:[%s13573_s12 + $0x8cc] ss:$16 sps:$4 sm:$0xff]  }
 0x34b   : > { %9095 = vmatprep.subr.bf16.mxu1 %v12527_v51  ;;  %v12575_v51 = vld [vmem:[%s13573_s12 + $0xacc] ss:$16 sps:$4 sm:$0xff]  }
 0x34d   : > { %9055 = vmatpush1.bf16.msra.mxu0 %v12522_v47 }
 0x34e   : > { %9096 = vmatpush1.bf16.msra.mxu1 %v12525_v12  ;;  %9056 = vmatprep.subr.bf16.mxu0 %v12530_v36 }
 0x34f   : > { %9097 = vmatprep.subr.bf16.mxu1 %v12533_v37 }
 0x351   : > { %9057 = vmatpush1.bf16.msra.mxu0 %v12528_v56 }
 0x352   : > { %9098 = vmatpush1.bf16.msra.mxu1 %v12531_v9  ;;  %9108 = vmatprep.subr.bf16.mxu0 %v12536_v13 }
 0x353   : > { %9149 = vmatprep.subr.bf16.mxu1 %v12539_v18 }
 0x354   : > { %9059 = vmatmul.mubr.bf16.vlgmr.msra.gmra.mrb[44].mxu0 %v13755_v16  ;;  %v12546_v16 = vld [vmem:[%s13573_s12 + $0x848] ss:$16 sps:$4 sm:$0xff]  }
 0x355   : > { %9100 = vmatmul.mubr.bf16.vlgmr.msra.gmra.mrb[44].mxu1 %v13759_v17  ;;  %9109 = vmatpush1.bf16.msra.mxu0 %v12534_v19  ;;  %v12549_v17 = vld [vmem:[%s13573_s12 + $0xa48] ss:$16 sps:$4 sm:$0xff]  }
 0x356   : > { %9150 = vmatpush1.bf16.msra.mxu1 %v12537_v2  ;;  %9110 = vmatprep.subr.bf16.mxu0 %v12542_v3  ;;  %v12570_v19 = vld [vmem:[%s13573_s12 + $0x8c8] ss:$16 sps:$4 sm:$0xff]  }
 0x357   : > { %9151 = vmatprep.subr.bf16.mxu1 %v12545_v29  ;;  %9140 = vmatprep.mubr.bf16.mxu0 %v13777_v24  ;;  %v12555_v24 = vld [vmem:[%s13573_s12 + $0xa68] ss:$16 sps:$4 sm:$0xff]  }
 0x358   : > { %9181 = vmatprep.mubr.bf16.mxu1 %v13781_v25  ;;  %v12560_v25 = vld [vmem:[%s13573_s12 + $0x88c] ss:$16 sps:$4 sm:$0xff]   ;;  %v12573_v2 = vld [vmem:[%s13573_s12 + $0xac8] ss:$16 sps:$4 sm:$0xff]  }
 0x359   : > { %9111 = vmatpush1.bf16.msra.mxu0 %v12540_v35 }
 0x35a   : > { %9152 = vmatpush1.bf16.msra.mxu1 %v12543_v22  ;;  %9112 = vmatprep.subr.bf16.mxu0 %v12548_v49  ;;  %v12576_v49 = vld [vmem:[%s13573_s12 + $0x8e8] ss:$16 sps:$4 sm:$0xff]  }
 0x35b   : > { %9153 = vmatprep.subr.bf16.mxu1 %v12551_v50  ;;  %v12579_v50 = vld [vmem:[%s13573_s12 + $0xae8] ss:$16 sps:$4 sm:$0xff]  }
 0x35d   : > { %9113 = vmatpush1.bf16.msra.mxu0 %v12546_v16  ;;  %v12584_v16 = vld [vmem:[%s13573_s12 + $0x90c] ss:$16 sps:$4 sm:$0xff]  }
 0x35e   : > { %9154 = vmatpush1.bf16.msra.mxu1 %v12549_v17  ;;  %9114 = vmatprep.subr.bf16.mxu0 %v12554_v44  ;;  %v12587_v17 = vld [vmem:[%s13573_s12 + $0xb0c] ss:$16 sps:$4 sm:$0xff]   ;;  %v12582_v44 = vld [vmem:[%s13573_s12 + $0x908] ss:$16 sps:$4 sm:$0xff]  }
 0x35f   : > { %9155 = vmatprep.subr.bf16.mxu1 %v12557_v63  ;;  %v12585_v63 = vld [vmem:[%s13573_s12 + $0xb08] ss:$16 sps:$4 sm:$0xff]  }
 0x361   : > { %9115 = vmatpush1.bf16.msra.mxu0 %v12552_v58  ;;  %v12590_v58 = vld [vmem:[%s13573_s12 + $0x92c] ss:$16 sps:$4 sm:$0xff]  }
 0x362   : > { %9156 = vmatpush1.bf16.msra.mxu1 %v12555_v24  ;;  %9116 = vmatprep.subr.bf16.mxu0 %v12560_v25  ;;  %v12593_v24 = vld [vmem:[%s13573_s12 + $0xb2c] ss:$16 sps:$4 sm:$0xff]   ;;  %v12588_v25 = vld [vmem:[%s13573_s12 + $0x928] ss:$16 sps:$4 sm:$0xff]  }
 0x363   : > { %9157 = vmatprep.subr.bf16.mxu1 %v12563_v14  ;;  %v12591_v14 = vld [vmem:[%s13573_s12 + $0xb28] ss:$16 sps:$4 sm:$0xff]  }
 0x365   : > { %9117 = vmatpush1.bf16.msra.mxu0 %v12558_v15  ;;  %v12596_v15 = vld [vmem:[%s13573_s12 + $0x94c] ss:$16 sps:$4 sm:$0xff]  }
 0x366   : > { %9158 = vmatpush1.bf16.msra.mxu1 %v12561_v32  ;;  %9118 = vmatprep.subr.bf16.mxu0 %v12566_v61  ;;  %v12599_v32 = vld [vmem:[%s13573_s12 + $0xb4c] ss:$16 sps:$4 sm:$0xff]   ;;  %v12594_v61 = vld [vmem:[%s13573_s12 + $0x948] ss:$16 sps:$4 sm:$0xff]  }
 0x367   : > { %9159 = vmatprep.subr.bf16.mxu1 %v12569_v62  ;;  %v8814_v47 = vpop.f32.mrb[32].mxu0  ;;  %v12597_v62 = vld [vmem:[%s13573_s12 + $0xb48] ss:$16 sps:$4 sm:$0xff]  }
 0x368   : > { %v8855_v12 = vpop.f32.mrb[32].mxu1  ;;  %v8815_v36 = vadd.f32 %v8814_v47, %v14663_v10  ;;  %v8816_v37 = vpop.f32.mrb[33].mxu0  ;;  %v12578_v10 = vld [vmem:[%s13573_s12 + $0x8ec] ss:$16 sps:$4 sm:$0xff]  }
 0x369   : > { %v8857_v56 = vpop.f32.mrb[33].mxu1  ;;  %v8817_v9 = vadd.f32 %v8816_v37, %v14667_v11  ;;  %v8818_v13 = vpop.f32.mrb[34].mxu0  ;;  %9119 = vmatpush1.bf16.msra.mxu0 %v12564_v6  ;;  %v12581_v11 = vld [vmem:[%s13573_s12 + $0xaec] ss:$16 sps:$4 sm:$0xff]   ;;  %v12609_v37 = vld [vmem:[%s13573_s12 + $0xb88] ss:$16 sps:$4 sm:$0xff]  }
 0x36a   : > { %v8859_v18 = vpop.f32.mrb[34].mxu1  ;;  %9160 = vmatpush1.bf16.msra.mxu1 %v12567_v7  ;;  %v14737_v3 = vadd.f32 %v8855_v12, %v8815_v36  ;;  %v8819_v29 = vpop.f32.mrb[35].mxu0  ;;  %9120 = vmatprep.subr.bf16.mxu0 %v12572_v34  ;;  %v12602_v6 = vld [vmem:[%s13573_s12 + $0x96c] ss:$16 sps:$4 sm:$0xff]   ;;  %v12600_v34 = vld [vmem:[%s13573_s12 + $0x968] ss:$16 sps:$4 sm:$0xff]  }
 0x36b   : > { %v8860_v35 = vpop.f32.mrb[35].mxu1  ;;  %9161 = vmatprep.subr.bf16.mxu1 %v12575_v51  ;;  %v14741_v22 = vadd.f32 %v8857_v56, %v8817_v9  ;;  %v12605_v7 = vld [vmem:[%s13573_s12 + $0xb6c] ss:$16 sps:$4 sm:$0xff]   ;;  %v12603_v51 = vld [vmem:[%s13573_s12 + $0xb68] ss:$16 sps:$4 sm:$0xff]  }
 0x36c   : > { %v12608_v47 = vld [vmem:[%s13573_s12 + $0x98c] ss:$16 sps:$4 sm:$0xff]   ;;  %v12606_v36 = vld [vmem:[%s13573_s12 + $0x988] ss:$16 sps:$4 sm:$0xff]  }
 0x36d   : > { %9121 = vmatpush1.bf16.msra.mxu0 %v12570_v19  ;;  %v12611_v12 = vld [vmem:[%s13573_s12 + $0xb8c] ss:$16 sps:$4 sm:$0xff]   ;;  %v12612_v13 = vld [vmem:[%s13573_s12 + $0x9a8] ss:$16 sps:$4 sm:$0xff]  }
 0x36e   : > { %9162 = vmatpush1.bf16.msra.mxu1 %v12573_v2  ;;  %9122 = vmatprep.subr.bf16.mxu0 %v12578_v10  ;;  %v12614_v56 = vld [vmem:[%s13573_s12 + $0x9ac] ss:$16 sps:$4 sm:$0xff]   ;;  %v12615_v18 = vld [vmem:[%s13573_s12 + $0xba8] ss:$16 sps:$4 sm:$0xff]  }
 0x36f   : > { %9163 = vmatprep.subr.bf16.mxu1 %v12581_v11  ;;  %v12617_v9 = vld [vmem:[%s13573_s12 + $0xbac] ss:$16 sps:$4 sm:$0xff]   ;;  %v12618_v29 = vld [vmem:[%s13573_s12 + $0x9c8] ss:$16 sps:$4 sm:$0xff]  }
 0x370   : > { %v12620_v19 = vld [vmem:[%s13573_s12 + $0x9cc] ss:$16 sps:$4 sm:$0xff]   ;;  %v12621_v35 = vld [vmem:[%s13573_s12 + $0xbc8] ss:$16 sps:$4 sm:$0xff]  }
 0x371   : > { %9123 = vmatpush1.bf16.msra.mxu0 %v12576_v49  ;;  %v12623_v2 = vld [vmem:[%s13573_s12 + $0xbcc] ss:$16 sps:$4 sm:$0xff]   ;;  %v12624_v49 = vld [vmem:[%s13573_s12 + $0x9e8] ss:$16 sps:$4 sm:$0xff]  }
 0x372   : > { %9164 = vmatpush1.bf16.msra.mxu1 %v12579_v50  ;;  %9124 = vmatprep.subr.bf16.mxu0 %v12584_v16  ;;  %v12626_v10 = vld [vmem:[%s13573_s12 + $0x9ec] ss:$16 sps:$4 sm:$0xff]   ;;  %v12627_v50 = vld [vmem:[%s13573_s12 + $0xbe8] ss:$16 sps:$4 sm:$0xff]  }
 0x373   : > { %9165 = vmatprep.subr.bf16.mxu1 %v12587_v17  ;;  %v12629_v11 = vld [vmem:[%s13573_s12 + $0xbec] ss:$16 sps:$4 sm:$0xff]  }
 0x374   : > { %v12632_v16 = vld [vmem:[%s13573_s12 + $0xc0c] ss:$16 sps:$4 sm:$0xff]  }
 0x375   : > { %9125 = vmatpush1.bf16.msra.mxu0 %v12582_v44  ;;  %v12635_v17 = vld [vmem:[%s13573_s12 + $0xe0c] ss:$16 sps:$4 sm:$0xff]   ;;  %v12630_v44 = vld [vmem:[%s13573_s12 + $0xc08] ss:$16 sps:$4 sm:$0xff]  }
 0x376   : > { %9166 = vmatpush1.bf16.msra.mxu1 %v12585_v63  ;;  %9126 = vmatprep.subr.bf16.mxu0 %v12590_v58  ;;  %v12633_v63 = vld [vmem:[%s13573_s12 + $0xe08] ss:$16 sps:$4 sm:$0xff]   ;;  %v12638_v58 = vld [vmem:[%s13573_s12 + $0xc2c] ss:$16 sps:$4 sm:$0xff]  }
 0x377   : > { %9167 = vmatprep.subr.bf16.mxu1 %v12593_v24  ;;  %v12641_v24 = vld [vmem:[%s13573_s12 + $0xe2c] ss:$16 sps:$4 sm:$0xff]  }
 0x379   : > { %9127 = vmatpush1.bf16.msra.mxu0 %v12588_v25  ;;  %v12636_v25 = vld [vmem:[%s13573_s12 + $0xc28] ss:$16 sps:$4 sm:$0xff]  }
 0x37a   : > { %9168 = vmatpush1.bf16.msra.mxu1 %v12591_v14  ;;  %9128 = vmatprep.subr.bf16.mxu0 %v12596_v15  ;;  %v12639_v14 = vld [vmem:[%s13573_s12 + $0xe28] ss:$16 sps:$4 sm:$0xff]   ;;  %v12644_v15 = vld [vmem:[%s13573_s12 + $0xc4c] ss:$16 sps:$4 sm:$0xff]  }
 0x37b   : > { %9169 = vmatprep.subr.bf16.mxu1 %v12599_v32  ;;  %v12647_v32 = vld [vmem:[%s13573_s12 + $0xe4c] ss:$16 sps:$4 sm:$0xff]  }
 0x37d   : > { %9129 = vmatpush1.bf16.msra.mxu0 %v12594_v61  ;;  %v12650_v61 = vld [vmem:[%s13573_s12 + $0xc6c] ss:$16 sps:$4 sm:$0xff]  }
 0x37e   : > { %9170 = vmatpush1.bf16.msra.mxu1 %v12597_v62  ;;  %9130 = vmatprep.subr.bf16.mxu0 %v12602_v6  ;;  %v12653_v62 = vld [vmem:[%s13573_s12 + $0xe6c] ss:$16 sps:$4 sm:$0xff]   ;;  %v12648_v6 = vld [vmem:[%s13573_s12 + $0xc68] ss:$16 sps:$4 sm:$0xff]  }
 0x37f   : > { %9171 = vmatprep.subr.bf16.mxu1 %v12605_v7  ;;  %v12659_v7 = vld [vmem:[%s13573_s12 + $0xe8c] ss:$16 sps:$4 sm:$0xff]  }
 0x381   : > { %9131 = vmatpush1.bf16.msra.mxu0 %v12600_v34  ;;  %v12654_v34 = vld [vmem:[%s13573_s12 + $0xc88] ss:$16 sps:$4 sm:$0xff]  }
 0x382   : > { %9172 = vmatpush1.bf16.msra.mxu1 %v12603_v51  ;;  %9132 = vmatprep.subr.bf16.mxu0 %v12608_v47  ;;  %v12657_v51 = vld [vmem:[%s13573_s12 + $0xe88] ss:$16 sps:$4 sm:$0xff]   ;;  %v12662_v47 = vld [vmem:[%s13573_s12 + $0xcac] ss:$16 sps:$4 sm:$0xff]  }
 0x383   : > { %9173 = vmatprep.subr.bf16.mxu1 %v12611_v12  ;;  %v12665_v12 = vld [vmem:[%s13573_s12 + $0xeac] ss:$16 sps:$4 sm:$0xff]  }
 0x385   : > { %9133 = vmatpush1.bf16.msra.mxu0 %v12606_v36  ;;  %v12660_v36 = vld [vmem:[%s13573_s12 + $0xca8] ss:$16 sps:$4 sm:$0xff]  }
 0x386   : > { %9174 = vmatpush1.bf16.msra.mxu1 %v12609_v37  ;;  %9134 = vmatprep.subr.bf16.mxu0 %v12614_v56  ;;  %v12663_v37 = vld [vmem:[%s13573_s12 + $0xea8] ss:$16 sps:$4 sm:$0xff]   ;;  %v12668_v56 = vld [vmem:[%s13573_s12 + $0xccc] ss:$16 sps:$4 sm:$0xff]  }
 0x387   : > { %9175 = vmatprep.subr.bf16.mxu1 %v12617_v9  ;;  %v12671_v9 = vld [vmem:[%s13573_s12 + $0xecc] ss:$16 sps:$4 sm:$0xff]  }
 0x389   : > { %9135 = vmatpush1.bf16.msra.mxu0 %v12612_v13 }
 0x38a   : > { %9176 = vmatpush1.bf16.msra.mxu1 %v12615_v18  ;;  %9136 = vmatprep.subr.bf16.mxu0 %v12620_v19 }
 0x38b   : > { %9177 = vmatprep.subr.bf16.mxu1 %v12623_v2 }
 0x38d   : > { %9137 = vmatpush1.bf16.msra.mxu0 %v12618_v29 }
 0x38e   : > { %9178 = vmatpush1.bf16.msra.mxu1 %v12621_v35  ;;  %9138 = vmatprep.subr.bf16.mxu0 %v12626_v10  ;;  %v12666_v35 = vld [vmem:[%s13573_s12 + $0xcc8] ss:$16 sps:$4 sm:$0xff]   ;;  %v280_v10 = vld [vmem:[%s14645_s26] sm:$0xff] }
 0x38f   : > { %9179 = vmatprep.subr.bf16.mxu1 %v12629_v11 }
 0x391   : > { %9139 = vmatpush1.bf16.msra.mxu0 %v12624_v49  ;;  %v281_v49 = vld [vmem:[%s14645_s26 + $0x8] sm:$0xff] }
 0x392   : > { %9180 = vmatpush1.bf16.msra.mxu1 %v12627_v50  ;;  %9190 = vmatprep.subr.bf16.mxu0 %v12632_v16 }
 0x393   : > { %9231 = vmatprep.subr.bf16.mxu1 %v12635_v17  ;;  %v12669_v17 = vld [vmem:[%s13573_s12 + $0xec8] ss:$16 sps:$4 sm:$0xff]  }
 0x394   : > { %9141 = vmatmul.mubr.bf16.vlgmr.msra.gmra.mrb[48].mxu0 %v13851_v38  ;;  %v12642_v38 = vld [vmem:[%s13573_s12 + $0xc48] ss:$16 sps:$4 sm:$0xff]  }
 0x395   : > { %9182 = vmatmul.mubr.bf16.vlgmr.msra.gmra.mrb[48].mxu1 %v13855_v39  ;;  %9191 = vmatpush1.bf16.msra.mxu0 %v12630_v44  ;;  %v12645_v39 = vld [vmem:[%s13573_s12 + $0xe48] ss:$16 sps:$4 sm:$0xff]  }
 0x396   : > { %9232 = vmatpush1.bf16.msra.mxu1 %v12633_v63  ;;  %9192 = vmatprep.subr.bf16.mxu0 %v12638_v58  ;;  %v12674_v58 = vld [vmem:[%s13573_s12 + $0xcec] ss:$16 sps:$4 sm:$0xff]  }
 0x397   : > { %9233 = vmatprep.subr.bf16.mxu1 %v12641_v24  ;;  %9222 = vmatprep.mubr.bf16.mxu0 %v13871_v42  ;;  %v12651_v42 = vld [vmem:[%s13573_s12 + $0xe68] ss:$16 sps:$4 sm:$0xff]   ;;  %v12677_v24 = vld [vmem:[%s13573_s12 + $0xeec] ss:$16 sps:$4 sm:$0xff]  }
 0x398   : > { %9263 = vmatprep.mubr.bf16.mxu1 %v13875_v43  ;;  %v12656_v43 = vld [vmem:[%s13573_s12 + $0xc8c] ss:$16 sps:$4 sm:$0xff]  }
 0x399   : > { %9193 = vmatpush1.bf16.msra.mxu0 %v12636_v25  ;;  %v14816_v25 = vld [vmem:[%s14645_s26 + $0x10] sm:$0xff] }
 0x39a   : > { %9234 = vmatpush1.bf16.msra.mxu1 %v12639_v14  ;;  %9194 = vmatprep.subr.bf16.mxu0 %v12644_v15 }
 0x39b   : > { %9235 = vmatprep.subr.bf16.mxu1 %v12647_v32  ;;  %v12672_v32 = vld [vmem:[%s13573_s12 + $0xce8] ss:$16 sps:$4 sm:$0xff]  }
 0x39d   : > { %9195 = vmatpush1.bf16.msra.mxu0 %v12642_v38  ;;  %v12675_v38 = vld [vmem:[%s13573_s12 + $0xee8] ss:$16 sps:$4 sm:$0xff]  }
 0x39e   : > { %9236 = vmatpush1.bf16.msra.mxu1 %v12645_v39  ;;  %9196 = vmatprep.subr.bf16.mxu0 %v12650_v61  ;;  %v12680_v39 = vld [vmem:[%s13573_s12 + $0xd0c] ss:$16 sps:$4 sm:$0xff]  }
 0x39f   : > { %9237 = vmatprep.subr.bf16.mxu1 %v12653_v62  ;;  %v12683_v61 = vld [vmem:[%s13573_s12 + $0xf0c] ss:$16 sps:$4 sm:$0xff]   ;;  %v12678_v62 = vld [vmem:[%s13573_s12 + $0xd08] ss:$16 sps:$4 sm:$0xff]  }
 0x3a1   : > { %9197 = vmatpush1.bf16.msra.mxu0 %v12648_v6  ;;  %v12681_v6 = vld [vmem:[%s13573_s12 + $0xf08] ss:$16 sps:$4 sm:$0xff]  }
 0x3a2   : > { %9238 = vmatpush1.bf16.msra.mxu1 %v12651_v42  ;;  %9198 = vmatprep.subr.bf16.mxu0 %v12656_v43  ;;  %v12686_v42 = vld [vmem:[%s13573_s12 + $0xd2c] ss:$16 sps:$4 sm:$0xff]  }
 0x3a3   : > { %9239 = vmatprep.subr.bf16.mxu1 %v12659_v7  ;;  %v12689_v43 = vld [vmem:[%s13573_s12 + $0xf2c] ss:$16 sps:$4 sm:$0xff]   ;;  %v12684_v7 = vld [vmem:[%s13573_s12 + $0xd28] ss:$16 sps:$4 sm:$0xff]  }
 0x3a5   : > { %9199 = vmatpush1.bf16.msra.mxu0 %v12654_v34  ;;  %v12687_v34 = vld [vmem:[%s13573_s12 + $0xf28] ss:$16 sps:$4 sm:$0xff]  }
 0x3a6   : > { %9240 = vmatpush1.bf16.msra.mxu1 %v12657_v51  ;;  %9200 = vmatprep.subr.bf16.mxu0 %v12662_v47  ;;  %v12692_v51 = vld [vmem:[%s13573_s12 + $0xd4c] ss:$16 sps:$4 sm:$0xff]  }
 0x3a7   : > { %9241 = vmatprep.subr.bf16.mxu1 %v12665_v12  ;;  %v8896_v13 = vpop.f32.mrb[36].mxu0  ;;  %v12695_v47 = vld [vmem:[%s13573_s12 + $0xf4c] ss:$16 sps:$4 sm:$0xff]   ;;  %v12690_v12 = vld [vmem:[%s13573_s12 + $0xd48] ss:$16 sps:$4 sm:$0xff]  }
 0x3a8   : > { %v8937_v18 = vpop.f32.mrb[36].mxu1  ;;  %v8897_v19 = vadd.f32 %v8896_v13, %v14737_v3  ;;  %v8898_v2 = vpop.f32.mrb[37].mxu0  ;;  %v12699_v13 = vld [vmem:[%s13573_s12 + $0xf68] ss:$16 sps:$4 sm:$0xff]  }
 0x3a9   : > { %v8939_v29 = vpop.f32.mrb[37].mxu1  ;;  %v8899_v11 = vadd.f32 %v8898_v2, %v14741_v22  ;;  %v8900_v50 = vpop.f32.mrb[38].mxu0  ;;  %9201 = vmatpush1.bf16.msra.mxu0 %v12660_v36  ;;  %v12693_v36 = vld [vmem:[%s13573_s12 + $0xf48] ss:$16 sps:$4 sm:$0xff]  }
 0x3aa   : > { %v8941_v16 = vpop.f32.mrb[38].mxu1  ;;  %9242 = vmatpush1.bf16.msra.mxu1 %v12663_v37  ;;  %v8938_v44 = vadd.f32 %v8937_v18, %v8897_v19  ;;  %v8901_v63 = vpop.f32.mrb[39].mxu0  ;;  %9202 = vmatprep.subr.bf16.mxu0 %v12668_v56  ;;  %v12698_v37 = vld [vmem:[%s13573_s12 + $0xd6c] ss:$16 sps:$4 sm:$0xff]   ;;  %v12702_v2 = vld [vmem:[%s13573_s12 + $0xd88] ss:$16 sps:$4 sm:$0xff]  }
 0x3ab   : > { %v8942_v3 = vpop.f32.mrb[39].mxu1  ;;  %9243 = vmatprep.subr.bf16.mxu1 %v12671_v9  ;;  %v8940_v22 = vadd.f32 %v8939_v29, %v8899_v11  ;;  %v12701_v56 = vld [vmem:[%s13573_s12 + $0xf6c] ss:$16 sps:$4 sm:$0xff]   ;;  %v12696_v9 = vld [vmem:[%s13573_s12 + $0xd68] ss:$16 sps:$4 sm:$0xff]  }
 0x3ac   : > { %v9764_v14 = vadd.f32 %v8938_v44, %v280_v10  ;;  %v12704_v18 = vld [vmem:[%s13573_s12 + $0xd8c] ss:$16 sps:$4 sm:$0xff]   ;;  %v12705_v29 = vld [vmem:[%s13573_s12 + $0xf88] ss:$16 sps:$4 sm:$0xff]  }
 0x3ad   : > { %v9765_v15 = vadd.f32 %v8940_v22, %v281_v49  ;;  %9203 = vmatpush1.bf16.msra.mxu0 %v12666_v35  ;;  %v12707_v19 = vld [vmem:[%s13573_s12 + $0xf8c] ss:$16 sps:$4 sm:$0xff]   ;;  %v12708_v11 = vld [vmem:[%s13573_s12 + $0xda8] ss:$16 sps:$4 sm:$0xff]  }
 0x3ae   : > { %9244 = vmatpush1.bf16.msra.mxu1 %v12669_v17  ;;  %9204 = vmatprep.subr.bf16.mxu0 %v12674_v58  ;;  %9768 = vst [vmem:[%s14645_s26] sm:$0xff] %v9764_v14  ;;  %v12710_v35 = vld [vmem:[%s13573_s12 + $0xdac] ss:$16 sps:$4 sm:$0xff]   ;;  %v12711_v49 = vld [vmem:[%s13573_s12 + $0xfa8] ss:$16 sps:$4 sm:$0xff]  }
 0x3af   : > { %9245 = vmatprep.subr.bf16.mxu1 %v12677_v24  ;;  %9769 = vst [vmem:[%s14645_s26 + $0x8] sm:$0xff] %v9765_v15  ;;  %v12713_v10 = vld [vmem:[%s13573_s12 + $0xfac] ss:$16 sps:$4 sm:$0xff]   ;;  %v12714_v17 = vld [vmem:[%s13573_s12 + $0xdc8] ss:$16 sps:$4 sm:$0xff]  }
 0x3b0   : > { %v12716_v50 = vld [vmem:[%s13573_s12 + $0xdcc] ss:$16 sps:$4 sm:$0xff]   ;;  %v12717_v44 = vld [vmem:[%s13573_s12 + $0xfc8] ss:$16 sps:$4 sm:$0xff]  }
 0x3b1   : > { %9205 = vmatpush1.bf16.msra.mxu0 %v12672_v32  ;;  %v12719_v16 = vld [vmem:[%s13573_s12 + $0xfcc] ss:$16 sps:$4 sm:$0xff]   ;;  %v12720_v58 = vld [vmem:[%s13573_s12 + $0xde8] ss:$16 sps:$4 sm:$0xff]  }
 0x3b2   : > { %9246 = vmatpush1.bf16.msra.mxu1 %v12675_v38  ;;  %9206 = vmatprep.subr.bf16.mxu0 %v12680_v39  ;;  %v12722_v63 = vld [vmem:[%s13573_s12 + $0xdec] ss:$16 sps:$4 sm:$0xff]   ;;  %v12723_v24 = vld [vmem:[%s13573_s12 + $0xfe8] ss:$16 sps:$4 sm:$0xff]  }
 0x3b3   : > { %9247 = vmatprep.subr.bf16.mxu1 %v12683_v61  ;;  %v12725_v3 = vld [vmem:[%s13573_s12 + $0xfec] ss:$16 sps:$4 sm:$0xff]   ;;  %v12726_v15 = vld [vmem:[%s13573_s12 + $0x1008] ss:$16 sps:$4 sm:$0xff]  }
 0x3b4   : > { %v12728_v22 = vld [vmem:[%s13573_s12 + $0x100c] ss:$16 sps:$4 sm:$0xff]   ;;  %v12729_v32 = vld [vmem:[%s13573_s12 + $0x1208] ss:$16 sps:$4 sm:$0xff]  }
 0x3b5   : > { %9207 = vmatpush1.bf16.msra.mxu0 %v12678_v62  ;;  %v12731_v14 = vld [vmem:[%s13573_s12 + $0x120c] ss:$16 sps:$4 sm:$0xff]   ;;  %v12732_v61 = vld [vmem:[%s13573_s12 + $0x1028] ss:$16 sps:$4 sm:$0xff]  }
 0x3b6   : > { %9248 = vmatpush1.bf16.msra.mxu1 %v12681_v6  ;;  %9208 = vmatprep.subr.bf16.mxu0 %v12686_v42  ;;  %v12734_v38 = vld [vmem:[%s13573_s12 + $0x102c] ss:$16 sps:$4 sm:$0xff]   ;;  %v12735_v62 = vld [vmem:[%s13573_s12 + $0x1228] ss:$16 sps:$4 sm:$0xff]  }
 0x3b7   : > { %9249 = vmatprep.subr.bf16.mxu1 %v12689_v43  ;;  %v12737_v39 = vld [vmem:[%s13573_s12 + $0x122c] ss:$16 sps:$4 sm:$0xff]  }
 0x3b8   : > { %v12740_v6 = vld [vmem:[%s13573_s12 + $0x104c] ss:$16 sps:$4 sm:$0xff]  }
 0x3b9   : > { %9209 = vmatpush1.bf16.msra.mxu0 %v12684_v7  ;;  %v12743_v42 = vld [vmem:[%s13573_s12 + $0x124c] ss:$16 sps:$4 sm:$0xff]  }
 0x3ba   : > { %9250 = vmatpush1.bf16.msra.mxu1 %v12687_v34  ;;  %9210 = vmatprep.subr.bf16.mxu0 %v12692_v51  ;;  %v12746_v43 = vld [vmem:[%s13573_s12 + $0x106c] ss:$16 sps:$4 sm:$0xff]   ;;  %v12744_v34 = vld [vmem:[%s13573_s12 + $0x1068] ss:$16 sps:$4 sm:$0xff]  }
 0x3bb   : > { %9251 = vmatprep.subr.bf16.mxu1 %v12695_v47  ;;  %v12749_v7 = vld [vmem:[%s13573_s12 + $0x126c] ss:$16 sps:$4 sm:$0xff]   ;;  %v12750_v47 = vld [vmem:[%s13573_s12 + $0x1088] ss:$16 sps:$4 sm:$0xff]  }
 0x3bc   : > { %v12755_v51 = vld [vmem:[%s13573_s12 + $0x128c] ss:$16 sps:$4 sm:$0xff]  }
 0x3bd   : > { %9211 = vmatpush1.bf16.msra.mxu0 %v12690_v12  ;;  %v12753_v12 = vld [vmem:[%s13573_s12 + $0x1288] ss:$16 sps:$4 sm:$0xff]  }
 0x3be   : > { %9252 = vmatpush1.bf16.msra.mxu1 %v12693_v36  ;;  %9212 = vmatprep.subr.bf16.mxu0 %v12698_v37  ;;  %v12758_v36 = vld [vmem:[%s13573_s12 + $0x10ac] ss:$16 sps:$4 sm:$0xff]  }
 0x3bf   : > { %9253 = vmatprep.subr.bf16.mxu1 %v12701_v56  ;;  %v12761_v37 = vld [vmem:[%s13573_s12 + $0x12ac] ss:$16 sps:$4 sm:$0xff]   ;;  %v12756_v56 = vld [vmem:[%s13573_s12 + $0x10a8] ss:$16 sps:$4 sm:$0xff]  }
 0x3c1   : > { %9213 = vmatpush1.bf16.msra.mxu0 %v12696_v9  ;;  %v12759_v9 = vld [vmem:[%s13573_s12 + $0x12a8] ss:$16 sps:$4 sm:$0xff]  }
 0x3c2   : > { %9254 = vmatpush1.bf16.msra.mxu1 %v12699_v13  ;;  %9214 = vmatprep.subr.bf16.mxu0 %v12704_v18  ;;  %v12764_v13 = vld [vmem:[%s13573_s12 + $0x10cc] ss:$16 sps:$4 sm:$0xff]  }
 0x3c3   : > { %9255 = vmatprep.subr.bf16.mxu1 %v12707_v19  ;;  %v12767_v18 = vld [vmem:[%s13573_s12 + $0x12cc] ss:$16 sps:$4 sm:$0xff]  }
 0x3c5   : > { %9215 = vmatpush1.bf16.msra.mxu0 %v12702_v2 }
 0x3c6   : > { %9256 = vmatpush1.bf16.msra.mxu1 %v12705_v29  ;;  %9216 = vmatprep.subr.bf16.mxu0 %v12710_v35 }
 0x3c7   : > { %9257 = vmatprep.subr.bf16.mxu1 %v12713_v10 }
 0x3c9   : > { %9217 = vmatpush1.bf16.msra.mxu0 %v12708_v11 }
 0x3ca   : > { %9258 = vmatpush1.bf16.msra.mxu1 %v12711_v49  ;;  %9218 = vmatprep.subr.bf16.mxu0 %v12716_v50 }
 0x3cb   : > { %9259 = vmatprep.subr.bf16.mxu1 %v12719_v16  ;;  %v12762_v16 = vld [vmem:[%s13573_s12 + $0x10c8] ss:$16 sps:$4 sm:$0xff]  }
 0x3cd   : > { %9219 = vmatpush1.bf16.msra.mxu0 %v12714_v17  ;;  %v12765_v17 = vld [vmem:[%s13573_s12 + $0x12c8] ss:$16 sps:$4 sm:$0xff]  }
 0x3ce   : > { %9260 = vmatpush1.bf16.msra.mxu1 %v12717_v44  ;;  %9220 = vmatprep.subr.bf16.mxu0 %v12722_v63 }
 0x3cf   : > { %9261 = vmatprep.subr.bf16.mxu1 %v12725_v3  ;;  %v12770_v3 = vld [vmem:[%s13573_s12 + $0x10ec] ss:$16 sps:$4 sm:$0xff]  }
 0x3d1   : > { %9221 = vmatpush1.bf16.msra.mxu0 %v12720_v58  ;;  %v12773_v58 = vld [vmem:[%s13573_s12 + $0x12ec] ss:$16 sps:$4 sm:$0xff]  }
 0x3d2   : > { %9262 = vmatpush1.bf16.msra.mxu1 %v12723_v24  ;;  %9272 = vmatprep.subr.bf16.mxu0 %v12728_v22  ;;  %v12768_v24 = vld [vmem:[%s13573_s12 + $0x10e8] ss:$16 sps:$4 sm:$0xff]  }
 0x3d3   : > { %9313 = vmatprep.subr.bf16.mxu1 %v12731_v14  ;;  %v12771_v22 = vld [vmem:[%s13573_s12 + $0x12e8] ss:$16 sps:$4 sm:$0xff]   ;;  %v12776_v14 = vld [vmem:[%s13573_s12 + $0x110c] ss:$16 sps:$4 sm:$0xff]  }
 0x3d4   : > { %9223 = vmatmul.mubr.bf16.vlgmr.msra.gmra.mrb[52].mxu0 %v13948_v59  ;;  %v12738_v59 = vld [vmem:[%s13573_s12 + $0x1048] ss:$16 sps:$4 sm:$0xff]  }
 0x3d5   : > { %9264 = vmatmul.mubr.bf16.vlgmr.msra.gmra.mrb[52].mxu1 %v13952_v60  ;;  %9273 = vmatpush1.bf16.msra.mxu0 %v12726_v15  ;;  %v12741_v60 = vld [vmem:[%s13573_s12 + $0x1248] ss:$16 sps:$4 sm:$0xff]   ;;  %v12779_v15 = vld [vmem:[%s13573_s12 + $0x130c] ss:$16 sps:$4 sm:$0xff]  }
 0x3d6   : > { %9314 = vmatpush1.bf16.msra.mxu1 %v12729_v32  ;;  %9274 = vmatprep.subr.bf16.mxu0 %v12734_v38  ;;  %v12774_v32 = vld [vmem:[%s13573_s12 + $0x1108] ss:$16 sps:$4 sm:$0xff]  }
 0x3d7   : > { %9315 = vmatprep.subr.bf16.mxu1 %v12737_v39  ;;  %9304 = vmatprep.mubr.bf16.mxu0 %v13965_v41  ;;  %v12747_v41 = vld [vmem:[%s13573_s12 + $0x1268] ss:$16 sps:$4 sm:$0xff]   ;;  %v12782_v39 = vld [vmem:[%s13573_s12 + $0x112c] ss:$16 sps:$4 sm:$0xff]  }
 0x3d8   : > { %9345 = vmatprep.mubr.bf16.mxu1 %v13969_v1  ;;  %v12752_v1 = vld [vmem:[%s13573_s12 + $0x108c] ss:$16 sps:$4 sm:$0xff]   ;;  %v12777_v38 = vld [vmem:[%s13573_s12 + $0x1308] ss:$16 sps:$4 sm:$0xff]  }
 0x3d9   : > { %9275 = vmatpush1.bf16.msra.mxu0 %v12732_v61  ;;  %v12785_v61 = vld [vmem:[%s13573_s12 + $0x132c] ss:$16 sps:$4 sm:$0xff]  }
 0x3da   : > { %9316 = vmatpush1.bf16.msra.mxu1 %v12735_v62  ;;  %9276 = vmatprep.subr.bf16.mxu0 %v12740_v6  ;;  %v12780_v62 = vld [vmem:[%s13573_s12 + $0x1128] ss:$16 sps:$4 sm:$0xff]  }
 0x3db   : > { %9317 = vmatprep.subr.bf16.mxu1 %v12743_v42  ;;  %v12783_v6 = vld [vmem:[%s13573_s12 + $0x1328] ss:$16 sps:$4 sm:$0xff]   ;;  %v12788_v42 = vld [vmem:[%s13573_s12 + $0x114c] ss:$16 sps:$4 sm:$0xff]  }
 0x3dd   : > { %9277 = vmatpush1.bf16.msra.mxu0 %v12738_v59  ;;  %v12791_v59 = vld [vmem:[%s13573_s12 + $0x134c] ss:$16 sps:$4 sm:$0xff]  }
 0x3de   : > { %9318 = vmatpush1.bf16.msra.mxu1 %v12741_v60  ;;  %9278 = vmatprep.subr.bf16.mxu0 %v12746_v43  ;;  %v12786_v60 = vld [vmem:[%s13573_s12 + $0x1148] ss:$16 sps:$4 sm:$0xff]  }
 0x3df   : > { %9319 = vmatprep.subr.bf16.mxu1 %v12749_v7  ;;  %v12789_v43 = vld [vmem:[%s13573_s12 + $0x1348] ss:$16 sps:$4 sm:$0xff]   ;;  %v12794_v7 = vld [vmem:[%s13573_s12 + $0x116c] ss:$16 sps:$4 sm:$0xff]  }
 0x3e1   : > { %9279 = vmatpush1.bf16.msra.mxu0 %v12744_v34  ;;  %v12797_v34 = vld [vmem:[%s13573_s12 + $0x136c] ss:$16 sps:$4 sm:$0xff]  }
 0x3e2   : > { %9320 = vmatpush1.bf16.msra.mxu1 %v12747_v41  ;;  %9280 = vmatprep.subr.bf16.mxu0 %v12752_v1  ;;  %v12792_v41 = vld [vmem:[%s13573_s12 + $0x1168] ss:$16 sps:$4 sm:$0xff]  }
 0x3e3   : > { %9321 = vmatprep.subr.bf16.mxu1 %v12755_v51  ;;  %v12795_v1 = vld [vmem:[%s13573_s12 + $0x1368] ss:$16 sps:$4 sm:$0xff]   ;;  %v12800_v51 = vld [vmem:[%s13573_s12 + $0x118c] ss:$16 sps:$4 sm:$0xff]  }
 0x3e5   : > { %9281 = vmatpush1.bf16.msra.mxu0 %v12750_v47  ;;  %v12803_v47 = vld [vmem:[%s13573_s12 + $0x138c] ss:$16 sps:$4 sm:$0xff]  }
 0x3e6   : > { %9322 = vmatpush1.bf16.msra.mxu1 %v12753_v12  ;;  %9282 = vmatprep.subr.bf16.mxu0 %v12758_v36  ;;  %v12798_v12 = vld [vmem:[%s13573_s12 + $0x1188] ss:$16 sps:$4 sm:$0xff]  }
 0x3e7   : > { %9323 = vmatprep.subr.bf16.mxu1 %v12761_v37  ;;  %v8978_v19 = vpop.f32.mrb[40].mxu0  ;;  %v12801_v36 = vld [vmem:[%s13573_s12 + $0x1388] ss:$16 sps:$4 sm:$0xff]   ;;  %v12806_v37 = vld [vmem:[%s13573_s12 + $0x11ac] ss:$16 sps:$4 sm:$0xff]  }
 0x3e8   : > { %v9019_v2 = vpop.f32.mrb[40].mxu1  ;;  %v8980_v35 = vpop.f32.mrb[41].mxu0 }
 0x3e9   : > { %v14884_v29 = vadd.f32 %v9019_v2, %v8978_v19  ;;  %v9021_v10 = vpop.f32.mrb[41].mxu1  ;;  %v8982_v49 = vpop.f32.mrb[42].mxu0  ;;  %9283 = vmatpush1.bf16.msra.mxu0 %v12756_v56  ;;  %v12809_v56 = vld [vmem:[%s13573_s12 + $0x13ac] ss:$16 sps:$4 sm:$0xff]   ;;  %v12810_v2 = vld [vmem:[%s13573_s12 + $0x11c8] ss:$16 sps:$4 sm:$0xff]  }
 0x3ea   : > { %v14886_v11 = vadd.f32 %v9021_v10, %v8980_v35  ;;  %v9023_v50 = vpop.f32.mrb[42].mxu1  ;;  %9324 = vmatpush1.bf16.msra.mxu1 %v12759_v9  ;;  %v8983_v44 = vpop.f32.mrb[43].mxu0  ;;  %9284 = vmatprep.subr.bf16.mxu0 %v12764_v13  ;;  %v12804_v9 = vld [vmem:[%s13573_s12 + $0x11a8] ss:$16 sps:$4 sm:$0xff]   ;;  %v12815_v19 = vld [vmem:[%s13573_s12 + $0x13cc] ss:$16 sps:$4 sm:$0xff]  }
 0x3eb   : > { %v9024_v63 = vpop.f32.mrb[43].mxu1  ;;  %9325 = vmatprep.subr.bf16.mxu1 %v12767_v18  ;;  %v12807_v13 = vld [vmem:[%s13573_s12 + $0x13a8] ss:$16 sps:$4 sm:$0xff]   ;;  %v12812_v18 = vld [vmem:[%s13573_s12 + $0x11cc] ss:$16 sps:$4 sm:$0xff]  }
 0x3ec   : > { %v12813_v35 = vld [vmem:[%s13573_s12 + $0x13c8] ss:$16 sps:$4 sm:$0xff]   ;;  %v12818_v10 = vld [vmem:[%s13573_s12 + $0x11ec] ss:$16 sps:$4 sm:$0xff]  }
 0x3ed   : > { %9285 = vmatpush1.bf16.msra.mxu0 %v12762_v16  ;;  %v12821_v49 = vld [vmem:[%s13573_s12 + $0x13ec] ss:$16 sps:$4 sm:$0xff]   ;;  %v12816_v50 = vld [vmem:[%s13573_s12 + $0x11e8] ss:$16 sps:$4 sm:$0xff]  }
 0x3ee   : > { %9326 = vmatpush1.bf16.msra.mxu1 %v12765_v17  ;;  %9286 = vmatprep.subr.bf16.mxu0 %v12770_v3  ;;  %v12819_v16 = vld [vmem:[%s13573_s12 + $0x13e8] ss:$16 sps:$4 sm:$0xff]   ;;  %v12824_v17 = vld [vmem:[%s13573_s12 + $0x140c] ss:$16 sps:$4 sm:$0xff]  }
 0x3ef   : > { %9327 = vmatprep.subr.bf16.mxu1 %v12773_v58  ;;  %v12827_v44 = vld [vmem:[%s13573_s12 + $0x160c] ss:$16 sps:$4 sm:$0xff]   ;;  %v12822_v63 = vld [vmem:[%s13573_s12 + $0x1408] ss:$16 sps:$4 sm:$0xff]  }
 0x3f0   : > { %v12825_v3 = vld [vmem:[%s13573_s12 + $0x1608] ss:$16 sps:$4 sm:$0xff]   ;;  %v12830_v58 = vld [vmem:[%s13573_s12 + $0x142c] ss:$16 sps:$4 sm:$0xff]  }
 0x3f1   : > { %9287 = vmatpush1.bf16.msra.mxu0 %v12768_v24  ;;  %v12833_v24 = vld [vmem:[%s13573_s12 + $0x162c] ss:$16 sps:$4 sm:$0xff]  }
 0x3f2   : > { %9328 = vmatpush1.bf16.msra.mxu1 %v12771_v22  ;;  %9288 = vmatprep.subr.bf16.mxu0 %v12776_v14  ;;  %v12828_v22 = vld [vmem:[%s13573_s12 + $0x1428] ss:$16 sps:$4 sm:$0xff]  }
 0x3f3   : > { %9329 = vmatprep.subr.bf16.mxu1 %v12779_v15  ;;  %v12831_v14 = vld [vmem:[%s13573_s12 + $0x1628] ss:$16 sps:$4 sm:$0xff]   ;;  %v12836_v15 = vld [vmem:[%s13573_s12 + $0x144c] ss:$16 sps:$4 sm:$0xff]  }
 0x3f5   : > { %9289 = vmatpush1.bf16.msra.mxu0 %v12774_v32  ;;  %v12839_v32 = vld [vmem:[%s13573_s12 + $0x164c] ss:$16 sps:$4 sm:$0xff]  }
 0x3f6   : > { %9330 = vmatpush1.bf16.msra.mxu1 %v12777_v38  ;;  %9290 = vmatprep.subr.bf16.mxu0 %v12782_v39  ;;  %v12842_v38 = vld [vmem:[%s13573_s12 + $0x146c] ss:$16 sps:$4 sm:$0xff]  }
 0x3f7   : > { %9331 = vmatprep.subr.bf16.mxu1 %v12785_v61  ;;  %v12845_v39 = vld [vmem:[%s13573_s12 + $0x166c] ss:$16 sps:$4 sm:$0xff]   ;;  %v12840_v61 = vld [vmem:[%s13573_s12 + $0x1468] ss:$16 sps:$4 sm:$0xff]  }
 0x3f9   : > { %9291 = vmatpush1.bf16.msra.mxu0 %v12780_v62  ;;  %v12851_v62 = vld [vmem:[%s13573_s12 + $0x168c] ss:$16 sps:$4 sm:$0xff]  }
 0x3fa   : > { %9332 = vmatpush1.bf16.msra.mxu1 %v12783_v6  ;;  %9292 = vmatprep.subr.bf16.mxu0 %v12788_v42  ;;  %v12846_v6 = vld [vmem:[%s13573_s12 + $0x1488] ss:$16 sps:$4 sm:$0xff]  }
 0x3fb   : > { %9333 = vmatprep.subr.bf16.mxu1 %v12791_v59  ;;  %v12849_v42 = vld [vmem:[%s13573_s12 + $0x1688] ss:$16 sps:$4 sm:$0xff]   ;;  %v12854_v59 = vld [vmem:[%s13573_s12 + $0x14ac] ss:$16 sps:$4 sm:$0xff]  }
 0x3fd   : > { %9293 = vmatpush1.bf16.msra.mxu0 %v12786_v60  ;;  %v12857_v60 = vld [vmem:[%s13573_s12 + $0x16ac] ss:$16 sps:$4 sm:$0xff]  }
 0x3fe   : > { %9334 = vmatpush1.bf16.msra.mxu1 %v12789_v43  ;;  %9294 = vmatprep.subr.bf16.mxu0 %v12794_v7  ;;  %v12852_v43 = vld [vmem:[%s13573_s12 + $0x14a8] ss:$16 sps:$4 sm:$0xff]  }
 0x3ff   : > { %9335 = vmatprep.subr.bf16.mxu1 %v12797_v34  ;;  %v12855_v7 = vld [vmem:[%s13573_s12 + $0x16a8] ss:$16 sps:$4 sm:$0xff]   ;;  %v12860_v34 = vld [vmem:[%s13573_s12 + $0x14cc] ss:$16 sps:$4 sm:$0xff]  }
 0x401   : > { %9295 = vmatpush1.bf16.msra.mxu0 %v12792_v41  ;;  %v12863_v41 = vld [vmem:[%s13573_s12 + $0x16cc] ss:$16 sps:$4 sm:$0xff]  }
 0x402   : > { %9336 = vmatpush1.bf16.msra.mxu1 %v12795_v1  ;;  %9296 = vmatprep.subr.bf16.mxu0 %v12800_v51 }
 0x403   : > { %9337 = vmatprep.subr.bf16.mxu1 %v12803_v47 }
 0x405   : > { %9297 = vmatpush1.bf16.msra.mxu0 %v12798_v12 }
 0x406   : > { %9338 = vmatpush1.bf16.msra.mxu1 %v12801_v36  ;;  %9298 = vmatprep.subr.bf16.mxu0 %v12806_v37 }
 0x407   : > { %9339 = vmatprep.subr.bf16.mxu1 %v12809_v56 }
 0x409   : > { %9299 = vmatpush1.bf16.msra.mxu0 %v12804_v9 }
 0x40a   : > { %9340 = vmatpush1.bf16.msra.mxu1 %v12807_v13  ;;  %9300 = vmatprep.subr.bf16.mxu0 %v12812_v18  ;;  %v12858_v13 = vld [vmem:[%s13573_s12 + $0x14c8] ss:$16 sps:$4 sm:$0xff]  }
 0x40b   : > { %9341 = vmatprep.subr.bf16.mxu1 %v12815_v19  ;;  %v12861_v18 = vld [vmem:[%s13573_s12 + $0x16c8] ss:$16 sps:$4 sm:$0xff]  }
 0x40d   : > { %9301 = vmatpush1.bf16.msra.mxu0 %v12810_v2 }
 0x40e   : > { %9342 = vmatpush1.bf16.msra.mxu1 %v12813_v35  ;;  %9302 = vmatprep.subr.bf16.mxu0 %v12818_v10 }
 0x40f   : > { %9343 = vmatprep.subr.bf16.mxu1 %v12821_v49  ;;  %v12864_v49 = vld [vmem:[%s13573_s12 + $0x14e8] ss:$16 sps:$4 sm:$0xff]  }
 0x411   : > { %9303 = vmatpush1.bf16.msra.mxu0 %v12816_v50  ;;  %v12867_v50 = vld [vmem:[%s13573_s12 + $0x16e8] ss:$16 sps:$4 sm:$0xff]  }
 0x412   : > { %9344 = vmatpush1.bf16.msra.mxu1 %v12819_v16  ;;  %9354 = vmatprep.subr.bf16.mxu0 %v12824_v17  ;;  %v12872_v16 = vld [vmem:[%s13573_s12 + $0x150c] ss:$16 sps:$4 sm:$0xff]  }
 0x413   : > { %9395 = vmatprep.subr.bf16.mxu1 %v12827_v44  ;;  %v12875_v17 = vld [vmem:[%s13573_s12 + $0x170c] ss:$16 sps:$4 sm:$0xff]   ;;  %v12870_v44 = vld [vmem:[%s13573_s12 + $0x1508] ss:$16 sps:$4 sm:$0xff]  }
 0x414   : > { %9305 = vmatmul.mubr.bf16.vlgmr.msra.gmra.mrb[56].mxu0 %v14043_v46  ;;  %v12834_v46 = vld [vmem:[%s13573_s12 + $0x1448] ss:$16 sps:$4 sm:$0xff]  }
 0x415   : > { %9346 = vmatmul.mubr.bf16.vlgmr.msra.gmra.mrb[56].mxu1 %v14047_v48  ;;  %9355 = vmatpush1.bf16.msra.mxu0 %v12822_v63  ;;  %v12837_v48 = vld [vmem:[%s13573_s12 + $0x1648] ss:$16 sps:$4 sm:$0xff]  }
 0x416   : > { %9396 = vmatpush1.bf16.msra.mxu1 %v12825_v3  ;;  %9356 = vmatprep.subr.bf16.mxu0 %v12830_v58  ;;  %v12873_v63 = vld [vmem:[%s13573_s12 + $0x1708] ss:$16 sps:$4 sm:$0xff]   ;;  %v12878_v3 = vld [vmem:[%s13573_s12 + $0x152c] ss:$16 sps:$4 sm:$0xff]  }
 0x417   : > { %9397 = vmatprep.subr.bf16.mxu1 %v12833_v24  ;;  %9386 = vmatprep.mubr.bf16.mxu0 %v14063_v52  ;;  %v12843_v52 = vld [vmem:[%s13573_s12 + $0x1668] ss:$16 sps:$4 sm:$0xff]   ;;  %v12881_v58 = vld [vmem:[%s13573_s12 + $0x172c] ss:$16 sps:$4 sm:$0xff]  }
 0x418   : > { %9427 = vmatprep.mubr.bf16.mxu1 %v14067_v53  ;;  %v12848_v53 = vld [vmem:[%s13573_s12 + $0x148c] ss:$16 sps:$4 sm:$0xff]   ;;  %v12876_v24 = vld [vmem:[%s13573_s12 + $0x1528] ss:$16 sps:$4 sm:$0xff]  }
 0x419   : > { %9357 = vmatpush1.bf16.msra.mxu0 %v12828_v22  ;;  %v12879_v22 = vld [vmem:[%s13573_s12 + $0x1728] ss:$16 sps:$4 sm:$0xff]  }
 0x41a   : > { %9398 = vmatpush1.bf16.msra.mxu1 %v12831_v14  ;;  %9358 = vmatprep.subr.bf16.mxu0 %v12836_v15  ;;  %v12884_v14 = vld [vmem:[%s13573_s12 + $0x154c] ss:$16 sps:$4 sm:$0xff]  }
 0x41b   : > { %9399 = vmatprep.subr.bf16.mxu1 %v12839_v32  ;;  %v12887_v15 = vld [vmem:[%s13573_s12 + $0x174c] ss:$16 sps:$4 sm:$0xff]   ;;  %v12882_v32 = vld [vmem:[%s13573_s12 + $0x1548] ss:$16 sps:$4 sm:$0xff]  }
 0x41d   : > { %9359 = vmatpush1.bf16.msra.mxu0 %v12834_v46  ;;  %v12885_v46 = vld [vmem:[%s13573_s12 + $0x1748] ss:$16 sps:$4 sm:$0xff]  }
 0x41e   : > { %9400 = vmatpush1.bf16.msra.mxu1 %v12837_v48  ;;  %9360 = vmatprep.subr.bf16.mxu0 %v12842_v38  ;;  %v12890_v48 = vld [vmem:[%s13573_s12 + $0x156c] ss:$16 sps:$4 sm:$0xff]  }
 0x41f   : > { %9401 = vmatprep.subr.bf16.mxu1 %v12845_v39  ;;  %v12893_v38 = vld [vmem:[%s13573_s12 + $0x176c] ss:$16 sps:$4 sm:$0xff]   ;;  %v12888_v39 = vld [vmem:[%s13573_s12 + $0x1568] ss:$16 sps:$4 sm:$0xff]  }
 0x421   : > { %9361 = vmatpush1.bf16.msra.mxu0 %v12840_v61  ;;  %v12891_v61 = vld [vmem:[%s13573_s12 + $0x1768] ss:$16 sps:$4 sm:$0xff]  }
 0x422   : > { %9402 = vmatpush1.bf16.msra.mxu1 %v12843_v52  ;;  %9362 = vmatprep.subr.bf16.mxu0 %v12848_v53  ;;  %v12896_v52 = vld [vmem:[%s13573_s12 + $0x158c] ss:$16 sps:$4 sm:$0xff]  }
 0x423   : > { %9403 = vmatprep.subr.bf16.mxu1 %v12851_v62  ;;  %v12899_v53 = vld [vmem:[%s13573_s12 + $0x178c] ss:$16 sps:$4 sm:$0xff]   ;;  %v12894_v62 = vld [vmem:[%s13573_s12 + $0x1588] ss:$16 sps:$4 sm:$0xff]  }
 0x425   : > { %9363 = vmatpush1.bf16.msra.mxu0 %v12846_v6  ;;  %v12897_v6 = vld [vmem:[%s13573_s12 + $0x1788] ss:$16 sps:$4 sm:$0xff]  }
 0x426   : > { %9404 = vmatpush1.bf16.msra.mxu1 %v12849_v42  ;;  %9364 = vmatprep.subr.bf16.mxu0 %v12854_v59  ;;  %v12902_v42 = vld [vmem:[%s13573_s12 + $0x15ac] ss:$16 sps:$4 sm:$0xff]  }
 0x427   : > { %9405 = vmatprep.subr.bf16.mxu1 %v12857_v60  ;;  %v9060_v1 = vpop.f32.mrb[44].mxu0  ;;  %v12905_v59 = vld [vmem:[%s13573_s12 + $0x17ac] ss:$16 sps:$4 sm:$0xff]   ;;  %v12900_v60 = vld [vmem:[%s13573_s12 + $0x15a8] ss:$16 sps:$4 sm:$0xff]  }
 0x428   : > { %v9101_v51 = vpop.f32.mrb[44].mxu1  ;;  %v9061_v47 = vadd.f32 %v9060_v1, %v14884_v29  ;;  %v9062_v12 = vpop.f32.mrb[45].mxu0  ;;  %v12866_v29 = vld [vmem:[%s13573_s12 + $0x14ec] ss:$16 sps:$4 sm:$0xff]   ;;  %v12909_v1 = vld [vmem:[%s13573_s12 + $0x17c8] ss:$16 sps:$4 sm:$0xff]  }
 0x429   : > { %v9103_v36 = vpop.f32.mrb[45].mxu1  ;;  %v9063_v37 = vadd.f32 %v9062_v12, %v14886_v11  ;;  %v9064_v56 = vpop.f32.mrb[46].mxu0  ;;  %9365 = vmatpush1.bf16.msra.mxu0 %v12852_v43  ;;  %v12869_v11 = vld [vmem:[%s13573_s12 + $0x16ec] ss:$16 sps:$4 sm:$0xff]   ;;  %v12903_v43 = vld [vmem:[%s13573_s12 + $0x17a8] ss:$16 sps:$4 sm:$0xff]  }
 0x42a   : > { %v9105_v9 = vpop.f32.mrb[46].mxu1  ;;  %9406 = vmatpush1.bf16.msra.mxu1 %v12855_v7  ;;  %v14960_v19 = vadd.f32 %v9101_v51, %v9061_v47  ;;  %v9065_v2 = vpop.f32.mrb[47].mxu0  ;;  %9366 = vmatprep.subr.bf16.mxu0 %v12860_v34  ;;  %v12908_v7 = vld [vmem:[%s13573_s12 + $0x15cc] ss:$16 sps:$4 sm:$0xff]   ;;  %v12912_v12 = vld [vmem:[%s13573_s12 + $0x15e8] ss:$16 sps:$4 sm:$0xff]  }
 0x42b   : > { %v9106_v35 = vpop.f32.mrb[47].mxu1  ;;  %9407 = vmatprep.subr.bf16.mxu1 %v12863_v41  ;;  %v14964_v10 = vadd.f32 %v9103_v36, %v9063_v37  ;;  %v12911_v34 = vld [vmem:[%s13573_s12 + $0x17cc] ss:$16 sps:$4 sm:$0xff]   ;;  %v12906_v41 = vld [vmem:[%s13573_s12 + $0x15c8] ss:$16 sps:$4 sm:$0xff]  }
 0x42c   : > { %v12914_v51 = vld [vmem:[%s13573_s12 + $0x15ec] ss:$16 sps:$4 sm:$0xff]   ;;  %v12915_v36 = vld [vmem:[%s13573_s12 + $0x17e8] ss:$16 sps:$4 sm:$0xff]  }
 0x42d   : > { %9367 = vmatpush1.bf16.msra.mxu0 %v12858_v13  ;;  %v12917_v47 = vld [vmem:[%s13573_s12 + $0x17ec] ss:$16 sps:$4 sm:$0xff]   ;;  %v12918_v9 = vld [vmem:[%s13573_s12 + $0x1808] ss:$16 sps:$4 sm:$0xff]  }
 0x42e   : > { %9408 = vmatpush1.bf16.msra.mxu1 %v12861_v18  ;;  %9368 = vmatprep.subr.bf16.mxu0 %v12866_v29  ;;  %v12920_v37 = vld [vmem:[%s13573_s12 + $0x180c] ss:$16 sps:$4 sm:$0xff]   ;;  %v12921_v13 = vld [vmem:[%s13573_s12 + $0x1a08] ss:$16 sps:$4 sm:$0xff]  }
 0x42f   : > { %9409 = vmatprep.subr.bf16.mxu1 %v12869_v11  ;;  %v12923_v56 = vld [vmem:[%s13573_s12 + $0x1a0c] ss:$16 sps:$4 sm:$0xff]   ;;  %v12924_v35 = vld [vmem:[%s13573_s12 + $0x1828] ss:$16 sps:$4 sm:$0xff]  }
 0x430   : > { %v12926_v18 = vld [vmem:[%s13573_s12 + $0x182c] ss:$16 sps:$4 sm:$0xff]   ;;  %v12927_v29 = vld [vmem:[%s13573_s12 + $0x1a28] ss:$16 sps:$4 sm:$0xff]  }
 0x431   : > { %9369 = vmatpush1.bf16.msra.mxu0 %v12864_v49  ;;  %v12929_v2 = vld [vmem:[%s13573_s12 + $0x1a2c] ss:$16 sps:$4 sm:$0xff]  }
 0x432   : > { %9410 = vmatpush1.bf16.msra.mxu1 %v12867_v50  ;;  %9370 = vmatprep.subr.bf16.mxu0 %v12872_v16  ;;  %v12932_v11 = vld [vmem:[%s13573_s12 + $0x184c] ss:$16 sps:$4 sm:$0xff]  }
 0x433   : > { %9411 = vmatprep.subr.bf16.mxu1 %v12875_v17  ;;  %v12935_v49 = vld [vmem:[%s13573_s12 + $0x1a4c] ss:$16 sps:$4 sm:$0xff]   ;;  %v12936_v17 = vld [vmem:[%s13573_s12 + $0x1868] ss:$16 sps:$4 sm:$0xff]  }
 0x434   : > { %v12938_v50 = vld [vmem:[%s13573_s12 + $0x186c] ss:$16 sps:$4 sm:$0xff]  }
 0x435   : > { %9371 = vmatpush1.bf16.msra.mxu0 %v12870_v44  ;;  %v12941_v16 = vld [vmem:[%s13573_s12 + $0x1a6c] ss:$16 sps:$4 sm:$0xff]  }
 0x436   : > { %9412 = vmatpush1.bf16.msra.mxu1 %v12873_v63  ;;  %9372 = vmatprep.subr.bf16.mxu0 %v12878_v3  ;;  %v12947_v44 = vld [vmem:[%s13573_s12 + $0x1a8c] ss:$16 sps:$4 sm:$0xff]   ;;  %v12942_v63 = vld [vmem:[%s13573_s12 + $0x1888] ss:$16 sps:$4 sm:$0xff]  }
 0x437   : > { %9413 = vmatprep.subr.bf16.mxu1 %v12881_v58  ;;  %v12945_v3 = vld [vmem:[%s13573_s12 + $0x1a88] ss:$16 sps:$4 sm:$0xff]   ;;  %v12950_v58 = vld [vmem:[%s13573_s12 + $0x18ac] ss:$16 sps:$4 sm:$0xff]  }
 0x439   : > { %9373 = vmatpush1.bf16.msra.mxu0 %v12876_v24  ;;  %v12953_v24 = vld [vmem:[%s13573_s12 + $0x1aac] ss:$16 sps:$4 sm:$0xff]  }
 0x43a   : > { %9414 = vmatpush1.bf16.msra.mxu1 %v12879_v22  ;;  %9374 = vmatprep.subr.bf16.mxu0 %v12884_v14  ;;  %v12948_v22 = vld [vmem:[%s13573_s12 + $0x18a8] ss:$16 sps:$4 sm:$0xff]  }
 0x43b   : > { %9415 = vmatprep.subr.bf16.mxu1 %v12887_v15  ;;  %v12951_v14 = vld [vmem:[%s13573_s12 + $0x1aa8] ss:$16 sps:$4 sm:$0xff]   ;;  %v12956_v15 = vld [vmem:[%s13573_s12 + $0x18cc] ss:$16 sps:$4 sm:$0xff]  }
 0x43d   : > { %9375 = vmatpush1.bf16.msra.mxu0 %v12882_v32  ;;  %v12959_v32 = vld [vmem:[%s13573_s12 + $0x1acc] ss:$16 sps:$4 sm:$0xff]  }
 0x43e   : > { %9416 = vmatpush1.bf16.msra.mxu1 %v12885_v46  ;;  %9376 = vmatprep.subr.bf16.mxu0 %v12890_v48 }
 0x43f   : > { %9417 = vmatprep.subr.bf16.mxu1 %v12893_v38 }
 0x441   : > { %9377 = vmatpush1.bf16.msra.mxu0 %v12888_v39 }
 0x442   : > { %9418 = vmatpush1.bf16.msra.mxu1 %v12891_v61  ;;  %9378 = vmatprep.subr.bf16.mxu0 %v12896_v52 }
 0x443   : > { %9419 = vmatprep.subr.bf16.mxu1 %v12899_v53 }
 0x445   : > { %9379 = vmatpush1.bf16.msra.mxu0 %v12894_v62 }
 0x446   : > { %9420 = vmatpush1.bf16.msra.mxu1 %v12897_v6  ;;  %9380 = vmatprep.subr.bf16.mxu0 %v12902_v42  ;;  %v12954_v6 = vld [vmem:[%s13573_s12 + $0x18c8] ss:$16 sps:$4 sm:$0xff]  }
 0x447   : > { %9421 = vmatprep.subr.bf16.mxu1 %v12905_v59  ;;  %v12957_v42 = vld [vmem:[%s13573_s12 + $0x1ac8] ss:$16 sps:$4 sm:$0xff]  }
 0x449   : > { %9381 = vmatpush1.bf16.msra.mxu0 %v12900_v60 }
 0x44a   : > { %9422 = vmatpush1.bf16.msra.mxu1 %v12903_v43  ;;  %9382 = vmatprep.subr.bf16.mxu0 %v12908_v7 }
 0x44b   : > { %9423 = vmatprep.subr.bf16.mxu1 %v12911_v34  ;;  %v12960_v34 = vld [vmem:[%s13573_s12 + $0x18e8] ss:$16 sps:$4 sm:$0xff]  }
 0x44d   : > { %9383 = vmatpush1.bf16.msra.mxu0 %v12906_v41  ;;  %v12963_v41 = vld [vmem:[%s13573_s12 + $0x1ae8] ss:$16 sps:$4 sm:$0xff]  }
 0x44e   : > { %9424 = vmatpush1.bf16.msra.mxu1 %v12909_v1  ;;  %9384 = vmatprep.subr.bf16.mxu0 %v12914_v51  ;;  %v12968_v1 = vld [vmem:[%s13573_s12 + $0x190c] ss:$16 sps:$4 sm:$0xff]  }
 0x44f   : > { %9425 = vmatprep.subr.bf16.mxu1 %v12917_v47  ;;  %v12971_v51 = vld [vmem:[%s13573_s12 + $0x1b0c] ss:$16 sps:$4 sm:$0xff]   ;;  %v12966_v47 = vld [vmem:[%s13573_s12 + $0x1908] ss:$16 sps:$4 sm:$0xff]  }
 0x451   : > { %9385 = vmatpush1.bf16.msra.mxu0 %v12912_v12  ;;  %v12969_v12 = vld [vmem:[%s13573_s12 + $0x1b08] ss:$16 sps:$4 sm:$0xff]  }
 0x452   : > { %9426 = vmatpush1.bf16.msra.mxu1 %v12915_v36  ;;  %9436 = vmatprep.subr.bf16.mxu0 %v12920_v37  ;;  %v12974_v36 = vld [vmem:[%s13573_s12 + $0x192c] ss:$16 sps:$4 sm:$0xff]  }
 0x453   : > { %9477 = vmatprep.subr.bf16.mxu1 %v12923_v56  ;;  %v12977_v37 = vld [vmem:[%s13573_s12 + $0x1b2c] ss:$16 sps:$4 sm:$0xff]   ;;  %v12972_v56 = vld [vmem:[%s13573_s12 + $0x1928] ss:$16 sps:$4 sm:$0xff]  }
 0x454   : > { %9387 = vmatmul.mubr.bf16.vlgmr.msra.gmra.mrb[60].mxu0 %v14143_v23  ;;  %v12930_v23 = vld [vmem:[%s13573_s12 + $0x1848] ss:$16 sps:$4 sm:$0xff]  }
 0x455   : > { %9428 = vmatmul.mubr.bf16.vlgmr.msra.gmra.mrb[60].mxu1 %v14147_v45  ;;  %9437 = vmatpush1.bf16.msra.mxu0 %v12918_v9  ;;  %v12933_v45 = vld [vmem:[%s13573_s12 + $0x1a48] ss:$16 sps:$4 sm:$0xff]  }
 0x456   : > { %9478 = vmatpush1.bf16.msra.mxu1 %v12921_v13  ;;  %9438 = vmatprep.subr.bf16.mxu0 %v12926_v18  ;;  %v12975_v9 = vld [vmem:[%s13573_s12 + $0x1b28] ss:$16 sps:$4 sm:$0xff]   ;;  %v12980_v13 = vld [vmem:[%s13573_s12 + $0x194c] ss:$16 sps:$4 sm:$0xff]  }
 0x457   : > { %9479 = vmatprep.subr.bf16.mxu1 %v12929_v2  ;;  %9468 = vmatprep.mubr.bf16.mxu0 %v14163_v54  ;;  %v12939_v54 = vld [vmem:[%s13573_s12 + $0x1a68] ss:$16 sps:$4 sm:$0xff]   ;;  %v12983_v18 = vld [vmem:[%s13573_s12 + $0x1b4c] ss:$16 sps:$4 sm:$0xff]  }
 0x458   : > { %9509 = vmatprep.mubr.bf16.mxu1 %v14167_v55  ;;  %v12944_v55 = vld [vmem:[%s13573_s12 + $0x188c] ss:$16 sps:$4 sm:$0xff]   ;;  %v12978_v2 = vld [vmem:[%s13573_s12 + $0x1948] ss:$16 sps:$4 sm:$0xff]  }
 0x459   : > { %9439 = vmatpush1.bf16.msra.mxu0 %v12924_v35  ;;  %v12981_v35 = vld [vmem:[%s13573_s12 + $0x1b48] ss:$16 sps:$4 sm:$0xff]  }
 0x45a   : > { %9480 = vmatpush1.bf16.msra.mxu1 %v12927_v29  ;;  %9440 = vmatprep.subr.bf16.mxu0 %v12932_v11  ;;  %v12986_v29 = vld [vmem:[%s13573_s12 + $0x196c] ss:$16 sps:$4 sm:$0xff]  }
 0x45b   : > { %9481 = vmatprep.subr.bf16.mxu1 %v12935_v49  ;;  %v12989_v11 = vld [vmem:[%s13573_s12 + $0x1b6c] ss:$16 sps:$4 sm:$0xff]   ;;  %v12984_v49 = vld [vmem:[%s13573_s12 + $0x1968] ss:$16 sps:$4 sm:$0xff]  }
 0x45d   : > { %9441 = vmatpush1.bf16.msra.mxu0 %v12930_v23  ;;  %v12987_v23 = vld [vmem:[%s13573_s12 + $0x1b68] ss:$16 sps:$4 sm:$0xff]  }
 0x45e   : > { %9482 = vmatpush1.bf16.msra.mxu1 %v12933_v45  ;;  %9442 = vmatprep.subr.bf16.mxu0 %v12938_v50  ;;  %v12992_v45 = vld [vmem:[%s13573_s12 + $0x198c] ss:$16 sps:$4 sm:$0xff]  }
 0x45f   : > { %9483 = vmatprep.subr.bf16.mxu1 %v12941_v16  ;;  %v12995_v50 = vld [vmem:[%s13573_s12 + $0x1b8c] ss:$16 sps:$4 sm:$0xff]   ;;  %v12990_v16 = vld [vmem:[%s13573_s12 + $0x1988] ss:$16 sps:$4 sm:$0xff]  }
 0x461   : > { %9443 = vmatpush1.bf16.msra.mxu0 %v12936_v17  ;;  %v12993_v17 = vld [vmem:[%s13573_s12 + $0x1b88] ss:$16 sps:$4 sm:$0xff]  }
 0x462   : > { %9484 = vmatpush1.bf16.msra.mxu1 %v12939_v54  ;;  %9444 = vmatprep.subr.bf16.mxu0 %v12944_v55  ;;  %v12998_v54 = vld [vmem:[%s13573_s12 + $0x19ac] ss:$16 sps:$4 sm:$0xff]  }
 0x463   : > { %9485 = vmatprep.subr.bf16.mxu1 %v12947_v44  ;;  %v13001_v55 = vld [vmem:[%s13573_s12 + $0x1bac] ss:$16 sps:$4 sm:$0xff]   ;;  %v12996_v44 = vld [vmem:[%s13573_s12 + $0x19a8] ss:$16 sps:$4 sm:$0xff]  }
 0x465   : > { %9445 = vmatpush1.bf16.msra.mxu0 %v12942_v63  ;;  %v12999_v63 = vld [vmem:[%s13573_s12 + $0x1ba8] ss:$16 sps:$4 sm:$0xff]  }
 0x466   : > { %9486 = vmatpush1.bf16.msra.mxu1 %v12945_v3  ;;  %9446 = vmatprep.subr.bf16.mxu0 %v12950_v58  ;;  %v13004_v3 = vld [vmem:[%s13573_s12 + $0x19cc] ss:$16 sps:$4 sm:$0xff]  }
 0x467   : > { %9487 = vmatprep.subr.bf16.mxu1 %v12953_v24  ;;  %v9142_v46 = vpop.f32.mrb[48].mxu0  ;;  %v13007_v58 = vld [vmem:[%s13573_s12 + $0x1bcc] ss:$16 sps:$4 sm:$0xff]   ;;  %v13002_v24 = vld [vmem:[%s13573_s12 + $0x19c8] ss:$16 sps:$4 sm:$0xff]  }
 0x468   : > { %v9183_v48 = vpop.f32.mrb[48].mxu1  ;;  %v9143_v38 = vadd.f32 %v9142_v46, %v14960_v19  ;;  %v9144_v39 = vpop.f32.mrb[49].mxu0  ;;  %v12962_v19 = vld [vmem:[%s13573_s12 + $0x18ec] ss:$16 sps:$4 sm:$0xff]   ;;  %v13011_v46 = vld [vmem:[%s13573_s12 + $0x1be8] ss:$16 sps:$4 sm:$0xff]  }
 0x469   : > { %v9185_v61 = vpop.f32.mrb[49].mxu1  ;;  %v9145_v52 = vadd.f32 %v9144_v39, %v14964_v10  ;;  %v9146_v53 = vpop.f32.mrb[50].mxu0  ;;  %9447 = vmatpush1.bf16.msra.mxu0 %v12948_v22  ;;  %v12965_v10 = vld [vmem:[%s13573_s12 + $0x1aec] ss:$16 sps:$4 sm:$0xff]   ;;  %v13005_v22 = vld [vmem:[%s13573_s12 + $0x1bc8] ss:$16 sps:$4 sm:$0xff]  }
 0x46a   : > { %v9187_v62 = vpop.f32.mrb[50].mxu1  ;;  %9488 = vmatpush1.bf16.msra.mxu1 %v12951_v14  ;;  %v15034_v59 = vadd.f32 %v9183_v48, %v9143_v38  ;;  %v9147_v60 = vpop.f32.mrb[51].mxu0  ;;  %9448 = vmatprep.subr.bf16.mxu0 %v12956_v15  ;;  %v13010_v14 = vld [vmem:[%s13573_s12 + $0x19ec] ss:$16 sps:$4 sm:$0xff]   ;;  %v13014_v39 = vld [vmem:[%s13573_s12 + $0x1c08] ss:$16 sps:$4 sm:$0xff]  }
 0x46b   : > { %v9188_v43 = vpop.f32.mrb[51].mxu1  ;;  %9489 = vmatprep.subr.bf16.mxu1 %v12959_v32  ;;  %v15038_v7 = vadd.f32 %v9185_v61, %v9145_v52  ;;  %v13013_v15 = vld [vmem:[%s13573_s12 + $0x1bec] ss:$16 sps:$4 sm:$0xff]   ;;  %v13008_v32 = vld [vmem:[%s13573_s12 + $0x19e8] ss:$16 sps:$4 sm:$0xff]  }
 0x46c   : > { %v13016_v48 = vld [vmem:[%s13573_s12 + $0x1c0c] ss:$16 sps:$4 sm:$0xff]   ;;  %v13017_v61 = vld [vmem:[%s13573_s12 + $0x1e08] ss:$16 sps:$4 sm:$0xff]  }
 0x46d   : > { %9449 = vmatpush1.bf16.msra.mxu0 %v12954_v6  ;;  %v13019_v38 = vld [vmem:[%s13573_s12 + $0x1e0c] ss:$16 sps:$4 sm:$0xff]   ;;  %v13020_v62 = vld [vmem:[%s13573_s12 + $0x1c28] ss:$16 sps:$4 sm:$0xff]  }
 0x46e   : > { %9490 = vmatpush1.bf16.msra.mxu1 %v12957_v42  ;;  %9450 = vmatprep.subr.bf16.mxu0 %v12962_v19  ;;  %v13022_v52 = vld [vmem:[%s13573_s12 + $0x1c2c] ss:$16 sps:$4 sm:$0xff]   ;;  %v13023_v6 = vld [vmem:[%s13573_s12 + $0x1e28] ss:$16 sps:$4 sm:$0xff]  }
 0x46f   : > { %9491 = vmatprep.subr.bf16.mxu1 %v12965_v10  ;;  %v13025_v53 = vld [vmem:[%s13573_s12 + $0x1e2c] ss:$16 sps:$4 sm:$0xff]   ;;  %v13032_v10 = vld [vmem:[%s13573_s12 + $0x1c68] ss:$16 sps:$4 sm:$0xff]  }
 0x470   : > { %v13028_v42 = vld [vmem:[%s13573_s12 + $0x1c4c] ss:$16 sps:$4 sm:$0xff]  }
 0x471   : > { %9451 = vmatpush1.bf16.msra.mxu0 %v12960_v34  ;;  %v13031_v60 = vld [vmem:[%s13573_s12 + $0x1e4c] ss:$16 sps:$4 sm:$0xff]  }
 0x472   : > { %9492 = vmatpush1.bf16.msra.mxu1 %v12963_v41  ;;  %9452 = vmatprep.subr.bf16.mxu0 %v12968_v1  ;;  %v13034_v43 = vld [vmem:[%s13573_s12 + $0x1c6c] ss:$16 sps:$4 sm:$0xff]   ;;  %v13038_v41 = vld [vmem:[%s13573_s12 + $0x1c88] ss:$16 sps:$4 sm:$0xff]  }
 0x473   : > { %9493 = vmatprep.subr.bf16.mxu1 %v12971_v51  ;;  %v13037_v19 = vld [vmem:[%s13573_s12 + $0x1e6c] ss:$16 sps:$4 sm:$0xff]   ;;  %v13041_v1 = vld [vmem:[%s13573_s12 + $0x1e88] ss:$16 sps:$4 sm:$0xff]  }
 0x474   : > { %v13043_v34 = vld [vmem:[%s13573_s12 + $0x1e8c] ss:$16 sps:$4 sm:$0xff]  }
 0x475   : > { %9453 = vmatpush1.bf16.msra.mxu0 %v12966_v47  ;;  %v13046_v51 = vld [vmem:[%s13573_s12 + $0x1cac] ss:$16 sps:$4 sm:$0xff]  }
 0x476   : > { %9494 = vmatpush1.bf16.msra.mxu1 %v12969_v12  ;;  %9454 = vmatprep.subr.bf16.mxu0 %v12974_v36  ;;  %v13049_v47 = vld [vmem:[%s13573_s12 + $0x1eac] ss:$16 sps:$4 sm:$0xff]   ;;  %v13044_v12 = vld [vmem:[%s13573_s12 + $0x1ca8] ss:$16 sps:$4 sm:$0xff]  }
 0x477   : > { %9495 = vmatprep.subr.bf16.mxu1 %v12977_v37  ;;  %v13047_v36 = vld [vmem:[%s13573_s12 + $0x1ea8] ss:$16 sps:$4 sm:$0xff]   ;;  %v13052_v37 = vld [vmem:[%s13573_s12 + $0x1ccc] ss:$16 sps:$4 sm:$0xff]  }
 0x479   : > { %9455 = vmatpush1.bf16.msra.mxu0 %v12972_v56  ;;  %v13055_v56 = vld [vmem:[%s13573_s12 + $0x1ecc] ss:$16 sps:$4 sm:$0xff]  }
 0x47a   : > { %9496 = vmatpush1.bf16.msra.mxu1 %v12975_v9  ;;  %9456 = vmatprep.subr.bf16.mxu0 %v12980_v13 }
 0x47b   : > { %9497 = vmatprep.subr.bf16.mxu1 %v12983_v18 }
 0x47d   : > { %9457 = vmatpush1.bf16.msra.mxu0 %v12978_v2 }
 0x47e   : > { %9498 = vmatpush1.bf16.msra.mxu1 %v12981_v35  ;;  %9458 = vmatprep.subr.bf16.mxu0 %v12986_v29 }
 0x47f   : > { %9499 = vmatprep.subr.bf16.mxu1 %v12989_v11 }
 0x481   : > { %9459 = vmatpush1.bf16.msra.mxu0 %v12984_v49 }
 0x482   : > { %9500 = vmatpush1.bf16.msra.mxu1 %v12987_v23  ;;  %9460 = vmatprep.subr.bf16.mxu0 %v12992_v45  ;;  %v13050_v23 = vld [vmem:[%s13573_s12 + $0x1cc8] ss:$16 sps:$4 sm:$0xff]  }
 0x483   : > { %9501 = vmatprep.subr.bf16.mxu1 %v12995_v50  ;;  %v13053_v45 = vld [vmem:[%s13573_s12 + $0x1ec8] ss:$16 sps:$4 sm:$0xff]  }
 0x485   : > { %9461 = vmatpush1.bf16.msra.mxu0 %v12990_v16 }
 0x486   : > { %9502 = vmatpush1.bf16.msra.mxu1 %v12993_v17  ;;  %9462 = vmatprep.subr.bf16.mxu0 %v12998_v54 }
 0x487   : > { %9503 = vmatprep.subr.bf16.mxu1 %v13001_v55  ;;  %v13056_v55 = vld [vmem:[%s13573_s12 + $0x1ce8] ss:$16 sps:$4 sm:$0xff]  }
 0x489   : > { %9463 = vmatpush1.bf16.msra.mxu0 %v12996_v44  ;;  %v13059_v44 = vld [vmem:[%s13573_s12 + $0x1ee8] ss:$16 sps:$4 sm:$0xff]  }
 0x48a   : > { %9504 = vmatpush1.bf16.msra.mxu1 %v12999_v63  ;;  %9464 = vmatprep.subr.bf16.mxu0 %v13004_v3  ;;  %v13064_v63 = vld [vmem:[%s13573_s12 + $0x1d0c] ss:$16 sps:$4 sm:$0xff]  }
 0x48b   : > { %9505 = vmatprep.subr.bf16.mxu1 %v13007_v58  ;;  %v13067_v3 = vld [vmem:[%s13573_s12 + $0x1f0c] ss:$16 sps:$4 sm:$0xff]   ;;  %v13062_v58 = vld [vmem:[%s13573_s12 + $0x1d08] ss:$16 sps:$4 sm:$0xff]  }
 0x48d   : > { %9465 = vmatpush1.bf16.msra.mxu0 %v13002_v24  ;;  %v13065_v24 = vld [vmem:[%s13573_s12 + $0x1f08] ss:$16 sps:$4 sm:$0xff]  }
 0x48e   : > { %9506 = vmatpush1.bf16.msra.mxu1 %v13005_v22  ;;  %9466 = vmatprep.subr.bf16.mxu0 %v13010_v14  ;;  %v13070_v22 = vld [vmem:[%s13573_s12 + $0x1d2c] ss:$16 sps:$4 sm:$0xff]  }
 0x48f   : > { %9507 = vmatprep.subr.bf16.mxu1 %v13013_v15  ;;  %v13073_v14 = vld [vmem:[%s13573_s12 + $0x1f2c] ss:$16 sps:$4 sm:$0xff]   ;;  %v13068_v15 = vld [vmem:[%s13573_s12 + $0x1d28] ss:$16 sps:$4 sm:$0xff]  }
 0x491   : > { %9467 = vmatpush1.bf16.msra.mxu0 %v13008_v32  ;;  %v13071_v32 = vld [vmem:[%s13573_s12 + $0x1f28] ss:$16 sps:$4 sm:$0xff]  }
 0x492   : > { %9508 = vmatpush1.bf16.msra.mxu1 %v13011_v46  ;;  %9518 = vmatprep.subr.bf16.mxu0 %v13016_v48  ;;  %v13076_v46 = vld [vmem:[%s13573_s12 + $0x1d4c] ss:$16 sps:$4 sm:$0xff]  }
 0x493   : > { %9559 = vmatprep.subr.bf16.mxu1 %v13019_v38  ;;  %v13079_v48 = vld [vmem:[%s13573_s12 + $0x1f4c] ss:$16 sps:$4 sm:$0xff]   ;;  %v13074_v38 = vld [vmem:[%s13573_s12 + $0x1d48] ss:$16 sps:$4 sm:$0xff]  }
 0x494   : > { %9469 = vmatmul.mubr.bf16.vlgmr.msra.gmra.mrb[64].mxu0 %v14243_v40  ;;  %v13026_v40 = vld [vmem:[%s13573_s12 + $0x1c48] ss:$16 sps:$4 sm:$0xff]  }
 0x495   : > { %9510 = vmatmul.mubr.bf16.vlgmr.msra.gmra.mrb[64].mxu1 %v14247_v0  ;;  %9519 = vmatpush1.bf16.msra.mxu0 %v13014_v39  ;;  %v13029_v0 = vld [vmem:[%s13573_s12 + $0x1e48] ss:$16 sps:$4 sm:$0xff]  }
 0x496   : > { %9560 = vmatpush1.bf16.msra.mxu1 %v13017_v61  ;;  %9520 = vmatprep.subr.bf16.mxu0 %v13022_v52  ;;  %v13077_v39 = vld [vmem:[%s13573_s12 + $0x1f48] ss:$16 sps:$4 sm:$0xff]   ;;  %v13082_v61 = vld [vmem:[%s13573_s12 + $0x1d6c] ss:$16 sps:$4 sm:$0xff]  }
 0x497   : > { %9561 = vmatprep.subr.bf16.mxu1 %v13025_v53  ;;  %9550 = vmatprep.mubr.bf16.mxu0 %v14263_v4  ;;  %v13035_v4 = vld [vmem:[%s13573_s12 + $0x1e68] ss:$16 sps:$4 sm:$0xff]   ;;  %v13085_v52 = vld [vmem:[%s13573_s12 + $0x1f6c] ss:$16 sps:$4 sm:$0xff]  }
 0x498   : > { %9591 = vmatprep.mubr.bf16.mxu1 %v14267_v5  ;;  %v13040_v5 = vld [vmem:[%s13573_s12 + $0x1c8c] ss:$16 sps:$4 sm:$0xff]   ;;  %v13080_v53 = vld [vmem:[%s13573_s12 + $0x1d68] ss:$16 sps:$4 sm:$0xff]  }
 0x499   : > { %9521 = vmatpush1.bf16.msra.mxu0 %v13020_v62  ;;  %v13083_v62 = vld [vmem:[%s13573_s12 + $0x1f68] ss:$16 sps:$4 sm:$0xff]  }
 0x49a   : > { %9562 = vmatpush1.bf16.msra.mxu1 %v13023_v6  ;;  %9522 = vmatprep.subr.bf16.mxu0 %v13028_v42  ;;  %v13088_v6 = vld [vmem:[%s13573_s12 + $0x1d8c] ss:$16 sps:$4 sm:$0xff]  }
 0x49b   : > { %9563 = vmatprep.subr.bf16.mxu1 %v13031_v60  ;;  %v13091_v42 = vld [vmem:[%s13573_s12 + $0x1f8c] ss:$16 sps:$4 sm:$0xff]   ;;  %v13086_v60 = vld [vmem:[%s13573_s12 + $0x1d88] ss:$16 sps:$4 sm:$0xff]  }
 0x49d   : > { %9523 = vmatpush1.bf16.msra.mxu0 %v13026_v40  ;;  %v13089_v40 = vld [vmem:[%s13573_s12 + $0x1f88] ss:$16 sps:$4 sm:$0xff]  }
 0x49e   : > { %9564 = vmatpush1.bf16.msra.mxu1 %v13029_v0  ;;  %9524 = vmatprep.subr.bf16.mxu0 %v13034_v43  ;;  %v13094_v0 = vld [vmem:[%s13573_s12 + $0x1dac] ss:$16 sps:$4 sm:$0xff]  }
 0x49f   : > { %9565 = vmatprep.subr.bf16.mxu1 %v13037_v19  ;;  %v13097_v43 = vld [vmem:[%s13573_s12 + $0x1fac] ss:$16 sps:$4 sm:$0xff]   ;;  %v13092_v19 = vld [vmem:[%s13573_s12 + $0x1da8] ss:$16 sps:$4 sm:$0xff]  }
 0x4a1   : > { %9525 = vmatpush1.bf16.msra.mxu0 %v13032_v10  ;;  %v13095_v10 = vld [vmem:[%s13573_s12 + $0x1fa8] ss:$16 sps:$4 sm:$0xff]  }
 0x4a2   : > { %9566 = vmatpush1.bf16.msra.mxu1 %v13035_v4  ;;  %9526 = vmatprep.subr.bf16.mxu0 %v13040_v5  ;;  %v13100_v4 = vld [vmem:[%s13573_s12 + $0x1dcc] ss:$16 sps:$4 sm:$0xff]  }
 0x4a3   : > { %9567 = vmatprep.subr.bf16.mxu1 %v13043_v34  ;;  %v13103_v5 = vld [vmem:[%s13573_s12 + $0x1fcc] ss:$16 sps:$4 sm:$0xff]   ;;  %v13098_v34 = vld [vmem:[%s13573_s12 + $0x1dc8] ss:$16 sps:$4 sm:$0xff]  }
 0x4a5   : > { %9527 = vmatpush1.bf16.msra.mxu0 %v13038_v41  ;;  %v13101_v41 = vld [vmem:[%s13573_s12 + $0x1fc8] ss:$16 sps:$4 sm:$0xff]  }
 0x4a6   : > { %9568 = vmatpush1.bf16.msra.mxu1 %v13041_v1  ;;  %9528 = vmatprep.subr.bf16.mxu0 %v13046_v51  ;;  %v13106_v1 = vld [vmem:[%s13573_s12 + $0x1dec] ss:$16 sps:$4 sm:$0xff]  }
 0x4a7   : > { %9569 = vmatprep.subr.bf16.mxu1 %v13049_v47  ;;  %v9224_v9 = vpop.f32.mrb[52].mxu0  ;;  %v13109_v51 = vld [vmem:[%s13573_s12 + $0x1fec] ss:$16 sps:$4 sm:$0xff]   ;;  %v13104_v47 = vld [vmem:[%s13573_s12 + $0x1de8] ss:$16 sps:$4 sm:$0xff]  }
 0x4a8   : > { %v9265_v13 = vpop.f32.mrb[52].mxu1  ;;  %v9225_v18 = vadd.f32 %v9224_v9, %v15034_v59  ;;  %v9226_v2 = vpop.f32.mrb[53].mxu0  ;;  %v13058_v59 = vld [vmem:[%s13573_s12 + $0x1cec] ss:$16 sps:$4 sm:$0xff]   ;;  %v13113_v9 = vld [vmem:[%s13573_s12 + $0x2208] ss:$16 sps:$4 sm:$0xff]  }
 0x4a9   : > { %v9267_v35 = vpop.f32.mrb[53].mxu1  ;;  %v9227_v29 = vadd.f32 %v9226_v2, %v15038_v7  ;;  %v9228_v11 = vpop.f32.mrb[54].mxu0  ;;  %9529 = vmatpush1.bf16.msra.mxu0 %v13044_v12  ;;  %v13061_v7 = vld [vmem:[%s13573_s12 + $0x1eec] ss:$16 sps:$4 sm:$0xff]   ;;  %v13107_v12 = vld [vmem:[%s13573_s12 + $0x1fe8] ss:$16 sps:$4 sm:$0xff]  }
 0x4aa   : > { %v9269_v49 = vpop.f32.mrb[54].mxu1  ;;  %9570 = vmatpush1.bf16.msra.mxu1 %v13047_v36  ;;  %v15108_v50 = vadd.f32 %v9265_v13, %v9225_v18  ;;  %v9229_v16 = vpop.f32.mrb[55].mxu0  ;;  %9530 = vmatprep.subr.bf16.mxu0 %v13052_v37  ;;  %v13112_v36 = vld [vmem:[%s13573_s12 + $0x200c] ss:$16 sps:$4 sm:$0xff]   ;;  %v13116_v2 = vld [vmem:[%s13573_s12 + $0x2028] ss:$16 sps:$4 sm:$0xff]  }
 0x4ab   : > { %v9270_v17 = vpop.f32.mrb[55].mxu1  ;;  %9571 = vmatprep.subr.bf16.mxu1 %v13055_v56  ;;  %v15112_v54 = vadd.f32 %v9267_v35, %v9227_v29  ;;  %v13115_v37 = vld [vmem:[%s13573_s12 + $0x220c] ss:$16 sps:$4 sm:$0xff]   ;;  %v13110_v56 = vld [vmem:[%s13573_s12 + $0x2008] ss:$16 sps:$4 sm:$0xff]  }
 0x4ac   : > { %v13118_v13 = vld [vmem:[%s13573_s12 + $0x202c] ss:$16 sps:$4 sm:$0xff]   ;;  %v13119_v35 = vld [vmem:[%s13573_s12 + $0x2228] ss:$16 sps:$4 sm:$0xff]  }
 0x4ad   : > { %9531 = vmatpush1.bf16.msra.mxu0 %v13050_v23  ;;  %v13121_v18 = vld [vmem:[%s13573_s12 + $0x222c] ss:$16 sps:$4 sm:$0xff]   ;;  %v13134_v17 = vld [vmem:[%s13573_s12 + $0x2088] ss:$16 sps:$4 sm:$0xff]  }
 0x4ae   : > { %9572 = vmatpush1.bf16.msra.mxu1 %v13053_v45  ;;  %9532 = vmatprep.subr.bf16.mxu0 %v13058_v59  ;;  %v13124_v29 = vld [vmem:[%s13573_s12 + $0x204c] ss:$16 sps:$4 sm:$0xff]   ;;  %v13128_v45 = vld [vmem:[%s13573_s12 + $0x2068] ss:$16 sps:$4 sm:$0xff]  }
 0x4af   : > { %9573 = vmatprep.subr.bf16.mxu1 %v13061_v7  ;;  %v13127_v11 = vld [vmem:[%s13573_s12 + $0x224c] ss:$16 sps:$4 sm:$0xff]   ;;  %v13137_v59 = vld [vmem:[%s13573_s12 + $0x2288] ss:$16 sps:$4 sm:$0xff]  }
 0x4b0   : > { %v13130_v49 = vld [vmem:[%s13573_s12 + $0x206c] ss:$16 sps:$4 sm:$0xff]  }
 0x4b1   : > { %9533 = vmatpush1.bf16.msra.mxu0 %v13056_v55  ;;  %v13133_v23 = vld [vmem:[%s13573_s12 + $0x226c] ss:$16 sps:$4 sm:$0xff]  }
 0x4b2   : > { %9574 = vmatpush1.bf16.msra.mxu1 %v13059_v44  ;;  %9534 = vmatprep.subr.bf16.mxu0 %v13064_v63  ;;  %v13139_v16 = vld [vmem:[%s13573_s12 + $0x228c] ss:$16 sps:$4 sm:$0xff]   ;;  %v13140_v44 = vld [vmem:[%s13573_s12 + $0x20a8] ss:$16 sps:$4 sm:$0xff]  }
 0x4b3   : > { %9575 = vmatprep.subr.bf16.mxu1 %v13067_v3  ;;  %v13142_v7 = vld [vmem:[%s13573_s12 + $0x20ac] ss:$16 sps:$4 sm:$0xff]   ;;  %v13143_v63 = vld [vmem:[%s13573_s12 + $0x22a8] ss:$16 sps:$4 sm:$0xff]  }
 0x4b4   : > { %v13145_v55 = vld [vmem:[%s13573_s12 + $0x22ac] ss:$16 sps:$4 sm:$0xff]  }
 0x4b5   : > { %9535 = vmatpush1.bf16.msra.mxu0 %v13062_v58  ;;  %v13148_v3 = vld [vmem:[%s13573_s12 + $0x20cc] ss:$16 sps:$4 sm:$0xff]  }
 0x4b6   : > { %9576 = vmatpush1.bf16.msra.mxu1 %v13065_v24  ;;  %9536 = vmatprep.subr.bf16.mxu0 %v13070_v22  ;;  %v13151_v58 = vld [vmem:[%s13573_s12 + $0x22cc] ss:$16 sps:$4 sm:$0xff]  }
 0x4b7   : > { %9577 = vmatprep.subr.bf16.mxu1 %v13073_v14 }
 0x4b9   : > { %9537 = vmatpush1.bf16.msra.mxu0 %v13068_v15 }
 0x4ba   : > { %9578 = vmatpush1.bf16.msra.mxu1 %v13071_v32  ;;  %9538 = vmatprep.subr.bf16.mxu0 %v13076_v46 }
 0x4bb   : > { %9579 = vmatprep.subr.bf16.mxu1 %v13079_v48 }
 0x4bd   : > { %9539 = vmatpush1.bf16.msra.mxu0 %v13074_v38 }
 0x4be   : > { %9580 = vmatpush1.bf16.msra.mxu1 %v13077_v39  ;;  %9540 = vmatprep.subr.bf16.mxu0 %v13082_v61  ;;  %v13146_v39 = vld [vmem:[%s13573_s12 + $0x20c8] ss:$16 sps:$4 sm:$0xff]  }
 0x4bf   : > { %9581 = vmatprep.subr.bf16.mxu1 %v13085_v52  ;;  %v13149_v61 = vld [vmem:[%s13573_s12 + $0x22c8] ss:$16 sps:$4 sm:$0xff]  }
 0x4c1   : > { %9541 = vmatpush1.bf16.msra.mxu0 %v13080_v53 }
 0x4c2   : > { %9582 = vmatpush1.bf16.msra.mxu1 %v13083_v62  ;;  %9542 = vmatprep.subr.bf16.mxu0 %v13088_v6 }
 0x4c3   : > { %9583 = vmatprep.subr.bf16.mxu1 %v13091_v42  ;;  %v13152_v42 = vld [vmem:[%s13573_s12 + $0x20e8] ss:$16 sps:$4 sm:$0xff]  }
 0x4c5   : > { %9543 = vmatpush1.bf16.msra.mxu0 %v13086_v60  ;;  %v13155_v60 = vld [vmem:[%s13573_s12 + $0x22e8] ss:$16 sps:$4 sm:$0xff]  }
 0x4c6   : > { %9584 = vmatpush1.bf16.msra.mxu1 %v13089_v40  ;;  %9544 = vmatprep.subr.bf16.mxu0 %v13094_v0  ;;  %v13160_v40 = vld [vmem:[%s13573_s12 + $0x210c] ss:$16 sps:$4 sm:$0xff]  }
 0x4c7   : > { %9585 = vmatprep.subr.bf16.mxu1 %v13097_v43  ;;  %v13163_v0 = vld [vmem:[%s13573_s12 + $0x230c] ss:$16 sps:$4 sm:$0xff]   ;;  %v13158_v43 = vld [vmem:[%s13573_s12 + $0x2108] ss:$16 sps:$4 sm:$0xff]  }
 0x4c9   : > { %9545 = vmatpush1.bf16.msra.mxu0 %v13092_v19  ;;  %v13161_v19 = vld [vmem:[%s13573_s12 + $0x2308] ss:$16 sps:$4 sm:$0xff]  }
 0x4ca   : > { %9586 = vmatpush1.bf16.msra.mxu1 %v13095_v10  ;;  %9546 = vmatprep.subr.bf16.mxu0 %v13100_v4  ;;  %v13166_v10 = vld [vmem:[%s13573_s12 + $0x212c] ss:$16 sps:$4 sm:$0xff]  }
 0x4cb   : > { %9587 = vmatprep.subr.bf16.mxu1 %v13103_v5  ;;  %v13169_v4 = vld [vmem:[%s13573_s12 + $0x232c] ss:$16 sps:$4 sm:$0xff]   ;;  %v13164_v5 = vld [vmem:[%s13573_s12 + $0x2128] ss:$16 sps:$4 sm:$0xff]  }
 0x4cd   : > { %9547 = vmatpush1.bf16.msra.mxu0 %v13098_v34  ;;  %v13167_v34 = vld [vmem:[%s13573_s12 + $0x2328] ss:$16 sps:$4 sm:$0xff]  }
 0x4ce   : > { %9588 = vmatpush1.bf16.msra.mxu1 %v13101_v41  ;;  %9548 = vmatprep.subr.bf16.mxu0 %v13106_v1  ;;  %v13172_v41 = vld [vmem:[%s13573_s12 + $0x214c] ss:$16 sps:$4 sm:$0xff]  }
 0x4cf   : > { %9589 = vmatprep.subr.bf16.mxu1 %v13109_v51  ;;  %v13175_v1 = vld [vmem:[%s13573_s12 + $0x234c] ss:$16 sps:$4 sm:$0xff]   ;;  %v13170_v51 = vld [vmem:[%s13573_s12 + $0x2148] ss:$16 sps:$4 sm:$0xff]  }
 0x4d1   : > { %9549 = vmatpush1.bf16.msra.mxu0 %v13104_v47  ;;  %v13173_v47 = vld [vmem:[%s13573_s12 + $0x2348] ss:$16 sps:$4 sm:$0xff]  }
 0x4d2   : > { %9590 = vmatpush1.bf16.msra.mxu1 %v13107_v12  ;;  %9600 = vmatprep.subr.bf16.mxu0 %v13112_v36  ;;  %v13178_v12 = vld [vmem:[%s13573_s12 + $0x216c] ss:$16 sps:$4 sm:$0xff]  }
 0x4d3   : > { %9641 = vmatprep.subr.bf16.mxu1 %v13115_v37  ;;  %v13181_v36 = vld [vmem:[%s13573_s12 + $0x236c] ss:$16 sps:$4 sm:$0xff]   ;;  %v13176_v37 = vld [vmem:[%s13573_s12 + $0x2168] ss:$16 sps:$4 sm:$0xff]  }
 0x4d4   : > { %9551 = vmatmul.mubr.bf16.vlgmr.msra.gmra.mrb[68].mxu0 %v14343_v26  ;;  %v13122_v26 = vld [vmem:[%s13573_s12 + $0x2048] ss:$16 sps:$4 sm:$0xff]  }
 0x4d5   : > { %9592 = vmatmul.mubr.bf16.vlgmr.msra.gmra.mrb[68].mxu1 %v14347_v27  ;;  %9601 = vmatpush1.bf16.msra.mxu0 %v13110_v56  ;;  %v13125_v27 = vld [vmem:[%s13573_s12 + $0x2248] ss:$16 sps:$4 sm:$0xff]  }
 0x4d6   : > { %9642 = vmatpush1.bf16.msra.mxu1 %v13113_v9  ;;  %9602 = vmatprep.subr.bf16.mxu0 %v13118_v13  ;;  %v13179_v56 = vld [vmem:[%s13573_s12 + $0x2368] ss:$16 sps:$4 sm:$0xff]   ;;  %v13184_v9 = vld [vmem:[%s13573_s12 + $0x218c] ss:$16 sps:$4 sm:$0xff]  }
 0x4d7   : > { %9643 = vmatprep.subr.bf16.mxu1 %v13121_v18  ;;  %9632 = vmatprep.mubr.bf16.mxu0 %v14363_v30  ;;  %v13131_v30 = vld [vmem:[%s13573_s12 + $0x2268] ss:$16 sps:$4 sm:$0xff]   ;;  %v13187_v13 = vld [vmem:[%s13573_s12 + $0x238c] ss:$16 sps:$4 sm:$0xff]  }
 0x4d8   : > { %9673 = vmatprep.mubr.bf16.mxu1 %v14367_v31  ;;  %v13136_v31 = vld [vmem:[%s13573_s12 + $0x208c] ss:$16 sps:$4 sm:$0xff]   ;;  %v13182_v18 = vld [vmem:[%s13573_s12 + $0x2188] ss:$16 sps:$4 sm:$0xff]  }
 0x4d9   : > { %9603 = vmatpush1.bf16.msra.mxu0 %v13116_v2  ;;  %v13185_v2 = vld [vmem:[%s13573_s12 + $0x2388] ss:$16 sps:$4 sm:$0xff]  }
 0x4da   : > { %9644 = vmatpush1.bf16.msra.mxu1 %v13119_v35  ;;  %9604 = vmatprep.subr.bf16.mxu0 %v13124_v29  ;;  %v13190_v35 = vld [vmem:[%s13573_s12 + $0x21ac] ss:$16 sps:$4 sm:$0xff]  }
 0x4db   : > { %9645 = vmatprep.subr.bf16.mxu1 %v13127_v11  ;;  %v13193_v29 = vld [vmem:[%s13573_s12 + $0x23ac] ss:$16 sps:$4 sm:$0xff]   ;;  %v13188_v11 = vld [vmem:[%s13573_s12 + $0x21a8] ss:$16 sps:$4 sm:$0xff]  }
 0x4dd   : > { %9605 = vmatpush1.bf16.msra.mxu0 %v13122_v26  ;;  %v13191_v26 = vld [vmem:[%s13573_s12 + $0x23a8] ss:$16 sps:$4 sm:$0xff]  }
 0x4de   : > { %9646 = vmatpush1.bf16.msra.mxu1 %v13125_v27  ;;  %9606 = vmatprep.subr.bf16.mxu0 %v13130_v49  ;;  %v13196_v27 = vld [vmem:[%s13573_s12 + $0x21cc] ss:$16 sps:$4 sm:$0xff]  }
 0x4df   : > { %9647 = vmatprep.subr.bf16.mxu1 %v13133_v23  ;;  %v13199_v49 = vld [vmem:[%s13573_s12 + $0x23cc] ss:$16 sps:$4 sm:$0xff]   ;;  %v13194_v23 = vld [vmem:[%s13573_s12 + $0x21c8] ss:$16 sps:$4 sm:$0xff]  }
 0x4e1   : > { %9607 = vmatpush1.bf16.msra.mxu0 %v13128_v45  ;;  %v13197_v45 = vld [vmem:[%s13573_s12 + $0x23c8] ss:$16 sps:$4 sm:$0xff]  }
 0x4e2   : > { %9648 = vmatpush1.bf16.msra.mxu1 %v13131_v30  ;;  %9608 = vmatprep.subr.bf16.mxu0 %v13136_v31  ;;  %v13202_v30 = vld [vmem:[%s13573_s12 + $0x21ec] ss:$16 sps:$4 sm:$0xff]  }
 0x4e3   : > { %9649 = vmatprep.subr.bf16.mxu1 %v13139_v16  ;;  %v13205_v31 = vld [vmem:[%s13573_s12 + $0x23ec] ss:$16 sps:$4 sm:$0xff]   ;;  %v13200_v16 = vld [vmem:[%s13573_s12 + $0x21e8] ss:$16 sps:$4 sm:$0xff]  }
 0x4e5   : > { %9609 = vmatpush1.bf16.msra.mxu0 %v13134_v17  ;;  %v13203_v17 = vld [vmem:[%s13573_s12 + $0x23e8] ss:$16 sps:$4 sm:$0xff]  }
 0x4e6   : > { %9650 = vmatpush1.bf16.msra.mxu1 %v13137_v59  ;;  %9610 = vmatprep.subr.bf16.mxu0 %v13142_v7  ;;  %v13208_v59 = vld [vmem:[%s13573_s12 + $0x240c] ss:$16 sps:$4 sm:$0xff]  }
 0x4e7   : > { %9651 = vmatprep.subr.bf16.mxu1 %v13145_v55  ;;  %v9306_v24 = vpop.f32.mrb[56].mxu0  ;;  %v13211_v7 = vld [vmem:[%s13573_s12 + $0x260c] ss:$16 sps:$4 sm:$0xff]   ;;  %v13206_v55 = vld [vmem:[%s13573_s12 + $0x2408] ss:$16 sps:$4 sm:$0xff]  }
 0x4e8   : > { %v9347_v22 = vpop.f32.mrb[56].mxu1  ;;  %v9307_v14 = vadd.f32 %v9306_v24, %v15108_v50  ;;  %v9308_v15 = vpop.f32.mrb[57].mxu0  ;;  %v13154_v50 = vld [vmem:[%s13573_s12 + $0x20ec] ss:$16 sps:$4 sm:$0xff]   ;;  %v13215_v24 = vld [vmem:[%s13573_s12 + $0x2628] ss:$16 sps:$4 sm:$0xff]  }
 0x4e9   : > { %v9349_v32 = vpop.f32.mrb[57].mxu1  ;;  %v9309_v46 = vadd.f32 %v9308_v15, %v15112_v54  ;;  %v9310_v48 = vpop.f32.mrb[58].mxu0  ;;  %9611 = vmatpush1.bf16.msra.mxu0 %v13140_v44  ;;  %v13157_v54 = vld [vmem:[%s13573_s12 + $0x22ec] ss:$16 sps:$4 sm:$0xff]   ;;  %v13209_v44 = vld [vmem:[%s13573_s12 + $0x2608] ss:$16 sps:$4 sm:$0xff]  }
 0x4ea   : > { %v9351_v38 = vpop.f32.mrb[58].mxu1  ;;  %9652 = vmatpush1.bf16.msra.mxu1 %v13143_v63  ;;  %v15182_v52 = vadd.f32 %v9347_v22, %v9307_v14  ;;  %v9311_v53 = vpop.f32.mrb[59].mxu0  ;;  %9612 = vmatprep.subr.bf16.mxu0 %v13148_v3  ;;  %v13214_v63 = vld [vmem:[%s13573_s12 + $0x242c] ss:$16 sps:$4 sm:$0xff]  }
 0x4eb   : > { %v9352_v62 = vpop.f32.mrb[59].mxu1  ;;  %9653 = vmatprep.subr.bf16.mxu1 %v13151_v58  ;;  %v15186_v6 = vadd.f32 %v9349_v32, %v9309_v46  ;;  %v13217_v3 = vld [vmem:[%s13573_s12 + $0x262c] ss:$16 sps:$4 sm:$0xff]   ;;  %v13212_v58 = vld [vmem:[%s13573_s12 + $0x2428] ss:$16 sps:$4 sm:$0xff]  }
 0x4ec   : > { %v13220_v22 = vld [vmem:[%s13573_s12 + $0x244c] ss:$16 sps:$4 sm:$0xff]   ;;  %v13224_v46 = vld [vmem:[%s13573_s12 + $0x2468] ss:$16 sps:$4 sm:$0xff]  }
 0x4ed   : > { %9613 = vmatpush1.bf16.msra.mxu0 %v13146_v39  ;;  %v13223_v14 = vld [vmem:[%s13573_s12 + $0x264c] ss:$16 sps:$4 sm:$0xff]   ;;  %v13230_v38 = vld [vmem:[%s13573_s12 + $0x2488] ss:$16 sps:$4 sm:$0xff]  }
 0x4ee   : > { %9654 = vmatpush1.bf16.msra.mxu1 %v13149_v61  ;;  %9614 = vmatprep.subr.bf16.mxu0 %v13154_v50  ;;  %v13226_v15 = vld [vmem:[%s13573_s12 + $0x246c] ss:$16 sps:$4 sm:$0xff]   ;;  %v13233_v39 = vld [vmem:[%s13573_s12 + $0x2688] ss:$16 sps:$4 sm:$0xff]  }
 0x4ef   : > { %9655 = vmatprep.subr.bf16.mxu1 %v13157_v54  ;;  %v13229_v32 = vld [vmem:[%s13573_s12 + $0x266c] ss:$16 sps:$4 sm:$0xff]   ;;  %v13236_v62 = vld [vmem:[%s13573_s12 + $0x24a8] ss:$16 sps:$4 sm:$0xff]  }
 0x4f0   : > { %v13235_v48 = vld [vmem:[%s13573_s12 + $0x268c] ss:$16 sps:$4 sm:$0xff]   ;;  %v13239_v50 = vld [vmem:[%s13573_s12 + $0x26a8] ss:$16 sps:$4 sm:$0xff]  }
 0x4f1   : > { %9615 = vmatpush1.bf16.msra.mxu0 %v13152_v42  ;;  %v13238_v61 = vld [vmem:[%s13573_s12 + $0x24ac] ss:$16 sps:$4 sm:$0xff]  }
 0x4f2   : > { %9656 = vmatpush1.bf16.msra.mxu1 %v13155_v60  ;;  %9616 = vmatprep.subr.bf16.mxu0 %v13160_v40  ;;  %v13241_v53 = vld [vmem:[%s13573_s12 + $0x26ac] ss:$16 sps:$4 sm:$0xff]  }
 0x4f3   : > { %9657 = vmatprep.subr.bf16.mxu1 %v13163_v0  ;;  %v13244_v54 = vld [vmem:[%s13573_s12 + $0x24cc] ss:$16 sps:$4 sm:$0xff]  }
 0x4f4   : > { %v13247_v42 = vld [vmem:[%s13573_s12 + $0x26cc] ss:$16 sps:$4 sm:$0xff]  }
 0x4f5   : > { %9617 = vmatpush1.bf16.msra.mxu0 %v13158_v43 }
 0x4f6   : > { %9658 = vmatpush1.bf16.msra.mxu1 %v13161_v19  ;;  %9618 = vmatprep.subr.bf16.mxu0 %v13166_v10 }
 0x4f7   : > { %9659 = vmatprep.subr.bf16.mxu1 %v13169_v4 }
 0x4f9   : > { %9619 = vmatpush1.bf16.msra.mxu0 %v13164_v5 }
 0x4fa   : > { %9660 = vmatpush1.bf16.msra.mxu1 %v13167_v34  ;;  %9620 = vmatprep.subr.bf16.mxu0 %v13172_v41  ;;  %v13242_v34 = vld [vmem:[%s13573_s12 + $0x24c8] ss:$16 sps:$4 sm:$0xff]  }
 0x4fb   : > { %9661 = vmatprep.subr.bf16.mxu1 %v13175_v1  ;;  %v13245_v41 = vld [vmem:[%s13573_s12 + $0x26c8] ss:$16 sps:$4 sm:$0xff]  }
 0x4fd   : > { %9621 = vmatpush1.bf16.msra.mxu0 %v13170_v51 }
 0x4fe   : > { %9662 = vmatpush1.bf16.msra.mxu1 %v13173_v47  ;;  %9622 = vmatprep.subr.bf16.mxu0 %v13178_v12 }
 0x4ff   : > { %9663 = vmatprep.subr.bf16.mxu1 %v13181_v36  ;;  %v13248_v36 = vld [vmem:[%s13573_s12 + $0x24e8] ss:$16 sps:$4 sm:$0xff]  }
 0x501   : > { %9623 = vmatpush1.bf16.msra.mxu0 %v13176_v37  ;;  %v13251_v37 = vld [vmem:[%s13573_s12 + $0x26e8] ss:$16 sps:$4 sm:$0xff]  }
 0x502   : > { %9664 = vmatpush1.bf16.msra.mxu1 %v13179_v56  ;;  %9624 = vmatprep.subr.bf16.mxu0 %v13184_v9  ;;  %v13256_v56 = vld [vmem:[%s13573_s12 + $0x250c] ss:$16 sps:$4 sm:$0xff]  }
 0x503   : > { %9665 = vmatprep.subr.bf16.mxu1 %v13187_v13  ;;  %v13259_v9 = vld [vmem:[%s13573_s12 + $0x270c] ss:$16 sps:$4 sm:$0xff]   ;;  %v13254_v13 = vld [vmem:[%s13573_s12 + $0x2508] ss:$16 sps:$4 sm:$0xff]  }
 0x505   : > { %9625 = vmatpush1.bf16.msra.mxu0 %v13182_v18  ;;  %v13257_v18 = vld [vmem:[%s13573_s12 + $0x2708] ss:$16 sps:$4 sm:$0xff]  }
 0x506   : > { %9666 = vmatpush1.bf16.msra.mxu1 %v13185_v2  ;;  %9626 = vmatprep.subr.bf16.mxu0 %v13190_v35  ;;  %v13262_v2 = vld [vmem:[%s13573_s12 + $0x252c] ss:$16 sps:$4 sm:$0xff]  }
 0x507   : > { %9667 = vmatprep.subr.bf16.mxu1 %v13193_v29  ;;  %v13265_v35 = vld [vmem:[%s13573_s12 + $0x272c] ss:$16 sps:$4 sm:$0xff]   ;;  %v13260_v29 = vld [vmem:[%s13573_s12 + $0x2528] ss:$16 sps:$4 sm:$0xff]  }
 0x509   : > { %9627 = vmatpush1.bf16.msra.mxu0 %v13188_v11  ;;  %v13263_v11 = vld [vmem:[%s13573_s12 + $0x2728] ss:$16 sps:$4 sm:$0xff]  }
 0x50a   : > { %9668 = vmatpush1.bf16.msra.mxu1 %v13191_v26  ;;  %9628 = vmatprep.subr.bf16.mxu0 %v13196_v27  ;;  %v13268_v26 = vld [vmem:[%s13573_s12 + $0x254c] ss:$16 sps:$4 sm:$0xff]  }
 0x50b   : > { %9669 = vmatprep.subr.bf16.mxu1 %v13199_v49  ;;  %v13271_v27 = vld [vmem:[%s13573_s12 + $0x274c] ss:$16 sps:$4 sm:$0xff]   ;;  %v13266_v49 = vld [vmem:[%s13573_s12 + $0x2548] ss:$16 sps:$4 sm:$0xff]  }
 0x50d   : > { %9629 = vmatpush1.bf16.msra.mxu0 %v13194_v23  ;;  %v13269_v23 = vld [vmem:[%s13573_s12 + $0x2748] ss:$16 sps:$4 sm:$0xff]  }
 0x50e   : > { %9670 = vmatpush1.bf16.msra.mxu1 %v13197_v45  ;;  %9630 = vmatprep.subr.bf16.mxu0 %v13202_v30  ;;  %v13274_v45 = vld [vmem:[%s13573_s12 + $0x256c] ss:$16 sps:$4 sm:$0xff]  }
 0x50f   : > { %9671 = vmatprep.subr.bf16.mxu1 %v13205_v31  ;;  %v13277_v30 = vld [vmem:[%s13573_s12 + $0x276c] ss:$16 sps:$4 sm:$0xff]   ;;  %v13272_v31 = vld [vmem:[%s13573_s12 + $0x2568] ss:$16 sps:$4 sm:$0xff]  }
 0x511   : > { %9631 = vmatpush1.bf16.msra.mxu0 %v13200_v16  ;;  %v13275_v16 = vld [vmem:[%s13573_s12 + $0x2768] ss:$16 sps:$4 sm:$0xff]  }
 0x512   : > { %9672 = vmatpush1.bf16.msra.mxu1 %v13203_v17  ;;  %9682 = vmatprep.subr.bf16.mxu0 %v13208_v59  ;;  %v13280_v17 = vld [vmem:[%s13573_s12 + $0x258c] ss:$16 sps:$4 sm:$0xff]  }
 0x513   : > { %9723 = vmatprep.subr.bf16.mxu1 %v13211_v7  ;;  %v13283_v59 = vld [vmem:[%s13573_s12 + $0x278c] ss:$16 sps:$4 sm:$0xff]   ;;  %v13278_v7 = vld [vmem:[%s13573_s12 + $0x2588] ss:$16 sps:$4 sm:$0xff]  }
 0x514   : > { %9633 = vmatmul.mubr.bf16.vlgmr.msra.gmra.mrb[72].mxu0 %v14453_v20  ;;  %v13218_v20 = vld [vmem:[%s13573_s12 + $0x2448] ss:$16 sps:$4 sm:$0xff]  }
 0x515   : > { %9674 = vmatmul.mubr.bf16.vlgmr.msra.gmra.mrb[72].mxu1 %v14457_v21  ;;  %9683 = vmatpush1.bf16.msra.mxu0 %v13206_v55  ;;  %v13221_v21 = vld [vmem:[%s13573_s12 + $0x2648] ss:$16 sps:$4 sm:$0xff]  }
 0x516   : > { %9724 = vmatpush1.bf16.msra.mxu1 %v13209_v44  ;;  %9684 = vmatprep.subr.bf16.mxu0 %v13214_v63  ;;  %v13281_v55 = vld [vmem:[%s13573_s12 + $0x2788] ss:$16 sps:$4 sm:$0xff]   ;;  %v13286_v44 = vld [vmem:[%s13573_s12 + $0x25ac] ss:$16 sps:$4 sm:$0xff]  }
 0x517   : > { %9725 = vmatprep.subr.bf16.mxu1 %v13217_v3  ;;  %9714 = vmatprep.mubr.bf16.mxu0 %v14463_v33  ;;  %v13227_v33 = vld [vmem:[%s13573_s12 + $0x2668] ss:$16 sps:$4 sm:$0xff]   ;;  %v13289_v63 = vld [vmem:[%s13573_s12 + $0x27ac] ss:$16 sps:$4 sm:$0xff]  }
 0x518   : > { %9755 = vmatprep.mubr.bf16.mxu1 %v14467_v28  ;;  %v13232_v28 = vld [vmem:[%s13573_s12 + $0x248c] ss:$16 sps:$4 sm:$0xff]   ;;  %v13284_v3 = vld [vmem:[%s13573_s12 + $0x25a8] ss:$16 sps:$4 sm:$0xff]  }
 0x519   : > { %9685 = vmatpush1.bf16.msra.mxu0 %v13212_v58  ;;  %v13287_v58 = vld [vmem:[%s13573_s12 + $0x27a8] ss:$16 sps:$4 sm:$0xff]  }
 0x51a   : > { %9726 = vmatpush1.bf16.msra.mxu1 %v13215_v24  ;;  %9686 = vmatprep.subr.bf16.mxu0 %v13220_v22  ;;  %v13292_v24 = vld [vmem:[%s13573_s12 + $0x25cc] ss:$16 sps:$4 sm:$0xff]  }
 0x51b   : > { %9727 = vmatprep.subr.bf16.mxu1 %v13223_v14  ;;  %v13295_v22 = vld [vmem:[%s13573_s12 + $0x27cc] ss:$16 sps:$4 sm:$0xff]   ;;  %v13290_v14 = vld [vmem:[%s13573_s12 + $0x25c8] ss:$16 sps:$4 sm:$0xff]  }
 0x51d   : > { %9687 = vmatpush1.bf16.msra.mxu0 %v13218_v20  ;;  %v13293_v20 = vld [vmem:[%s13573_s12 + $0x27c8] ss:$16 sps:$4 sm:$0xff]  }
 0x51e   : > { %9728 = vmatpush1.bf16.msra.mxu1 %v13221_v21  ;;  %9688 = vmatprep.subr.bf16.mxu0 %v13226_v15  ;;  %v13298_v21 = vld [vmem:[%s13573_s12 + $0x25ec] ss:$16 sps:$4 sm:$0xff]  }
 0x51f   : > { %9729 = vmatprep.subr.bf16.mxu1 %v13229_v32  ;;  %v13301_v15 = vld [vmem:[%s13573_s12 + $0x27ec] ss:$16 sps:$4 sm:$0xff]   ;;  %v13296_v32 = vld [vmem:[%s13573_s12 + $0x25e8] ss:$16 sps:$4 sm:$0xff]  }
 0x521   : > { %9689 = vmatpush1.bf16.msra.mxu0 %v13224_v46  ;;  %v13299_v46 = vld [vmem:[%s13573_s12 + $0x27e8] ss:$16 sps:$4 sm:$0xff]  }
 0x522   : > { %9730 = vmatpush1.bf16.msra.mxu1 %v13227_v33  ;;  %9690 = vmatprep.subr.bf16.mxu0 %v13232_v28 }
 0x523   : > { %9731 = vmatprep.subr.bf16.mxu1 %v13235_v48 }
 0x525   : > { %9691 = vmatpush1.bf16.msra.mxu0 %v13230_v38 }
 0x526   : > { %9732 = vmatpush1.bf16.msra.mxu1 %v13233_v39  ;;  %9692 = vmatprep.subr.bf16.mxu0 %v13238_v61 }
 0x527   : > { %9733 = vmatprep.subr.bf16.mxu1 %v13241_v53  ;;  %v9388_v60 = vpop.f32.mrb[60].mxu0 }
 0x528   : > { %v9429_v40 = vpop.f32.mrb[60].mxu1  ;;  %v9389_v0 = vadd.f32 %v9388_v60, %v15182_v52  ;;  %v9390_v43 = vpop.f32.mrb[61].mxu0  ;;  %v13250_v52 = vld [vmem:[%s13573_s12 + $0x24ec] ss:$16 sps:$4 sm:$0xff]  }
 0x529   : > { %v9431_v19 = vpop.f32.mrb[61].mxu1  ;;  %v9391_v10 = vadd.f32 %v9390_v43, %v15186_v6  ;;  %v9392_v4 = vpop.f32.mrb[62].mxu0  ;;  %9693 = vmatpush1.bf16.msra.mxu0 %v13236_v62  ;;  %v13253_v6 = vld [vmem:[%s13573_s12 + $0x26ec] ss:$16 sps:$4 sm:$0xff]  }
 0x52a   : > { %v9433_v5 = vpop.f32.mrb[62].mxu1  ;;  %9734 = vmatpush1.bf16.msra.mxu1 %v13239_v50  ;;  %v15256_v1 = vadd.f32 %v9429_v40, %v9389_v0  ;;  %v9393_v51 = vpop.f32.mrb[63].mxu0  ;;  %9694 = vmatprep.subr.bf16.mxu0 %v13244_v54 }
 0x52b   : > { %v9434_v47 = vpop.f32.mrb[63].mxu1  ;;  %9735 = vmatprep.subr.bf16.mxu1 %v13247_v42  ;;  %v15260_v12 = vadd.f32 %v9431_v19, %v9391_v10 }
 0x52d   : > { %9695 = vmatpush1.bf16.msra.mxu0 %v13242_v34 }
 0x52e   : > { %9736 = vmatpush1.bf16.msra.mxu1 %v13245_v41  ;;  %9696 = vmatprep.subr.bf16.mxu0 %v13250_v52 }
 0x52f   : > { %9737 = vmatprep.subr.bf16.mxu1 %v13253_v6 }
 0x531   : > { %9697 = vmatpush1.bf16.msra.mxu0 %v13248_v36 }
 0x532   : > { %9738 = vmatpush1.bf16.msra.mxu1 %v13251_v37  ;;  %9698 = vmatprep.subr.bf16.mxu0 %v13256_v56 }
 0x533   : > { %9739 = vmatprep.subr.bf16.mxu1 %v13259_v9 }
 0x535   : > { %9699 = vmatpush1.bf16.msra.mxu0 %v13254_v13 }
 0x536   : > { %9740 = vmatpush1.bf16.msra.mxu1 %v13257_v18  ;;  %9700 = vmatprep.subr.bf16.mxu0 %v13262_v2 }
 0x537   : > { %9741 = vmatprep.subr.bf16.mxu1 %v13265_v35  ;;  %v9781_v35 = vlaneseq }
 0x539   : > { %9701 = vmatpush1.bf16.msra.mxu0 %v13260_v29 }
 0x53a   : > { %9742 = vmatpush1.bf16.msra.mxu1 %v13263_v11  ;;  %9702 = vmatprep.subr.bf16.mxu0 %v13268_v26 }
 0x53b   : > { %9743 = vmatprep.subr.bf16.mxu1 %v13271_v27 }
 0x53d   : > { %9703 = vmatpush1.bf16.msra.mxu0 %v13266_v49 }
 0x53e   : > { %9744 = vmatpush1.bf16.msra.mxu1 %v13269_v23  ;;  %9704 = vmatprep.subr.bf16.mxu0 %v13274_v45  ;;  %v9782_v45 = vshrl.u32 %v9781_v35, 7 }
 0x53f   : > { %9745 = vmatprep.subr.bf16.mxu1 %v13277_v30 }
 0x541   : > { %9705 = vmatpush1.bf16.msra.mxu0 %v13272_v31 }
 0x542   : > { %9746 = vmatpush1.bf16.msra.mxu1 %v13275_v16  ;;  %9706 = vmatprep.subr.bf16.mxu0 %v13280_v17 }
 0x543   : > { %9747 = vmatprep.subr.bf16.mxu1 %v13283_v59 }
 0x545   : > { %9707 = vmatpush1.bf16.msra.mxu0 %v13278_v7 }
 0x546   : > { %9748 = vmatpush1.bf16.msra.mxu1 %v13281_v55  ;;  %9708 = vmatprep.subr.bf16.mxu0 %v13286_v44  ;;  %v9795_v44 = vsub.s32 3, %v9782_v45 }
 0x547   : > { %9749 = vmatprep.subr.bf16.mxu1 %v13289_v63  ;;  %v9779_v63 = vld [vmem:[%s13579_s6] sm:$0xf] }
 0x549   : > { %9709 = vmatpush1.bf16.msra.mxu0 %v13284_v3  ;;  %v9783_v3 = vsub.s32 0, %v9782_v45 }
 0x54a   : > { %9750 = vmatpush1.bf16.msra.mxu1 %v13287_v58  ;;  %9710 = vmatprep.subr.bf16.mxu0 %v13292_v24  ;;  %v9787_v58 = vsub.s32 1, %v9782_v45  ;;  %v9791_v24 = vsub.s32 2, %v9782_v45 }
 0x54b   : > { %9751 = vmatprep.subr.bf16.mxu1 %v13295_v22  ;;  %v9796_v22 = vrot.slane %v9779_v63, %v9795_v44 }
 0x54d   : > { %9711 = vmatpush1.bf16.msra.mxu0 %v13290_v14  ;;  %v9784_v14 = vrot.slane %v9779_v63, %v9783_v3 }
 0x54e   : > { %9752 = vmatpush1.bf16.msra.mxu1 %v13293_v20  ;;  %9712 = vmatprep.subr.bf16.mxu0 %v13298_v21  ;;  %v9788_v20 = vrot.slane %v9779_v63, %v9787_v58  ;;  %v9792_v21 = vrot.slane %v9779_v63, %v9791_v24 }
 0x54f   : > { %9753 = vmatprep.subr.bf16.mxu1 %v13301_v15 }
 0x551   : > { %9713 = vmatpush1.bf16.msra.mxu0 %v13296_v32  ;;  %v9775_v32 = vld [vmem:[%s14645_s26] sm:$0xff] }
 0x552   : > { %9754 = vmatpush1.bf16.msra.mxu1 %v13299_v46  ;;  %v9776_v46 = vld [vmem:[%s14645_s26 + $0x8] sm:$0xff] }
 0x554   : > { %9715 = vmatmul.mubr.bf16.vlgmr.msra.gmra.mrb[76].mxu0 %v14543_v8 }
 0x555   : > { %9756 = vmatmul.mubr.bf16.vlgmr.msra.gmra.mrb[76].mxu1 %v14547_v57 }
 0x567   : > { %v9470_v33 = vpop.f32.mrb[64].mxu0 }
 0x568   : > { %v9511_v28 = vpop.f32.mrb[64].mxu1  ;;  %v9471_v48 = vadd.f32 %v9470_v33, %v15256_v1  ;;  %v9472_v38 = vpop.f32.mrb[65].mxu0 }
 0x569   : > { %v9513_v39 = vpop.f32.mrb[65].mxu1  ;;  %v9473_v61 = vadd.f32 %v9472_v38, %v15260_v12  ;;  %v9474_v53 = vpop.f32.mrb[66].mxu0 }
 0x56a   : > { %v9515_v62 = vpop.f32.mrb[66].mxu1  ;;  %v9512_v50 = vadd.f32 %v9511_v28, %v9471_v48  ;;  %v9475_v54 = vpop.f32.mrb[67].mxu0  ;;  %v9801_v28 = vadd.f32 %v9784_v14, %v9775_v32  ;;  %v9802_v48 = vadd.f32 %v9788_v20, %v9776_v46 }
 0x56b   : > { %v9516_v42 = vpop.f32.mrb[67].mxu1  ;;  %v9514_v60 = vadd.f32 %v9513_v39, %v9473_v61 }
 0x56c   : > { %vm9805_vm0 = vcmp.ge.f32.partialorder %v9801_v28, 0.0  ;;  %vm9806_vm1 = vcmp.ge.f32.partialorder %v9802_v48, 0.0  ;;  %v9809_v38 = vmul.f32 0.1, %v9801_v28  ;;  %v9810_v61 = vmul.f32 0.1, %v9802_v48 }
 0x56e   : > { %v9813_v62 = vsel %vm9805_vm0, %v9801_v28, %v9809_v38 }
 0x56f   : > { %9817 = vst [vmem:[%s14645_s26] sm:$0xff] %v9813_v62 }
 0x5a7   : > { %v9552_v40 = vpop.f32.mrb[68].mxu0 }
 0x5a8   : > { %v9593_v0 = vpop.f32.mrb[68].mxu1  ;;  %v9553_v43 = vadd.f32 %v9552_v40, %v9512_v50  ;;  %v9554_v8 = vpop.f32.mrb[69].mxu0  ;;  %v9814_v50 = vsel %vm9806_vm1, %v9802_v48, %v9810_v61 }
 0x5a9   : > { %v9595_v19 = vpop.f32.mrb[69].mxu1  ;;  %v9555_v57 = vadd.f32 %v9554_v8, %v9514_v60  ;;  %v9556_v10 = vpop.f32.mrb[70].mxu0  ;;  %9818 = vst [vmem:[%s14645_s26 + $0x8] sm:$0xff] %v9814_v50 }
 0x5aa   : > { %v9597_v4 = vpop.f32.mrb[70].mxu1  ;;  %v9594_v5 = vadd.f32 %v9593_v0, %v9553_v43  ;;  %v9557_v34 = vpop.f32.mrb[71].mxu0 }
 0x5ab   : > { %v9598_v41 = vpop.f32.mrb[71].mxu1  ;;  %v9596_v1 = vadd.f32 %v9595_v19, %v9555_v57 }
 0x5e7   : > { %v9634_v51 = vpop.f32.mrb[72].mxu0 }
 0x5e8   : > { %v9675_v47 = vpop.f32.mrb[72].mxu1  ;;  %v9635_v52 = vadd.f32 %v9634_v51, %v9594_v5  ;;  %v9636_v6 = vpop.f32.mrb[73].mxu0 }
 0x5e9   : > { %v9677_v12 = vpop.f32.mrb[73].mxu1  ;;  %v9637_v36 = vadd.f32 %v9636_v6, %v9596_v1  ;;  %v9638_v37 = vpop.f32.mrb[74].mxu0 }
 0x5ea   : > { %v9679_v56 = vpop.f32.mrb[74].mxu1  ;;  %v9676_v9 = vadd.f32 %v9675_v47, %v9635_v52  ;;  %v9639_v13 = vpop.f32.mrb[75].mxu0 }
 0x5eb   : > { %v9680_v18 = vpop.f32.mrb[75].mxu1  ;;  %v9678_v2 = vadd.f32 %v9677_v12, %v9637_v36 }
 0x627   : > { %v9716_v29 = vpop.f32.mrb[76].mxu0 }
 0x628   : > { %v9757_v11 = vpop.f32.mrb[76].mxu1  ;;  %v9717_v26 = vadd.f32 %v9716_v29, %v9676_v9  ;;  %v9718_v27 = vpop.f32.mrb[77].mxu0 }
 0x629   : > { %v9759_v49 = vpop.f32.mrb[77].mxu1  ;;  %v9719_v23 = vadd.f32 %v9718_v27, %v9678_v2  ;;  %v9720_v30 = vpop.f32.mrb[78].mxu0 }
 0x62a   : > { %v9761_v31 = vpop.f32.mrb[78].mxu1  ;;  %v9758_v16 = vadd.f32 %v9757_v11, %v9717_v26  ;;  %v9721_v17 = vpop.f32.mrb[79].mxu0 }
 0x62b   : > { %v9762_v59 = vpop.f32.mrb[79].mxu1  ;;  %v9760_v7 = vadd.f32 %v9759_v49, %v9719_v23 }
 0x62c   : > { %v9766_v55 = vadd.f32 %v9758_v16, %v14816_v25 }
 0x62d   : > { %9771 = vst [vmem:[%s14645_s26 + $0x18] sm:$0xff] %v9760_v7  ;;  %v9804_v15 = vadd.f32 %v9796_v22, %v9760_v7 }
 0x62e   : > { %9770 = vst [vmem:[%s14645_s26 + $0x10] sm:$0xff] %v9766_v55 }
 0x62f   : > { %v9812_v39 = vmul.f32 0.1, %v9804_v15  ;;  %vm9808_vm3 = vcmp.ge.f32.partialorder %v9804_v15, 0.0 }
 0x631   : > { %v9816_v42 = vsel %vm9808_vm3, %v9804_v15, %v9812_v39 }
 0x632   : > { %9820 = vst [vmem:[%s14645_s26 + $0x18] sm:$0xff] %v9816_v42 }
 0x635   : > { %v9777_v33 = vld [vmem:[%s14645_s26 + $0x10] sm:$0xff] }
 0x636   : > { %v9803_v25 = vadd.f32 %v9792_v21, %v9777_v33 }
 0x638   : > { %vm9807_vm2 = vcmp.ge.f32.partialorder %v9803_v25, 0.0  ;;  %v9811_v53 = vmul.f32 0.1, %v9803_v25 }
 0x63a   : > { %v9815_v54 = vsel %vm9807_vm2, %v9803_v25, %v9811_v53 }
 0x63b   : > { %9819 = vst [vmem:[%s14645_s26 + $0x10] sm:$0xff] %v9815_v54 }
 0x63c PF: > { %s19_s17 = sadd.s32 1, %s13416_s17   ;;  %s15340_s12 = smov %s13400_s13 }
 0x63d   : > { %p16_p9 = scmp.ge.s32.totalorder %s19_s17, 4   ;;  %s15341_s13 = smov %s13404_s14 }
 0x63e   : > { %s15342_s14 = smov %s13489_s23  ;;  %s15343_s15 = smov %s13412_s16 }
 0x63f   : > { %s15344_s16 = smov %s15346_s19  ;;  %18 = sbr.rel (!%p16_p9) target bundleno = 6 (0x6), region = 96 }
 0x646   :  { %9843 = vsyncpa [#allocation3], 1 }
 0x647   :  { %9845 = vsyncpa [#allocation3 + $0x1], 1 }
 0x648   :  { %9846 = vsyncpa [#allocation5], 1 }
 0x649   :  { %9848 = vsyncpa [#allocation5 + $0x1], 1 }

</bundles_post_ra>
